<compile_context>
chip_gen: v7x
topology: tpu7x:2x2x1
jax: 0.10.0
libtpu: 0.0.40
codegen_flags: <defaults>
</compile_context>

<pallas_src>
import jax
import jax.numpy as jnp
from jax.experimental import pallas as pl
from jax.experimental.pallas import tpu as pltpu

EMBED_DIM = 300   # fixed by the module: self.embedding = 300
NUM_HEADS = 2     # fixed by the module: nhead=2
LN_EPS = 1e-5

_VMEM_SPEC = pl.BlockSpec(memory_space=pltpu.MemorySpace.VMEM)


# -------------------------------- Pallas kernel -------------------------------- #
def transformer_classifier_kernel(
        x_ref, pool_ref,
        wq_ref, wk_ref, wv_ref, bq_ref, bk_ref, bv_ref,
        wo_ref, bo_ref,
        ln1w_ref, ln1b_ref, ln2w_ref, ln2b_ref,
        w1_ref, b1_ref, w2_ref, b2_ref,
        wc_ref, bc_ref,
        out_ref,
        head_s):
    """Fused encoder stack + mean pooling + classifier.

    x_ref   : (N, E)  token embeddings, N = B*T (row index b*T + t)   VMEM
    pool_ref: (B, N)  mean-pooling matrix (1/T on own tokens)          VMEM
    wq/wk/wv: (L, H, E, Dh)   bq/bk/bv: (L, H, 1, Dh)                  per-head in-proj
    wo      : (L, H, Dh, E)   bo: (L, 1, E)                            per-head out-proj
    ln*w/b  : (L, 1, E)                                                LayerNorm params
    w1,b1   : (L, E, F), (L, 1, F)   w2,b2: (L, F, E), (L, 1, E)       feed-forward
    wc,bc   : (E, C), (1, C)                                           classifier
    out_ref : (B, C)  logits
    head_s  : (N, Dh) scratch holding one head's attention output
    """
    N, E = x_ref.shape
    B = pool_ref.shape[0]
    T = N // B
    L, H, _, Dh = wq_ref.shape
    scale = 1.0 / float(Dh) ** 0.5

    def layer_norm(y, gamma, beta):
        mu = jnp.mean(y, axis=-1, keepdims=True)
        c = y - mu
        var = jnp.mean(c * c, axis=-1, keepdims=True)
        return c * jax.lax.rsqrt(var + LN_EPS) * gamma + beta

    h = x_ref[...]                                       # (N, E) activations stay on-chip
    for l in range(L):                                   # static -> fully unrolled
        # ---------------- multi-head self-attention (post-norm) ----------------
        attn = jnp.zeros((N, E), jnp.float32)
        for hd in range(H):                              # static -> fully unrolled
            q = jnp.dot(h, wq_ref[l, hd], preferred_element_type=jnp.float32) + bq_ref[l, hd]
            k = jnp.dot(h, wk_ref[l, hd], preferred_element_type=jnp.float32) + bk_ref[l, hd]
            v = jnp.dot(h, wv_ref[l, hd], preferred_element_type=jnp.float32) + bv_ref[l, hd]
            q = q * scale
            for b in range(B):                           # static -> fully unrolled
                rows = slice(b * T, (b + 1) * T)         # sublane-aligned row block
                s = jax.lax.dot_general(                 # (T, T) = q @ k.T
                    q[rows, :], k[rows, :],
                    (((1,), (1,)), ((), ())),
                    preferred_element_type=jnp.float32)
                s = s - jnp.max(s, axis=-1, keepdims=True)
                p = jnp.exp(s)
                p = p / jnp.sum(p, axis=-1, keepdims=True)
                head_s[rows, :] = jnp.dot(p, v[rows, :],
                                          preferred_element_type=jnp.float32)
            # concat(heads) @ Wo  ==  sum_h head_h @ Wo_h  -> accumulate per head
            attn = attn + jnp.dot(head_s[...], wo_ref[l, hd],
                                  preferred_element_type=jnp.float32)
        attn = attn + bo_ref[l]
        h = layer_norm(h + attn, ln1w_ref[l], ln1b_ref[l])   # dropout = identity (eval)
        # ------------------------------ feed-forward ---------------------------
        ff = jnp.dot(h, w1_ref[l], preferred_element_type=jnp.float32) + b1_ref[l]
        ff = jnp.maximum(ff, 0.0)                            # ReLU
        ff = jnp.dot(ff, w2_ref[l], preferred_element_type=jnp.float32) + b2_ref[l]
        h = layer_norm(h + ff, ln2w_ref[l], ln2b_ref[l])

    # ------------- mean pool over time (one matmul) + classifier ---------------
    pooled = jnp.dot(pool_ref[...], h, preferred_element_type=jnp.float32)      # (B, E)
    out_ref[...] = (jnp.dot(pooled, wc_ref[...], preferred_element_type=jnp.float32)
                    + bc_ref[...])


# ---------------------------------- wrapper ------------------------------------ #
def seq_classifier_forward(params, batch_ids):
    B, T = batch_ids.shape
    E = EMBED_DIM
    # embedding lookup (glue, plain JAX gather) + flatten to (B*T, E)
    x = params["embedding"][batch_ids].reshape(B * T, E)
    # mean-pooling matrix: row b has 1/T over its own T token rows
    pool = jnp.repeat(jnp.eye(B, dtype=jnp.float32), T, axis=1) / float(T)     # (B, B*T)

    args = (x, pool,
            params["wq"], params["wk"], params["wv"],
            params["bq"], params["bk"], params["bv"],
            params["wo"], params["bo"],
            params["ln1w"], params["ln1b"], params["ln2w"], params["ln2b"],
            params["w1"], params["b1"], params["w2"], params["b2"],
            params["cls_w"], params["cls_b"])

    L, H, _, Dh = params["wq"].shape
    F = params["w1"].shape[2]
    C = params["cls_w"].shape[1]
    N = B * T
    flops = L * (6 * N * E * Dh * H          # q,k,v projections
                 + 4 * B * H * T * T * Dh    # scores + weighted sum
                 + 2 * H * N * Dh * E        # out-projection
                 + 4 * N * E * F)            # feed-forward
    flops += 2 * B * N * E + 2 * B * E * C   # pooling + classifier
    transcendentals = L * (B * H * T * T + 2 * N)
    bytes_accessed = 4 * (sum(int(a.size) for a in args) + B * C)

    return pl.pallas_call(
        transformer_classifier_kernel,
        out_shape=jax.ShapeDtypeStruct((B, C), jnp.float32),
        in_specs=[_VMEM_SPEC] * len(args),
        out_specs=_VMEM_SPEC,
        scratch_shapes=[pltpu.VMEM((N, Dh), jnp.float32)],
        cost_estimate=pl.CostEstimate(flops=flops,
                                      transcendentals=transcendentals,
                                      bytes_accessed=bytes_accessed),
    )(*args)


# --------------------------- parameter construction ---------------------------- #
def init_params(key, vocab, hidden_size, num_layers, num_class):
    E, H = EMBED_DIM, NUM_HEADS
    Dh = E // H
    F, L = hidden_size, num_layers
    ke_scale = 1.0 / (E ** 0.5)
    kd_scale = 1.0 / (Dh ** 0.5)
    kf_scale = 1.0 / (F ** 0.5)

    def u(k, shape, s):
        return jax.random.uniform(k, shape, jnp.float32, -s, s)

    key, ke = jax.random.split(key)
    p = {"embedding": 0.1 * jax.random.normal(ke, (vocab, E), jnp.float32)}

    key, *sub = jax.random.split(key, 13)
    p["wq"] = u(sub[0], (L, H, E, Dh), ke_scale)
    p["wk"] = u(sub[1], (L, H, E, Dh), ke_scale)
    p["wv"] = u(sub[2], (L, H, E, Dh), ke_scale)
    p["bq"] = u(sub[3], (L, H, 1, Dh), ke_scale)
    p["bk"] = u(sub[4], (L, H, 1, Dh), ke_scale)
    p["bv"] = u(sub[5], (L, H, 1, Dh), ke_scale)
    p["wo"] = u(sub[6], (L, H, Dh, E), kd_scale)
    p["bo"] = u(sub[7], (L, 1, E), kd_scale)
    p["w1"] = u(sub[8], (L, E, F), ke_scale)
    p["b1"] = u(sub[9], (L, 1, F), ke_scale)
    p["w2"] = u(sub[10], (L, F, E), kf_scale)
    p["b2"] = u(sub[11], (L, 1, E), kf_scale)
    p["ln1w"] = jnp.ones((L, 1, E), jnp.float32)
    p["ln1b"] = jnp.zeros((L, 1, E), jnp.float32)
    p["ln2w"] = jnp.ones((L, 1, E), jnp.float32)
    p["ln2b"] = jnp.zeros((L, 1, E), jnp.float32)

    key, k1, k2 = jax.random.split(key, 3)
    p["cls_w"] = u(k1, (E, num_class), ke_scale)
    p["cls_b"] = u(k2, (1, num_class), ke_scale)
    return p


# --------------------------- pure-JAX reference check --------------------------- #
def _ref_layer_norm(y, gamma, beta):
    mu = y.mean(axis=-1, keepdims=True)
    c = y - mu
    var = (c * c).mean(axis=-1, keepdims=True)
    return c / jnp.sqrt(var + LN_EPS) * gamma + beta


def ref_forward(params, batch_ids):
    x = params["embedding"][batch_ids]                       # (B, T, E)
    L, H, _, Dh = params["wq"].shape
    h = x
    for l in range(L):
        attn = jnp.zeros_like(h)
        for hd in range(H):
            q = h @ params["wq"][l, hd] + params["bq"][l, hd]
            k = h @ params["wk"][l, hd] + params["bk"][l, hd]
            v = h @ params["wv"][l, hd] + params["bv"][l, hd]
            s = jnp.einsum("btd,bsd->bts", q, k) / jnp.sqrt(float(Dh))
            a = jax.nn.softmax(s, axis=-1)
            o = jnp.einsum("bts,bsd->btd", a, v)
            attn = attn + o @ params["wo"][l, hd]
        attn = attn + params["bo"][l]
        h = _ref_layer_norm(h + attn, params["ln1w"][l], params["ln1b"][l])
        ff = jax.nn.relu(h @ params["w1"][l] + params["b1"][l]) @ params["w2"][l] + params["b2"][l]
        h = _ref_layer_norm(h + ff, params["ln2w"][l], params["ln2b"][l])
    pooled = h.mean(axis=1)                                  # mean over time, matches out.mean(dim=1)
    return pooled @ params["cls_w"] + params["cls_b"]


# ------------------------------------- main ------------------------------------- #
if __name__ == "__main__":
    VOCAB = 50
    HIDDEN = 32        # dim_feedforward of the encoder layer
    NUM_LAYERS = 2
    NUM_CLASS = 8
    BATCH = 2
    SEQ = 8

    key = jax.random.PRNGKey(0)
    key, pkey, ikey = jax.random.split(key, 3)
    params = init_params(pkey, VOCAB, HIDDEN, NUM_LAYERS, NUM_CLASS)
    batch_ids = jax.random.randint(ikey, (BATCH, SEQ), 0, VOCAB, dtype=jnp.int32)

    logits = jax.block_until_ready(seq_classifier_forward(params, batch_ids))
    ref = jax.block_until_ready(ref_forward(params, batch_ids))

    assert logits.shape == (BATCH, NUM_CLASS), logits.shape
    err = float(jnp.max(jnp.abs(logits - ref)))
    assert err < 2e-3, f"mismatch vs pure-JAX reference, max abs err={err}"

    print("KERNEL_OK")
</pallas_src>

<mosaic_0001>
module attributes {stable_mosaic.version = 11 : i64} {
  func.func @transformer_classifier_kernel(%arg0: memref<16x300xf32, #tpu.memory_space<vmem>>, %arg1: memref<2x16xf32, #tpu.memory_space<vmem>>, %arg2: memref<2x2x300x150xf32, #tpu.memory_space<vmem>>, %arg3: memref<2x2x300x150xf32, #tpu.memory_space<vmem>>, %arg4: memref<2x2x300x150xf32, #tpu.memory_space<vmem>>, %arg5: memref<2x2x1x150xf32, #tpu.memory_space<vmem>>, %arg6: memref<2x2x1x150xf32, #tpu.memory_space<vmem>>, %arg7: memref<2x2x1x150xf32, #tpu.memory_space<vmem>>, %arg8: memref<2x2x150x300xf32, #tpu.memory_space<vmem>>, %arg9: memref<2x1x300xf32, #tpu.memory_space<vmem>>, %arg10: memref<2x1x300xf32, #tpu.memory_space<vmem>>, %arg11: memref<2x1x300xf32, #tpu.memory_space<vmem>>, %arg12: memref<2x1x300xf32, #tpu.memory_space<vmem>>, %arg13: memref<2x1x300xf32, #tpu.memory_space<vmem>>, %arg14: memref<2x300x32xf32, #tpu.memory_space<vmem>>, %arg15: memref<2x1x32xf32, #tpu.memory_space<vmem>>, %arg16: memref<2x32x300xf32, #tpu.memory_space<vmem>>, %arg17: memref<2x1x300xf32, #tpu.memory_space<vmem>>, %arg18: memref<300x8xf32, #tpu.memory_space<vmem>>, %arg19: memref<1x8xf32, #tpu.memory_space<vmem>>, %arg20: memref<2x8xf32, #tpu.memory_space<vmem>>, %arg21: memref<16x150xf32, #tpu.memory_space<vmem>>) attributes {dimension_semantics = [], scalar_prefetch = 0 : i64, scratch_operands = 1 : i64, tpu.core_type = #tpu.core_type<tc>} {
    %c0 = arith.constant 0 : index
    %c0_0 = arith.constant 0 : index
    %0 = vector.load %arg0[%c0, %c0_0] : memref<16x300xf32, #tpu.memory_space<vmem>>, vector<16x300xf32>
    %cst = arith.constant 0.000000e+00 : f32
    %1 = vector.broadcast %cst : f32 to vector<16x300xf32>
    %c0_1 = arith.constant 0 : index
    %c0_2 = arith.constant 0 : index
    %c0_3 = arith.constant 0 : index
    %c0_4 = arith.constant 0 : index
    %2 = vector.load %arg2[%c0_1, %c0_2, %c0_3, %c0_4] : memref<2x2x300x150xf32, #tpu.memory_space<vmem>>, vector<1x1x300x150xf32>
    %3 = vector.shape_cast %2 : vector<1x1x300x150xf32> to vector<300x150xf32>
    %cst_5 = arith.constant dense<0.000000e+00> : vector<16x150xf32>
    %4 = tpu.matmul %0, %3, %cst_5 {dimension_numbers = #tpu.dot_dimension_numbers<[1], [0], [0], [1], [0, 0, 1, 1], [], []>} : vector<16x300xf32>, vector<300x150xf32>, vector<16x150xf32> -> vector<16x150xf32>
    %c0_6 = arith.constant 0 : index
    %c0_7 = arith.constant 0 : index
    %c0_8 = arith.constant 0 : index
    %c0_9 = arith.constant 0 : index
    %5 = vector.load %arg5[%c0_6, %c0_7, %c0_8, %c0_9] : memref<2x2x1x150xf32, #tpu.memory_space<vmem>>, vector<1x1x1x150xf32>
    %6 = vector.shape_cast %5 : vector<1x1x1x150xf32> to vector<1x150xf32>
    %7 = vector.broadcast %6 : vector<1x150xf32> to vector<16x150xf32>
    %8 = arith.addf %4, %7 : vector<16x150xf32>
    %c0_10 = arith.constant 0 : index
    %c0_11 = arith.constant 0 : index
    %c0_12 = arith.constant 0 : index
    %c0_13 = arith.constant 0 : index
    %9 = vector.load %arg3[%c0_10, %c0_11, %c0_12, %c0_13] : memref<2x2x300x150xf32, #tpu.memory_space<vmem>>, vector<1x1x300x150xf32>
    %10 = vector.shape_cast %9 : vector<1x1x300x150xf32> to vector<300x150xf32>
    %cst_14 = arith.constant dense<0.000000e+00> : vector<16x150xf32>
    %11 = tpu.matmul %0, %10, %cst_14 {dimension_numbers = #tpu.dot_dimension_numbers<[1], [0], [0], [1], [0, 0, 1, 1], [], []>} : vector<16x300xf32>, vector<300x150xf32>, vector<16x150xf32> -> vector<16x150xf32>
    %c0_15 = arith.constant 0 : index
    %c0_16 = arith.constant 0 : index
    %c0_17 = arith.constant 0 : index
    %c0_18 = arith.constant 0 : index
    %12 = vector.load %arg6[%c0_15, %c0_16, %c0_17, %c0_18] : memref<2x2x1x150xf32, #tpu.memory_space<vmem>>, vector<1x1x1x150xf32>
    %13 = vector.shape_cast %12 : vector<1x1x1x150xf32> to vector<1x150xf32>
    %14 = vector.broadcast %13 : vector<1x150xf32> to vector<16x150xf32>
    %15 = arith.addf %11, %14 : vector<16x150xf32>
    %c0_19 = arith.constant 0 : index
    %c0_20 = arith.constant 0 : index
    %c0_21 = arith.constant 0 : index
    %c0_22 = arith.constant 0 : index
    %16 = vector.load %arg4[%c0_19, %c0_20, %c0_21, %c0_22] : memref<2x2x300x150xf32, #tpu.memory_space<vmem>>, vector<1x1x300x150xf32>
    %17 = vector.shape_cast %16 : vector<1x1x300x150xf32> to vector<300x150xf32>
    %cst_23 = arith.constant dense<0.000000e+00> : vector<16x150xf32>
    %18 = tpu.matmul %0, %17, %cst_23 {dimension_numbers = #tpu.dot_dimension_numbers<[1], [0], [0], [1], [0, 0, 1, 1], [], []>} : vector<16x300xf32>, vector<300x150xf32>, vector<16x150xf32> -> vector<16x150xf32>
    %c0_24 = arith.constant 0 : index
    %c0_25 = arith.constant 0 : index
    %c0_26 = arith.constant 0 : index
    %c0_27 = arith.constant 0 : index
    %19 = vector.load %arg7[%c0_24, %c0_25, %c0_26, %c0_27] : memref<2x2x1x150xf32, #tpu.memory_space<vmem>>, vector<1x1x1x150xf32>
    %20 = vector.shape_cast %19 : vector<1x1x1x150xf32> to vector<1x150xf32>
    %21 = vector.broadcast %20 : vector<1x150xf32> to vector<16x150xf32>
    %22 = arith.addf %18, %21 : vector<16x150xf32>
    %cst_28 = arith.constant 0.0816496611 : f32
    %23 = vector.broadcast %cst_28 : f32 to vector<16x150xf32>
    %24 = arith.mulf %8, %23 : vector<16x150xf32>
    %25 = vector.extract_strided_slice %24 {offsets = [0, 0], sizes = [8, 150], strides = [1, 1]} : vector<16x150xf32> to vector<8x150xf32>
    %26 = vector.extract_strided_slice %15 {offsets = [0, 0], sizes = [8, 150], strides = [1, 1]} : vector<16x150xf32> to vector<8x150xf32>
    %cst_29 = arith.constant dense<0.000000e+00> : vector<8x8xf32>
    %27 = tpu.matmul %25, %26, %cst_29 {dimension_numbers = #tpu.dot_dimension_numbers<[1], [1], [0], [0], [0, 0, 1, 0], [], []>} : vector<8x150xf32>, vector<8x150xf32>, vector<8x8xf32> -> vector<8x8xf32>
    %cst_30 = arith.constant dense<0xFF800000> : vector<8xf32>
    %28 = vector.multi_reduction <maximumf>, %27, %cst_30 [1] : vector<8x8xf32> to vector<8xf32>
    %29 = vector.shape_cast %28 : vector<8xf32> to vector<8x1xf32>
    %30 = vector.broadcast %29 : vector<8x1xf32> to vector<8x8xf32>
    %31 = arith.subf %27, %30 : vector<8x8xf32>
    %32 = math.exp %31 : vector<8x8xf32>
    %cst_31 = arith.constant dense<0.000000e+00> : vector<8xf32>
    %33 = vector.multi_reduction <add>, %32, %cst_31 [1] : vector<8x8xf32> to vector<8xf32>
    %34 = vector.shape_cast %33 : vector<8xf32> to vector<8x1xf32>
    %35 = vector.broadcast %34 : vector<8x1xf32> to vector<8x8xf32>
    %36 = arith.divf %32, %35 : vector<8x8xf32>
    %37 = vector.extract_strided_slice %22 {offsets = [0, 0], sizes = [8, 150], strides = [1, 1]} : vector<16x150xf32> to vector<8x150xf32>
    %cst_32 = arith.constant dense<0.000000e+00> : vector<8x150xf32>
    %38 = tpu.matmul %36, %37, %cst_32 {dimension_numbers = #tpu.dot_dimension_numbers<[1], [0], [0], [1], [0, 0, 1, 1], [], []>} : vector<8x8xf32>, vector<8x150xf32>, vector<8x150xf32> -> vector<8x150xf32>
    %c0_33 = arith.constant 0 : index
    %c0_34 = arith.constant 0 : index
    %39 = vector.load %arg21[%c0_33, %c0_34] : memref<16x150xf32, #tpu.memory_space<vmem>>, vector<8x150xf32>
    tpu.vector_store %arg21[%c0_33, %c0_34], %38 {strides = array<i32>} : memref<16x150xf32, #tpu.memory_space<vmem>>, vector<8x150xf32>,
    %40 = vector.extract_strided_slice %24 {offsets = [8, 0], sizes = [8, 150], strides = [1, 1]} : vector<16x150xf32> to vector<8x150xf32>
    %41 = vector.extract_strided_slice %15 {offsets = [8, 0], sizes = [8, 150], strides = [1, 1]} : vector<16x150xf32> to vector<8x150xf32>
    %cst_35 = arith.constant dense<0.000000e+00> : vector<8x8xf32>
    %42 = tpu.matmul %40, %41, %cst_35 {dimension_numbers = #tpu.dot_dimension_numbers<[1], [1], [0], [0], [0, 0, 1, 0], [], []>} : vector<8x150xf32>, vector<8x150xf32>, vector<8x8xf32> -> vector<8x8xf32>
    %cst_36 = arith.constant dense<0xFF800000> : vector<8xf32>
    %43 = vector.multi_reduction <maximumf>, %42, %cst_36 [1] : vector<8x8xf32> to vector<8xf32>
    %44 = vector.shape_cast %43 : vector<8xf32> to vector<8x1xf32>
    %45 = vector.broadcast %44 : vector<8x1xf32> to vector<8x8xf32>
    %46 = arith.subf %42, %45 : vector<8x8xf32>
    %47 = math.exp %46 : vector<8x8xf32>
    %cst_37 = arith.constant dense<0.000000e+00> : vector<8xf32>
    %48 = vector.multi_reduction <add>, %47, %cst_37 [1] : vector<8x8xf32> to vector<8xf32>
    %49 = vector.shape_cast %48 : vector<8xf32> to vector<8x1xf32>
    %50 = vector.broadcast %49 : vector<8x1xf32> to vector<8x8xf32>
    %51 = arith.divf %47, %50 : vector<8x8xf32>
    %52 = vector.extract_strided_slice %22 {offsets = [8, 0], sizes = [8, 150], strides = [1, 1]} : vector<16x150xf32> to vector<8x150xf32>
    %cst_38 = arith.constant dense<0.000000e+00> : vector<8x150xf32>
    %53 = tpu.matmul %51, %52, %cst_38 {dimension_numbers = #tpu.dot_dimension_numbers<[1], [0], [0], [1], [0, 0, 1, 1], [], []>} : vector<8x8xf32>, vector<8x150xf32>, vector<8x150xf32> -> vector<8x150xf32>
    %c8 = arith.constant 8 : index
    %c0_39 = arith.constant 0 : index
    %54 = vector.load %arg21[%c8, %c0_39] : memref<16x150xf32, #tpu.memory_space<vmem>>, vector<8x150xf32>
    tpu.vector_store %arg21[%c8, %c0_39], %53 {strides = array<i32>} : memref<16x150xf32, #tpu.memory_space<vmem>>, vector<8x150xf32>,
    %c0_40 = arith.constant 0 : index
    %c0_41 = arith.constant 0 : index
    %55 = vector.load %arg21[%c0_40, %c0_41] : memref<16x150xf32, #tpu.memory_space<vmem>>, vector<16x150xf32>
    %c0_42 = arith.constant 0 : index
    %c0_43 = arith.constant 0 : index
    %c0_44 = arith.constant 0 : index
    %c0_45 = arith.constant 0 : index
    %56 = vector.load %arg8[%c0_42, %c0_43, %c0_44, %c0_45] : memref<2x2x150x300xf32, #tpu.memory_space<vmem>>, vector<1x1x150x300xf32>
    %57 = vector.shape_cast %56 : vector<1x1x150x300xf32> to vector<150x300xf32>
    %cst_46 = arith.constant dense<0.000000e+00> : vector<16x300xf32>
    %58 = tpu.matmul %55, %57, %cst_46 {dimension_numbers = #tpu.dot_dimension_numbers<[1], [0], [0], [1], [0, 0, 1, 1], [], []>} : vector<16x150xf32>, vector<150x300xf32>, vector<16x300xf32> -> vector<16x300xf32>
    %59 = arith.addf %1, %58 : vector<16x300xf32>
    %c0_47 = arith.constant 0 : index
    %c1 = arith.constant 1 : index
    %c0_48 = arith.constant 0 : index
    %c0_49 = arith.constant 0 : index
    %60 = vector.load %arg2[%c0_47, %c1, %c0_48, %c0_49] : memref<2x2x300x150xf32, #tpu.memory_space<vmem>>, vector<1x1x300x150xf32>
    %61 = vector.shape_cast %60 : vector<1x1x300x150xf32> to vector<300x150xf32>
    %cst_50 = arith.constant dense<0.000000e+00> : vector<16x150xf32>
    %62 = tpu.matmul %0, %61, %cst_50 {dimension_numbers = #tpu.dot_dimension_numbers<[1], [0], [0], [1], [0, 0, 1, 1], [], []>} : vector<16x300xf32>, vector<300x150xf32>, vector<16x150xf32> -> vector<16x150xf32>
    %c0_51 = arith.constant 0 : index
    %c1_52 = arith.constant 1 : index
    %c0_53 = arith.constant 0 : index
    %c0_54 = arith.constant 0 : index
    %63 = vector.load %arg5[%c0_51, %c1_52, %c0_53, %c0_54] : memref<2x2x1x150xf32, #tpu.memory_space<vmem>>, vector<1x1x1x150xf32>
    %64 = vector.shape_cast %63 : vector<1x1x1x150xf32> to vector<1x150xf32>
    %65 = vector.broadcast %64 : vector<1x150xf32> to vector<16x150xf32>
    %66 = arith.addf %62, %65 : vector<16x150xf32>
    %c0_55 = arith.constant 0 : index
    %c1_56 = arith.constant 1 : index
    %c0_57 = arith.constant 0 : index
    %c0_58 = arith.constant 0 : index
    %67 = vector.load %arg3[%c0_55, %c1_56, %c0_57, %c0_58] : memref<2x2x300x150xf32, #tpu.memory_space<vmem>>, vector<1x1x300x150xf32>
    %68 = vector.shape_cast %67 : vector<1x1x300x150xf32> to vector<300x150xf32>
    %cst_59 = arith.constant dense<0.000000e+00> : vector<16x150xf32>
    %69 = tpu.matmul %0, %68, %cst_59 {dimension_numbers = #tpu.dot_dimension_numbers<[1], [0], [0], [1], [0, 0, 1, 1], [], []>} : vector<16x300xf32>, vector<300x150xf32>, vector<16x150xf32> -> vector<16x150xf32>
    %c0_60 = arith.constant 0 : index
    %c1_61 = arith.constant 1 : index
    %c0_62 = arith.constant 0 : index
    %c0_63 = arith.constant 0 : index
    %70 = vector.load %arg6[%c0_60, %c1_61, %c0_62, %c0_63] : memref<2x2x1x150xf32, #tpu.memory_space<vmem>>, vector<1x1x1x150xf32>
    %71 = vector.shape_cast %70 : vector<1x1x1x150xf32> to vector<1x150xf32>
    %72 = vector.broadcast %71 : vector<1x150xf32> to vector<16x150xf32>
    %73 = arith.addf %69, %72 : vector<16x150xf32>
    %c0_64 = arith.constant 0 : index
    %c1_65 = arith.constant 1 : index
    %c0_66 = arith.constant 0 : index
    %c0_67 = arith.constant 0 : index
    %74 = vector.load %arg4[%c0_64, %c1_65, %c0_66, %c0_67] : memref<2x2x300x150xf32, #tpu.memory_space<vmem>>, vector<1x1x300x150xf32>
    %75 = vector.shape_cast %74 : vector<1x1x300x150xf32> to vector<300x150xf32>
    %cst_68 = arith.constant dense<0.000000e+00> : vector<16x150xf32>
    %76 = tpu.matmul %0, %75, %cst_68 {dimension_numbers = #tpu.dot_dimension_numbers<[1], [0], [0], [1], [0, 0, 1, 1], [], []>} : vector<16x300xf32>, vector<300x150xf32>, vector<16x150xf32> -> vector<16x150xf32>
    %c0_69 = arith.constant 0 : index
    %c1_70 = arith.constant 1 : index
    %c0_71 = arith.constant 0 : index
    %c0_72 = arith.constant 0 : index
    %77 = vector.load %arg7[%c0_69, %c1_70, %c0_71, %c0_72] : memref<2x2x1x150xf32, #tpu.memory_space<vmem>>, vector<1x1x1x150xf32>
    %78 = vector.shape_cast %77 : vector<1x1x1x150xf32> to vector<1x150xf32>
    %79 = vector.broadcast %78 : vector<1x150xf32> to vector<16x150xf32>
    %80 = arith.addf %76, %79 : vector<16x150xf32>
    %cst_73 = arith.constant 0.0816496611 : f32
    %81 = vector.broadcast %cst_73 : f32 to vector<16x150xf32>
    %82 = arith.mulf %66, %81 : vector<16x150xf32>
    %83 = vector.extract_strided_slice %82 {offsets = [0, 0], sizes = [8, 150], strides = [1, 1]} : vector<16x150xf32> to vector<8x150xf32>
    %84 = vector.extract_strided_slice %73 {offsets = [0, 0], sizes = [8, 150], strides = [1, 1]} : vector<16x150xf32> to vector<8x150xf32>
    %cst_74 = arith.constant dense<0.000000e+00> : vector<8x8xf32>
    %85 = tpu.matmul %83, %84, %cst_74 {dimension_numbers = #tpu.dot_dimension_numbers<[1], [1], [0], [0], [0, 0, 1, 0], [], []>} : vector<8x150xf32>, vector<8x150xf32>, vector<8x8xf32> -> vector<8x8xf32>
    %cst_75 = arith.constant dense<0xFF800000> : vector<8xf32>
    %86 = vector.multi_reduction <maximumf>, %85, %cst_75 [1] : vector<8x8xf32> to vector<8xf32>
    %87 = vector.shape_cast %86 : vector<8xf32> to vector<8x1xf32>
    %88 = vector.broadcast %87 : vector<8x1xf32> to vector<8x8xf32>
    %89 = arith.subf %85, %88 : vector<8x8xf32>
    %90 = math.exp %89 : vector<8x8xf32>
    %cst_76 = arith.constant dense<0.000000e+00> : vector<8xf32>
    %91 = vector.multi_reduction <add>, %90, %cst_76 [1] : vector<8x8xf32> to vector<8xf32>
    %92 = vector.shape_cast %91 : vector<8xf32> to vector<8x1xf32>
    %93 = vector.broadcast %92 : vector<8x1xf32> to vector<8x8xf32>
    %94 = arith.divf %90, %93 : vector<8x8xf32>
    %95 = vector.extract_strided_slice %80 {offsets = [0, 0], sizes = [8, 150], strides = [1, 1]} : vector<16x150xf32> to vector<8x150xf32>
    %cst_77 = arith.constant dense<0.000000e+00> : vector<8x150xf32>
    %96 = tpu.matmul %94, %95, %cst_77 {dimension_numbers = #tpu.dot_dimension_numbers<[1], [0], [0], [1], [0, 0, 1, 1], [], []>} : vector<8x8xf32>, vector<8x150xf32>, vector<8x150xf32> -> vector<8x150xf32>
    %c0_78 = arith.constant 0 : index
    %c0_79 = arith.constant 0 : index
    %97 = vector.load %arg21[%c0_78, %c0_79] : memref<16x150xf32, #tpu.memory_space<vmem>>, vector<8x150xf32>
    tpu.vector_store %arg21[%c0_78, %c0_79], %96 {strides = array<i32>} : memref<16x150xf32, #tpu.memory_space<vmem>>, vector<8x150xf32>,
    %98 = vector.extract_strided_slice %82 {offsets = [8, 0], sizes = [8, 150], strides = [1, 1]} : vector<16x150xf32> to vector<8x150xf32>
    %99 = vector.extract_strided_slice %73 {offsets = [8, 0], sizes = [8, 150], strides = [1, 1]} : vector<16x150xf32> to vector<8x150xf32>
    %cst_80 = arith.constant dense<0.000000e+00> : vector<8x8xf32>
    %100 = tpu.matmul %98, %99, %cst_80 {dimension_numbers = #tpu.dot_dimension_numbers<[1], [1], [0], [0], [0, 0, 1, 0], [], []>} : vector<8x150xf32>, vector<8x150xf32>, vector<8x8xf32> -> vector<8x8xf32>
    %cst_81 = arith.constant dense<0xFF800000> : vector<8xf32>
    %101 = vector.multi_reduction <maximumf>, %100, %cst_81 [1] : vector<8x8xf32> to vector<8xf32>
    %102 = vector.shape_cast %101 : vector<8xf32> to vector<8x1xf32>
    %103 = vector.broadcast %102 : vector<8x1xf32> to vector<8x8xf32>
    %104 = arith.subf %100, %103 : vector<8x8xf32>
    %105 = math.exp %104 : vector<8x8xf32>
    %cst_82 = arith.constant dense<0.000000e+00> : vector<8xf32>
    %106 = vector.multi_reduction <add>, %105, %cst_82 [1] : vector<8x8xf32> to vector<8xf32>
    %107 = vector.shape_cast %106 : vector<8xf32> to vector<8x1xf32>
    %108 = vector.broadcast %107 : vector<8x1xf32> to vector<8x8xf32>
    %109 = arith.divf %105, %108 : vector<8x8xf32>
    %110 = vector.extract_strided_slice %80 {offsets = [8, 0], sizes = [8, 150], strides = [1, 1]} : vector<16x150xf32> to vector<8x150xf32>
    %cst_83 = arith.constant dense<0.000000e+00> : vector<8x150xf32>
    %111 = tpu.matmul %109, %110, %cst_83 {dimension_numbers = #tpu.dot_dimension_numbers<[1], [0], [0], [1], [0, 0, 1, 1], [], []>} : vector<8x8xf32>, vector<8x150xf32>, vector<8x150xf32> -> vector<8x150xf32>
    %c8_84 = arith.constant 8 : index
    %c0_85 = arith.constant 0 : index
    %112 = vector.load %arg21[%c8_84, %c0_85] : memref<16x150xf32, #tpu.memory_space<vmem>>, vector<8x150xf32>
    tpu.vector_store %arg21[%c8_84, %c0_85], %111 {strides = array<i32>} : memref<16x150xf32, #tpu.memory_space<vmem>>, vector<8x150xf32>,
    %c0_86 = arith.constant 0 : index
    %c0_87 = arith.constant 0 : index
    %113 = vector.load %arg21[%c0_86, %c0_87] : memref<16x150xf32, #tpu.memory_space<vmem>>, vector<16x150xf32>
    %c0_88 = arith.constant 0 : index
    %c1_89 = arith.constant 1 : index
    %c0_90 = arith.constant 0 : index
    %c0_91 = arith.constant 0 : index
    %114 = vector.load %arg8[%c0_88, %c1_89, %c0_90, %c0_91] : memref<2x2x150x300xf32, #tpu.memory_space<vmem>>, vector<1x1x150x300xf32>
    %115 = vector.shape_cast %114 : vector<1x1x150x300xf32> to vector<150x300xf32>
    %cst_92 = arith.constant dense<0.000000e+00> : vector<16x300xf32>
    %116 = tpu.matmul %113, %115, %cst_92 {dimension_numbers = #tpu.dot_dimension_numbers<[1], [0], [0], [1], [0, 0, 1, 1], [], []>} : vector<16x150xf32>, vector<150x300xf32>, vector<16x300xf32> -> vector<16x300xf32>
    %117 = arith.addf %59, %116 : vector<16x300xf32>
    %c0_93 = arith.constant 0 : index
    %c0_94 = arith.constant 0 : index
    %c0_95 = arith.constant 0 : index
    %118 = vector.load %arg9[%c0_93, %c0_94, %c0_95] : memref<2x1x300xf32, #tpu.memory_space<vmem>>, vector<1x1x300xf32>
    %119 = vector.shape_cast %118 : vector<1x1x300xf32> to vector<1x300xf32>
    %120 = vector.broadcast %119 : vector<1x300xf32> to vector<16x300xf32>
    %121 = arith.addf %117, %120 : vector<16x300xf32>
    %122 = arith.addf %0, %121 : vector<16x300xf32>
    %c0_96 = arith.constant 0 : index
    %c0_97 = arith.constant 0 : index
    %c0_98 = arith.constant 0 : index
    %123 = vector.load %arg10[%c0_96, %c0_97, %c0_98] : memref<2x1x300xf32, #tpu.memory_space<vmem>>, vector<1x1x300xf32>
    %124 = vector.shape_cast %123 : vector<1x1x300xf32> to vector<1x300xf32>
    %c0_99 = arith.constant 0 : index
    %c0_100 = arith.constant 0 : index
    %c0_101 = arith.constant 0 : index
    %125 = vector.load %arg11[%c0_99, %c0_100, %c0_101] : memref<2x1x300xf32, #tpu.memory_space<vmem>>, vector<1x1x300xf32>
    %126 = vector.shape_cast %125 : vector<1x1x300xf32> to vector<1x300xf32>
    %cst_102 = arith.constant dense<0.000000e+00> : vector<16xf32>
    %127 = vector.multi_reduction <add>, %122, %cst_102 [1] : vector<16x300xf32> to vector<16xf32>
    %128 = vector.shape_cast %127 : vector<16xf32> to vector<16x1xf32>
    %cst_103 = arith.constant 3.000000e+02 : f32
    %129 = vector.broadcast %cst_103 : f32 to vector<16x1xf32>
    %130 = arith.divf %128, %129 : vector<16x1xf32>
    %131 = vector.broadcast %130 : vector<16x1xf32> to vector<16x300xf32>
    %132 = arith.subf %122, %131 : vector<16x300xf32>
    %133 = arith.mulf %132, %132 : vector<16x300xf32>
    %cst_104 = arith.constant dense<0.000000e+00> : vector<16xf32>
    %134 = vector.multi_reduction <add>, %133, %cst_104 [1] : vector<16x300xf32> to vector<16xf32>
    %135 = vector.shape_cast %134 : vector<16xf32> to vector<16x1xf32>
    %cst_105 = arith.constant 3.000000e+02 : f32
    %136 = vector.broadcast %cst_105 : f32 to vector<16x1xf32>
    %137 = arith.divf %135, %136 : vector<16x1xf32>
    %cst_106 = arith.constant 9.99999974E-6 : f32
    %138 = vector.broadcast %cst_106 : f32 to vector<16x1xf32>
    %139 = arith.addf %137, %138 : vector<16x1xf32>
    %140 = math.rsqrt %139 : vector<16x1xf32>
    %141 = vector.broadcast %140 : vector<16x1xf32> to vector<16x300xf32>
    %142 = arith.mulf %132, %141 : vector<16x300xf32>
    %143 = vector.broadcast %124 : vector<1x300xf32> to vector<16x300xf32>
    %144 = arith.mulf %142, %143 : vector<16x300xf32>
    %145 = vector.broadcast %126 : vector<1x300xf32> to vector<16x300xf32>
    %146 = arith.addf %144, %145 : vector<16x300xf32>
    %c0_107 = arith.constant 0 : index
    %c0_108 = arith.constant 0 : index
    %c0_109 = arith.constant 0 : index
    %147 = vector.load %arg14[%c0_107, %c0_108, %c0_109] : memref<2x300x32xf32, #tpu.memory_space<vmem>>, vector<1x300x32xf32>
    %148 = vector.shape_cast %147 : vector<1x300x32xf32> to vector<300x32xf32>
    %cst_110 = arith.constant dense<0.000000e+00> : vector<16x32xf32>
    %149 = tpu.matmul %146, %148, %cst_110 {dimension_numbers = #tpu.dot_dimension_numbers<[1], [0], [0], [1], [0, 0, 1, 1], [], []>} : vector<16x300xf32>, vector<300x32xf32>, vector<16x32xf32> -> vector<16x32xf32>
    %c0_111 = arith.constant 0 : index
    %c0_112 = arith.constant 0 : index
    %c0_113 = arith.constant 0 : index
    %150 = vector.load %arg15[%c0_111, %c0_112, %c0_113] : memref<2x1x32xf32, #tpu.memory_space<vmem>>, vector<1x1x32xf32>
    %151 = vector.shape_cast %150 : vector<1x1x32xf32> to vector<1x32xf32>
    %152 = vector.broadcast %151 : vector<1x32xf32> to vector<16x32xf32>
    %153 = arith.addf %149, %152 : vector<16x32xf32>
    %cst_114 = arith.constant 0.000000e+00 : f32
    %154 = vector.broadcast %cst_114 : f32 to vector<16x32xf32>
    %155 = arith.maximumf %153, %154 : vector<16x32xf32>
    %c0_115 = arith.constant 0 : index
    %c0_116 = arith.constant 0 : index
    %c0_117 = arith.constant 0 : index
    %156 = vector.load %arg16[%c0_115, %c0_116, %c0_117] : memref<2x32x300xf32, #tpu.memory_space<vmem>>, vector<1x32x300xf32>
    %157 = vector.shape_cast %156 : vector<1x32x300xf32> to vector<32x300xf32>
    %cst_118 = arith.constant dense<0.000000e+00> : vector<16x300xf32>
    %158 = tpu.matmul %155, %157, %cst_118 {dimension_numbers = #tpu.dot_dimension_numbers<[1], [0], [0], [1], [0, 0, 1, 1], [], []>} : vector<16x32xf32>, vector<32x300xf32>, vector<16x300xf32> -> vector<16x300xf32>
    %c0_119 = arith.constant 0 : index
    %c0_120 = arith.constant 0 : index
    %c0_121 = arith.constant 0 : index
    %159 = vector.load %arg17[%c0_119, %c0_120, %c0_121] : memref<2x1x300xf32, #tpu.memory_space<vmem>>, vector<1x1x300xf32>
    %160 = vector.shape_cast %159 : vector<1x1x300xf32> to vector<1x300xf32>
    %161 = vector.broadcast %160 : vector<1x300xf32> to vector<16x300xf32>
    %162 = arith.addf %158, %161 : vector<16x300xf32>
    %163 = arith.addf %146, %162 : vector<16x300xf32>
    %c0_122 = arith.constant 0 : index
    %c0_123 = arith.constant 0 : index
    %c0_124 = arith.constant 0 : index
    %164 = vector.load %arg12[%c0_122, %c0_123, %c0_124] : memref<2x1x300xf32, #tpu.memory_space<vmem>>, vector<1x1x300xf32>
    %165 = vector.shape_cast %164 : vector<1x1x300xf32> to vector<1x300xf32>
    %c0_125 = arith.constant 0 : index
    %c0_126 = arith.constant 0 : index
    %c0_127 = arith.constant 0 : index
    %166 = vector.load %arg13[%c0_125, %c0_126, %c0_127] : memref<2x1x300xf32, #tpu.memory_space<vmem>>, vector<1x1x300xf32>
    %167 = vector.shape_cast %166 : vector<1x1x300xf32> to vector<1x300xf32>
    %cst_128 = arith.constant dense<0.000000e+00> : vector<16xf32>
    %168 = vector.multi_reduction <add>, %163, %cst_128 [1] : vector<16x300xf32> to vector<16xf32>
    %169 = vector.shape_cast %168 : vector<16xf32> to vector<16x1xf32>
    %cst_129 = arith.constant 3.000000e+02 : f32
    %170 = vector.broadcast %cst_129 : f32 to vector<16x1xf32>
    %171 = arith.divf %169, %170 : vector<16x1xf32>
    %172 = vector.broadcast %171 : vector<16x1xf32> to vector<16x300xf32>
    %173 = arith.subf %163, %172 : vector<16x300xf32>
    %174 = arith.mulf %173, %173 : vector<16x300xf32>
    %cst_130 = arith.constant dense<0.000000e+00> : vector<16xf32>
    %175 = vector.multi_reduction <add>, %174, %cst_130 [1] : vector<16x300xf32> to vector<16xf32>
    %176 = vector.shape_cast %175 : vector<16xf32> to vector<16x1xf32>
    %cst_131 = arith.constant 3.000000e+02 : f32
    %177 = vector.broadcast %cst_131 : f32 to vector<16x1xf32>
    %178 = arith.divf %176, %177 : vector<16x1xf32>
    %cst_132 = arith.constant 9.99999974E-6 : f32
    %179 = vector.broadcast %cst_132 : f32 to vector<16x1xf32>
    %180 = arith.addf %178, %179 : vector<16x1xf32>
    %181 = math.rsqrt %180 : vector<16x1xf32>
    %182 = vector.broadcast %181 : vector<16x1xf32> to vector<16x300xf32>
    %183 = arith.mulf %173, %182 : vector<16x300xf32>
    %184 = vector.broadcast %165 : vector<1x300xf32> to vector<16x300xf32>
    %185 = arith.mulf %183, %184 : vector<16x300xf32>
    %186 = vector.broadcast %167 : vector<1x300xf32> to vector<16x300xf32>
    %187 = arith.addf %185, %186 : vector<16x300xf32>
    %cst_133 = arith.constant 0.000000e+00 : f32
    %188 = vector.broadcast %cst_133 : f32 to vector<16x300xf32>
    %c1_134 = arith.constant 1 : index
    %c0_135 = arith.constant 0 : index
    %c0_136 = arith.constant 0 : index
    %c0_137 = arith.constant 0 : index
    %189 = vector.load %arg2[%c1_134, %c0_135, %c0_136, %c0_137] : memref<2x2x300x150xf32, #tpu.memory_space<vmem>>, vector<1x1x300x150xf32>
    %190 = vector.shape_cast %189 : vector<1x1x300x150xf32> to vector<300x150xf32>
    %cst_138 = arith.constant dense<0.000000e+00> : vector<16x150xf32>
    %191 = tpu.matmul %187, %190, %cst_138 {dimension_numbers = #tpu.dot_dimension_numbers<[1], [0], [0], [1], [0, 0, 1, 1], [], []>} : vector<16x300xf32>, vector<300x150xf32>, vector<16x150xf32> -> vector<16x150xf32>
    %c1_139 = arith.constant 1 : index
    %c0_140 = arith.constant 0 : index
    %c0_141 = arith.constant 0 : index
    %c0_142 = arith.constant 0 : index
    %192 = vector.load %arg5[%c1_139, %c0_140, %c0_141, %c0_142] : memref<2x2x1x150xf32, #tpu.memory_space<vmem>>, vector<1x1x1x150xf32>
    %193 = vector.shape_cast %192 : vector<1x1x1x150xf32> to vector<1x150xf32>
    %194 = vector.broadcast %193 : vector<1x150xf32> to vector<16x150xf32>
    %195 = arith.addf %191, %194 : vector<16x150xf32>
    %c1_143 = arith.constant 1 : index
    %c0_144 = arith.constant 0 : index
    %c0_145 = arith.constant 0 : index
    %c0_146 = arith.constant 0 : index
    %196 = vector.load %arg3[%c1_143, %c0_144, %c0_145, %c0_146] : memref<2x2x300x150xf32, #tpu.memory_space<vmem>>, vector<1x1x300x150xf32>
    %197 = vector.shape_cast %196 : vector<1x1x300x150xf32> to vector<300x150xf32>
    %cst_147 = arith.constant dense<0.000000e+00> : vector<16x150xf32>
    %198 = tpu.matmul %187, %197, %cst_147 {dimension_numbers = #tpu.dot_dimension_numbers<[1], [0], [0], [1], [0, 0, 1, 1], [], []>} : vector<16x300xf32>, vector<300x150xf32>, vector<16x150xf32> -> vector<16x150xf32>
    %c1_148 = arith.constant 1 : index
    %c0_149 = arith.constant 0 : index
    %c0_150 = arith.constant 0 : index
    %c0_151 = arith.constant 0 : index
    %199 = vector.load %arg6[%c1_148, %c0_149, %c0_150, %c0_151] : memref<2x2x1x150xf32, #tpu.memory_space<vmem>>, vector<1x1x1x150xf32>
    %200 = vector.shape_cast %199 : vector<1x1x1x150xf32> to vector<1x150xf32>
    %201 = vector.broadcast %200 : vector<1x150xf32> to vector<16x150xf32>
    %202 = arith.addf %198, %201 : vector<16x150xf32>
    %c1_152 = arith.constant 1 : index
    %c0_153 = arith.constant 0 : index
    %c0_154 = arith.constant 0 : index
    %c0_155 = arith.constant 0 : index
    %203 = vector.load %arg4[%c1_152, %c0_153, %c0_154, %c0_155] : memref<2x2x300x150xf32, #tpu.memory_space<vmem>>, vector<1x1x300x150xf32>
    %204 = vector.shape_cast %203 : vector<1x1x300x150xf32> to vector<300x150xf32>
    %cst_156 = arith.constant dense<0.000000e+00> : vector<16x150xf32>
    %205 = tpu.matmul %187, %204, %cst_156 {dimension_numbers = #tpu.dot_dimension_numbers<[1], [0], [0], [1], [0, 0, 1, 1], [], []>} : vector<16x300xf32>, vector<300x150xf32>, vector<16x150xf32> -> vector<16x150xf32>
    %c1_157 = arith.constant 1 : index
    %c0_158 = arith.constant 0 : index
    %c0_159 = arith.constant 0 : index
    %c0_160 = arith.constant 0 : index
    %206 = vector.load %arg7[%c1_157, %c0_158, %c0_159, %c0_160] : memref<2x2x1x150xf32, #tpu.memory_space<vmem>>, vector<1x1x1x150xf32>
    %207 = vector.shape_cast %206 : vector<1x1x1x150xf32> to vector<1x150xf32>
    %208 = vector.broadcast %207 : vector<1x150xf32> to vector<16x150xf32>
    %209 = arith.addf %205, %208 : vector<16x150xf32>
    %cst_161 = arith.constant 0.0816496611 : f32
    %210 = vector.broadcast %cst_161 : f32 to vector<16x150xf32>
    %211 = arith.mulf %195, %210 : vector<16x150xf32>
    %212 = vector.extract_strided_slice %211 {offsets = [0, 0], sizes = [8, 150], strides = [1, 1]} : vector<16x150xf32> to vector<8x150xf32>
    %213 = vector.extract_strided_slice %202 {offsets = [0, 0], sizes = [8, 150], strides = [1, 1]} : vector<16x150xf32> to vector<8x150xf32>
    %cst_162 = arith.constant dense<0.000000e+00> : vector<8x8xf32>
    %214 = tpu.matmul %212, %213, %cst_162 {dimension_numbers = #tpu.dot_dimension_numbers<[1], [1], [0], [0], [0, 0, 1, 0], [], []>} : vector<8x150xf32>, vector<8x150xf32>, vector<8x8xf32> -> vector<8x8xf32>
    %cst_163 = arith.constant dense<0xFF800000> : vector<8xf32>
    %215 = vector.multi_reduction <maximumf>, %214, %cst_163 [1] : vector<8x8xf32> to vector<8xf32>
    %216 = vector.shape_cast %215 : vector<8xf32> to vector<8x1xf32>
    %217 = vector.broadcast %216 : vector<8x1xf32> to vector<8x8xf32>
    %218 = arith.subf %214, %217 : vector<8x8xf32>
    %219 = math.exp %218 : vector<8x8xf32>
    %cst_164 = arith.constant dense<0.000000e+00> : vector<8xf32>
    %220 = vector.multi_reduction <add>, %219, %cst_164 [1] : vector<8x8xf32> to vector<8xf32>
    %221 = vector.shape_cast %220 : vector<8xf32> to vector<8x1xf32>
    %222 = vector.broadcast %221 : vector<8x1xf32> to vector<8x8xf32>
    %223 = arith.divf %219, %222 : vector<8x8xf32>
    %224 = vector.extract_strided_slice %209 {offsets = [0, 0], sizes = [8, 150], strides = [1, 1]} : vector<16x150xf32> to vector<8x150xf32>
    %cst_165 = arith.constant dense<0.000000e+00> : vector<8x150xf32>
    %225 = tpu.matmul %223, %224, %cst_165 {dimension_numbers = #tpu.dot_dimension_numbers<[1], [0], [0], [1], [0, 0, 1, 1], [], []>} : vector<8x8xf32>, vector<8x150xf32>, vector<8x150xf32> -> vector<8x150xf32>
    %c0_166 = arith.constant 0 : index
    %c0_167 = arith.constant 0 : index
    %226 = vector.load %arg21[%c0_166, %c0_167] : memref<16x150xf32, #tpu.memory_space<vmem>>, vector<8x150xf32>
    tpu.vector_store %arg21[%c0_166, %c0_167], %225 {strides = array<i32>} : memref<16x150xf32, #tpu.memory_space<vmem>>, vector<8x150xf32>,
    %227 = vector.extract_strided_slice %211 {offsets = [8, 0], sizes = [8, 150], strides = [1, 1]} : vector<16x150xf32> to vector<8x150xf32>
    %228 = vector.extract_strided_slice %202 {offsets = [8, 0], sizes = [8, 150], strides = [1, 1]} : vector<16x150xf32> to vector<8x150xf32>
    %cst_168 = arith.constant dense<0.000000e+00> : vector<8x8xf32>
    %229 = tpu.matmul %227, %228, %cst_168 {dimension_numbers = #tpu.dot_dimension_numbers<[1], [1], [0], [0], [0, 0, 1, 0], [], []>} : vector<8x150xf32>, vector<8x150xf32>, vector<8x8xf32> -> vector<8x8xf32>
    %cst_169 = arith.constant dense<0xFF800000> : vector<8xf32>
    %230 = vector.multi_reduction <maximumf>, %229, %cst_169 [1] : vector<8x8xf32> to vector<8xf32>
    %231 = vector.shape_cast %230 : vector<8xf32> to vector<8x1xf32>
    %232 = vector.broadcast %231 : vector<8x1xf32> to vector<8x8xf32>
    %233 = arith.subf %229, %232 : vector<8x8xf32>
    %234 = math.exp %233 : vector<8x8xf32>
    %cst_170 = arith.constant dense<0.000000e+00> : vector<8xf32>
    %235 = vector.multi_reduction <add>, %234, %cst_170 [1] : vector<8x8xf32> to vector<8xf32>
    %236 = vector.shape_cast %235 : vector<8xf32> to vector<8x1xf32>
    %237 = vector.broadcast %236 : vector<8x1xf32> to vector<8x8xf32>
    %238 = arith.divf %234, %237 : vector<8x8xf32>
    %239 = vector.extract_strided_slice %209 {offsets = [8, 0], sizes = [8, 150], strides = [1, 1]} : vector<16x150xf32> to vector<8x150xf32>
    %cst_171 = arith.constant dense<0.000000e+00> : vector<8x150xf32>
    %240 = tpu.matmul %238, %239, %cst_171 {dimension_numbers = #tpu.dot_dimension_numbers<[1], [0], [0], [1], [0, 0, 1, 1], [], []>} : vector<8x8xf32>, vector<8x150xf32>, vector<8x150xf32> -> vector<8x150xf32>
    %c8_172 = arith.constant 8 : index
    %c0_173 = arith.constant 0 : index
    %241 = vector.load %arg21[%c8_172, %c0_173] : memref<16x150xf32, #tpu.memory_space<vmem>>, vector<8x150xf32>
    tpu.vector_store %arg21[%c8_172, %c0_173], %240 {strides = array<i32>} : memref<16x150xf32, #tpu.memory_space<vmem>>, vector<8x150xf32>,
    %c0_174 = arith.constant 0 : index
    %c0_175 = arith.constant 0 : index
    %242 = vector.load %arg21[%c0_174, %c0_175] : memref<16x150xf32, #tpu.memory_space<vmem>>, vector<16x150xf32>
    %c1_176 = arith.constant 1 : index
    %c0_177 = arith.constant 0 : index
    %c0_178 = arith.constant 0 : index
    %c0_179 = arith.constant 0 : index
    %243 = vector.load %arg8[%c1_176, %c0_177, %c0_178, %c0_179] : memref<2x2x150x300xf32, #tpu.memory_space<vmem>>, vector<1x1x150x300xf32>
    %244 = vector.shape_cast %243 : vector<1x1x150x300xf32> to vector<150x300xf32>
    %cst_180 = arith.constant dense<0.000000e+00> : vector<16x300xf32>
    %245 = tpu.matmul %242, %244, %cst_180 {dimension_numbers = #tpu.dot_dimension_numbers<[1], [0], [0], [1], [0, 0, 1, 1], [], []>} : vector<16x150xf32>, vector<150x300xf32>, vector<16x300xf32> -> vector<16x300xf32>
    %246 = arith.addf %188, %245 : vector<16x300xf32>
    %c1_181 = arith.constant 1 : index
    %c1_182 = arith.constant 1 : index
    %c0_183 = arith.constant 0 : index
    %c0_184 = arith.constant 0 : index
    %247 = vector.load %arg2[%c1_181, %c1_182, %c0_183, %c0_184] : memref<2x2x300x150xf32, #tpu.memory_space<vmem>>, vector<1x1x300x150xf32>
    %248 = vector.shape_cast %247 : vector<1x1x300x150xf32> to vector<300x150xf32>
    %cst_185 = arith.constant dense<0.000000e+00> : vector<16x150xf32>
    %249 = tpu.matmul %187, %248, %cst_185 {dimension_numbers = #tpu.dot_dimension_numbers<[1], [0], [0], [1], [0, 0, 1, 1], [], []>} : vector<16x300xf32>, vector<300x150xf32>, vector<16x150xf32> -> vector<16x150xf32>
    %c1_186 = arith.constant 1 : index
    %c1_187 = arith.constant 1 : index
    %c0_188 = arith.constant 0 : index
    %c0_189 = arith.constant 0 : index
    %250 = vector.load %arg5[%c1_186, %c1_187, %c0_188, %c0_189] : memref<2x2x1x150xf32, #tpu.memory_space<vmem>>, vector<1x1x1x150xf32>
    %251 = vector.shape_cast %250 : vector<1x1x1x150xf32> to vector<1x150xf32>
    %252 = vector.broadcast %251 : vector<1x150xf32> to vector<16x150xf32>
    %253 = arith.addf %249, %252 : vector<16x150xf32>
    %c1_190 = arith.constant 1 : index
    %c1_191 = arith.constant 1 : index
    %c0_192 = arith.constant 0 : index
    %c0_193 = arith.constant 0 : index
    %254 = vector.load %arg3[%c1_190, %c1_191, %c0_192, %c0_193] : memref<2x2x300x150xf32, #tpu.memory_space<vmem>>, vector<1x1x300x150xf32>
    %255 = vector.shape_cast %254 : vector<1x1x300x150xf32> to vector<300x150xf32>
    %cst_194 = arith.constant dense<0.000000e+00> : vector<16x150xf32>
    %256 = tpu.matmul %187, %255, %cst_194 {dimension_numbers = #tpu.dot_dimension_numbers<[1], [0], [0], [1], [0, 0, 1, 1], [], []>} : vector<16x300xf32>, vector<300x150xf32>, vector<16x150xf32> -> vector<16x150xf32>
    %c1_195 = arith.constant 1 : index
    %c1_196 = arith.constant 1 : index
    %c0_197 = arith.constant 0 : index
    %c0_198 = arith.constant 0 : index
    %257 = vector.load %arg6[%c1_195, %c1_196, %c0_197, %c0_198] : memref<2x2x1x150xf32, #tpu.memory_space<vmem>>, vector<1x1x1x150xf32>
    %258 = vector.shape_cast %257 : vector<1x1x1x150xf32> to vector<1x150xf32>
    %259 = vector.broadcast %258 : vector<1x150xf32> to vector<16x150xf32>
    %260 = arith.addf %256, %259 : vector<16x150xf32>
    %c1_199 = arith.constant 1 : index
    %c1_200 = arith.constant 1 : index
    %c0_201 = arith.constant 0 : index
    %c0_202 = arith.constant 0 : index
    %261 = vector.load %arg4[%c1_199, %c1_200, %c0_201, %c0_202] : memref<2x2x300x150xf32, #tpu.memory_space<vmem>>, vector<1x1x300x150xf32>
    %262 = vector.shape_cast %261 : vector<1x1x300x150xf32> to vector<300x150xf32>
    %cst_203 = arith.constant dense<0.000000e+00> : vector<16x150xf32>
    %263 = tpu.matmul %187, %262, %cst_203 {dimension_numbers = #tpu.dot_dimension_numbers<[1], [0], [0], [1], [0, 0, 1, 1], [], []>} : vector<16x300xf32>, vector<300x150xf32>, vector<16x150xf32> -> vector<16x150xf32>
    %c1_204 = arith.constant 1 : index
    %c1_205 = arith.constant 1 : index
    %c0_206 = arith.constant 0 : index
    %c0_207 = arith.constant 0 : index
    %264 = vector.load %arg7[%c1_204, %c1_205, %c0_206, %c0_207] : memref<2x2x1x150xf32, #tpu.memory_space<vmem>>, vector<1x1x1x150xf32>
    %265 = vector.shape_cast %264 : vector<1x1x1x150xf32> to vector<1x150xf32>
    %266 = vector.broadcast %265 : vector<1x150xf32> to vector<16x150xf32>
    %267 = arith.addf %263, %266 : vector<16x150xf32>
    %cst_208 = arith.constant 0.0816496611 : f32
    %268 = vector.broadcast %cst_208 : f32 to vector<16x150xf32>
    %269 = arith.mulf %253, %268 : vector<16x150xf32>
    %270 = vector.extract_strided_slice %269 {offsets = [0, 0], sizes = [8, 150], strides = [1, 1]} : vector<16x150xf32> to vector<8x150xf32>
    %271 = vector.extract_strided_slice %260 {offsets = [0, 0], sizes = [8, 150], strides = [1, 1]} : vector<16x150xf32> to vector<8x150xf32>
    %cst_209 = arith.constant dense<0.000000e+00> : vector<8x8xf32>
    %272 = tpu.matmul %270, %271, %cst_209 {dimension_numbers = #tpu.dot_dimension_numbers<[1], [1], [0], [0], [0, 0, 1, 0], [], []>} : vector<8x150xf32>, vector<8x150xf32>, vector<8x8xf32> -> vector<8x8xf32>
    %cst_210 = arith.constant dense<0xFF800000> : vector<8xf32>
    %273 = vector.multi_reduction <maximumf>, %272, %cst_210 [1] : vector<8x8xf32> to vector<8xf32>
    %274 = vector.shape_cast %273 : vector<8xf32> to vector<8x1xf32>
    %275 = vector.broadcast %274 : vector<8x1xf32> to vector<8x8xf32>
    %276 = arith.subf %272, %275 : vector<8x8xf32>
    %277 = math.exp %276 : vector<8x8xf32>
    %cst_211 = arith.constant dense<0.000000e+00> : vector<8xf32>
    %278 = vector.multi_reduction <add>, %277, %cst_211 [1] : vector<8x8xf32> to vector<8xf32>
    %279 = vector.shape_cast %278 : vector<8xf32> to vector<8x1xf32>
    %280 = vector.broadcast %279 : vector<8x1xf32> to vector<8x8xf32>
    %281 = arith.divf %277, %280 : vector<8x8xf32>
    %282 = vector.extract_strided_slice %267 {offsets = [0, 0], sizes = [8, 150], strides = [1, 1]} : vector<16x150xf32> to vector<8x150xf32>
    %cst_212 = arith.constant dense<0.000000e+00> : vector<8x150xf32>
    %283 = tpu.matmul %281, %282, %cst_212 {dimension_numbers = #tpu.dot_dimension_numbers<[1], [0], [0], [1], [0, 0, 1, 1], [], []>} : vector<8x8xf32>, vector<8x150xf32>, vector<8x150xf32> -> vector<8x150xf32>
    %c0_213 = arith.constant 0 : index
    %c0_214 = arith.constant 0 : index
    %284 = vector.load %arg21[%c0_213, %c0_214] : memref<16x150xf32, #tpu.memory_space<vmem>>, vector<8x150xf32>
    tpu.vector_store %arg21[%c0_213, %c0_214], %283 {strides = array<i32>} : memref<16x150xf32, #tpu.memory_space<vmem>>, vector<8x150xf32>,
    %285 = vector.extract_strided_slice %269 {offsets = [8, 0], sizes = [8, 150], strides = [1, 1]} : vector<16x150xf32> to vector<8x150xf32>
    %286 = vector.extract_strided_slice %260 {offsets = [8, 0], sizes = [8, 150], strides = [1, 1]} : vector<16x150xf32> to vector<8x150xf32>
    %cst_215 = arith.constant dense<0.000000e+00> : vector<8x8xf32>
    %287 = tpu.matmul %285, %286, %cst_215 {dimension_numbers = #tpu.dot_dimension_numbers<[1], [1], [0], [0], [0, 0, 1, 0], [], []>} : vector<8x150xf32>, vector<8x150xf32>, vector<8x8xf32> -> vector<8x8xf32>
    %cst_216 = arith.constant dense<0xFF800000> : vector<8xf32>
    %288 = vector.multi_reduction <maximumf>, %287, %cst_216 [1] : vector<8x8xf32> to vector<8xf32>
    %289 = vector.shape_cast %288 : vector<8xf32> to vector<8x1xf32>
    %290 = vector.broadcast %289 : vector<8x1xf32> to vector<8x8xf32>
    %291 = arith.subf %287, %290 : vector<8x8xf32>
    %292 = math.exp %291 : vector<8x8xf32>
    %cst_217 = arith.constant dense<0.000000e+00> : vector<8xf32>
    %293 = vector.multi_reduction <add>, %292, %cst_217 [1] : vector<8x8xf32> to vector<8xf32>
    %294 = vector.shape_cast %293 : vector<8xf32> to vector<8x1xf32>
    %295 = vector.broadcast %294 : vector<8x1xf32> to vector<8x8xf32>
    %296 = arith.divf %292, %295 : vector<8x8xf32>
    %297 = vector.extract_strided_slice %267 {offsets = [8, 0], sizes = [8, 150], strides = [1, 1]} : vector<16x150xf32> to vector<8x150xf32>
    %cst_218 = arith.constant dense<0.000000e+00> : vector<8x150xf32>
    %298 = tpu.matmul %296, %297, %cst_218 {dimension_numbers = #tpu.dot_dimension_numbers<[1], [0], [0], [1], [0, 0, 1, 1], [], []>} : vector<8x8xf32>, vector<8x150xf32>, vector<8x150xf32> -> vector<8x150xf32>
    %c8_219 = arith.constant 8 : index
    %c0_220 = arith.constant 0 : index
    %299 = vector.load %arg21[%c8_219, %c0_220] : memref<16x150xf32, #tpu.memory_space<vmem>>, vector<8x150xf32>
    tpu.vector_store %arg21[%c8_219, %c0_220], %298 {strides = array<i32>} : memref<16x150xf32, #tpu.memory_space<vmem>>, vector<8x150xf32>,
    %c0_221 = arith.constant 0 : index
    %c0_222 = arith.constant 0 : index
    %300 = vector.load %arg21[%c0_221, %c0_222] : memref<16x150xf32, #tpu.memory_space<vmem>>, vector<16x150xf32>
    %c1_223 = arith.constant 1 : index
    %c1_224 = arith.constant 1 : index
    %c0_225 = arith.constant 0 : index
    %c0_226 = arith.constant 0 : index
    %301 = vector.load %arg8[%c1_223, %c1_224, %c0_225, %c0_226] : memref<2x2x150x300xf32, #tpu.memory_space<vmem>>, vector<1x1x150x300xf32>
    %302 = vector.shape_cast %301 : vector<1x1x150x300xf32> to vector<150x300xf32>
    %cst_227 = arith.constant dense<0.000000e+00> : vector<16x300xf32>
    %303 = tpu.matmul %300, %302, %cst_227 {dimension_numbers = #tpu.dot_dimension_numbers<[1], [0], [0], [1], [0, 0, 1, 1], [], []>} : vector<16x150xf32>, vector<150x300xf32>, vector<16x300xf32> -> vector<16x300xf32>
    %304 = arith.addf %246, %303 : vector<16x300xf32>
    %c1_228 = arith.constant 1 : index
    %c0_229 = arith.constant 0 : index
    %c0_230 = arith.constant 0 : index
    %305 = vector.load %arg9[%c1_228, %c0_229, %c0_230] : memref<2x1x300xf32, #tpu.memory_space<vmem>>, vector<1x1x300xf32>
    %306 = vector.shape_cast %305 : vector<1x1x300xf32> to vector<1x300xf32>
    %307 = vector.broadcast %306 : vector<1x300xf32> to vector<16x300xf32>
    %308 = arith.addf %304, %307 : vector<16x300xf32>
    %309 = arith.addf %187, %308 : vector<16x300xf32>
    %c1_231 = arith.constant 1 : index
    %c0_232 = arith.constant 0 : index
    %c0_233 = arith.constant 0 : index
    %310 = vector.load %arg10[%c1_231, %c0_232, %c0_233] : memref<2x1x300xf32, #tpu.memory_space<vmem>>, vector<1x1x300xf32>
    %311 = vector.shape_cast %310 : vector<1x1x300xf32> to vector<1x300xf32>
    %c1_234 = arith.constant 1 : index
    %c0_235 = arith.constant 0 : index
    %c0_236 = arith.constant 0 : index
    %312 = vector.load %arg11[%c1_234, %c0_235, %c0_236] : memref<2x1x300xf32, #tpu.memory_space<vmem>>, vector<1x1x300xf32>
    %313 = vector.shape_cast %312 : vector<1x1x300xf32> to vector<1x300xf32>
    %cst_237 = arith.constant dense<0.000000e+00> : vector<16xf32>
    %314 = vector.multi_reduction <add>, %309, %cst_237 [1] : vector<16x300xf32> to vector<16xf32>
    %315 = vector.shape_cast %314 : vector<16xf32> to vector<16x1xf32>
    %cst_238 = arith.constant 3.000000e+02 : f32
    %316 = vector.broadcast %cst_238 : f32 to vector<16x1xf32>
    %317 = arith.divf %315, %316 : vector<16x1xf32>
    %318 = vector.broadcast %317 : vector<16x1xf32> to vector<16x300xf32>
    %319 = arith.subf %309, %318 : vector<16x300xf32>
    %320 = arith.mulf %319, %319 : vector<16x300xf32>
    %cst_239 = arith.constant dense<0.000000e+00> : vector<16xf32>
    %321 = vector.multi_reduction <add>, %320, %cst_239 [1] : vector<16x300xf32> to vector<16xf32>
    %322 = vector.shape_cast %321 : vector<16xf32> to vector<16x1xf32>
    %cst_240 = arith.constant 3.000000e+02 : f32
    %323 = vector.broadcast %cst_240 : f32 to vector<16x1xf32>
    %324 = arith.divf %322, %323 : vector<16x1xf32>
    %cst_241 = arith.constant 9.99999974E-6 : f32
    %325 = vector.broadcast %cst_241 : f32 to vector<16x1xf32>
    %326 = arith.addf %324, %325 : vector<16x1xf32>
    %327 = math.rsqrt %326 : vector<16x1xf32>
    %328 = vector.broadcast %327 : vector<16x1xf32> to vector<16x300xf32>
    %329 = arith.mulf %319, %328 : vector<16x300xf32>
    %330 = vector.broadcast %311 : vector<1x300xf32> to vector<16x300xf32>
    %331 = arith.mulf %329, %330 : vector<16x300xf32>
    %332 = vector.broadcast %313 : vector<1x300xf32> to vector<16x300xf32>
    %333 = arith.addf %331, %332 : vector<16x300xf32>
    %c1_242 = arith.constant 1 : index
    %c0_243 = arith.constant 0 : index
    %c0_244 = arith.constant 0 : index
    %334 = vector.load %arg14[%c1_242, %c0_243, %c0_244] : memref<2x300x32xf32, #tpu.memory_space<vmem>>, vector<1x300x32xf32>
    %335 = vector.shape_cast %334 : vector<1x300x32xf32> to vector<300x32xf32>
    %cst_245 = arith.constant dense<0.000000e+00> : vector<16x32xf32>
    %336 = tpu.matmul %333, %335, %cst_245 {dimension_numbers = #tpu.dot_dimension_numbers<[1], [0], [0], [1], [0, 0, 1, 1], [], []>} : vector<16x300xf32>, vector<300x32xf32>, vector<16x32xf32> -> vector<16x32xf32>
    %c1_246 = arith.constant 1 : index
    %c0_247 = arith.constant 0 : index
    %c0_248 = arith.constant 0 : index
    %337 = vector.load %arg15[%c1_246, %c0_247, %c0_248] : memref<2x1x32xf32, #tpu.memory_space<vmem>>, vector<1x1x32xf32>
    %338 = vector.shape_cast %337 : vector<1x1x32xf32> to vector<1x32xf32>
    %339 = vector.broadcast %338 : vector<1x32xf32> to vector<16x32xf32>
    %340 = arith.addf %336, %339 : vector<16x32xf32>
    %cst_249 = arith.constant 0.000000e+00 : f32
    %341 = vector.broadcast %cst_249 : f32 to vector<16x32xf32>
    %342 = arith.maximumf %340, %341 : vector<16x32xf32>
    %c1_250 = arith.constant 1 : index
    %c0_251 = arith.constant 0 : index
    %c0_252 = arith.constant 0 : index
    %343 = vector.load %arg16[%c1_250, %c0_251, %c0_252] : memref<2x32x300xf32, #tpu.memory_space<vmem>>, vector<1x32x300xf32>
    %344 = vector.shape_cast %343 : vector<1x32x300xf32> to vector<32x300xf32>
    %cst_253 = arith.constant dense<0.000000e+00> : vector<16x300xf32>
    %345 = tpu.matmul %342, %344, %cst_253 {dimension_numbers = #tpu.dot_dimension_numbers<[1], [0], [0], [1], [0, 0, 1, 1], [], []>} : vector<16x32xf32>, vector<32x300xf32>, vector<16x300xf32> -> vector<16x300xf32>
    %c1_254 = arith.constant 1 : index
    %c0_255 = arith.constant 0 : index
    %c0_256 = arith.constant 0 : index
    %346 = vector.load %arg17[%c1_254, %c0_255, %c0_256] : memref<2x1x300xf32, #tpu.memory_space<vmem>>, vector<1x1x300xf32>
    %347 = vector.shape_cast %346 : vector<1x1x300xf32> to vector<1x300xf32>
    %348 = vector.broadcast %347 : vector<1x300xf32> to vector<16x300xf32>
    %349 = arith.addf %345, %348 : vector<16x300xf32>
    %350 = arith.addf %333, %349 : vector<16x300xf32>
    %c1_257 = arith.constant 1 : index
    %c0_258 = arith.constant 0 : index
    %c0_259 = arith.constant 0 : index
    %351 = vector.load %arg12[%c1_257, %c0_258, %c0_259] : memref<2x1x300xf32, #tpu.memory_space<vmem>>, vector<1x1x300xf32>
    %352 = vector.shape_cast %351 : vector<1x1x300xf32> to vector<1x300xf32>
    %c1_260 = arith.constant 1 : index
    %c0_261 = arith.constant 0 : index
    %c0_262 = arith.constant 0 : index
    %353 = vector.load %arg13[%c1_260, %c0_261, %c0_262] : memref<2x1x300xf32, #tpu.memory_space<vmem>>, vector<1x1x300xf32>
    %354 = vector.shape_cast %353 : vector<1x1x300xf32> to vector<1x300xf32>
    %cst_263 = arith.constant dense<0.000000e+00> : vector<16xf32>
    %355 = vector.multi_reduction <add>, %350, %cst_263 [1] : vector<16x300xf32> to vector<16xf32>
    %356 = vector.shape_cast %355 : vector<16xf32> to vector<16x1xf32>
    %cst_264 = arith.constant 3.000000e+02 : f32
    %357 = vector.broadcast %cst_264 : f32 to vector<16x1xf32>
    %358 = arith.divf %356, %357 : vector<16x1xf32>
    %359 = vector.broadcast %358 : vector<16x1xf32> to vector<16x300xf32>
    %360 = arith.subf %350, %359 : vector<16x300xf32>
    %361 = arith.mulf %360, %360 : vector<16x300xf32>
    %cst_265 = arith.constant dense<0.000000e+00> : vector<16xf32>
    %362 = vector.multi_reduction <add>, %361, %cst_265 [1] : vector<16x300xf32> to vector<16xf32>
    %363 = vector.shape_cast %362 : vector<16xf32> to vector<16x1xf32>
    %cst_266 = arith.constant 3.000000e+02 : f32
    %364 = vector.broadcast %cst_266 : f32 to vector<16x1xf32>
    %365 = arith.divf %363, %364 : vector<16x1xf32>
    %cst_267 = arith.constant 9.99999974E-6 : f32
    %366 = vector.broadcast %cst_267 : f32 to vector<16x1xf32>
    %367 = arith.addf %365, %366 : vector<16x1xf32>
    %368 = math.rsqrt %367 : vector<16x1xf32>
    %369 = vector.broadcast %368 : vector<16x1xf32> to vector<16x300xf32>
    %370 = arith.mulf %360, %369 : vector<16x300xf32>
    %371 = vector.broadcast %352 : vector<1x300xf32> to vector<16x300xf32>
    %372 = arith.mulf %370, %371 : vector<16x300xf32>
    %373 = vector.broadcast %354 : vector<1x300xf32> to vector<16x300xf32>
    %374 = arith.addf %372, %373 : vector<16x300xf32>
    %c0_268 = arith.constant 0 : index
    %c0_269 = arith.constant 0 : index
    %375 = vector.load %arg1[%c0_268, %c0_269] : memref<2x16xf32, #tpu.memory_space<vmem>>, vector<2x16xf32>
    %cst_270 = arith.constant dense<0.000000e+00> : vector<2x300xf32>
    %376 = tpu.matmul %375, %374, %cst_270 {dimension_numbers = #tpu.dot_dimension_numbers<[1], [0], [0], [1], [0, 0, 1, 1], [], []>} : vector<2x16xf32>, vector<16x300xf32>, vector<2x300xf32> -> vector<2x300xf32>
    %c0_271 = arith.constant 0 : index
    %c0_272 = arith.constant 0 : index
    %377 = vector.load %arg18[%c0_271, %c0_272] : memref<300x8xf32, #tpu.memory_space<vmem>>, vector<300x8xf32>
    %cst_273 = arith.constant dense<0.000000e+00> : vector<2x8xf32>
    %378 = tpu.matmul %376, %377, %cst_273 {dimension_numbers = #tpu.dot_dimension_numbers<[1], [0], [0], [1], [0, 0, 1, 1], [], []>} : vector<2x300xf32>, vector<300x8xf32>, vector<2x8xf32> -> vector<2x8xf32>
    %c0_274 = arith.constant 0 : index
    %c0_275 = arith.constant 0 : index
    %379 = vector.load %arg19[%c0_274, %c0_275] : memref<1x8xf32, #tpu.memory_space<vmem>>, vector<1x8xf32>
    %380 = vector.broadcast %379 : vector<1x8xf32> to vector<2x8xf32>
    %381 = arith.addf %378, %380 : vector<2x8xf32>
    %c0_276 = arith.constant 0 : index
    %c0_277 = arith.constant 0 : index
    %382 = vector.load %arg20[%c0_276, %c0_277] : memref<2x8xf32, #tpu.memory_space<vmem>>, vector<2x8xf32>
    tpu.vector_store %arg20[%c0_276, %c0_277], %381 {strides = array<i32>} : memref<2x8xf32, #tpu.memory_space<vmem>>, vector<2x8xf32>,
    return
  }
}

</mosaic_0001>

<bundles_post_ra>
// kernel: tpu_custom_call.1
= control target key start
LH: loop header
LB: loop body
LE: loop exit
PB: predicated region body
PF: predicated region fallthrough
CT: control target
= control target key end

     0   :  { %s14549_s0 = inlined_call_operand.vmem [shape: f32[16,300], index: 0, kind: input, shape index: {}]   ;;  %s14550_s1 = inlined_call_operand.vmem [shape: f32[2,16], index: 1, kind: input, shape index: {}]   ;;  %s14551_s2 = inlined_call_operand.vmem [shape: f32[2,2,300,150], index: 2, kind: input, shape index: {}]   ;;  %s14552_s3 = inlined_call_operand.vmem [shape: f32[2,2,300,150], index: 3, kind: input, shape index: {}]   ;;  %s14553_s4 = inlined_call_operand.vmem [shape: f32[2,2,300,150], index: 4, kind: input, shape index: {}]   ;;  %s14554_s5 = inlined_call_operand.vmem [shape: f32[2,2,1,150], index: 5, kind: input, shape index: {}]   ;;  %s14555_s6 = inlined_call_operand.vmem [shape: f32[2,2,1,150], index: 6, kind: input, shape index: {}]   ;;  %s14556_s7 = inlined_call_operand.vmem [shape: f32[2,2,1,150], index: 7, kind: input, shape index: {}]   ;;  %s14557_s8 = inlined_call_operand.vmem [shape: f32[2,2,150,300], index: 8, kind: input, shape index: {}]   ;;  %s14558_s9 = inlined_call_operand.vmem [shape: f32[2,1,300], index: 9, kind: input, shape index: {}]   ;;  %s14559_s10 = inlined_call_operand.vmem [shape: f32[2,1,300], index: 10, kind: input, shape index: {}]   ;;  %s14560_s11 = inlined_call_operand.vmem [shape: f32[2,1,300], index: 11, kind: input, shape index: {}]   ;;  %s14561_s12 = inlined_call_operand.vmem [shape: f32[2,1,300], index: 12, kind: input, shape index: {}]   ;;  %s14562_s13 = inlined_call_operand.vmem [shape: f32[2,1,300], index: 13, kind: input, shape index: {}]   ;;  %s14563_s14 = inlined_call_operand.vmem [shape: f32[2,300,32], index: 14, kind: input, shape index: {}]   ;;  %s14564_s15 = inlined_call_operand.vmem [shape: f32[2,1,32], index: 15, kind: input, shape index: {}]   ;;  %s14565_s16 = inlined_call_operand.vmem [shape: f32[2,32,300], index: 16, kind: input, shape index: {}]   ;;  %s14566_s17 = inlined_call_operand.vmem [shape: f32[2,1,300], index: 17, kind: input, shape index: {}]   ;;  %s14567_s18 = inlined_call_operand.vmem [shape: f32[300,8], index: 18, kind: input, shape index: {}]   ;;  %s14568_s19 = inlined_call_operand.vmem [shape: f32[1,8], index: 19, kind: input, shape index: {}]   ;;  %s14569_s20 = inlined_call_operand.hbm [shape: f32[2,8], index: 20, kind: output, shape index: {}]  }
   0x1   :  { %14574 = sst [smem:[#allocation6_spill]] %s14549_s0 }
   0x2   :  { %14575 = sst [smem:[#allocation7_spill]] %s14550_s1 }
   0x3   :  { %14576 = sst [smem:[#allocation8_spill]] %s14551_s2 }
   0x4   :  { %14577 = sst [smem:[#allocation9_spill]] %s14552_s3 }
   0x5   :  { %14578 = sst [smem:[#allocation10_spill]] %s14553_s4 }
   0x6   :  { %s14579_s23 = sld [smem:[#allocation8_spill]]  ;;  %s14580_s26 = sld [smem:[#allocation9_spill]]  ;;  %vm167_vm0 = vcmask 1043456   ;;  %vm9725_vm1 = vmmov 1   ;;  %vm160_vm3 = vcmask 359424  }
   0x7   :  { %s14581_s2 = sld [smem:[#allocation6_spill]]  ;;  %vm10304_vm2 = vmpackc.low %vm167_vm0, %vm9725_vm1  ;;  %s14584_s21 = sld [smem:[#allocation10_spill]] }
   0xc   :  { %v73_v0 = vld [vmem:[%s14579_s23 + $0x8] sm:$0xff]  ;;  %v75_v1 = vld [vmem:[%s14579_s23 + $0x18] sm:$0xff]  ;;  %v72_v5 = vld [vmem:[%s14579_s23] sm:$0xff] }
   0xd   :  { %v329_v2 = vld [vmem:[%s14580_s26 + $0x8] sm:$0xff]  ;;  %v8171_v3 = vpack.c.bf16 %v75_v1, %v73_v0  ;;  %v331_v4 = vld [vmem:[%s14580_s26 + $0x18] sm:$0xff]  ;;  %v74_v6 = vld [vmem:[%s14579_s23 + $0x10] sm:$0xff] }
   0xe   :  { %v8249_v7 = vpack.c.bf16 %v331_v4, %v329_v2  ;;  %v8173_v8 = vpack.c.bf16 %v74_v6, %v72_v5  ;;  %v328_v9 = vld [vmem:[%s14580_s26] sm:$0xff]  ;;  %v330_v10 = vld [vmem:[%s14580_s26 + $0x10] sm:$0xff]  ;;  %v77_v11 = vld [vmem:[%s14579_s23 + $0x28] sm:$0xff] }
   0xf   :  { %8172 = vmatprep.subr.bf16.mxu0 %v8171_v3  ;;  %v8251_v12 = vpack.c.bf16 %v330_v10, %v328_v9  ;;  %v79_v13 = vld [vmem:[%s14579_s23 + $0x38] sm:$0xff]  ;;  %v333_v14 = vld [vmem:[%s14580_s26 + $0x28] sm:$0xff]  ;;  %v76_v18 = vld [vmem:[%s14579_s23 + $0x20] sm:$0xff] }
  0x10   :  { %v335_v15 = vld [vmem:[%s14580_s26 + $0x38] sm:$0xff]  ;;  %8250 = vmatprep.subr.bf16.mxu1 %v8249_v7  ;;  %8174 = vmatpush1.bf16.msra.mxu0 %v8173_v8  ;;  %v8175_v16 = vpack.c.bf16 %v79_v13, %v77_v11  ;;  %v78_v19 = vld [vmem:[%s14579_s23 + $0x30] sm:$0xff]  ;;  %v332_v20 = vld [vmem:[%s14580_s26 + $0x20] sm:$0xff] }
  0x11   :  { %v8253_v17 = vpack.c.bf16 %v335_v15, %v333_v14  ;;  %8252 = vmatpush1.bf16.msra.mxu1 %v8251_v12  ;;  %v8177_v21 = vpack.c.bf16 %v78_v19, %v76_v18  ;;  %v334_v22 = vld [vmem:[%s14580_s26 + $0x30] sm:$0xff]  ;;  %v81_v23 = vld [vmem:[%s14579_s23 + $0x48] sm:$0xff]  ;;  %v83_v24 = vld [vmem:[%s14579_s23 + $0x58] sm:$0xff] }
  0x12   :  { %8176 = vmatprep.subr.bf16.mxu0 %v8175_v16  ;;  %v8255_v25 = vpack.c.bf16 %v334_v22, %v332_v20  ;;  %v8179_v26 = vpack.c.bf16 %v83_v24, %v81_v23  ;;  %v337_v27 = vld [vmem:[%s14580_s26 + $0x48] sm:$0xff]  ;;  %v339_v28 = vld [vmem:[%s14580_s26 + $0x58] sm:$0xff]  ;;  %v80_v29 = vld [vmem:[%s14579_s23 + $0x40] sm:$0xff] }
  0x13   :  { %8254 = vmatprep.subr.bf16.mxu1 %v8253_v17  ;;  %v8257_v30 = vpack.c.bf16 %v339_v28, %v337_v27  ;;  %v82_v31 = vld [vmem:[%s14579_s23 + $0x50] sm:$0xff]  ;;  %v336_v32 = vld [vmem:[%s14580_s26 + $0x40] sm:$0xff]  ;;  %v85_v35 = vld [vmem:[%s14579_s23 + $0x68] sm:$0xff] }
  0x14   :  { %v338_v33 = vld [vmem:[%s14580_s26 + $0x50] sm:$0xff]  ;;  %8178 = vmatpush1.bf16.msra.mxu0 %v8177_v21  ;;  %v8181_v34 = vpack.c.bf16 %v82_v31, %v80_v29  ;;  %v87_v36 = vld [vmem:[%s14579_s23 + $0x78] sm:$0xff]  ;;  %v341_v37 = vld [vmem:[%s14580_s26 + $0x68] sm:$0xff] }
  0x15   :  { %8256 = vmatpush1.bf16.msra.mxu1 %v8255_v25  ;;  %8180 = vmatprep.subr.bf16.mxu0 %v8179_v26  ;;  %v8259_v38 = vpack.c.bf16 %v338_v33, %v336_v32  ;;  %v8183_v39 = vpack.c.bf16 %v87_v36, %v85_v35  ;;  %v343_v40 = vld [vmem:[%s14580_s26 + $0x78] sm:$0xff]  ;;  %v84_v41 = vld [vmem:[%s14579_s23 + $0x60] sm:$0xff]  ;;  %v86_v42 = vld [vmem:[%s14579_s23 + $0x70] sm:$0xff] }
  0x16   :  { %8258 = vmatprep.subr.bf16.mxu1 %v8257_v30  ;;  %v8261_v43 = vpack.c.bf16 %v343_v40, %v341_v37  ;;  %v340_v44 = vld [vmem:[%s14580_s26 + $0x60] sm:$0xff]  ;;  %v342_v45 = vld [vmem:[%s14580_s26 + $0x70] sm:$0xff]  ;;  %v89_v46 = vld [vmem:[%s14579_s23 + $0x88] sm:$0xff]  ;;  %v8185_v50 = vpack.c.bf16 %v86_v42, %v84_v41 }
  0x17   :  { %v91_v47 = vld [vmem:[%s14579_s23 + $0x98] sm:$0xff]  ;;  %v345_v48 = vld [vmem:[%s14580_s26 + $0x88] sm:$0xff]  ;;  %v8263_v51 = vpack.c.bf16 %v342_v45, %v340_v44  ;;  %v88_v53 = vld [vmem:[%s14579_s23 + $0x80] sm:$0xff] }
  0x18   :  { %v347_v49 = vld [vmem:[%s14580_s26 + $0x98] sm:$0xff]  ;;  %8182 = vmatpush1.bf16.msra.mxu0 %v8181_v34  ;;  %v8187_v52 = vpack.c.bf16 %v91_v47, %v89_v46  ;;  %v90_v54 = vld [vmem:[%s14579_s23 + $0x90] sm:$0xff]  ;;  %v344_v55 = vld [vmem:[%s14580_s26 + $0x80] sm:$0xff] }
  0x19   :  { %8260 = vmatpush1.bf16.msra.mxu1 %v8259_v38  ;;  %8184 = vmatprep.subr.bf16.mxu0 %v8183_v39  ;;  %v8265_v56 = vpack.c.bf16 %v347_v49, %v345_v48  ;;  %v346_v57 = vld [vmem:[%s14580_s26 + $0x90] sm:$0xff]  ;;  %v93_v58 = vld [vmem:[%s14579_s23 + $0xa8] sm:$0xff]  ;;  %v95_v59 = vld [vmem:[%s14579_s23 + $0xb8] sm:$0xff]  ;;  %v8189_v62 = vpack.c.bf16 %v90_v54, %v88_v53 }
  0x1a   :  { %8262 = vmatprep.subr.bf16.mxu1 %v8261_v43  ;;  %v349_v60 = vld [vmem:[%s14580_s26 + $0xa8] sm:$0xff]  ;;  %v351_v61 = vld [vmem:[%s14580_s26 + $0xb8] sm:$0xff]  ;;  %v8267_v63 = vpack.c.bf16 %v346_v57, %v344_v55  ;;  %v8191_v0 = vpack.c.bf16 %v95_v59, %v93_v58  ;;  %v92_v1 = vld [vmem:[%s14579_s23 + $0xa0] sm:$0xff] }
  0x1b   :  { %v94_v2 = vld [vmem:[%s14579_s23 + $0xb0] sm:$0xff]  ;;  %v348_v3 = vld [vmem:[%s14580_s26 + $0xa0] sm:$0xff]  ;;  %v8269_v4 = vpack.c.bf16 %v351_v61, %v349_v60  ;;  %v97_v6 = vld [vmem:[%s14579_s23 + $0xc8] sm:$0xff] }
  0x1c   :  { %8186 = vmatpush1.bf16.msra.mxu0 %v8185_v50  ;;  %v350_v5 = vld [vmem:[%s14580_s26 + $0xb0] sm:$0xff]  ;;  %v99_v7 = vld [vmem:[%s14579_s23 + $0xd8] sm:$0xff]  ;;  %v353_v8 = vld [vmem:[%s14580_s26 + $0xc8] sm:$0xff]  ;;  %v8193_v10 = vpack.c.bf16 %v94_v2, %v92_v1 }
  0x1d   :  { %8264 = vmatpush1.bf16.msra.mxu1 %v8263_v51  ;;  %8188 = vmatprep.subr.bf16.mxu0 %v8187_v52  ;;  %v355_v9 = vld [vmem:[%s14580_s26 + $0xd8] sm:$0xff]  ;;  %v8271_v11 = vpack.c.bf16 %v350_v5, %v348_v3  ;;  %v8195_v12 = vpack.c.bf16 %v99_v7, %v97_v6  ;;  %v96_v13 = vld [vmem:[%s14579_s23 + $0xc0] sm:$0xff]  ;;  %v98_v14 = vld [vmem:[%s14579_s23 + $0xd0] sm:$0xff] }
  0x1e   :  { %8266 = vmatprep.subr.bf16.mxu1 %v8265_v56  ;;  %v352_v15 = vld [vmem:[%s14580_s26 + $0xc0] sm:$0xff]  ;;  %v8273_v16 = vpack.c.bf16 %v355_v9, %v353_v8  ;;  %v354_v17 = vld [vmem:[%s14580_s26 + $0xd0] sm:$0xff]  ;;  %v101_v18 = vld [vmem:[%s14579_s23 + $0xe8] sm:$0xff]  ;;  %v8197_v22 = vpack.c.bf16 %v98_v14, %v96_v13 }
  0x1f   :  { %v103_v19 = vld [vmem:[%s14579_s23 + $0xf8] sm:$0xff]  ;;  %v357_v20 = vld [vmem:[%s14580_s26 + $0xe8] sm:$0xff]  ;;  %v8275_v23 = vpack.c.bf16 %v354_v17, %v352_v15  ;;  %v100_v25 = vld [vmem:[%s14579_s23 + $0xe0] sm:$0xff] }
  0x20   :  { %8190 = vmatpush1.bf16.msra.mxu0 %v8189_v62  ;;  %v359_v21 = vld [vmem:[%s14580_s26 + $0xf8] sm:$0xff]  ;;  %v8199_v24 = vpack.c.bf16 %v103_v19, %v101_v18  ;;  %v102_v26 = vld [vmem:[%s14579_s23 + $0xf0] sm:$0xff]  ;;  %v356_v27 = vld [vmem:[%s14580_s26 + $0xe0] sm:$0xff] }
  0x21   :  { %8268 = vmatpush1.bf16.msra.mxu1 %v8267_v63  ;;  %8192 = vmatprep.subr.bf16.mxu0 %v8191_v0  ;;  %v8277_v28 = vpack.c.bf16 %v359_v21, %v357_v20  ;;  %v358_v29 = vld [vmem:[%s14580_s26 + $0xf0] sm:$0xff]  ;;  %v105_v30 = vld [vmem:[%s14579_s23 + $0x108] sm:$0xff]  ;;  %v107_v31 = vld [vmem:[%s14579_s23 + $0x118] sm:$0xff]  ;;  %v8201_v34 = vpack.c.bf16 %v102_v26, %v100_v25 }
  0x22   :  { %8270 = vmatprep.subr.bf16.mxu1 %v8269_v4  ;;  %v361_v32 = vld [vmem:[%s14580_s26 + $0x108] sm:$0xff]  ;;  %v363_v33 = vld [vmem:[%s14580_s26 + $0x118] sm:$0xff]  ;;  %v8279_v35 = vpack.c.bf16 %v358_v29, %v356_v27  ;;  %v8203_v36 = vpack.c.bf16 %v107_v31, %v105_v30  ;;  %v104_v37 = vld [vmem:[%s14579_s23 + $0x100] sm:$0xff] }
  0x23   :  { %v106_v38 = vld [vmem:[%s14579_s23 + $0x110] sm:$0xff]  ;;  %v360_v39 = vld [vmem:[%s14580_s26 + $0x100] sm:$0xff]  ;;  %v8281_v40 = vpack.c.bf16 %v363_v33, %v361_v32  ;;  %v109_v42 = vld [vmem:[%s14579_s23 + $0x128] sm:$0xff] }
  0x24   :  { %8194 = vmatpush1.bf16.msra.mxu0 %v8193_v10  ;;  %v362_v41 = vld [vmem:[%s14580_s26 + $0x110] sm:$0xff]  ;;  %v111_v43 = vld [vmem:[%s14579_s23 + $0x138] sm:$0xff]  ;;  %v365_v44 = vld [vmem:[%s14580_s26 + $0x128] sm:$0xff]  ;;  %v8205_v46 = vpack.c.bf16 %v106_v38, %v104_v37 }
  0x25   :  { %8272 = vmatpush1.bf16.msra.mxu1 %v8271_v11  ;;  %8196 = vmatprep.subr.bf16.mxu0 %v8195_v12  ;;  %v367_v45 = vld [vmem:[%s14580_s26 + $0x138] sm:$0xff]  ;;  %v8283_v47 = vpack.c.bf16 %v362_v41, %v360_v39  ;;  %v8207_v48 = vpack.c.bf16 %v111_v43, %v109_v42  ;;  %v108_v49 = vld [vmem:[%s14579_s23 + $0x120] sm:$0xff]  ;;  %v110_v50 = vld [vmem:[%s14579_s23 + $0x130] sm:$0xff] }
  0x26   :  { %8274 = vmatprep.subr.bf16.mxu1 %v8273_v16  ;;  %v364_v51 = vld [vmem:[%s14580_s26 + $0x120] sm:$0xff]  ;;  %v8285_v52 = vpack.c.bf16 %v367_v45, %v365_v44  ;;  %v366_v53 = vld [vmem:[%s14580_s26 + $0x130] sm:$0xff]  ;;  %v113_v54 = vld [vmem:[%s14579_s23 + $0x148] sm:$0xff]  ;;  %v8209_v58 = vpack.c.bf16 %v110_v50, %v108_v49 }
  0x27   :  { %v115_v55 = vld [vmem:[%s14579_s23 + $0x158] sm:$0xff]  ;;  %v369_v56 = vld [vmem:[%s14580_s26 + $0x148] sm:$0xff]  ;;  %v8287_v59 = vpack.c.bf16 %v366_v53, %v364_v51  ;;  %v112_v61 = vld [vmem:[%s14579_s23 + $0x140] sm:$0xff] }
  0x28   :  { %8198 = vmatpush1.bf16.msra.mxu0 %v8197_v22  ;;  %v371_v57 = vld [vmem:[%s14580_s26 + $0x158] sm:$0xff]  ;;  %v8211_v60 = vpack.c.bf16 %v115_v55, %v113_v54  ;;  %v114_v62 = vld [vmem:[%s14579_s23 + $0x150] sm:$0xff]  ;;  %v368_v63 = vld [vmem:[%s14580_s26 + $0x140] sm:$0xff] }
  0x29   :  { %8276 = vmatpush1.bf16.msra.mxu1 %v8275_v23  ;;  %8200 = vmatprep.subr.bf16.mxu0 %v8199_v24  ;;  %v8289_v0 = vpack.c.bf16 %v371_v57, %v369_v56  ;;  %v370_v1 = vld [vmem:[%s14580_s26 + $0x150] sm:$0xff]  ;;  %v117_v2 = vld [vmem:[%s14579_s23 + $0x168] sm:$0xff]  ;;  %v119_v3 = vld [vmem:[%s14579_s23 + $0x178] sm:$0xff]  ;;  %v8213_v6 = vpack.c.bf16 %v114_v62, %v112_v61 }
  0x2a   :  { %8278 = vmatprep.subr.bf16.mxu1 %v8277_v28  ;;  %v373_v4 = vld [vmem:[%s14580_s26 + $0x168] sm:$0xff]  ;;  %v375_v5 = vld [vmem:[%s14580_s26 + $0x178] sm:$0xff]  ;;  %v116_v7 = vld [vmem:[%s14579_s23 + $0x160] sm:$0xff]  ;;  %v8291_v8 = vpack.c.bf16 %v370_v1, %v368_v63  ;;  %v8215_v9 = vpack.c.bf16 %v119_v3, %v117_v2 }
  0x2b   :  { %v118_v10 = vld [vmem:[%s14579_s23 + $0x170] sm:$0xff]  ;;  %v372_v11 = vld [vmem:[%s14580_s26 + $0x160] sm:$0xff]  ;;  %v8293_v13 = vpack.c.bf16 %v375_v5, %v373_v4  ;;  %v121_v14 = vld [vmem:[%s14579_s23 + $0x188] sm:$0xff] }
  0x2c   :  { %8202 = vmatpush1.bf16.msra.mxu0 %v8201_v34  ;;  %v374_v12 = vld [vmem:[%s14580_s26 + $0x170] sm:$0xff]  ;;  %v123_v15 = vld [vmem:[%s14579_s23 + $0x198] sm:$0xff]  ;;  %v10132_v16 = vld [vmem:[%s14581_s2 + $0x8] sm:$0xff]  ;;  %v8217_v19 = vpack.c.bf16 %v118_v10, %v116_v7 }
  0x2d   :  { %8280 = vmatpush1.bf16.msra.mxu1 %v8279_v35  ;;  %8204 = vmatprep.subr.bf16.mxu0 %v8203_v36  ;;  %v377_v17 = vld [vmem:[%s14580_s26 + $0x188] sm:$0xff]  ;;  %v379_v18 = vld [vmem:[%s14580_s26 + $0x198] sm:$0xff]  ;;  %v8295_v20 = vpack.c.bf16 %v374_v12, %v372_v11  ;;  %v8219_v21 = vpack.c.bf16 %v123_v15, %v121_v14  ;;  %v120_v22 = vld [vmem:[%s14579_s23 + $0x180] sm:$0xff] }
  0x2e   :  { %8282 = vmatprep.subr.bf16.mxu1 %v8281_v40  ;;  %238 = vmatprep.mubr.f32.mxu0 %v10132_v16  ;;  %v122_v23 = vld [vmem:[%s14579_s23 + $0x190] sm:$0xff]  ;;  %v376_v24 = vld [vmem:[%s14580_s26 + $0x180] sm:$0xff]  ;;  %v8297_v25 = vpack.c.bf16 %v379_v18, %v377_v17  ;;  %v125_v27 = vld [vmem:[%s14579_s23 + $0x1a8] sm:$0xff] }
  0x2f   :  { %486 = vmatprep.mubr.f32.mxu1 %v10132_v16  ;;  %v378_v26 = vld [vmem:[%s14580_s26 + $0x190] sm:$0xff]  ;;  %v127_v28 = vld [vmem:[%s14579_s23 + $0x1b8] sm:$0xff]  ;;  %v381_v29 = vld [vmem:[%s14580_s26 + $0x1a8] sm:$0xff]  ;;  %v8221_v31 = vpack.c.bf16 %v122_v23, %v120_v22 }
  0x30   :  { %8206 = vmatpush1.bf16.msra.mxu0 %v8205_v46  ;;  %v383_v30 = vld [vmem:[%s14580_s26 + $0x1b8] sm:$0xff]  ;;  %v8299_v32 = vpack.c.bf16 %v378_v26, %v376_v24  ;;  %v8223_v33 = vpack.c.bf16 %v127_v28, %v125_v27  ;;  %v124_v34 = vld [vmem:[%s14579_s23 + $0x1a0] sm:$0xff]  ;;  %v126_v35 = vld [vmem:[%s14579_s23 + $0x1b0] sm:$0xff] }
  0x31   :  { %8284 = vmatpush1.bf16.msra.mxu1 %v8283_v47  ;;  %8208 = vmatprep.subr.bf16.mxu0 %v8207_v48  ;;  %v380_v36 = vld [vmem:[%s14580_s26 + $0x1a0] sm:$0xff]  ;;  %v8301_v37 = vpack.c.bf16 %v383_v30, %v381_v29  ;;  %v382_v38 = vld [vmem:[%s14580_s26 + $0x1b0] sm:$0xff]  ;;  %v129_v39 = vld [vmem:[%s14579_s23 + $0x1c8] sm:$0xff]  ;;  %v8225_v43 = vpack.c.bf16 %v126_v35, %v124_v34 }
  0x32   :  { %8286 = vmatprep.subr.bf16.mxu1 %v8285_v52  ;;  %v131_v40 = vld [vmem:[%s14579_s23 + $0x1d8] sm:$0xff]  ;;  %v385_v41 = vld [vmem:[%s14580_s26 + $0x1c8] sm:$0xff]  ;;  %v8303_v44 = vpack.c.bf16 %v382_v38, %v380_v36  ;;  %v128_v46 = vld [vmem:[%s14579_s23 + $0x1c0] sm:$0xff] }
  0x33   :  { %v387_v42 = vld [vmem:[%s14580_s26 + $0x1d8] sm:$0xff]  ;;  %v8227_v45 = vpack.c.bf16 %v131_v40, %v129_v39  ;;  %v130_v47 = vld [vmem:[%s14579_s23 + $0x1d0] sm:$0xff]  ;;  %v384_v48 = vld [vmem:[%s14580_s26 + $0x1c0] sm:$0xff] }
  0x34   :  { %8210 = vmatpush1.bf16.msra.mxu0 %v8209_v58  ;;  %v8305_v49 = vpack.c.bf16 %v387_v42, %v385_v41  ;;  %v386_v50 = vld [vmem:[%s14580_s26 + $0x1d0] sm:$0xff]  ;;  %v133_v51 = vld [vmem:[%s14579_s23 + $0x1e8] sm:$0xff]  ;;  %v135_v52 = vld [vmem:[%s14579_s23 + $0x1f8] sm:$0xff]  ;;  %v8229_v55 = vpack.c.bf16 %v130_v47, %v128_v46  ;;  %v9726_v47 = vmov 0.0  }
  0x35   :  { %8288 = vmatpush1.bf16.msra.mxu1 %v8287_v59  ;;  %8212 = vmatprep.subr.bf16.mxu0 %v8211_v60  ;;  %v389_v53 = vld [vmem:[%s14580_s26 + $0x1e8] sm:$0xff]  ;;  %v391_v54 = vld [vmem:[%s14580_s26 + $0x1f8] sm:$0xff]  ;;  %v8307_v56 = vpack.c.bf16 %v386_v50, %v384_v48  ;;  %v8231_v57 = vpack.c.bf16 %v135_v52, %v133_v51  ;;  %v132_v58 = vld [vmem:[%s14579_s23 + $0x1e0] sm:$0xff] }
  0x36   :  { %8290 = vmatprep.subr.bf16.mxu1 %v8289_v0  ;;  %v134_v59 = vld [vmem:[%s14579_s23 + $0x1f0] sm:$0xff]  ;;  %v388_v60 = vld [vmem:[%s14580_s26 + $0x1e0] sm:$0xff]  ;;  %v8309_v61 = vpack.c.bf16 %v391_v54, %v389_v53  ;;  %v137_v63 = vld [vmem:[%s14579_s23 + $0x208] sm:$0xff] }
  0x37   :  { %v390_v62 = vld [vmem:[%s14580_s26 + $0x1f0] sm:$0xff]  ;;  %v139_v0 = vld [vmem:[%s14579_s23 + $0x218] sm:$0xff]  ;;  %v393_v1 = vld [vmem:[%s14580_s26 + $0x208] sm:$0xff]  ;;  %v8233_v3 = vpack.c.bf16 %v134_v59, %v132_v58 }
  0x38   :  { %8214 = vmatpush1.bf16.msra.mxu0 %v8213_v6  ;;  %v395_v2 = vld [vmem:[%s14580_s26 + $0x218] sm:$0xff]  ;;  %v8311_v4 = vpack.c.bf16 %v390_v62, %v388_v60  ;;  %v8235_v5 = vpack.c.bf16 %v139_v0, %v137_v63  ;;  %v136_v6 = vld [vmem:[%s14579_s23 + $0x200] sm:$0xff]  ;;  %v138_v7 = vld [vmem:[%s14579_s23 + $0x210] sm:$0xff] }
  0x39   :  { %8292 = vmatpush1.bf16.msra.mxu1 %v8291_v8  ;;  %8216 = vmatprep.subr.bf16.mxu0 %v8215_v9  ;;  %v392_v8 = vld [vmem:[%s14580_s26 + $0x200] sm:$0xff]  ;;  %v8313_v9 = vpack.c.bf16 %v395_v2, %v393_v1  ;;  %v394_v10 = vld [vmem:[%s14580_s26 + $0x210] sm:$0xff]  ;;  %v141_v11 = vld [vmem:[%s14579_s23 + $0x228] sm:$0xff]  ;;  %v8237_v17 = vpack.c.bf16 %v138_v7, %v136_v6 }
  0x3a   :  { %8294 = vmatprep.subr.bf16.mxu1 %v8293_v13  ;;  %v143_v12 = vld [vmem:[%s14579_s23 + $0x238] sm:$0xff]  ;;  %v397_v13 = vld [vmem:[%s14580_s26 + $0x228] sm:$0xff]  ;;  %v10265_v15 = vld [vmem:[%s14581_s2] sm:$0xff]  ;;  %v8315_v18 = vpack.c.bf16 %v394_v10, %v392_v8 }
  0x3b   :  { %v399_v14 = vld [vmem:[%s14580_s26 + $0x238] sm:$0xff]  ;;  %v396_v22 = vld [vmem:[%s14580_s26 + $0x220] sm:$0xff]  ;;  %v398_v24 = vld [vmem:[%s14580_s26 + $0x230] sm:$0xff] }
  0x3c   :  { %8218 = vmatpush1.bf16.msra.mxu0 %v8217_v19  ;;  %v8239_v19 = vpack.c.bf16 %v143_v12, %v141_v11  ;;  %v8317_v23 = vpack.c.bf16 %v399_v14, %v397_v13  ;;  %v147_v26 = vld [vmem:[%s14579_s23 + $0x258] sm:$0xf]  ;;  %v10289_v27 = vld [vmem:[%s14581_s2 + $0x20] sm:$0xff]  ;;  %v401_v28 = vld [vmem:[%s14580_s26 + $0x248] sm:$0xff] }
  0x3d   :  { %8296 = vmatpush1.bf16.msra.mxu1 %v8295_v20  ;;  %8220 = vmatprep.subr.bf16.mxu0 %v8219_v21  ;;  %v140_v20 = vld [vmem:[%s14579_s23 + $0x220] sm:$0xff]  ;;  %v142_v21 = vld [vmem:[%s14579_s23 + $0x230] sm:$0xff]  ;;  %v403_v29 = vld [vmem:[%s14580_s26 + $0x258] sm:$0xf] }
  0x3e   :  { %8298 = vmatprep.subr.bf16.mxu1 %v8297_v25  ;;  %v145_v25 = vld [vmem:[%s14579_s23 + $0x248] sm:$0xff]  ;;  %v8241_v30 = vpack.c.bf16 %v142_v21, %v140_v20  ;;  %v144_v35 = vld [vmem:[%s14579_s23 + $0x240] sm:$0xff]  ;;  %v146_v36 = vld [vmem:[%s14579_s23 + $0x250] sm:$0xf]  ;;  %v8321_v38 = vpack.c.bf16 %v403_v29, %v401_v28 }
  0x3f   :  { %v8243_v34 = vpack.c.bf16 %v147_v26, %v145_v25  ;;  %v402_v39 = vld [vmem:[%s14580_s26 + $0x250] sm:$0xf]  ;;  %v577_v40 = vld [vmem:[%s14584_s21 + $0x8] sm:$0xff]  ;;  %v579_v41 = vld [vmem:[%s14584_s21 + $0x18] sm:$0xff]  ;;  %v8246_v42 = vpack.c.bf16 %v146_v36, %v144_v35 }
  0x40   :  { %8222 = vmatpush1.bf16.msra.mxu0 %v8221_v31  ;;  %v10301_v31 = vld [vmem:[%s14581_s2 + $0x18] sm:$0xff]  ;;  %v578_v46 = vld [vmem:[%s14584_s21 + $0x10] sm:$0xff]  ;;  %v581_v48 = vld [vmem:[%s14584_s21 + $0x28] sm:$0xff] }
  0x41   :  { %8300 = vmatpush1.bf16.msra.mxu1 %v8299_v32  ;;  %8224 = vmatprep.subr.bf16.mxu0 %v8223_v33  ;;  %v8319_v33 = vpack.c.bf16 %v398_v24, %v396_v22  ;;  %v10353_v50 = vld [vmem:[%s14581_s2 + $0x10] sm:$0xff]  ;;  %v580_v52 = vld [vmem:[%s14584_s21 + $0x20] sm:$0xff] }
  0x42   :  { %8302 = vmatprep.subr.bf16.mxu1 %v8301_v37  ;;  %v400_v37 = vld [vmem:[%s14580_s26 + $0x240] sm:$0xff]  ;;  %v582_v53 = vld [vmem:[%s14584_s21 + $0x30] sm:$0xff] }
  0x44   :  { %8226 = vmatpush1.bf16.msra.mxu0 %v8225_v43  ;;  %v8324_v43 = vpack.c.bf16 %v402_v39, %v400_v37 }
  0x45   :  { %8304 = vmatpush1.bf16.msra.mxu1 %v8303_v44  ;;  %8228 = vmatprep.subr.bf16.mxu0 %v8227_v45  ;;  %v8327_v44 = vpack.c.bf16 %v579_v41, %v577_v40  ;;  %v576_v45 = vld [vmem:[%s14584_s21] sm:$0xff] }
  0x46   :  { %8306 = vmatprep.subr.bf16.mxu1 %v8305_v49  ;;  %v583_v49 = vld [vmem:[%s14584_s21 + $0x38] sm:$0xff]  ;;  %v8329_v51 = vpack.c.bf16 %v578_v46, %v576_v45 }
  0x47   :  { %v8331_v54 = vpack.c.bf16 %v583_v49, %v581_v48 }
  0x48   :  { %8230 = vmatpush1.bf16.msra.mxu0 %v8229_v55  ;;  %v585_v55 = vld [vmem:[%s14584_s21 + $0x48] sm:$0xff] }
  0x49   :  { %8308 = vmatpush1.bf16.msra.mxu1 %v8307_v56  ;;  %8232 = vmatprep.subr.bf16.mxu0 %v8231_v57  ;;  %v587_v56 = vld [vmem:[%s14584_s21 + $0x58] sm:$0xff] }
  0x4a   :  { %8310 = vmatprep.subr.bf16.mxu1 %v8309_v61 }
  0x4c   :  { %8234 = vmatpush1.bf16.msra.mxu0 %v8233_v3 }
  0x4d   :  { %8312 = vmatpush1.bf16.msra.mxu1 %v8311_v4  ;;  %8236 = vmatprep.subr.bf16.mxu0 %v8235_v5 }
  0x4e   :  { %8314 = vmatprep.subr.bf16.mxu1 %v8313_v9 }
  0x4f   :  { %239 = vmatmul.mubr.f32.vlgmr.msra.gmra.mrb[0].mxu0 %v10265_v15 }
  0x50   :  { %8238 = vmatpush1.bf16.msra.mxu0 %v8237_v17  ;;  %487 = vmatmul.mubr.f32.vlgmr.msra.gmra.mrb[0].mxu1 %v10265_v15 }
  0x51   :  { %8316 = vmatpush1.bf16.msra.mxu1 %v8315_v18  ;;  %8240 = vmatprep.subr.bf16.mxu0 %v8239_v19 }
  0x52   :  { %8318 = vmatprep.subr.bf16.mxu1 %v8317_v23  ;;  %244 = vmatprep.mubr.f32.mxu0 %v10289_v27 }
  0x53   :  { %492 = vmatprep.mubr.f32.mxu1 %v10289_v27  ;;  %245 = vmatmul.mubr.f32.gmra.mrb[2].mxu0 %v10301_v31 }
  0x54   :  { %8242 = vmatpush1.bf16.msra.mxu0 %v8241_v30  ;;  %493 = vmatmul.mubr.f32.gmra.mrb[2].mxu1 %v10301_v31 }
  0x55   :  { %8320 = vmatpush1.bf16.msra.mxu1 %v8319_v33  ;;  %8245 = vmatprep.subr.msk.bf16.mxu0 %vm10304_vm2, %v8243_v34 }
  0x56   :  { %8323 = vmatprep.subr.msk.bf16.mxu1 %vm10304_vm2, %v8321_v38  ;;  %315 = vmatprep.mubr.f32.mxu0 %v9726_v47 }
  0x57   :  { %563 = vmatprep.mubr.f32.mxu1 %v9726_v47 }
  0x58   :  { %8248 = vmatpush1.bf16.msk.msra.mxu0 %vm10304_vm2, %v8246_v42 }
  0x59   :  { %8326 = vmatpush1.bf16.msk.msra.mxu1 %vm10304_vm2, %v8324_v43  ;;  %8328 = vmatprep.subr.bf16.mxu0 %v8327_v44 }
  0x5a   :  { %25 = vsyncpa [#allocation4], 0  ;;  %v10376_v57 = vld [vmem:[%s14581_s2 + $0x28] sm:$0xff]  ;;  %v8333_v58 = vpack.c.bf16 %v582_v53, %v580_v52  ;;  %v8335_v59 = vpack.c.bf16 %v587_v56, %v585_v55  ;;  %v584_v60 = vld [vmem:[%s14584_s21 + $0x40] sm:$0xff]  ;;  %vm828_vm4 = vcmask 179200   ;;  %vm905_vm5 = vcmask 64512  }
  0x5b   :  { %6908 = vmatmul.mubr.msk.f32.vlgmr.msra.gmra.mrb[0].mxu0 %vm160_vm3, %v10353_v50  ;;  %v586_v61 = vld [vmem:[%s14584_s21 + $0x50] sm:$0xff]  ;;  %v589_v62 = vld [vmem:[%s14584_s21 + $0x68] sm:$0xff]  ;;  %v591_v63 = vld [vmem:[%s14584_s21 + $0x78] sm:$0xff]  ;;  %vm2365_vm6 = vcmask 1045504   ;;  %vm3051_vm7 = vcmask 261120   ;;  %s14585_s28 = sld [smem:[#allocation7_spill]] }
  0x5c   :  { %6912 = vmatmul.mubr.msk.f32.vlgmr.msra.gmra.mrb[0].mxu1 %vm160_vm3, %v10353_v50  ;;  %8330 = vmatpush1.bf16.msra.mxu0 %v8329_v51  ;;  %v8337_v0 = vpack.c.bf16 %v586_v61, %v584_v60  ;;  %v8339_v1 = vpack.c.bf16 %v591_v63, %v589_v62  ;;  %v588_v2 = vld [vmem:[%s14584_s21 + $0x60] sm:$0xff]  ;;  %v590_v3 = vld [vmem:[%s14584_s21 + $0x70] sm:$0xff]  ;;  %v593_v4 = vld [vmem:[%s14584_s21 + $0x88] sm:$0xff]  ;;  %vm6554_vm8 = vcmask 130048   ;;  %vm9728_vm9 = vmmov 0  }
  0x5d   :  { %321 = vmatprep.mubr.f32.mxu0 %v9726_v47  ;;  %569 = vmatprep.mubr.f32.mxu1 %v9726_v47  ;;  %v595_v5 = vld [vmem:[%s14584_s21 + $0x98] sm:$0xff]  ;;  %v8341_v6 = vpack.c.bf16 %v590_v3, %v588_v2  ;;  %v592_v8 = vld [vmem:[%s14584_s21 + $0x80] sm:$0xff]  ;;  %v594_v9 = vld [vmem:[%s14584_s21 + $0x90] sm:$0xff]  ;;  %vm6890_vm10 = vcmask 58368  }
  0x5e   :  { %8332 = vmatprep.subr.bf16.mxu0 %v8331_v54  ;;  %v8343_v7 = vpack.c.bf16 %v595_v5, %v593_v4  ;;  %v597_v10 = vld [vmem:[%s14584_s21 + $0xa8] sm:$0xff]  ;;  %v599_v11 = vld [vmem:[%s14584_s21 + $0xb8] sm:$0xff]  ;;  %v8345_v12 = vpack.c.bf16 %v594_v9, %v592_v8  ;;  %v596_v14 = vld [vmem:[%s14584_s21 + $0xa0] sm:$0xff] }
  0x5f   :  { %6909 = vmatmul.mubr.msk.f32.gmra.mrb[2].mxu0 %vm160_vm3, %v10376_v57  ;;  %v8347_v13 = vpack.c.bf16 %v599_v11, %v597_v10  ;;  %v598_v17 = vld [vmem:[%s14584_s21 + $0xb0] sm:$0xff]  ;;  %v601_v18 = vld [vmem:[%s14584_s21 + $0xc8] sm:$0xff]  ;;  %v603_v19 = vld [vmem:[%s14584_s21 + $0xd8] sm:$0xff] }
  0x60   :  { %6913 = vmatmul.mubr.msk.f32.gmra.mrb[2].mxu1 %vm160_vm3, %v10376_v57  ;;  %8334 = vmatpush1.bf16.msra.mxu0 %v8333_v58  ;;  %v8349_v20 = vpack.c.bf16 %v598_v17, %v596_v14  ;;  %v8351_v21 = vpack.c.bf16 %v603_v19, %v601_v18  ;;  %v600_v22 = vld [vmem:[%s14584_s21 + $0xc0] sm:$0xff]  ;;  %v602_v23 = vld [vmem:[%s14584_s21 + $0xd0] sm:$0xff]  ;;  %v605_v24 = vld [vmem:[%s14584_s21 + $0xe8] sm:$0xff] }
  0x61   :  { %8336 = vmatprep.subr.bf16.mxu0 %v8335_v59  ;;  %734 = vmatprep.mubr.f32.mxu0 %v10132_v16  ;;  %v607_v25 = vld [vmem:[%s14584_s21 + $0xf8] sm:$0xff]  ;;  %v8353_v26 = vpack.c.bf16 %v602_v23, %v600_v22  ;;  %v604_v29 = vld [vmem:[%s14584_s21 + $0xe0] sm:$0xff]  ;;  %v606_v30 = vld [vmem:[%s14584_s21 + $0xf0] sm:$0xff] }
  0x62   :  { %984 = vmatprep.mubr.f32.mxu1 %v9726_v47  ;;  %v8355_v28 = vpack.c.bf16 %v607_v25, %v605_v24  ;;  %v609_v33 = vld [vmem:[%s14584_s21 + $0x108] sm:$0xff]  ;;  %v611_v34 = vld [vmem:[%s14584_s21 + $0x118] sm:$0xff]  ;;  %v8357_v35 = vpack.c.bf16 %v606_v30, %v604_v29  ;;  %v608_v37 = vld [vmem:[%s14584_s21 + $0x100] sm:$0xff] }
  0x63   :  { %v8359_v36 = vpack.c.bf16 %v611_v34, %v609_v33  ;;  %v610_v38 = vld [vmem:[%s14584_s21 + $0x110] sm:$0xff]  ;;  %v613_v39 = vld [vmem:[%s14584_s21 + $0x128] sm:$0xff]  ;;  %v615_v40 = vld [vmem:[%s14584_s21 + $0x138] sm:$0xff] }
  0x64   :  { %8338 = vmatpush1.bf16.msra.mxu0 %v8337_v0  ;;  %v8361_v41 = vpack.c.bf16 %v610_v38, %v608_v37  ;;  %v8363_v42 = vpack.c.bf16 %v615_v40, %v613_v39  ;;  %v612_v43 = vld [vmem:[%s14584_s21 + $0x120] sm:$0xff]  ;;  %v614_v44 = vld [vmem:[%s14584_s21 + $0x130] sm:$0xff]  ;;  %v617_v45 = vld [vmem:[%s14584_s21 + $0x148] sm:$0xff] }
  0x65   :  { %8340 = vmatprep.subr.bf16.mxu0 %v8339_v1  ;;  %v619_v46 = vld [vmem:[%s14584_s21 + $0x158] sm:$0xff]  ;;  %v8365_v48 = vpack.c.bf16 %v614_v44, %v612_v43  ;;  %v616_v51 = vld [vmem:[%s14584_s21 + $0x140] sm:$0xff]  ;;  %v618_v52 = vld [vmem:[%s14584_s21 + $0x150] sm:$0xff]  ;;  %v150_v44 = vlaneseq }
  0x66   :  { %v8367_v49 = vpack.c.bf16 %v619_v46, %v617_v45  ;;  %v621_v53 = vld [vmem:[%s14584_s21 + $0x168] sm:$0xff]  ;;  %v623_v54 = vld [vmem:[%s14584_s21 + $0x178] sm:$0xff]  ;;  %v8369_v55 = vpack.c.bf16 %v618_v52, %v616_v51  ;;  %v620_v58 = vld [vmem:[%s14584_s21 + $0x160] sm:$0xff] }
  0x67   :  { %v8371_v56 = vpack.c.bf16 %v623_v54, %v621_v53  ;;  %v622_v59 = vld [vmem:[%s14584_s21 + $0x170] sm:$0xff]  ;;  %v625_v60 = vld [vmem:[%s14584_s21 + $0x188] sm:$0xff]  ;;  %v627_v61 = vld [vmem:[%s14584_s21 + $0x198] sm:$0xff]  ;;  %v10597_v45 = vshrl.u32 %v150_v44, 7 }
  0x68   :  { %8342 = vmatpush1.bf16.msra.mxu0 %v8341_v6  ;;  %v8373_v62 = vpack.c.bf16 %v622_v59, %v620_v58  ;;  %v8375_v63 = vpack.c.bf16 %v627_v61, %v625_v60  ;;  %v624_v0 = vld [vmem:[%s14584_s21 + $0x180] sm:$0xff]  ;;  %v626_v1 = vld [vmem:[%s14584_s21 + $0x190] sm:$0xff]  ;;  %v629_v2 = vld [vmem:[%s14584_s21 + $0x1a8] sm:$0xff] }
  0x69   :  { %8344 = vmatprep.subr.bf16.mxu0 %v8343_v7  ;;  %v631_v3 = vld [vmem:[%s14584_s21 + $0x1b8] sm:$0xff]  ;;  %v8377_v4 = vpack.c.bf16 %v626_v1, %v624_v0  ;;  %v628_v6 = vld [vmem:[%s14584_s21 + $0x1a0] sm:$0xff]  ;;  %v630_v7 = vld [vmem:[%s14584_s21 + $0x1b0] sm:$0xff]  ;;  %v10600_v46 = vsub.s32 1, %v10597_v45 }
  0x6a   :  { %v8379_v5 = vpack.c.bf16 %v631_v3, %v629_v2  ;;  %v633_v8 = vld [vmem:[%s14584_s21 + $0x1c8] sm:$0xff]  ;;  %v635_v9 = vld [vmem:[%s14584_s21 + $0x1d8] sm:$0xff]  ;;  %v8381_v10 = vpack.c.bf16 %v630_v7, %v628_v6  ;;  %v404_v51 = vld [vmem:[%s14555_s6] sm:$0x3] }
  0x6b   :  { %v8383_v11 = vpack.c.bf16 %v635_v9, %v633_v8  ;;  %v637_v14 = vld [vmem:[%s14584_s21 + $0x1e8] sm:$0xff]  ;;  %v639_v17 = vld [vmem:[%s14584_s21 + $0x1f8] sm:$0xff]  ;;  %v413_v54 = vrot.slane %v404_v51, %v10600_v46 }
  0x6c   :  { %8346 = vmatpush1.bf16.msra.mxu0 %v8345_v12  ;;  %v632_v12 = vld [vmem:[%s14584_s21 + $0x1c0] sm:$0xff]  ;;  %v8387_v19 = vpack.c.bf16 %v639_v17, %v637_v14  ;;  %v641_v22 = vld [vmem:[%s14584_s21 + $0x208] sm:$0xff]  ;;  %v643_v23 = vld [vmem:[%s14584_s21 + $0x218] sm:$0xff] }
  0x6d   :  { %8348 = vmatprep.subr.bf16.mxu0 %v8347_v13  ;;  %v634_v13 = vld [vmem:[%s14584_s21 + $0x1d0] sm:$0xff]  ;;  %v8391_v25 = vpack.c.bf16 %v643_v23, %v641_v22  ;;  %v645_v29 = vld [vmem:[%s14584_s21 + $0x228] sm:$0xff]  ;;  %v647_v30 = vld [vmem:[%s14584_s21 + $0x238] sm:$0xff] }
  0x6e   :  { %v8385_v18 = vpack.c.bf16 %v634_v13, %v632_v12  ;;  %v8395_v34 = vpack.c.bf16 %v647_v30, %v645_v29  ;;  %v649_v37 = vld [vmem:[%s14584_s21 + $0x248] sm:$0xff]  ;;  %v651_v38 = vld [vmem:[%s14584_s21 + $0x258] sm:$0xf] }
  0x6f   :  { %v8399_v40 = vpack.c.bf16 %v651_v38, %v649_v37  ;;  %v7006_v44 = vld [vmem:[%s14580_s26 + $0x268] sm:$0xff] }
  0x70   :  { %8350 = vmatpush1.bf16.msra.mxu0 %v8349_v20  ;;  %v636_v20 = vld [vmem:[%s14584_s21 + $0x1e0] sm:$0xff] }
  0x71   :  { %8352 = vmatprep.subr.bf16.mxu0 %v8351_v21  ;;  %v638_v21 = vld [vmem:[%s14584_s21 + $0x1f0] sm:$0xff] }
  0x72   :  { %v8389_v24 = vpack.c.bf16 %v638_v21, %v636_v20 }
  0x74   :  { %8354 = vmatpush1.bf16.msra.mxu0 %v8353_v26  ;;  %v640_v26 = vld [vmem:[%s14584_s21 + $0x200] sm:$0xff] }
  0x75   :  { %8356 = vmatprep.subr.bf16.mxu0 %v8355_v28  ;;  %v642_v28 = vld [vmem:[%s14584_s21 + $0x210] sm:$0xff] }
  0x76   :  { %v8393_v33 = vpack.c.bf16 %v642_v28, %v640_v26 }
  0x78   :  { %8358 = vmatpush1.bf16.msra.mxu0 %v8357_v35  ;;  %v644_v35 = vld [vmem:[%s14584_s21 + $0x220] sm:$0xff] }
  0x79   :  { %8360 = vmatprep.subr.bf16.mxu0 %v8359_v36  ;;  %v646_v36 = vld [vmem:[%s14584_s21 + $0x230] sm:$0xff] }
  0x7a   :  { %v8397_v39 = vpack.c.bf16 %v646_v36, %v644_v35 }
  0x7c   :  { %8362 = vmatpush1.bf16.msra.mxu0 %v8361_v41  ;;  %v648_v41 = vld [vmem:[%s14584_s21 + $0x240] sm:$0xff] }
  0x7d   :  { %8364 = vmatprep.subr.bf16.mxu0 %v8363_v42  ;;  %v650_v42 = vld [vmem:[%s14584_s21 + $0x250] sm:$0xf] }
  0x7e   :  { %v8402_v43 = vpack.c.bf16 %v650_v42, %v648_v41 }
  0x80   :  { %8366 = vmatpush1.bf16.msra.mxu0 %v8365_v48  ;;  %v148_v48 = vld [vmem:[%s14554_s5] sm:$0x3] }
  0x81   :  { %8368 = vmatprep.subr.bf16.mxu0 %v8367_v49  ;;  %v10606_v49 = vsub.s32 0, %v10597_v45  ;;  %v157_v52 = vrot.slane %v148_v48, %v10600_v46 }
  0x83   :  { %v153_v53 = vrot.slane %v148_v48, %v10606_v49  ;;  %v7008_v48 = vld [vmem:[%s14580_s26 + $0x278] sm:$0xff] }
  0x84   :  { %8370 = vmatpush1.bf16.msra.mxu0 %v8369_v55 }
  0x85   :  { %8372 = vmatprep.subr.bf16.mxu0 %v8371_v56  ;;  %v409_v56 = vrot.slane %v404_v51, %v10606_v49  ;;  %v7005_v51 = vld [vmem:[%s14580_s26 + $0x260] sm:$0xff] }
  0x88   :  { %8374 = vmatpush1.bf16.msra.mxu0 %v8373_v62 }
  0x89   :  { %8376 = vmatprep.subr.bf16.mxu0 %v8375_v63 }
  0x8c   :  { %8378 = vmatpush1.bf16.msra.mxu0 %v8377_v4 }
  0x8d   :  { %8380 = vmatprep.subr.bf16.mxu0 %v8379_v5 }
  0x90   :  { %8382 = vmatpush1.bf16.msra.mxu0 %v8381_v10 }
  0x91   :  { %8384 = vmatprep.subr.bf16.mxu0 %v8383_v11  ;;  %v652_v11 = vld [vmem:[%s14556_s7] sm:$0x3] }
  0x92   :  { %v657_v12 = vrot.slane %v652_v11, %v10606_v49  ;;  %v661_v13 = vrot.slane %v652_v11, %v10600_v46 }
  0x94   :  { %8386 = vmatpush1.bf16.msra.mxu0 %v8385_v18 }
  0x95   :  { %8388 = vmatprep.subr.bf16.mxu0 %v8387_v19 }
  0x98   :  { %8390 = vmatpush1.bf16.msra.mxu0 %v8389_v24 }
  0x99   :  { %8392 = vmatprep.subr.bf16.mxu0 %v8391_v25 }
  0x9b   :  { %735 = vmatmul.mubr.f32.vlgmr.msra.gmra.mrb[4].mxu0 %v10265_v15 }
  0x9c   :  { %8394 = vmatpush1.bf16.msra.mxu0 %v8393_v33  ;;  %740 = vmatprep.mubr.f32.mxu0 %v10289_v27 }
  0x9d   :  { %8396 = vmatprep.subr.bf16.mxu0 %v8395_v34 }
  0x9f   :  { %741 = vmatmul.mubr.f32.gmra.mrb[6].mxu0 %v10301_v31 }
  0xa0   :  { %8398 = vmatpush1.bf16.msra.mxu0 %v8397_v39  ;;  %811 = vmatprep.mubr.f32.mxu0 %v9726_v47 }
  0xa1   :  { %8401 = vmatprep.subr.msk.bf16.mxu0 %vm10304_vm2, %v8399_v40 }
  0xa4   :  { %8404 = vmatpush1.bf16.msk.msra.mxu0 %vm10304_vm2, %v8402_v43 }
  0xa7   :  { %6916 = vmatmul.mubr.msk.f32.vlgmr.msra.gmra.mrb[4].mxu0 %vm160_vm3, %v10353_v50 }
  0xa8   :  { %817 = vmatprep.mubr.f32.mxu0 %v9726_v47 }
  0xab   :  { %6917 = vmatmul.mubr.msk.f32.gmra.mrb[6].mxu0 %vm160_vm3, %v10376_v57 }
 0x12e   :  { %v317_v55 = vpop.f32.mrb[0].mxu0 }
 0x12f   :  { %v565_v58 = vpop.f32.mrb[0].mxu1  ;;  %v319_v59 = vpop.f32.mrb[1].mxu0  ;;  %v9532_v62 = vadd.f32 %v317_v55, %v153_v53 }
 0x130   :  { %v9533_v60 = vadd.f32 %v319_v59, %v157_v52  ;;  %v567_v61 = vpop.f32.mrb[1].mxu1  ;;  %v9536_v0 = vadd.f32 %v565_v58, %v409_v56 }
 0x131   :  { %v9537_v63 = vadd.f32 %v567_v61, %v413_v54  ;;  %v824_v9 = vmul.f32 0.08164966, %v9532_v62  ;;  %v7010_v61 = vld [vmem:[%s14580_s26 + $0x288] sm:$0xff]  ;;  %v7012_v62 = vld [vmem:[%s14580_s26 + $0x298] sm:$0xff] }
 0x132   :  { %v825_v1 = vmul.f32 0.08164966, %v9533_v60  ;;  %v323_v2 = vpop.f32.mrb[2].mxu0 }
 0x133   :  { %v9534_v3 = vadd.f32 %v323_v2, %v153_v53  ;;  %v571_v4 = vpop.f32.mrb[2].mxu1  ;;  %6918 = vmatprep.subr.msk.mxu0 %vm828_vm4, %v9537_v63  ;;  %v325_v5 = vpop.f32.mrb[3].mxu0  ;;  %v7007_v53 = vld [vmem:[%s14580_s26 + $0x270] sm:$0xff]  ;;  %v8487_v63 = vpack.c.bf16 %v7012_v62, %v7010_v61  ;;  %v7041_v62 = vld [vmem:[%s14580_s26 + $0x380] sm:$0xff] }
 0x134   :  { %v9538_v6 = vadd.f32 %v571_v4, %v409_v56  ;;  %v9535_v7 = vadd.f32 %v325_v5, %v157_v52  ;;  %v573_v8 = vpop.f32.mrb[3].mxu1  ;;  %836 = vmatpush1.xpose.msra.mxu0 %v9536_v0  ;;  %6919 = vmatprep.mubr.msk.f32.mxu0 %vm828_vm4, %v825_v1  ;;  %v8483_v52 = vpack.c.bf16 %v7008_v48, %v7006_v44  ;;  %v7009_v0 = vld [vmem:[%s14580_s26 + $0x280] sm:$0xff]  ;;  %v7011_v1 = vld [vmem:[%s14580_s26 + $0x290] sm:$0xff]  ;;  %v7016_v4 = vld [vmem:[%s14580_s26 + $0x2b8] sm:$0xff] }
 0x135   :  { %v9539_v10 = vadd.f32 %v573_v8, %v413_v54  ;;  %v826_v38 = vmul.f32 0.08164966, %v9534_v3  ;;  %v8485_v54 = vpack.c.bf16 %v7007_v53, %v7005_v51  ;;  %v8489_v2 = vpack.c.bf16 %v7011_v1, %v7009_v0  ;;  %v7014_v3 = vld [vmem:[%s14580_s26 + $0x2a8] sm:$0xff]  ;;  %v7035_v44 = vld [vmem:[%s14580_s26 + $0x350] sm:$0xff] }
 0x136   :  { %v827_v37 = vmul.f32 0.08164966, %v9535_v7  ;;  %8484 = vmatprep.subr.bf16.mxu0 %v8483_v52  ;;  %v8491_v5 = vpack.c.bf16 %v7016_v4, %v7014_v3  ;;  %v7015_v7 = vld [vmem:[%s14580_s26 + $0x2b0] sm:$0xff]  ;;  %v7038_v51 = vld [vmem:[%s14580_s26 + $0x368] sm:$0xff]  ;;  %v7040_v52 = vld [vmem:[%s14580_s26 + $0x378] sm:$0xff] }
 0x137   :  { %900 = vmatmul.mubr.f32.vlgmr.msra.gmra.mrb[8].mxu0 %v824_v9  ;;  %v7018_v9 = vld [vmem:[%s14580_s26 + $0x2c8] sm:$0xff]  ;;  %v8515_v53 = vpack.c.bf16 %v7040_v52, %v7038_v51  ;;  %v7045_v4 = vld [vmem:[%s14580_s26 + $0x3a0] sm:$0xff] }
 0x138   :  { %1627 = vmatprep.mubr.f32.mxu0 %v10132_v16  ;;  %8486 = vmatpush1.bf16.msra.mxu0 %v8485_v54  ;;  %v7037_v54 = vld [vmem:[%s14580_s26 + $0x360] sm:$0xff]  ;;  %v7046_v1 = vld [vmem:[%s14580_s26 + $0x3a8] sm:$0xff] }
 0x139   :  { %8488 = vmatprep.subr.bf16.mxu0 %v8487_v63  ;;  %v7043_v63 = vld [vmem:[%s14580_s26 + $0x390] sm:$0xff]  ;;  %v7074_v52 = vld [vmem:[%s14580_s26 + $0x488] sm:$0xff] }
 0x13a   :  { %v8521_v0 = vpack.c.bf16 %v7043_v63, %v7041_v62 }
 0x13c   :  { %8490 = vmatpush1.bf16.msra.mxu0 %v8489_v2  ;;  %v7048_v2 = vld [vmem:[%s14580_s26 + $0x3b8] sm:$0xff] }
 0x13d   :  { %8492 = vmatprep.subr.bf16.mxu0 %v8491_v5  ;;  %v8523_v3 = vpack.c.bf16 %v7048_v2, %v7046_v1  ;;  %v7047_v5 = vld [vmem:[%s14580_s26 + $0x3b0] sm:$0xff]  ;;  %v6929_v2 = vld [vmem:[%s14579_s23 + $0x288] sm:$0xff] }
 0x13e   :  { %v6926_v1 = vld [vmem:[%s14579_s23 + $0x270] sm:$0xff] }
 0x17a   :  { %v813_v14 = vpop.f32.mrb[4].mxu0 }
 0x17b   :  { %v9540_v17 = vadd.f32 %v813_v14, %v657_v12  ;;  %v815_v18 = vpop.f32.mrb[5].mxu0 }
 0x17c   :  { %v9541_v19 = vadd.f32 %v815_v18, %v661_v13  ;;  %v6927_v18 = vld [vmem:[%s14579_s23 + $0x278] sm:$0xff] }
 0x17e   :  { %920 = vmatprep.subr.mxu1 %v9541_v19  ;;  %v819_v20 = vpop.f32.mrb[6].mxu0 }
 0x17f   :  { %921 = vmatpush1.msra.mxu1 %v9540_v17  ;;  %v9542_v21 = vadd.f32 %v819_v20, %v657_v12  ;;  %v821_v22 = vpop.f32.mrb[7].mxu0  ;;  %v7017_v12 = vld [vmem:[%s14580_s26 + $0x2c0] sm:$0xff]  ;;  %v6925_v17 = vld [vmem:[%s14579_s23 + $0x268] sm:$0xff] }
 0x180   :  { %6921 = vmatprep.subr.msk.mxu1 %vm828_vm4, %v9539_v10  ;;  %v9543_v16 = vadd.f32 %v821_v22, %v661_v13  ;;  %v7020_v10 = vld [vmem:[%s14580_s26 + $0x2d8] sm:$0xff]  ;;  %v7019_v13 = vld [vmem:[%s14580_s26 + $0x2d0] sm:$0xff]  ;;  %v8405_v19 = vpack.c.bf16 %v6927_v18, %v6925_v17  ;;  %v7022_v20 = vld [vmem:[%s14580_s26 + $0x2e8] sm:$0xff] }
 0x181   :  { %v8495_v11 = vpack.c.bf16 %v7020_v10, %v7018_v9  ;;  %v8497_v14 = vpack.c.bf16 %v7019_v13, %v7017_v12  ;;  %v7049_v10 = vld [vmem:[%s14580_s26 + $0x3c0] sm:$0xff]  ;;  %v7054_v13 = vld [vmem:[%s14580_s26 + $0x3e8] sm:$0xff] }
 0x182   :  { %v7053_v18 = vld [vmem:[%s14580_s26 + $0x3e0] sm:$0xff] }
 0x20a   :  { %v901_v23 = vpop.f32.mrb[8].mxu0 }
 0x20b   :  { %v903_v24 = vpop.f32.mrb[9].mxu0  ;;  %v906_v25 = vsel %vm905_vm5, %v901_v23, -inf }
 0x20c   :  { %907 = vmax.xlane.f32.xlu0 %v906_v25  ;;  %v7026_v25 = vld [vmem:[%s14580_s26 + $0x308] sm:$0xff] }
 0x299   :  { %v908_v26 = vpop.xlane.xlu0 %907 }
 0x29a   :  { %v909_v28 = vsub.f32 %v901_v23, %v908_v26  ;;  %v7023_v23 = vld [vmem:[%s14580_s26 + $0x2f0] sm:$0xff]  ;;  %v7028_v26 = vld [vmem:[%s14580_s26 + $0x318] sm:$0xff] }
 0x29c   :  { %v910_v29 = vmul.f32 1.442695, %v909_v28  ;;  %v8503_v28 = vpack.c.bf16 %v7028_v26, %v7026_v25  ;;  %v7062_v26 = vld [vmem:[%s14580_s26 + $0x428] sm:$0xff] }
 0x29e   :  { %9641 = vpow2.f32 %v910_v29  ;;  %v7025_v29 = vld [vmem:[%s14580_s26 + $0x300] sm:$0xff] }
 0x2a8   :  { %v9642_v30 = vpop.eup %9641 }
 0x2a9   :  { %v912_v33 = vsel %vm905_vm5, %v9642_v30, 0.0 }
 0x2aa   :  { %913 = vadd.xlane.f32.xlu0 %v912_v33 }
 0x337   :  { %v914_v34 = vpop.xlane.xlu0 %913 }
 0x338   :  { %9643 = vrcp.f32 %v914_v34  ;;  %v7030_v34 = vld [vmem:[%s14580_s26 + $0x328] sm:$0xff] }
 0x342   :  { %v9644_v35 = vpop.eup %9643 }
 0x343   :  { %v916_v36 = vmul.f32 %v9644_v35, %v9642_v30  ;;  %v7027_v30 = vld [vmem:[%s14580_s26 + $0x310] sm:$0xff]  ;;  %v7032_v35 = vld [vmem:[%s14580_s26 + $0x338] sm:$0xff] }
 0x344   :  { %v8505_v33 = vpack.c.bf16 %v7027_v30, %v7025_v29  ;;  %v7061_v30 = vld [vmem:[%s14580_s26 + $0x420] sm:$0xff] }
 0x345   :  { %6920 = vmatmul.mubr.msk.f32.vlgmr.msra.gmra.mrb[4].mxu1 %vm905_vm5, %v916_v36  ;;  %v8507_v36 = vpack.c.bf16 %v7032_v35, %v7030_v34  ;;  %v7066_v35 = vld [vmem:[%s14580_s26 + $0x448] sm:$0xff] }
 0x346   :  { %1000 = vmatpush1.xpose.msra.mxu1 %v9538_v6  ;;  %6922 = vmatprep.mubr.msk.f32.mxu1 %vm828_vm4, %v827_v37  ;;  %v7013_v6 = vld [vmem:[%s14580_s26 + $0x2a0] sm:$0xff] }
 0x347   :  { %1083 = vmatprep.subr.mxu1 %v9543_v16  ;;  %v8493_v8 = vpack.c.bf16 %v7015_v7, %v7013_v6  ;;  %v7021_v16 = vld [vmem:[%s14580_s26 + $0x2e0] sm:$0xff]  ;;  %v8525_v6 = vpack.c.bf16 %v7047_v5, %v7045_v4  ;;  %v7050_v7 = vld [vmem:[%s14580_s26 + $0x3c8] sm:$0xff] }
 0x348   :  { %v8501_v24 = vpack.c.bf16 %v7023_v23, %v7021_v16  ;;  %v7029_v37 = vld [vmem:[%s14580_s26 + $0x320] sm:$0xff] }
 0x349   :  { %1064 = vmatmul.mubr.f32.vlgmr.msra.gmra.mrb[6].mxu1 %v826_v38  ;;  %8494 = vmatpush1.bf16.msra.mxu0 %v8493_v8  ;;  %v7031_v38 = vld [vmem:[%s14580_s26 + $0x330] sm:$0xff]  ;;  %v7052_v8 = vld [vmem:[%s14580_s26 + $0x3d8] sm:$0xff]  ;;  %v7057_v23 = vld [vmem:[%s14580_s26 + $0x400] sm:$0xff] }
 0x34a   :  { %1084 = vmatpush1.msra.mxu1 %v9542_v21  ;;  %1147 = vmatprep.mubr.f32.mxu1 %v9726_v47  ;;  %v7024_v21 = vld [vmem:[%s14580_s26 + $0x2f8] sm:$0xff]  ;;  %v8527_v9 = vpack.c.bf16 %v7052_v8, %v7050_v7  ;;  %v6930_v7 = vld [vmem:[%s14579_s23 + $0x290] sm:$0xff]  ;;  %v6933_v8 = vld [vmem:[%s14579_s23 + $0x2a8] sm:$0xff] }
 0x34b   :  { %8496 = vmatprep.subr.bf16.mxu0 %v8495_v11  ;;  %8406 = vmatprep.subr.bf16.mxu1 %v8405_v19  ;;  %v8499_v22 = vpack.c.bf16 %v7024_v21, %v7022_v20  ;;  %v7051_v11 = vld [vmem:[%s14580_s26 + $0x3d0] sm:$0xff]  ;;  %v7058_v21 = vld [vmem:[%s14580_s26 + $0x408] sm:$0xff] }
 0x34c   :  { %v8529_v12 = vpack.c.bf16 %v7051_v11, %v7049_v10  ;;  %v7055_v19 = vld [vmem:[%s14580_s26 + $0x3f0] sm:$0xff]  ;;  %v10911_v10 = vld [vmem:[%s14581_s2 + $0x8] sm:$0xff] }
 0x34d   :  { %8498 = vmatpush1.bf16.msra.mxu0 %v8497_v14  ;;  %v7056_v14 = vld [vmem:[%s14580_s26 + $0x3f8] sm:$0xff]  ;;  %v8533_v20 = vpack.c.bf16 %v7055_v19, %v7053_v18 }
 0x34e   :  { %8500 = vmatprep.subr.bf16.mxu0 %v8499_v22  ;;  %v8531_v17 = vpack.c.bf16 %v7056_v14, %v7054_v13  ;;  %v7060_v22 = vld [vmem:[%s14580_s26 + $0x418] sm:$0xff]  ;;  %v6934_v13 = vld [vmem:[%s14579_s23 + $0x2b0] sm:$0xff]  ;;  %v6937_v14 = vld [vmem:[%s14579_s23 + $0x2c8] sm:$0xff] }
 0x34f   :  { %v8535_v16 = vpack.c.bf16 %v7060_v22, %v7058_v21  ;;  %v6938_v21 = vld [vmem:[%s14579_s23 + $0x2d0] sm:$0xff]  ;;  %v6941_v22 = vld [vmem:[%s14579_s23 + $0x2e8] sm:$0xff] }
 0x351   :  { %8502 = vmatpush1.bf16.msra.mxu0 %v8501_v24  ;;  %v7059_v24 = vld [vmem:[%s14580_s26 + $0x410] sm:$0xff] }
 0x352   :  { %8504 = vmatprep.subr.bf16.mxu0 %v8503_v28  ;;  %v8537_v25 = vpack.c.bf16 %v7059_v24, %v7057_v23  ;;  %v7064_v28 = vld [vmem:[%s14580_s26 + $0x438] sm:$0xff] }
 0x353   :  { %v8539_v29 = vpack.c.bf16 %v7064_v28, %v7062_v26  ;;  %v6942_v26 = vld [vmem:[%s14579_s23 + $0x2f0] sm:$0xff]  ;;  %v6945_v28 = vld [vmem:[%s14579_s23 + $0x308] sm:$0xff] }
 0x355   :  { %8506 = vmatpush1.bf16.msra.mxu0 %v8505_v33  ;;  %v7063_v33 = vld [vmem:[%s14580_s26 + $0x430] sm:$0xff] }
 0x356   :  { %8508 = vmatprep.subr.bf16.mxu0 %v8507_v36  ;;  %v8541_v34 = vpack.c.bf16 %v7063_v33, %v7061_v30  ;;  %v7068_v36 = vld [vmem:[%s14580_s26 + $0x458] sm:$0xff] }
 0x418   :  { %v986_v39 = vpop.f32.mrb[4].mxu1 }
 0x419   :  { %991 = vst [vmem:[#allocation2] sm:$0xff] %v986_v39  ;;  %v988_v40 = vpop.f32.mrb[5].mxu1  ;;  %v8509_v39 = vpack.c.bf16 %v7031_v38, %v7029_v37  ;;  %v8543_v37 = vpack.c.bf16 %v7068_v36, %v7066_v35  ;;  %v7065_v38 = vld [vmem:[%s14580_s26 + $0x440] sm:$0xff]  ;;  %v6946_v35 = vld [vmem:[%s14579_s23 + $0x310] sm:$0xff]  ;;  %v6949_v36 = vld [vmem:[%s14579_s23 + $0x328] sm:$0xff] }
 0x41a   :  { %992 = vst.msk [vmem:[#allocation2 + $0x8] sm:$0xff] %vm828_vm4, %v988_v40  ;;  %v7034_v40 = vld [vmem:[%s14580_s26 + $0x348] sm:$0xff] }
 0x41b   :  { %8510 = vmatpush1.bf16.msra.mxu0 %v8509_v39  ;;  %v7067_v39 = vld [vmem:[%s14580_s26 + $0x450] sm:$0xff] }
 0x41c   :  { %v1065_v41 = vpop.f32.mrb[6].mxu1 }
 0x41d   :  { %v1067_v42 = vpop.f32.mrb[7].mxu1  ;;  %v1069_v43 = vsel %vm905_vm5, %v1065_v41, -inf }
 0x41e   :  { %1070 = vmax.xlane.f32.xlu1 %v1069_v43  ;;  %v7033_v43 = vld [vmem:[%s14580_s26 + $0x340] sm:$0xff] }
 0x41f   :  { %v8513_v48 = vpack.c.bf16 %v7035_v44, %v7033_v43  ;;  %v7069_v44 = vld [vmem:[%s14580_s26 + $0x460] sm:$0xff] }
 0x4ab   :  { %v1071_v55 = vpop.xlane.xlu1 %1070 }
 0x4ac   :  { %v1072_v56 = vsub.f32 %v1065_v41, %v1071_v55  ;;  %v7036_v41 = vld [vmem:[%s14580_s26 + $0x358] sm:$0xff]  ;;  %v7039_v55 = vld [vmem:[%s14580_s26 + $0x370] sm:$0xff] }
 0x4ad   :  { %v8511_v42 = vpack.c.bf16 %v7036_v41, %v7034_v40  ;;  %v8545_v40 = vpack.c.bf16 %v7067_v39, %v7065_v38  ;;  %v7070_v41 = vld [vmem:[%s14580_s26 + $0x468] sm:$0xff] }
 0x4ae   :  { %v1073_v58 = vmul.f32 1.442695, %v1072_v56  ;;  %v8517_v56 = vpack.c.bf16 %v7039_v55, %v7037_v54  ;;  %v7073_v55 = vld [vmem:[%s14580_s26 + $0x480] sm:$0xff] }
 0x4af   :  { %8512 = vmatprep.subr.bf16.mxu0 %v8511_v42  ;;  %v7072_v42 = vld [vmem:[%s14580_s26 + $0x478] sm:$0xff] }
 0x4b0   :  { %9645 = vpow2.f32 %v1073_v58  ;;  %8514 = vmatpush1.bf16.msra.mxu0 %v8513_v48  ;;  %v7042_v58 = vld [vmem:[%s14580_s26 + $0x388] sm:$0xff]  ;;  %v8547_v43 = vpack.c.bf16 %v7072_v42, %v7070_v41  ;;  %v7071_v48 = vld [vmem:[%s14580_s26 + $0x470] sm:$0xff] }
 0x4b1   :  { %8516 = vmatprep.subr.bf16.mxu0 %v8515_v53  ;;  %v8549_v51 = vpack.c.bf16 %v7071_v48, %v7069_v44  ;;  %v7076_v53 = vld [vmem:[%s14580_s26 + $0x498] sm:$0xff]  ;;  %v6950_v41 = vld [vmem:[%s14579_s23 + $0x330] sm:$0xff]  ;;  %v6953_v42 = vld [vmem:[%s14579_s23 + $0x348] sm:$0xff] }
 0x4b2   :  { %v8551_v54 = vpack.c.bf16 %v7076_v53, %v7074_v52  ;;  %v6954_v52 = vld [vmem:[%s14579_s23 + $0x350] sm:$0xff]  ;;  %v6957_v53 = vld [vmem:[%s14579_s23 + $0x368] sm:$0xff] }
 0x4b4   :  { %8518 = vmatpush1.bf16.msra.mxu0 %v8517_v56 }
 0x4ba   :  { %v10643_v59 = vpop.eup %9645 }
 0x4bb   :  { %v1075_v60 = vsel %vm905_vm5, %v10643_v59, 0.0 }
 0x4bc   :  { %1076 = vadd.xlane.f32.xlu1 %v1075_v60  ;;  %v7044_v60 = vld [vmem:[%s14580_s26 + $0x398] sm:$0xff] }
 0x4bd   :  { %v8519_v61 = vpack.c.bf16 %v7044_v60, %v7042_v58  ;;  %v7078_v58 = vld [vmem:[%s14580_s26 + $0x4a8] sm:$0xff] }
 0x4bf   :  { %8520 = vmatprep.subr.bf16.mxu0 %v8519_v61  ;;  %v7077_v61 = vld [vmem:[%s14580_s26 + $0x4a0] sm:$0xff] }
 0x4c0   :  { %8522 = vmatpush1.bf16.msra.mxu0 %v8521_v0  ;;  %v6924_v0 = vld [vmem:[%s14579_s23 + $0x260] sm:$0xff] }
 0x4c1   :  { %8524 = vmatprep.subr.bf16.mxu0 %v8523_v3 }
 0x4c4   :  { %8526 = vmatpush1.bf16.msra.mxu0 %v8525_v6  ;;  %v6928_v6 = vld [vmem:[%s14579_s23 + $0x280] sm:$0xff] }
 0x4c5   :  { %8528 = vmatprep.subr.bf16.mxu0 %v8527_v9  ;;  %v6935_v9 = vld [vmem:[%s14579_s23 + $0x2b8] sm:$0xff] }
 0x4c6   :  { %v8413_v11 = vpack.c.bf16 %v6935_v9, %v6933_v8  ;;  %v6968_v8 = vld [vmem:[%s14579_s23 + $0x3c0] sm:$0xff]  ;;  %v6970_v9 = vld [vmem:[%s14579_s23 + $0x3d0] sm:$0xff] }
 0x4c8   :  { %8530 = vmatpush1.bf16.msra.mxu0 %v8529_v12  ;;  %v6932_v12 = vld [vmem:[%s14579_s23 + $0x2a0] sm:$0xff] }
 0x4c9   :  { %8532 = vmatprep.subr.bf16.mxu0 %v8531_v17  ;;  %v6939_v17 = vld [vmem:[%s14579_s23 + $0x2d8] sm:$0xff]  ;;  %v8415_v18 = vpack.c.bf16 %v6934_v13, %v6932_v12  ;;  %v8451_v12 = vpack.c.bf16 %v6970_v9, %v6968_v8  ;;  %v7092_v8 = vld [vmem:[%s14584_s21 + $0x290] sm:$0xff]  ;;  %v7095_v9 = vld [vmem:[%s14584_s21 + $0x2a8] sm:$0xff] }
 0x4ca   :  { %v8417_v19 = vpack.c.bf16 %v6939_v17, %v6937_v14  ;;  %v6972_v14 = vld [vmem:[%s14579_s23 + $0x3e0] sm:$0xff]  ;;  %v6974_v17 = vld [vmem:[%s14579_s23 + $0x3f0] sm:$0xff] }
 0x4cc   :  { %8534 = vmatpush1.bf16.msra.mxu0 %v8533_v20  ;;  %v6936_v20 = vld [vmem:[%s14579_s23 + $0x2c0] sm:$0xff] }
 0x4cd   :  { %8536 = vmatprep.subr.bf16.mxu0 %v8535_v16  ;;  %v6943_v16 = vld [vmem:[%s14579_s23 + $0x2f8] sm:$0xff]  ;;  %v8419_v23 = vpack.c.bf16 %v6938_v21, %v6936_v20  ;;  %v8455_v20 = vpack.c.bf16 %v6974_v17, %v6972_v14  ;;  %v7094_v14 = vld [vmem:[%s14584_s21 + $0x2a0] sm:$0xff]  ;;  %v7096_v17 = vld [vmem:[%s14584_s21 + $0x2b0] sm:$0xff] }
 0x4ce   :  { %v8421_v24 = vpack.c.bf16 %v6943_v16, %v6941_v22  ;;  %v6976_v22 = vld [vmem:[%s14579_s23 + $0x400] sm:$0xff]  ;;  %v6978_v16 = vld [vmem:[%s14579_s23 + $0x410] sm:$0xff] }
 0x4d0   :  { %8538 = vmatpush1.bf16.msra.mxu0 %v8537_v25  ;;  %v6940_v25 = vld [vmem:[%s14579_s23 + $0x2e0] sm:$0xff] }
 0x4d1   :  { %8540 = vmatprep.subr.bf16.mxu0 %v8539_v29  ;;  %v6947_v29 = vld [vmem:[%s14579_s23 + $0x318] sm:$0xff]  ;;  %v8423_v30 = vpack.c.bf16 %v6942_v26, %v6940_v25  ;;  %v8459_v25 = vpack.c.bf16 %v6978_v16, %v6976_v22  ;;  %v7098_v16 = vld [vmem:[%s14584_s21 + $0x2c0] sm:$0xff] }
 0x4d2   :  { %v8425_v33 = vpack.c.bf16 %v6947_v29, %v6945_v28  ;;  %v6980_v28 = vld [vmem:[%s14579_s23 + $0x420] sm:$0xff]  ;;  %v6982_v29 = vld [vmem:[%s14579_s23 + $0x430] sm:$0xff] }
 0x4d4   :  { %8542 = vmatpush1.bf16.msra.mxu0 %v8541_v34  ;;  %v6944_v34 = vld [vmem:[%s14579_s23 + $0x300] sm:$0xff] }
 0x4d5   :  { %8544 = vmatprep.subr.bf16.mxu0 %v8543_v37  ;;  %v6951_v37 = vld [vmem:[%s14579_s23 + $0x338] sm:$0xff]  ;;  %v8427_v38 = vpack.c.bf16 %v6946_v35, %v6944_v34  ;;  %v8463_v34 = vpack.c.bf16 %v6982_v29, %v6980_v28  ;;  %v7102_v28 = vld [vmem:[%s14584_s21 + $0x2e0] sm:$0xff]  ;;  %v7104_v29 = vld [vmem:[%s14584_s21 + $0x2f0] sm:$0xff] }
 0x4d6   :  { %v8429_v39 = vpack.c.bf16 %v6951_v37, %v6949_v36  ;;  %v6984_v36 = vld [vmem:[%s14579_s23 + $0x440] sm:$0xff]  ;;  %v6986_v37 = vld [vmem:[%s14579_s23 + $0x450] sm:$0xff] }
 0x4d8   :  { %8546 = vmatpush1.bf16.msra.mxu0 %v8545_v40  ;;  %v6948_v40 = vld [vmem:[%s14579_s23 + $0x320] sm:$0xff] }
 0x4d9   :  { %8548 = vmatprep.subr.bf16.mxu0 %v8547_v43  ;;  %v6955_v43 = vld [vmem:[%s14579_s23 + $0x358] sm:$0xff]  ;;  %v8431_v44 = vpack.c.bf16 %v6950_v41, %v6948_v40  ;;  %v8467_v40 = vpack.c.bf16 %v6986_v37, %v6984_v36  ;;  %v7106_v36 = vld [vmem:[%s14584_s21 + $0x300] sm:$0xff]  ;;  %v7108_v37 = vld [vmem:[%s14584_s21 + $0x310] sm:$0xff] }
 0x4da   :  { %v8433_v48 = vpack.c.bf16 %v6955_v43, %v6953_v42  ;;  %v6988_v42 = vld [vmem:[%s14579_s23 + $0x460] sm:$0xff]  ;;  %v6990_v43 = vld [vmem:[%s14579_s23 + $0x470] sm:$0xff] }
 0x4db   :  { %1628 = vmatmul.mubr.f32.vlgmr.msra.gmra.mrb[10].mxu0 %v10265_v15  ;;  %v7075_v15 = vld [vmem:[%s14580_s26 + $0x490] sm:$0xff] }
 0x4dc   :  { %8550 = vmatpush1.bf16.msra.mxu0 %v8549_v51  ;;  %1633 = vmatprep.mubr.f32.mxu0 %v10289_v27  ;;  %v8553_v56 = vpack.c.bf16 %v7075_v15, %v7073_v55  ;;  %v7080_v27 = vld [vmem:[%s14580_s26 + $0x4b8] sm:$0xf]  ;;  %v6952_v51 = vld [vmem:[%s14579_s23 + $0x340] sm:$0xff] }
 0x4dd   :  { %8552 = vmatprep.subr.bf16.mxu0 %v8551_v54  ;;  %v8555_v60 = vpack.c.bf16 %v7080_v27, %v7078_v58  ;;  %v6959_v54 = vld [vmem:[%s14579_s23 + $0x378] sm:$0xff]  ;;  %v8435_v55 = vpack.c.bf16 %v6954_v52, %v6952_v51  ;;  %v6958_v58 = vld [vmem:[%s14579_s23 + $0x370] sm:$0xff]  ;;  %v6961_v27 = vld [vmem:[%s14579_s23 + $0x388] sm:$0xff]  ;;  %v8471_v51 = vpack.c.bf16 %v6990_v43, %v6988_v42 }
 0x4de   :  { %v8437_v15 = vpack.c.bf16 %v6959_v54, %v6957_v53  ;;  %v6992_v53 = vld [vmem:[%s14579_s23 + $0x480] sm:$0xff]  ;;  %v6994_v54 = vld [vmem:[%s14579_s23 + $0x490] sm:$0xff] }
 0x4df   :  { %1634 = vmatmul.mubr.f32.gmra.mrb[12].mxu0 %v10301_v31  ;;  %v7079_v31 = vld [vmem:[%s14580_s26 + $0x4b0] sm:$0xf]  ;;  %v7110_v42 = vld [vmem:[%s14584_s21 + $0x320] sm:$0xff] }
 0x4e0   :  { %8554 = vmatpush1.bf16.msra.mxu0 %v8553_v56  ;;  %1704 = vmatprep.mubr.f32.mxu0 %v9726_v47  ;;  %v8558_v62 = vpack.c.bf16 %v7079_v31, %v7077_v61  ;;  %v6956_v56 = vld [vmem:[%s14579_s23 + $0x360] sm:$0xff]  ;;  %v7112_v43 = vld [vmem:[%s14584_s21 + $0x330] sm:$0xff] }
 0x4e1   :  { %8557 = vmatprep.subr.msk.bf16.mxu0 %vm10304_vm2, %v8555_v60  ;;  %v6963_v60 = vld [vmem:[%s14579_s23 + $0x398] sm:$0xff]  ;;  %v8439_v61 = vpack.c.bf16 %v6958_v58, %v6956_v56  ;;  %v11109_v56 = vld [vmem:[%s14581_s2] sm:$0xff]  ;;  %v8475_v58 = vpack.c.bf16 %v6994_v54, %v6992_v53  ;;  %v7116_v54 = vld [vmem:[%s14584_s21 + $0x350] sm:$0xff] }
 0x4e2   :  { %v8441_v31 = vpack.c.bf16 %v6963_v60, %v6961_v27  ;;  %v11115_v27 = vld [vmem:[%s14581_s2 + $0x20] sm:$0xff] }
 0x4e3   :  { %v7114_v53 = vld [vmem:[%s14584_s21 + $0x340] sm:$0xff] }
 0x4e4   :  { %8560 = vmatpush1.bf16.msk.msra.mxu0 %vm10304_vm2, %v8558_v62  ;;  %v6960_v62 = vld [vmem:[%s14579_s23 + $0x380] sm:$0xff] }
 0x4e7   :  { %7084 = vmatmul.mubr.msk.f32.vlgmr.msra.gmra.mrb[10].mxu0 %vm160_vm3, %v10353_v50  ;;  %v6931_v50 = vld [vmem:[%s14579_s23 + $0x298] sm:$0xff] }
 0x4e8   :  { %1710 = vmatprep.mubr.f32.mxu0 %v9726_v47  ;;  %v8409_v5 = vpack.c.bf16 %v6931_v50, %v6929_v2 }
 0x4eb   :  { %7085 = vmatmul.mubr.msk.f32.gmra.mrb[12].mxu0 %vm160_vm3, %v10376_v57  ;;  %v8407_v57 = vpack.c.bf16 %v6926_v1, %v6924_v0  ;;  %v6965_v0 = vld [vmem:[%s14579_s23 + $0x3a8] sm:$0xff]  ;;  %v6967_v1 = vld [vmem:[%s14579_s23 + $0x3b8] sm:$0xff] }
 0x4ec   :  { %v8445_v50 = vpack.c.bf16 %v6967_v1, %v6965_v0  ;;  %v11133_v0 = vld [vmem:[%s14581_s2 + $0x18] sm:$0xff] }
 0x549   :  { %v1077_v63 = vpop.xlane.xlu1 %1076 }
 0x54a   :  { %9647 = vrcp.f32 %v1077_v63  ;;  %v6962_v63 = vld [vmem:[%s14579_s23 + $0x390] sm:$0xff] }
 0x54b   :  { %v8443_v2 = vpack.c.bf16 %v6962_v63, %v6960_v62  ;;  %v7087_v62 = vld [vmem:[%s14584_s21 + $0x268] sm:$0xff]  ;;  %v7089_v63 = vld [vmem:[%s14584_s21 + $0x278] sm:$0xff] }
 0x554   :  { %v9648_v3 = vpop.eup %9647 }
 0x555   :  { %v1079_v4 = vmul.f32 %v9648_v3, %v10643_v59  ;;  %v8411_v59 = vpack.c.bf16 %v6930_v7, %v6928_v6  ;;  %v6964_v3 = vld [vmem:[%s14579_s23 + $0x3a0] sm:$0xff] }
 0x557   :  { %6923 = vmatmul.mubr.msk.f32.vlgmr.msra.gmra.mrb[8].mxu1 %vm905_vm5, %v1079_v4  ;;  %v6969_v4 = vld [vmem:[%s14579_s23 + $0x3c8] sm:$0xff] }
 0x558   :  { %8408 = vmatpush1.bf16.msra.mxu1 %v8407_v57  ;;  %1377 = vmatprep.mubr.f32.mxu1 %v10911_v10  ;;  %v6966_v57 = vld [vmem:[%s14579_s23 + $0x3b0] sm:$0xff] }
 0x559   :  { %8410 = vmatprep.subr.bf16.mxu1 %v8409_v5  ;;  %v6971_v5 = vld [vmem:[%s14579_s23 + $0x3d8] sm:$0xff]  ;;  %v8447_v6 = vpack.c.bf16 %v6966_v57, %v6964_v3  ;;  %v7088_v3 = vld [vmem:[%s14584_s21 + $0x270] sm:$0xff]  ;;  %v7091_v57 = vld [vmem:[%s14584_s21 + $0x288] sm:$0xff] }
 0x55a   :  { %v8449_v7 = vpack.c.bf16 %v6971_v5, %v6969_v4  ;;  %v7093_v4 = vld [vmem:[%s14584_s21 + $0x298] sm:$0xff] }
 0x55c   :  { %8412 = vmatpush1.bf16.msra.mxu1 %v8411_v59  ;;  %v6973_v59 = vld [vmem:[%s14579_s23 + $0x3e8] sm:$0xff] }
 0x55d   :  { %8414 = vmatprep.subr.bf16.mxu1 %v8413_v11  ;;  %v6975_v11 = vld [vmem:[%s14579_s23 + $0x3f8] sm:$0xff] }
 0x55e   :  { %v8453_v13 = vpack.c.bf16 %v6975_v11, %v6973_v59  ;;  %v7097_v59 = vld [vmem:[%s14584_s21 + $0x2b8] sm:$0xff]  ;;  %v11168_v11 = vld [vmem:[%s14581_s2 + $0x10] sm:$0xff] }
 0x560   :  { %8416 = vmatpush1.bf16.msra.mxu1 %v8415_v18  ;;  %v6977_v18 = vld [vmem:[%s14579_s23 + $0x408] sm:$0xff] }
 0x561   :  { %8418 = vmatprep.subr.bf16.mxu1 %v8417_v19  ;;  %v6979_v19 = vld [vmem:[%s14579_s23 + $0x418] sm:$0xff] }
 0x562   :  { %v8457_v21 = vpack.c.bf16 %v6979_v19, %v6977_v18  ;;  %v7099_v18 = vld [vmem:[%s14584_s21 + $0x2c8] sm:$0xff]  ;;  %v7101_v19 = vld [vmem:[%s14584_s21 + $0x2d8] sm:$0xff] }
 0x563   :  { %v8573_v22 = vpack.c.bf16 %v7101_v19, %v7099_v18  ;;  %v7135_v18 = vld [vmem:[%s14584_s21 + $0x3e8] sm:$0xff]  ;;  %v7137_v19 = vld [vmem:[%s14584_s21 + $0x3f8] sm:$0xff] }
 0x564   :  { %8420 = vmatpush1.bf16.msra.mxu1 %v8419_v23  ;;  %v6981_v23 = vld [vmem:[%s14579_s23 + $0x428] sm:$0xff] }
 0x565   :  { %8422 = vmatprep.subr.bf16.mxu1 %v8421_v24  ;;  %v6983_v24 = vld [vmem:[%s14579_s23 + $0x438] sm:$0xff] }
 0x566   :  { %v8461_v26 = vpack.c.bf16 %v6983_v24, %v6981_v23  ;;  %v7100_v23 = vld [vmem:[%s14584_s21 + $0x2d0] sm:$0xff]  ;;  %v7103_v24 = vld [vmem:[%s14584_s21 + $0x2e8] sm:$0xff] }
 0x568   :  { %8424 = vmatpush1.bf16.msra.mxu1 %v8423_v30  ;;  %v6985_v30 = vld [vmem:[%s14579_s23 + $0x448] sm:$0xff] }
 0x569   :  { %8426 = vmatprep.subr.bf16.mxu1 %v8425_v33  ;;  %v6987_v33 = vld [vmem:[%s14579_s23 + $0x458] sm:$0xff] }
 0x56a   :  { %v8465_v35 = vpack.c.bf16 %v6987_v33, %v6985_v30  ;;  %v7107_v30 = vld [vmem:[%s14584_s21 + $0x308] sm:$0xff]  ;;  %v7109_v33 = vld [vmem:[%s14584_s21 + $0x318] sm:$0xff] }
 0x56c   :  { %8428 = vmatpush1.bf16.msra.mxu1 %v8427_v38  ;;  %v6989_v38 = vld [vmem:[%s14579_s23 + $0x468] sm:$0xff] }
 0x56d   :  { %8430 = vmatprep.subr.bf16.mxu1 %v8429_v39  ;;  %v6991_v39 = vld [vmem:[%s14579_s23 + $0x478] sm:$0xff] }
 0x56e   :  { %v8469_v41 = vpack.c.bf16 %v6991_v39, %v6989_v38  ;;  %v7111_v38 = vld [vmem:[%s14584_s21 + $0x328] sm:$0xff]  ;;  %v7113_v39 = vld [vmem:[%s14584_s21 + $0x338] sm:$0xff] }
 0x570   :  { %8432 = vmatpush1.bf16.msra.mxu1 %v8431_v44  ;;  %v6993_v44 = vld [vmem:[%s14579_s23 + $0x488] sm:$0xff] }
 0x571   :  { %8434 = vmatprep.subr.bf16.mxu1 %v8433_v48  ;;  %v6995_v48 = vld [vmem:[%s14579_s23 + $0x498] sm:$0xff] }
 0x572   :  { %v8473_v52 = vpack.c.bf16 %v6995_v48, %v6993_v44  ;;  %v7115_v44 = vld [vmem:[%s14584_s21 + $0x348] sm:$0xff]  ;;  %v7117_v48 = vld [vmem:[%s14584_s21 + $0x358] sm:$0xff] }
 0x574   :  { %8436 = vmatpush1.bf16.msra.mxu1 %v8435_v55  ;;  %v6997_v55 = vld [vmem:[%s14579_s23 + $0x4a8] sm:$0xff] }
 0x575   :  { %8438 = vmatprep.subr.bf16.mxu1 %v8437_v15  ;;  %v6999_v15 = vld [vmem:[%s14579_s23 + $0x4b8] sm:$0xf] }
 0x576   :  { %v8477_v60 = vpack.c.bf16 %v6999_v15, %v6997_v55  ;;  %v7119_v55 = vld [vmem:[%s14584_s21 + $0x368] sm:$0xff]  ;;  %v7121_v15 = vld [vmem:[%s14584_s21 + $0x378] sm:$0xff] }
 0x578   :  { %8440 = vmatpush1.bf16.msra.mxu1 %v8439_v61  ;;  %v6996_v61 = vld [vmem:[%s14579_s23 + $0x4a0] sm:$0xff] }
 0x579   :  { %8442 = vmatprep.subr.bf16.mxu1 %v8441_v31  ;;  %v6998_v31 = vld [vmem:[%s14579_s23 + $0x4b0] sm:$0xf] }
 0x57a   :  { %v8480_v1 = vpack.c.bf16 %v6998_v31, %v6996_v61  ;;  %v7118_v61 = vld [vmem:[%s14584_s21 + $0x360] sm:$0xff]  ;;  %v7120_v31 = vld [vmem:[%s14584_s21 + $0x370] sm:$0xff] }
 0x57c   :  { %8444 = vmatpush1.bf16.msra.mxu1 %v8443_v2  ;;  %v8561_v2 = vpack.c.bf16 %v7089_v63, %v7087_v62  ;;  %v7123_v62 = vld [vmem:[%s14584_s21 + $0x388] sm:$0xff]  ;;  %v7125_v63 = vld [vmem:[%s14584_s21 + $0x398] sm:$0xff] }
 0x57d   :  { %8446 = vmatprep.subr.bf16.mxu1 %v8445_v50  ;;  %v7086_v50 = vld [vmem:[%s14584_s21 + $0x260] sm:$0xff] }
 0x57e   :  { %v8563_v5 = vpack.c.bf16 %v7088_v3, %v7086_v50  ;;  %v7122_v50 = vld [vmem:[%s14584_s21 + $0x380] sm:$0xff]  ;;  %v7124_v3 = vld [vmem:[%s14584_s21 + $0x390] sm:$0xff] }
 0x580   :  { %8448 = vmatpush1.bf16.msra.mxu1 %v8447_v6  ;;  %v8565_v6 = vpack.c.bf16 %v7093_v4, %v7091_v57  ;;  %v7127_v57 = vld [vmem:[%s14584_s21 + $0x3a8] sm:$0xff]  ;;  %v7129_v4 = vld [vmem:[%s14584_s21 + $0x3b8] sm:$0xff] }
 0x581   :  { %8450 = vmatprep.subr.bf16.mxu1 %v8449_v7  ;;  %v7090_v7 = vld [vmem:[%s14584_s21 + $0x280] sm:$0xff] }
 0x584   :  { %8452 = vmatpush1.bf16.msra.mxu1 %v8451_v12  ;;  %v8567_v12 = vpack.c.bf16 %v7092_v8, %v7090_v7  ;;  %v7126_v7 = vld [vmem:[%s14584_s21 + $0x3a0] sm:$0xff]  ;;  %v7128_v8 = vld [vmem:[%s14584_s21 + $0x3b0] sm:$0xff] }
 0x585   :  { %8454 = vmatprep.subr.bf16.mxu1 %v8453_v13  ;;  %v8569_v13 = vpack.c.bf16 %v7097_v59, %v7095_v9  ;;  %v7131_v9 = vld [vmem:[%s14584_s21 + $0x3c8] sm:$0xff]  ;;  %v7133_v59 = vld [vmem:[%s14584_s21 + $0x3d8] sm:$0xff] }
 0x588   :  { %8456 = vmatpush1.bf16.msra.mxu1 %v8455_v20  ;;  %v11188_v20 = vld [vmem:[%s14581_s2 + $0x28] sm:$0xff] }
 0x589   :  { %8458 = vmatprep.subr.bf16.mxu1 %v8457_v21  ;;  %v8571_v21 = vpack.c.bf16 %v7096_v17, %v7094_v14  ;;  %v7130_v14 = vld [vmem:[%s14584_s21 + $0x3c0] sm:$0xff]  ;;  %v7132_v17 = vld [vmem:[%s14584_s21 + $0x3d0] sm:$0xff] }
 0x58c   :  { %8460 = vmatpush1.bf16.msra.mxu1 %v8459_v25  ;;  %v7105_v25 = vld [vmem:[%s14584_s21 + $0x2f8] sm:$0xff] }
 0x58d   :  { %8462 = vmatprep.subr.bf16.mxu1 %v8461_v26  ;;  %v8577_v26 = vpack.c.bf16 %v7105_v25, %v7103_v24  ;;  %v7139_v24 = vld [vmem:[%s14584_s21 + $0x408] sm:$0xff]  ;;  %v7141_v25 = vld [vmem:[%s14584_s21 + $0x418] sm:$0xff] }
 0x590   :  { %8464 = vmatpush1.bf16.msra.mxu1 %v8463_v34  ;;  %v8579_v34 = vpack.c.bf16 %v7104_v29, %v7102_v28  ;;  %v7138_v28 = vld [vmem:[%s14584_s21 + $0x400] sm:$0xff]  ;;  %v7140_v29 = vld [vmem:[%s14584_s21 + $0x410] sm:$0xff] }
 0x591   :  { %8466 = vmatprep.subr.bf16.mxu1 %v8465_v35  ;;  %v8581_v35 = vpack.c.bf16 %v7109_v33, %v7107_v30  ;;  %v7143_v30 = vld [vmem:[%s14584_s21 + $0x428] sm:$0xff]  ;;  %v7145_v33 = vld [vmem:[%s14584_s21 + $0x438] sm:$0xff] }
 0x594   :  { %8468 = vmatpush1.bf16.msra.mxu1 %v8467_v40  ;;  %v8583_v40 = vpack.c.bf16 %v7108_v37, %v7106_v36  ;;  %v7142_v36 = vld [vmem:[%s14584_s21 + $0x420] sm:$0xff]  ;;  %v7144_v37 = vld [vmem:[%s14584_s21 + $0x430] sm:$0xff] }
 0x595   :  { %8470 = vmatprep.subr.bf16.mxu1 %v8469_v41  ;;  %v8585_v41 = vpack.c.bf16 %v7113_v39, %v7111_v38  ;;  %v7147_v38 = vld [vmem:[%s14584_s21 + $0x448] sm:$0xff]  ;;  %v7149_v39 = vld [vmem:[%s14584_s21 + $0x458] sm:$0xff] }
 0x597   :  { %1378 = vmatmul.mubr.f32.vlgmr.msra.gmra.mrb[10].mxu1 %v11109_v56 }
 0x598   :  { %8472 = vmatpush1.bf16.msra.mxu1 %v8471_v51  ;;  %1383 = vmatprep.mubr.f32.mxu1 %v11115_v27  ;;  %v8587_v51 = vpack.c.bf16 %v7112_v43, %v7110_v42  ;;  %v7146_v42 = vld [vmem:[%s14584_s21 + $0x440] sm:$0xff]  ;;  %v7148_v43 = vld [vmem:[%s14584_s21 + $0x450] sm:$0xff] }
 0x599   :  { %8474 = vmatprep.subr.bf16.mxu1 %v8473_v52  ;;  %v8589_v52 = vpack.c.bf16 %v7117_v48, %v7115_v44  ;;  %v7151_v44 = vld [vmem:[%s14584_s21 + $0x468] sm:$0xff]  ;;  %v7153_v48 = vld [vmem:[%s14584_s21 + $0x478] sm:$0xff] }
 0x59b   :  { %1384 = vmatmul.mubr.f32.gmra.mrb[12].mxu1 %v11133_v0 }
 0x59c   :  { %8476 = vmatpush1.bf16.msra.mxu1 %v8475_v58  ;;  %1454 = vmatprep.mubr.f32.mxu1 %v9726_v47  ;;  %v8591_v58 = vpack.c.bf16 %v7116_v54, %v7114_v53  ;;  %v7150_v53 = vld [vmem:[%s14584_s21 + $0x460] sm:$0xff]  ;;  %v7152_v54 = vld [vmem:[%s14584_s21 + $0x470] sm:$0xff] }
 0x59d   :  { %8479 = vmatprep.subr.msk.bf16.mxu1 %vm10304_vm2, %v8477_v60  ;;  %v8593_v60 = vpack.c.bf16 %v7121_v15, %v7119_v55  ;;  %v7155_v55 = vld [vmem:[%s14584_s21 + $0x488] sm:$0xff]  ;;  %v7157_v15 = vld [vmem:[%s14584_s21 + $0x498] sm:$0xff] }
 0x5a0   :  { %8482 = vmatpush1.bf16.msk.msra.mxu1 %vm10304_vm2, %v8480_v1  ;;  %v8595_v1 = vpack.c.bf16 %v7120_v31, %v7118_v61  ;;  %v7154_v61 = vld [vmem:[%s14584_s21 + $0x480] sm:$0xff]  ;;  %v7156_v31 = vld [vmem:[%s14584_s21 + $0x490] sm:$0xff] }
 0x5a1   :  { %8562 = vmatprep.subr.bf16.mxu1 %v8561_v2  ;;  %v8597_v2 = vpack.c.bf16 %v7125_v63, %v7123_v62  ;;  %v7159_v62 = vld [vmem:[%s14584_s21 + $0x4a8] sm:$0xff]  ;;  %v7161_v63 = vld [vmem:[%s14584_s21 + $0x4b8] sm:$0xf] }
 0x5a3   :  { %7003 = vmatmul.mubr.msk.f32.vlgmr.msra.gmra.mrb[10].mxu1 %vm160_vm3, %v11168_v11 }
 0x5a4   :  { %8564 = vmatpush1.bf16.msra.mxu1 %v8563_v5  ;;  %1460 = vmatprep.mubr.f32.mxu1 %v9726_v47  ;;  %v8599_v5 = vpack.c.bf16 %v7124_v3, %v7122_v50  ;;  %v8633_v50 = vpack.c.bf16 %v7161_v63, %v7159_v62  ;;  %v7158_v3 = vld [vmem:[%s14584_s21 + $0x4a0] sm:$0xff]  ;;  %v7193_v63 = vld [vmem:[%s14557_s8 + $0x268] sm:$0xff] }
 0x5a5   :  { %8566 = vmatprep.subr.bf16.mxu1 %v8565_v6  ;;  %v8601_v6 = vpack.c.bf16 %v7129_v4, %v7127_v57  ;;  %v7160_v57 = vld [vmem:[%s14584_s21 + $0x4b0] sm:$0xf] }
 0x5a7   :  { %7004 = vmatmul.mubr.msk.f32.gmra.mrb[12].mxu1 %vm160_vm3, %v11188_v20 }
 0x5a8   :  { %8568 = vmatpush1.bf16.msra.mxu1 %v8567_v12  ;;  %1877 = vmatprep.mubr.f32.mxu1 %v10911_v10  ;;  %v8575_v10 = vpack.c.bf16 %v7100_v23, %v7098_v16  ;;  %v8603_v12 = vpack.c.bf16 %v7128_v8, %v7126_v7  ;;  %v7134_v16 = vld [vmem:[%s14584_s21 + $0x3e0] sm:$0xff]  ;;  %v7136_v23 = vld [vmem:[%s14584_s21 + $0x3f0] sm:$0xff] }
 0x5a9   :  { %8570 = vmatprep.subr.bf16.mxu1 %v8569_v13  ;;  %v8605_v13 = vpack.c.bf16 %v7133_v59, %v7131_v9 }
 0x5ac   :  { %8572 = vmatpush1.bf16.msra.mxu1 %v8571_v21  ;;  %v8607_v21 = vpack.c.bf16 %v7132_v17, %v7130_v14  ;;  %v7000_v17 = vld [vmem:[%s14554_s5 + $0x2] sm:$0x3] }
 0x5ad   :  { %8574 = vmatprep.subr.bf16.mxu1 %v8573_v22  ;;  %v8609_v22 = vpack.c.bf16 %v7137_v19, %v7135_v18  ;;  %v1300_v18 = vrot.slane %v7000_v17, %v10606_v49  ;;  %v1304_v19 = vrot.slane %v7000_v17, %v10600_v46 }
 0x5b0   :  { %8576 = vmatpush1.bf16.msra.mxu1 %v8575_v10  ;;  %v8611_v10 = vpack.c.bf16 %v7136_v23, %v7134_v16 }
 0x5b1   :  { %8578 = vmatprep.subr.bf16.mxu1 %v8577_v26  ;;  %v8613_v26 = vpack.c.bf16 %v7141_v25, %v7139_v24 }
 0x5b4   :  { %8580 = vmatpush1.bf16.msra.mxu1 %v8579_v34  ;;  %v8615_v34 = vpack.c.bf16 %v7140_v29, %v7138_v28  ;;  %v7162_v28 = vld [vmem:[%s14556_s7 + $0x2] sm:$0x3] }
 0x5b5   :  { %8582 = vmatprep.subr.bf16.mxu1 %v8581_v35  ;;  %v8617_v35 = vpack.c.bf16 %v7145_v33, %v7143_v30  ;;  %v11418_v29 = vrot.slane %v7162_v28, %v10606_v49  ;;  %v11421_v30 = vrot.slane %v7162_v28, %v10600_v46 }
 0x5b8   :  { %8584 = vmatpush1.bf16.msra.mxu1 %v8583_v40  ;;  %v8619_v40 = vpack.c.bf16 %v7144_v37, %v7142_v36 }
 0x5b9   :  { %8586 = vmatprep.subr.bf16.mxu1 %v8585_v41  ;;  %v8621_v41 = vpack.c.bf16 %v7149_v39, %v7147_v38 }
 0x5bc   :  { %8588 = vmatpush1.bf16.msra.mxu1 %v8587_v51  ;;  %v8623_v51 = vpack.c.bf16 %v7148_v43, %v7146_v42 }
 0x5bd   :  { %8590 = vmatprep.subr.bf16.mxu1 %v8589_v52  ;;  %v8625_v52 = vpack.c.bf16 %v7153_v48, %v7151_v44 }
 0x5c0   :  { %8592 = vmatpush1.bf16.msra.mxu1 %v8591_v58  ;;  %v8627_v58 = vpack.c.bf16 %v7152_v54, %v7150_v53  ;;  %v7178_v53 = vld [vmem:[%s14557_s8 + $0x1f0] sm:$0xff]  ;;  %v7181_v54 = vld [vmem:[%s14557_s8 + $0x208] sm:$0xff] }
 0x5c1   :  { %8594 = vmatprep.subr.bf16.mxu1 %v8593_v60  ;;  %v8629_v60 = vpack.c.bf16 %v7157_v15, %v7155_v55  ;;  %v9727_v55 = vmov 0.0|0.0  }
 0x5c4   :  { %8596 = vmatpush1.bf16.msra.mxu1 %v8595_v1  ;;  %v7081_v1 = vld [vmem:[%s14555_s6 + $0x2] sm:$0x3] }
 0x5c5   :  { %8598 = vmatprep.subr.bf16.mxu1 %v8597_v2  ;;  %v8631_v2 = vpack.c.bf16 %v7156_v31, %v7154_v61  ;;  %v1550_v4 = vrot.slane %v7081_v1, %v10606_v49  ;;  %v7187_v61 = vld [vmem:[%s14557_s8 + $0x238] sm:$0xff]  ;;  %v7190_v31 = vld [vmem:[%s14557_s8 + $0x250] sm:$0xff] }
 0x5c6   :  { %v8682_v62 = vpack.c.bf16 %v7190_v31, %v7187_v61  ;;  %v1186_v31 = vld [vmem:[%s14557_s8 + $0xd0] sm:$0xff] }
 0x5c8   :  { %8600 = vmatpush1.bf16.msra.mxu1 %v8599_v5  ;;  %v1554_v5 = vrot.slane %v7081_v1, %v10600_v46  ;;  %v7196_v1 = vld [vmem:[%s14557_s8 + $0x280] sm:$0xff] }
 0x5c9   :  { %8602 = vmatprep.subr.bf16.mxu1 %v8601_v6 }
 0x5cc   :  { %8604 = vmatpush1.bf16.msra.mxu1 %v8603_v12 }
 0x5cd   :  { %8606 = vmatprep.subr.bf16.mxu1 %v8605_v13 }
 0x5d0   :  { %8608 = vmatpush1.bf16.msra.mxu1 %v8607_v21 }
 0x5d1   :  { %8610 = vmatprep.subr.bf16.mxu1 %v8609_v22 }
 0x5d4   :  { %8612 = vmatpush1.bf16.msra.mxu1 %v8611_v10 }
 0x5d5   :  { %8614 = vmatprep.subr.bf16.mxu1 %v8613_v26 }
 0x5d8   :  { %8616 = vmatpush1.bf16.msra.mxu1 %v8615_v34 }
 0x5d9   :  { %8618 = vmatprep.subr.bf16.mxu1 %v8617_v35 }
 0x5dc   :  { %8620 = vmatpush1.bf16.msra.mxu1 %v8619_v40 }
 0x5dd   :  { %8622 = vmatprep.subr.bf16.mxu1 %v8621_v41 }
 0x5e0   :  { %8624 = vmatpush1.bf16.msra.mxu1 %v8623_v51 }
 0x5e1   :  { %8626 = vmatprep.subr.bf16.mxu1 %v8625_v52  ;;  %v7175_v52 = vld [vmem:[%s14557_s8 + $0x1d8] sm:$0xff] }
 0x5e2   :  { %v8676_v15 = vpack.c.bf16 %v7178_v53, %v7175_v52  ;;  %v1174_v53 = vld [vmem:[%s14557_s8 + $0x70] sm:$0xff] }
 0x5e3   :  { %1878 = vmatmul.mubr.f32.vlgmr.msra.gmra.mrb[14].mxu1 %v11109_v56  ;;  %v8636_v56 = vpack.c.bf16 %v7160_v57, %v7158_v3  ;;  %v7202_v3 = vld [vmem:[%s14557_s8 + $0x2b0] sm:$0xff] }
 0x5e4   :  { %8628 = vmatpush1.bf16.msra.mxu1 %v8627_v58  ;;  %1883 = vmatprep.mubr.f32.mxu1 %v11115_v27  ;;  %v1706_v27 = vpop.f32.mrb[10].mxu0  ;;  %v7184_v58 = vld [vmem:[%s14557_s8 + $0x220] sm:$0xff] }
 0x5e5   :  { %8630 = vmatprep.subr.bf16.mxu1 %v8629_v60  ;;  %v9548_v6 = vadd.f32 %v1706_v27, %v1550_v4  ;;  %v1708_v7 = vpop.f32.mrb[11].mxu0  ;;  %v8679_v60 = vpack.c.bf16 %v7184_v58, %v7181_v54  ;;  %v7211_v27 = vld [vmem:[%s14557_s8 + $0x2f8] sm:$0xff]  ;;  %v1177_v54 = vld [vmem:[%s14557_s8 + $0x88] sm:$0xff]  ;;  %v1180_v58 = vld [vmem:[%s14557_s8 + $0xa0] sm:$0xff] }
 0x5e6   :  { %v9549_v8 = vadd.f32 %v1708_v7, %v1554_v5  ;;  %v1712_v9 = vpop.f32.mrb[12].mxu0 }
 0x5e7   :  { %1884 = vmatmul.mubr.f32.gmra.mrb[16].mxu1 %v11133_v0  ;;  %v11393_v59 = vadd.f32 %v1712_v9, %v1550_v4  ;;  %v1714_v0 = vpop.f32.mrb[13].mxu0  ;;  %v7205_v4 = vld [vmem:[%s14557_s8 + $0x2c8] sm:$0xff] }
 0x5e8   :  { %8632 = vmatpush1.bf16.msra.mxu1 %v8631_v2  ;;  %1954 = vmatprep.mubr.f32.mxu1 %v9726_v47  ;;  %v9551_v12 = vadd.f32 %v1714_v0, %v1554_v5  ;;  %v8685_v2 = vpack.c.bf16 %v7196_v1, %v7193_v63  ;;  %v7208_v5 = vld [vmem:[%s14557_s8 + $0x2e0] sm:$0xff] }
 0x5e9   :  { %8635 = vmatprep.subr.msk.bf16.mxu1 %vm10304_vm2, %v8633_v50  ;;  %7167 = vmatprep.subr.msk.mxu0 %vm828_vm4, %v9549_v8  ;;  %v7199_v50 = vld [vmem:[%s14557_s8 + $0x298] sm:$0xff]  ;;  %v1192_v1 = vld [vmem:[%s14557_s8 + $0x100] sm:$0xff] }
 0x5ea   :  { %1978 = vmatpush1.xpose.msra.mxu0 %v9548_v6  ;;  %v8688_v57 = vpack.c.bf16 %v7202_v3, %v7199_v50  ;;  %v7214_v6 = vld [vmem:[%s14557_s8 + $0x310] sm:$0xff] }
 0x5eb   :  { %v8694_v7 = vpack.c.bf16 %v7214_v6, %v7211_v27 }
 0x5ec   :  { %8638 = vmatpush1.bf16.msk.msra.mxu1 %vm10304_vm2, %v8636_v56  ;;  %v8691_v56 = vpack.c.bf16 %v7208_v5, %v7205_v4  ;;  %v7176_v4 = vld [vmem:[%s14557_s8 + $0x1e0] sm:$0xff] }
 0x5ed   :  { %8675 = vmatprep.subr.bf16.mxu1 %v9727_v55  ;;  %v7180_v5 = vld [vmem:[%s14557_s8 + $0x200] sm:$0xff] }
 0x5ef   :  { %7165 = vmatmul.mubr.msk.f32.vlgmr.msra.gmra.mrb[14].mxu1 %vm160_vm3, %v11168_v11 }
 0x5f0   :  { %1960 = vmatprep.mubr.f32.mxu1 %v9726_v47  ;;  %8677 = vmatpush1.bf16.msra.mxu1 %v8676_v15  ;;  %v8745_v15 = vpack.c.bf16 %v1177_v54, %v1174_v53  ;;  %v7219_v53 = vld [vmem:[%s14557_s8 + $0x338] sm:$0xff] }
 0x5f1   :  { %8678 = vmatprep.subr.bf16.mxu1 %v9727_v55 }
 0x5f3   :  { %7166 = vmatmul.mubr.msk.f32.gmra.mrb[16].mxu1 %vm160_vm3, %v11188_v20 }
 0x5f4   :  { %8680 = vmatpush1.bf16.msra.mxu1 %v8679_v60  ;;  %v1183_v60 = vld [vmem:[%s14557_s8 + $0xb8] sm:$0xff] }
 0x5f5   :  { %8681 = vmatprep.subr.bf16.mxu1 %v9727_v55  ;;  %v8748_v61 = vpack.c.bf16 %v1183_v60, %v1180_v58  ;;  %v7215_v58 = vld [vmem:[%s14557_s8 + $0x318] sm:$0xff]  ;;  %v7218_v60 = vld [vmem:[%s14557_s8 + $0x330] sm:$0xff] }
 0x5f8   :  { %8683 = vmatpush1.bf16.msra.mxu1 %v8682_v62  ;;  %v1189_v62 = vld [vmem:[%s14557_s8 + $0xe8] sm:$0xff] }
 0x5f9   :  { %8684 = vmatprep.subr.bf16.mxu1 %v9727_v55  ;;  %v8751_v63 = vpack.c.bf16 %v1189_v62, %v1186_v31  ;;  %v7225_v31 = vld [vmem:[%s14557_s8 + $0x368] sm:$0xff]  ;;  %v8669_v62 = vpack.c.bf16 %v7218_v60, %v7215_v58  ;;  %v1203_v60 = vld [vmem:[%s14557_s8 + $0x158] sm:$0xff] }
 0x5fc   :  { %8686 = vmatpush1.bf16.msra.mxu1 %v8685_v2  ;;  %v1195_v2 = vld [vmem:[%s14557_s8 + $0x118] sm:$0xff] }
 0x5fd   :  { %8687 = vmatprep.subr.bf16.mxu1 %v9727_v55  ;;  %v8754_v50 = vpack.c.bf16 %v1195_v2, %v1192_v1  ;;  %v7221_v1 = vld [vmem:[%s14557_s8 + $0x348] sm:$0xff]  ;;  %v7224_v2 = vld [vmem:[%s14557_s8 + $0x360] sm:$0xff] }
 0x600   :  { %8689 = vmatpush1.bf16.msra.mxu1 %v8688_v57  ;;  %v7173_v57 = vld [vmem:[%s14557_s8 + $0x1c8] sm:$0xff] }
 0x601   :  { %8690 = vmatprep.subr.bf16.mxu1 %v9727_v55  ;;  %v8641_v6 = vpack.c.bf16 %v7176_v4, %v7173_v57  ;;  %v1161_v57 = vld [vmem:[%s14557_s8 + $0x8] sm:$0xff]  ;;  %v1164_v4 = vld [vmem:[%s14557_s8 + $0x20] sm:$0xff] }
 0x604   :  { %8692 = vmatpush1.bf16.msra.mxu1 %v8691_v56  ;;  %v7183_v56 = vld [vmem:[%s14557_s8 + $0x218] sm:$0xff] }
 0x605   :  { %8693 = vmatprep.subr.bf16.mxu1 %v9727_v55 }
 0x608   :  { %8695 = vmatpush1.bf16.msra.mxu1 %v8694_v7 }
 0x609   :  { %8696 = vmatprep.subr.bf16.mxu1 %v9727_v55 }
 0x62a   :  { %v11400_v13 = vpop.f32.mrb[8].mxu1 }
 0x62b   :  { %v1151_v14 = vpop.f32.mrb[9].mxu1 }
 0x62c   :  { %1155 = vst.msk [vmem:[#allocation2 + $0x18] sm:$0xff] %vm828_vm4, %v1151_v14 }
 0x676   :  { %v1456_v21 = vpop.f32.mrb[10].mxu1 }
 0x677   :  { %v9544_v11 = vadd.f32 %v1456_v21, %v1300_v18  ;;  %v1458_v22 = vpop.f32.mrb[11].mxu1  ;;  %v7220_v21 = vld [vmem:[%s14557_s8 + $0x340] sm:$0xff] }
 0x678   :  { %v9545_v16 = vadd.f32 %v1458_v22, %v1304_v19  ;;  %v7226_v22 = vld [vmem:[%s14557_s8 + $0x370] sm:$0xff] }
 0x679   :  { %v1967_v20 = vmul.f32 0.08164966, %v9544_v11  ;;  %v7223_v11 = vld [vmem:[%s14557_s8 + $0x358] sm:$0xff] }
 0x67a   :  { %v1968_v23 = vmul.f32 0.08164966, %v9545_v16  ;;  %v1462_v24 = vpop.f32.mrb[12].mxu1  ;;  %v8700_v16 = vpack.c.bf16 %v7226_v22, %v7223_v11  ;;  %v7195_v11 = vld [vmem:[%s14557_s8 + $0x278] sm:$0xff] }
 0x67b   :  { %v11408_v25 = vadd.f32 %v1462_v24, %v1300_v18  ;;  %v1464_v10 = vpop.f32.mrb[13].mxu1 }
 0x67c   :  { %v11410_v26 = vadd.f32 %v1464_v10, %v1304_v19  ;;  %7168 = vmatprep.mubr.msk.f32.mxu0 %vm828_vm4, %v1968_v23  ;;  %v7217_v19 = vld [vmem:[%s14557_s8 + $0x328] sm:$0xff] }
 0x67d   :  { %2042 = vmatmul.mubr.f32.vlgmr.msra.gmra.mrb[14].mxu0 %v1967_v20  ;;  %v1969_v17 = vmul.f32 0.08164966, %v11408_v25  ;;  %v7229_v23 = vld [vmem:[%s14557_s8 + $0x388] sm:$0x3f] }
 0x67e   :  { %2125 = vmatprep.mubr.f32.mxu0 %v9726_v47  ;;  %v11507_v20 = vld [vmem:[#allocation2 + $0x8] sm:$0xff] }
 0x6c2   :  { %v1956_v33 = vpop.f32.mrb[14].mxu1 }
 0x6c3   :  { %v9552_v34 = vadd.f32 %v1956_v33, %v11418_v29  ;;  %v1958_v35 = vpop.f32.mrb[15].mxu1 }
 0x6c4   :  { %v9553_v36 = vadd.f32 %v1958_v35, %v11421_v30 }
 0x6c6   :  { %2061 = vmatprep.subr.mxu0 %v9553_v36  ;;  %v1962_v40 = vpop.f32.mrb[16].mxu1 }
 0x6c7   :  { %2062 = vmatpush1.msra.mxu0 %v9552_v34  ;;  %v1964_v41 = vpop.f32.mrb[17].mxu1  ;;  %v9554_v18 = vadd.f32 %v1962_v40, %v11418_v29 }
 0x6c8   :  { %7170 = vmatprep.subr.msk.mxu0 %vm828_vm4, %v9551_v12  ;;  %v1970_v12 = vmul.f32 0.08164966, %v11410_v26  ;;  %v9555_v14 = vadd.f32 %v1964_v41, %v11421_v30 }
 0x750   :  { %v2043_v37 = vpop.f32.mrb[14].mxu0 }
 0x751   :  { %v2045_v38 = vpop.f32.mrb[15].mxu0  ;;  %v2047_v39 = vsel %vm905_vm5, %v2043_v37, -inf }
 0x752   :  { %2048 = vmax.xlane.f32.xlu0 %v2047_v39  ;;  %v7177_v38 = vld [vmem:[%s14557_s8 + $0x1e8] sm:$0xff] }
 0x7df   :  { %v2049_v42 = vpop.xlane.xlu0 %2048 }
 0x7e0   :  { %v2050_v43 = vsub.f32 %v2043_v37, %v2049_v42  ;;  %v7174_v37 = vld [vmem:[%s14557_s8 + $0x1d0] sm:$0xff] }
 0x7e1   :  { %v8639_v39 = vpack.c.bf16 %v7177_v38, %v7174_v37  ;;  %v1162_v42 = vld [vmem:[%s14557_s8 + $0x10] sm:$0xff]  ;;  %v7203_v38 = vld [vmem:[%s14557_s8 + $0x2b8] sm:$0xff] }
 0x7e2   :  { %v2051_v44 = vmul.f32 1.442695, %v2050_v43  ;;  %v1165_v43 = vld [vmem:[%s14557_s8 + $0x28] sm:$0xff] }
 0x7e4   :  { %9649 = vpow2.f32 %v2051_v44  ;;  %v8739_v44 = vpack.c.bf16 %v1165_v43, %v1162_v42  ;;  %v7213_v42 = vld [vmem:[%s14557_s8 + $0x308] sm:$0xff] }
 0x7ee   :  { %v9650_v48 = vpop.eup %9649 }
 0x7ef   :  { %v2053_v51 = vsel %vm905_vm5, %v9650_v48, 0.0 }
 0x7f0   :  { %2054 = vadd.xlane.f32.xlu1 %v2053_v51  ;;  %v1171_v51 = vld [vmem:[%s14557_s8 + $0x58] sm:$0xff] }
 0x87d   :  { %v2055_v8 = vpop.xlane.xlu1 %2054 }
 0x87e   :  { %9651 = vrcp.f32 %v2055_v8  ;;  %v8643_v8 = vpack.c.bf16 %v7183_v56, %v7180_v5  ;;  %v1160_v5 = vld [vmem:[%s14557_s8] sm:$0xff]  ;;  %v1163_v56 = vld [vmem:[%s14557_s8 + $0x18] sm:$0xff] }
 0x888   :  { %v9652_v9 = vpop.eup %9651 }
 0x889   :  { %v2057_v0 = vmul.f32 %v9652_v9, %v9650_v48  ;;  %v1168_v48 = vld [vmem:[%s14557_s8 + $0x40] sm:$0xff]  ;;  %v7179_v9 = vld [vmem:[%s14557_s8 + $0x1f8] sm:$0xff] }
 0x88a   :  { %v8742_v52 = vpack.c.bf16 %v1171_v51, %v1168_v48  ;;  %v7209_v48 = vld [vmem:[%s14557_s8 + $0x2e8] sm:$0xff]  ;;  %v7212_v51 = vld [vmem:[%s14557_s8 + $0x300] sm:$0xff] }
 0x88b   :  { %7169 = vmatmul.mubr.msk.f32.vlgmr.msra.gmra.mrb[16].mxu0 %vm905_vm5, %v2057_v0  ;;  %v7182_v0 = vld [vmem:[%s14557_s8 + $0x210] sm:$0xff]  ;;  %v8665_v54 = vpack.c.bf16 %v7212_v51, %v7209_v48  ;;  %v1196_v51 = vld [vmem:[%s14557_s8 + $0x120] sm:$0xff] }
 0x88c   :  { %2141 = vmatpush1.xpose.msra.mxu0 %v11393_v59  ;;  %7171 = vmatprep.mubr.msk.f32.mxu0 %vm828_vm4, %v1970_v12  ;;  %v8697_v59 = vpack.c.bf16 %v7220_v21, %v7217_v19  ;;  %v7186_v12 = vld [vmem:[%s14557_s8 + $0x230] sm:$0xff]  ;;  %v7185_v19 = vld [vmem:[%s14557_s8 + $0x228] sm:$0xff]  ;;  %v7188_v21 = vld [vmem:[%s14557_s8 + $0x240] sm:$0xff] }
 0x88d   :  { %2224 = vmatprep.subr.mxu0 %v9555_v14  ;;  %v7189_v14 = vld [vmem:[%s14557_s8 + $0x248] sm:$0xff]  ;;  %v8649_v22 = vpack.c.bf16 %v7188_v21, %v7185_v19 }
 0x88e   :  { %8698 = vmatpush1.bf16.msra.mxu1 %v8697_v59  ;;  %v7192_v59 = vld [vmem:[%s14557_s8 + $0x260] sm:$0xff] }
 0x88f   :  { %2205 = vmatmul.mubr.f32.vlgmr.msra.gmra.mrb[18].mxu0 %v1969_v17  ;;  %8699 = vmatprep.subr.bf16.mxu1 %v9727_v55  ;;  %v8645_v17 = vpack.c.bf16 %v7182_v0, %v7179_v9  ;;  %v8704_v9 = vpack.c.bf16 %v1163_v56, %v1160_v5  ;;  %v1208_v56 = vld [vmem:[%s14557_s8 + $0x180] sm:$0xff] }
 0x890   :  { %2225 = vmatpush1.msra.mxu0 %v9554_v18  ;;  %2288 = vmatprep.mubr.f32.mxu0 %v9726_v47  ;;  %v8647_v18 = vpack.c.bf16 %v7189_v14, %v7186_v12  ;;  %v1166_v12 = vld [vmem:[%s14557_s8 + $0x30] sm:$0xff]  ;;  %v1169_v14 = vld [vmem:[%s14557_s8 + $0x48] sm:$0xff] }
 0x891   :  { %8640 = vmatprep.subr.bf16.mxu0 %v8639_v39  ;;  %v7206_v39 = vld [vmem:[%s14557_s8 + $0x2d0] sm:$0xff]  ;;  %v8708_v19 = vpack.c.bf16 %v1169_v14, %v1166_v12  ;;  %v1216_v14 = vld [vmem:[%s14557_s8 + $0x1c0] sm:$0x3f] }
 0x892   :  { %8701 = vmatpush1.bf16.msra.mxu1 %v8700_v16  ;;  %v8651_v16 = vpack.c.bf16 %v7195_v11, %v7192_v59  ;;  %v8661_v43 = vpack.c.bf16 %v7206_v39, %v7203_v38  ;;  %v1172_v59 = vld [vmem:[%s14557_s8 + $0x60] sm:$0xff]  ;;  %v1175_v11 = vld [vmem:[%s14557_s8 + $0x78] sm:$0xff]  ;;  %v1190_v39 = vld [vmem:[%s14557_s8 + $0xf0] sm:$0xff] }
 0x893   :  { %2488 = vmatprep.subr.mxu1 %v9726_v47  ;;  %v1214_v12 = vld [vmem:[%s14557_s8 + $0x1b0] sm:$0x3f] }
 0x896   :  { %7234 = vmatpush1.msk.msra.mxu1 %vm2365_vm6, %v7229_v23  ;;  %v7191_v23 = vld [vmem:[%s14557_s8 + $0x258] sm:$0xff] }
 0x897   :  { %8738 = vmatprep.subr.bf16.mxu1 %v9727_v55 }
 0x95e   :  { %v11505_v24 = vpop.f32.mrb[16].mxu0 }
 0x95f   :  { %v2129_v25 = vpop.f32.mrb[17].mxu0 }
 0x960   :  { %2133 = vst.msk [vmem:[#allocation2 + $0x8] sm:$0xff] %vm828_vm4, %v2129_v25  ;;  %v7194_v25 = vld [vmem:[%s14557_s8 + $0x270] sm:$0xff] }
 0x962   :  { %v2206_v10 = vpop.f32.mrb[18].mxu0 }
 0x963   :  { %v2208_v26 = vpop.f32.mrb[19].mxu0  ;;  %v2210_v28 = vsel %vm905_vm5, %v2206_v10, -inf }
 0x964   :  { %2211 = vmax.xlane.f32.xlu0 %v2210_v28  ;;  %v7201_v26 = vld [vmem:[%s14557_s8 + $0x2a8] sm:$0xff]  ;;  %v8653_v28 = vpack.c.bf16 %v7194_v25, %v7191_v23  ;;  %v1178_v25 = vld [vmem:[%s14557_s8 + $0x90] sm:$0xff] }
 0x967   :  { %v2298_v29 = vld [vmem:[#allocation2 + $0x8] sm:$0xff] }
 0x968   :  { %7235 = vmatprep.mubr.msk.f32.mxu1 %vm828_vm4, %v2298_v29 }
 0x969   :  { %2517 = vmatmul.mubr.f32.vlgmr.msra.gmra.mrb[18].mxu1 %v11505_v24 }
 0x96a   :  { %8740 = vmatpush1.bf16.msra.mxu1 %v8739_v44 }
 0x96b   :  { %8741 = vmatprep.subr.bf16.mxu1 %v9727_v55 }
 0x96e   :  { %8743 = vmatpush1.bf16.msra.mxu1 %v8742_v52  ;;  %v7216_v52 = vld [vmem:[%s14557_s8 + $0x320] sm:$0xff] }
 0x96f   :  { %8744 = vmatprep.subr.bf16.mxu1 %v9727_v55 }
 0x972   :  { %8746 = vmatpush1.bf16.msra.mxu1 %v8745_v15  ;;  %v8667_v15 = vpack.c.bf16 %v7219_v53, %v7216_v52  ;;  %v1199_v52 = vld [vmem:[%s14557_s8 + $0x138] sm:$0xff]  ;;  %v1198_v53 = vld [vmem:[%s14557_s8 + $0x130] sm:$0xff] }
 0x973   :  { %8747 = vmatprep.subr.bf16.mxu1 %v9727_v55 }
 0x976   :  { %8749 = vmatpush1.bf16.msra.mxu1 %v8748_v61  ;;  %v7222_v61 = vld [vmem:[%s14557_s8 + $0x350] sm:$0xff] }
 0x977   :  { %8750 = vmatprep.subr.bf16.mxu1 %v9727_v55 }
 0x97a   :  { %8752 = vmatpush1.bf16.msra.mxu1 %v8751_v63  ;;  %v8671_v63 = vpack.c.bf16 %v7225_v31, %v7222_v61  ;;  %v1206_v61 = vld [vmem:[%s14557_s8 + $0x170] sm:$0xff] }
 0x97b   :  { %8753 = vmatprep.subr.bf16.mxu1 %v9727_v55  ;;  %v1202_v31 = vld [vmem:[%s14557_s8 + $0x150] sm:$0xff] }
 0x97e   :  { %8755 = vmatpush1.bf16.msra.mxu1 %v8754_v50  ;;  %v8673_v50 = vpack.c.bf16 %v7224_v2, %v7221_v1  ;;  %v1204_v1 = vld [vmem:[%s14557_s8 + $0x160] sm:$0xff]  ;;  %v1207_v2 = vld [vmem:[%s14557_s8 + $0x178] sm:$0xff] }
 0x97f   :  { %8756 = vmatprep.subr.bf16.mxu1 %v9727_v55 }
 0x9f1   :  { %v2212_v30 = vpop.xlane.xlu0 %2211 }
 0x9f2   :  { %v2213_v33 = vsub.f32 %v2206_v10, %v2212_v30  ;;  %v7198_v10 = vld [vmem:[%s14557_s8 + $0x290] sm:$0xff]  ;;  %v7197_v30 = vld [vmem:[%s14557_s8 + $0x288] sm:$0xff] }
 0x9f4   :  { %v2214_v34 = vmul.f32 1.442695, %v2213_v33  ;;  %v7200_v33 = vld [vmem:[%s14557_s8 + $0x2a0] sm:$0xff] }
 0x9f6   :  { %9653 = vpow2.f32 %v2214_v34  ;;  %v7204_v34 = vld [vmem:[%s14557_s8 + $0x2c0] sm:$0xff] }
 0xa00   :  { %v9654_v35 = vpop.eup %9653 }
 0xa01   :  { %v2216_v36 = vsel %vm905_vm5, %v9654_v35, 0.0 }
 0xa02   :  { %2217 = vadd.xlane.f32.xlu1 %v2216_v36  ;;  %v8657_v36 = vpack.c.bf16 %v7200_v33, %v7197_v30  ;;  %v1184_v33 = vld [vmem:[%s14557_s8 + $0xc0] sm:$0xff] }
 0xa3c   :  { %v11520_v40 = vpop.f32.mrb[18].mxu1 }
 0xa3d   :  { %v2520_v41 = vpop.f32.mrb[19].mxu1 }
 0xa3e   :  { %v7210_v41 = vld [vmem:[%s14557_s8 + $0x2f0] sm:$0xff] }
 0xa3f   :  { %v8663_v44 = vpack.c.bf16 %v7213_v42, %v7210_v41  ;;  %v1193_v41 = vld [vmem:[%s14557_s8 + $0x108] sm:$0xff] }
 0xa40   :  { %v8724_v42 = vpack.c.bf16 %v1193_v41, %v1190_v39 }
 0xa8f   :  { %v2218_v3 = vpop.xlane.xlu1 %2217 }
 0xa90   :  { %9655 = vrcp.f32 %v2218_v3  ;;  %v7228_v3 = vld [vmem:[%s14557_s8 + $0x380] sm:$0x3f] }
 0xa9a   :  { %v9656_v27 = vpop.eup %9655 }
 0xa9b   :  { %v2220_v7 = vmul.f32 %v9656_v27, %v9654_v35  ;;  %v7207_v35 = vld [vmem:[%s14557_s8 + $0x2d8] sm:$0xff] }
 0xa9c   :  { %v8659_v37 = vpack.c.bf16 %v7207_v35, %v7204_v34  ;;  %v1167_v27 = vld [vmem:[%s14557_s8 + $0x38] sm:$0xff] }
 0xa9d   :  { %7172 = vmatmul.mubr.msk.f32.vlgmr.msra.gmra.mrb[20].mxu0 %vm905_vm5, %v2220_v7  ;;  %v7227_v7 = vld [vmem:[%s14557_s8 + $0x378] sm:$0x3f] }
 0xa9e   :  { %8642 = vmatpush1.bf16.msra.mxu0 %v8641_v6  ;;  %7232 = vmatprep.mubr.msk.f32.mxu0 %vm828_vm4, %v2298_v29  ;;  %v8655_v29 = vpack.c.bf16 %v7201_v26, %v7198_v10  ;;  %v1170_v6 = vld [vmem:[%s14557_s8 + $0x50] sm:$0xff]  ;;  %v1181_v10 = vld [vmem:[%s14557_s8 + $0xa8] sm:$0xff]  ;;  %v1187_v34 = vld [vmem:[%s14557_s8 + $0xd8] sm:$0xff] }
 0xa9f   :  { %8644 = vmatprep.subr.bf16.mxu0 %v8643_v8  ;;  %v8702_v8 = vpack.c.bf16 %v1164_v4, %v1161_v57  ;;  %v8706_v0 = vpack.c.bf16 %v1170_v6, %v1167_v27  ;;  %v1185_v26 = vld [vmem:[%s14557_s8 + $0xc8] sm:$0xff]  ;;  %v1191_v35 = vld [vmem:[%s14557_s8 + $0xf8] sm:$0xff]  ;;  %v1212_v4 = vld [vmem:[%s14557_s8 + $0x1a0] sm:$0xff] }
 0xaa0   :  { %v1209_v57 = vld [vmem:[%s14557_s8 + $0x188] sm:$0xff]  ;;  %v1211_v27 = vld [vmem:[%s14557_s8 + $0x198] sm:$0xff]  ;;  %v1210_v6 = vld [vmem:[%s14557_s8 + $0x190] sm:$0xff] }
 0xaa1   :  { %v8734_v5 = vpack.c.bf16 %v1212_v4, %v1209_v57  ;;  %v2833_v57 = vld [vmem:[%s14563_s14 + $0x88] sm:$0xff]  ;;  %v2816_v4 = vld [vmem:[%s14563_s14] sm:$0xff] }
 0xaa2   :  { %8646 = vmatpush1.bf16.msra.mxu0 %v8645_v17  ;;  %v1173_v17 = vld [vmem:[%s14557_s8 + $0x68] sm:$0xff] }
 0xaa3   :  { %8648 = vmatprep.subr.bf16.mxu0 %v8647_v18  ;;  %v1176_v18 = vld [vmem:[%s14557_s8 + $0x80] sm:$0xff] }
 0xaa4   :  { %v8710_v21 = vpack.c.bf16 %v1176_v18, %v1173_v17  ;;  %v1159_v18 = vld [vmem:[#allocation2 + $0x18] sm:$0xff] }
 0xaa6   :  { %8650 = vmatpush1.bf16.msra.mxu0 %v8649_v22  ;;  %v1179_v22 = vld [vmem:[%s14557_s8 + $0x98] sm:$0xff] }
 0xaa7   :  { %8652 = vmatprep.subr.bf16.mxu0 %v8651_v16  ;;  %v8712_v16 = vpack.c.bf16 %v1175_v11, %v1172_v59  ;;  %v1156_v59 = vld [vmem:[#allocation2] sm:$0xff] }
 0xaa8   :  { %v2694_v11 = vld [vmem:[%s14558_s9] sm:$0x7] }
 0xaaa   :  { %8654 = vmatpush1.bf16.msra.mxu0 %v8653_v28  ;;  %v1188_v28 = vld [vmem:[%s14557_s8 + $0xe0] sm:$0xff] }
 0xaab   :  { %8656 = vmatprep.subr.bf16.mxu0 %v8655_v29  ;;  %v8716_v29 = vpack.c.bf16 %v1181_v10, %v1178_v25  ;;  %v8718_v30 = vpack.c.bf16 %v1188_v28, %v1185_v26 }
 0xaae   :  { %8658 = vmatpush1.bf16.msra.mxu0 %v8657_v36  ;;  %v1194_v36 = vld [vmem:[%s14557_s8 + $0x110] sm:$0xff] }
 0xaaf   :  { %8660 = vmatprep.subr.bf16.mxu0 %v8659_v37  ;;  %v8720_v37 = vpack.c.bf16 %v1187_v34, %v1184_v33  ;;  %v8722_v38 = vpack.c.bf16 %v1194_v36, %v1191_v35  ;;  %v9696_v36 = vld [vmem:[%s14581_s2 + $0x8] sm:$0xff] }
 0xab2   :  { %8662 = vmatpush1.bf16.msra.mxu0 %v8661_v43  ;;  %v1197_v43 = vld [vmem:[%s14557_s8 + $0x128] sm:$0xff] }
 0xab3   :  { %8664 = vmatprep.subr.bf16.mxu0 %v8663_v44  ;;  %v1200_v44 = vld [vmem:[%s14557_s8 + $0x140] sm:$0xff] }
 0xab4   :  { %v8726_v48 = vpack.c.bf16 %v1200_v44, %v1197_v43  ;;  %v9697_v44 = vld [vmem:[%s14581_s2 + $0x10] sm:$0xff] }
 0xab6   :  { %8666 = vmatpush1.bf16.msra.mxu0 %v8665_v54  ;;  %v8728_v54 = vpack.c.bf16 %v1199_v52, %v1196_v51 }
 0xab7   :  { %8668 = vmatprep.subr.bf16.mxu0 %v8667_v15  ;;  %v1201_v15 = vld [vmem:[%s14557_s8 + $0x148] sm:$0xff] }
 0xab8   :  { %v8757_v58 = vpack.c.bf16 %v1201_v15, %v1198_v53  ;;  %v9698_v53 = vld [vmem:[%s14581_s2 + $0x18] sm:$0xff] }
 0xaba   :  { %8670 = vmatpush1.bf16.msra.mxu0 %v8669_v62  ;;  %v8730_v62 = vpack.c.bf16 %v1206_v61, %v1203_v60  ;;  %8758 = vmatpush1.bf16.msra.mxu1 %v8757_v58  ;;  %v9699_v60 = vld [vmem:[%s14581_s2 + $0x20] sm:$0xff] }
 0xabb   :  { %8672 = vmatprep.subr.bf16.mxu0 %v8671_v63  ;;  %v1205_v63 = vld [vmem:[%s14557_s8 + $0x168] sm:$0xff]  ;;  %8759 = vmatprep.subr.bf16.mxu1 %v9727_v55 }
 0xabe   :  { %8674 = vmatpush1.bf16.msra.mxu0 %v8673_v50  ;;  %v8732_v50 = vpack.c.bf16 %v1205_v63, %v1202_v31 }
 0xabf   :  { %7230 = vmatprep.subr.msk.mxu0 %vm2365_vm6, %v7228_v3  ;;  %v8760_v3 = vpack.c.bf16 %v1207_v2, %v1204_v1 }
 0xac1   :  { %8761 = vmatpush1.bf16.msra.mxu1 %v8760_v3  ;;  %v2832_v3 = vld [vmem:[%s14563_s14 + $0x80] sm:$0xff] }
 0xac2   :  { %7231 = vmatpush1.msk.msra.mxu0 %vm2365_vm6, %v7227_v7  ;;  %8762 = vmatprep.subr.bf16.mxu1 %v9727_v55  ;;  %v8736_v7 = vpack.c.bf16 %v1211_v27, %v1208_v56  ;;  %v2817_v56 = vld [vmem:[%s14563_s14 + $0x8] sm:$0xff]  ;;  %v2834_v27 = vld [vmem:[%s14563_s14 + $0x90] sm:$0xff] }
 0xac3   :  { %2440 = vmatmul.mubr.f32.vlgmr.msra.gmra.mrb[22].mxu0 %v11505_v24  ;;  %8703 = vmatprep.subr.bf16.mxu0 %v8702_v8  ;;  %v1182_v24 = vld [vmem:[%s14557_s8 + $0xb0] sm:$0xff]  ;;  %v1213_v8 = vld [vmem:[%s14557_s8 + $0x1a8] sm:$0xff] }
 0xac4   :  { %8705 = vmatpush1.bf16.msra.mxu0 %v8704_v9  ;;  %v8714_v23 = vpack.c.bf16 %v1182_v24, %v1179_v22  ;;  %v8763_v9 = vpack.c.bf16 %v1213_v8, %v1210_v6  ;;  %v11833_v22 = vsub.s32 2, %v10597_v45  ;;  %v9695_v45 = vld [vmem:[%s14581_s2] sm:$0xff]  ;;  %v2835_v6 = vld [vmem:[%s14563_s14 + $0x98] sm:$0xff] }
 0xac5   :  { %8707 = vmatprep.subr.bf16.mxu0 %v8706_v0  ;;  %v1215_v0 = vld [vmem:[%s14557_s8 + $0x1b8] sm:$0x3f]  ;;  %v8769_v8 = vpack.c.bf16 %v2835_v6, %v2834_v27  ;;  %v2828_v27 = vld [vmem:[%s14563_s14 + $0x60] sm:$0xff] }
 0xac6   :  { %8764 = vmatpush1.bf16.msra.mxu1 %v8763_v9  ;;  %v2707_v25 = vrot.slane %v2694_v11, %v11833_v22  ;;  %v2818_v9 = vld [vmem:[%s14563_s14 + $0x10] sm:$0xff] }
 0xac7   :  { %2655 = vmatprep.subr.mxu1 %v9726_v47 }
 0xac8   :  { %8709 = vmatpush1.bf16.msra.mxu0 %v8708_v19 }
 0xac9   :  { %8711 = vmatprep.subr.bf16.mxu0 %v8710_v21 }
 0xaca   :  { %7241 = vmatpush1.msk.msra.mxu1 %vm2365_vm6, %v1216_v14  ;;  %v2837_v14 = vld [vmem:[%s14563_s14 + $0xa8] sm:$0xff] }
 0xacc   :  { %8713 = vmatpush1.bf16.msra.mxu0 %v8712_v16  ;;  %v2699_v16 = vrot.slane %v2694_v11, %v10606_v49 }
 0xacd   :  { %8715 = vmatprep.subr.bf16.mxu0 %v8714_v23  ;;  %v2703_v23 = vrot.slane %v2694_v11, %v10600_v46 }
 0xad0   :  { %8717 = vmatpush1.bf16.msra.mxu0 %v8716_v29 }
 0xad1   :  { %8719 = vmatprep.subr.bf16.mxu0 %v8718_v30 }
 0xad4   :  { %8721 = vmatpush1.bf16.msra.mxu0 %v8720_v37 }
 0xad5   :  { %8723 = vmatprep.subr.bf16.mxu0 %v8722_v38 }
 0xad8   :  { %8725 = vmatpush1.bf16.msra.mxu0 %v8724_v42 }
 0xad9   :  { %8727 = vmatprep.subr.bf16.mxu0 %v8726_v48 }
 0xadc   :  { %8729 = vmatpush1.bf16.msra.mxu0 %v8728_v54 }
 0xadd   :  { %8731 = vmatprep.subr.bf16.mxu0 %v8730_v62  ;;  %v9700_v62 = vld [vmem:[%s14581_s2 + $0x28] sm:$0xff] }
 0xae0   :  { %8733 = vmatpush1.bf16.msra.mxu0 %v8732_v50 }
 0xae1   :  { %8735 = vmatprep.subr.bf16.mxu0 %v8734_v5  ;;  %v8765_v5 = vpack.c.bf16 %v2833_v57, %v2832_v3  ;;  %v2849_v3 = vld [vmem:[%s14563_s14 + $0x108] sm:$0xff] }
 0xae4   :  { %8737 = vmatpush1.bf16.msra.mxu0 %v8736_v7  ;;  %v8767_v7 = vpack.c.bf16 %v2817_v56, %v2816_v4  ;;  %v2845_v56 = vld [vmem:[%s14563_s14 + $0xe8] sm:$0xff] }
 0xae5   :  { %7237 = vmatprep.subr.msk.mxu0 %vm2365_vm6, %v1215_v0  ;;  %v2819_v0 = vld [vmem:[%s14563_s14 + $0x18] sm:$0xff] }
 0xae8   :  { %7238 = vmatpush1.msk.msra.mxu0 %vm2365_vm6, %v1214_v12  ;;  %v2836_v12 = vld [vmem:[%s14563_s14 + $0xa0] sm:$0xff] }
 0xae9   :  { %8766 = vmatprep.subr.bf16.mxu0 %v8765_v5  ;;  %v2844_v5 = vld [vmem:[%s14563_s14 + $0xe0] sm:$0xff] }
 0xaea   :  { %v8789_v6 = vpack.c.bf16 %v2845_v56, %v2844_v5  ;;  %v3029_v5 = vld [vmem:[%s14565_s16 + $0x38] sm:$0xff]  ;;  %v3032_v56 = vld [vmem:[%s14565_s16 + $0x50] sm:$0xff] }
 0xb70   :  { %v2290_v17 = vpop.f32.mrb[20].mxu0 }
 0xb71   :  { %v2292_v19 = vpop.f32.mrb[21].mxu0 }
 0xb72   :  { %2296 = vst.msk [vmem:[#allocation2 + $0x18] sm:$0xff] %vm828_vm4, %v2292_v19  ;;  %v2820_v19 = vld [vmem:[%s14563_s14 + $0x20] sm:$0xff] }
 0xb79   :  { %v2300_v21 = vld [vmem:[#allocation2 + $0x18] sm:$0xff] }
 0xb7a   :  { %7233 = vmatprep.mubr.msk.f32.mxu0 %vm828_vm4, %v2300_v21  ;;  %7236 = vmatprep.mubr.msk.f32.mxu1 %vm828_vm4, %v2300_v21  ;;  %v2821_v21 = vld [vmem:[%s14563_s14 + $0x28] sm:$0xff] }
 0xb7b   :  { %2446 = vmatmul.mubr.f32.gmra.mrb[24].mxu0 %v2290_v17  ;;  %2522 = vmatmul.mubr.f32.gmra.mrb[20].mxu1 %v2290_v17  ;;  %v8771_v17 = vpack.c.bf16 %v2819_v0, %v2818_v9  ;;  %v2851_v9 = vld [vmem:[%s14563_s14 + $0x118] sm:$0xff] }
 0xb7c   :  { %7239 = vmatprep.mubr.msk.f32.mxu0 %vm828_vm4, %v11507_v20  ;;  %7242 = vmatprep.mubr.msk.f32.mxu1 %vm828_vm4, %v11507_v20 }
 0xb7f   :  { %2607 = vmatmul.mubr.f32.vlgmr.msra.gmra.mrb[22].mxu0 %v1156_v59  ;;  %2684 = vmatmul.mubr.f32.vlgmr.msra.gmra.mrb[22].mxu1 %v1156_v59  ;;  %v8775_v59 = vpack.c.bf16 %v2821_v21, %v2820_v19  ;;  %v2830_v19 = vld [vmem:[%s14563_s14 + $0x70] sm:$0xff]  ;;  %v2831_v21 = vld [vmem:[%s14563_s14 + $0x78] sm:$0xff] }
 0xb80   :  { %7240 = vmatprep.mubr.msk.f32.mxu0 %vm828_vm4, %v1159_v18  ;;  %7243 = vmatprep.mubr.msk.f32.mxu1 %vm828_vm4, %v1159_v18  ;;  %v8773_v18 = vpack.c.bf16 %v2837_v14, %v2836_v12  ;;  %v2846_v14 = vld [vmem:[%s14563_s14 + $0xf0] sm:$0xff] }
 0xb81   :  { %8768 = vmatpush3.bf16.msra.mxu0 %v8767_v7  ;;  %v2829_v7 = vld [vmem:[%s14563_s14 + $0x68] sm:$0xff] }
 0xb82   :  { %8770 = vmatprep.subr.bf16.mxu0 %v8769_v8  ;;  %v2850_v8 = vld [vmem:[%s14563_s14 + $0x110] sm:$0xff]  ;;  %v8791_v0 = vpack.c.bf16 %v2829_v7, %v2828_v27  ;;  %v8815_v27 = vpack.c.bf16 %v3032_v56, %v3029_v5  ;;  %v3031_v7 = vld [vmem:[%s14565_s16 + $0x48] sm:$0xff]  ;;  %v7336_v56 = vld [vmem:[%s14580_s26 + $0x4d8] sm:$0xff] }
 0xb83   :  { %2613 = vmatmul.mubr.f32.gmra.mrb[24].mxu0 %v11400_v13  ;;  %2689 = vmatmul.mubr.f32.gmra.mrb[24].mxu1 %v11400_v13  ;;  %v8801_v12 = vpack.c.bf16 %v2851_v9, %v2850_v8  ;;  %v3024_v9 = vld [vmem:[%s14565_s16 + $0x10] sm:$0xff] }
 0xb85   :  { %8772 = vmatpush3.bf16.msra.mxu0 %v8771_v17  ;;  %v2847_v17 = vld [vmem:[%s14563_s14 + $0xf8] sm:$0xff] }
 0xb86   :  { %8774 = vmatprep.subr.bf16.mxu0 %v8773_v18  ;;  %v8793_v18 = vpack.c.bf16 %v2847_v17, %v2846_v14 }
 0xb89   :  { %8776 = vmatpush3.bf16.msra.mxu0 %v8775_v59  ;;  %v8795_v59 = vpack.c.bf16 %v2831_v21, %v2830_v19 }
 0xc4e   :  { %v2523_v24 = vpop.f32.mrb[20].mxu1 }
 0xc4f   :  { %v2525_v20 = vpop.f32.mrb[21].mxu1 }
 0xc52   :  { %v2608_v10 = vpop.f32.mrb[22].mxu0  ;;  %v2685_v26 = vpop.f32.mrb[22].mxu1 }
 0xc53   :  { %v2711_v28 = vadd.f32 %v2699_v16, %v2608_v10  ;;  %v2686_v13 = vadd.f32 %v2685_v26, %v11520_v40  ;;  %v2610_v29 = vpop.f32.mrb[23].mxu0  ;;  %v2687_v30 = vpop.f32.mrb[23].mxu1 }
 0xc54   :  { %v2712_v33 = vadd.f32 %v2703_v23, %v2610_v29 }
 0xc55   :  { %v2717_v34 = vadd.f32 %v9695_v45, %v2711_v28  ;;  %v2713_v35 = vadd.f32 %v2707_v25, %v2686_v13 }
 0xc56   :  { %v2718_v37 = vadd.f32 %v9696_v36, %v2712_v33  ;;  %v2614_v38 = vpop.f32.mrb[24].mxu0  ;;  %v2690_v39 = vpop.f32.mrb[24].mxu1 }
 0xc57   :  { %v2714_v41 = vadd.f32 %v2699_v16, %v2614_v38  ;;  %v2691_v42 = vadd.f32 %v2690_v39, %v2523_v24  ;;  %v2616_v43 = vpop.f32.mrb[25].mxu0  ;;  %v2692_v40 = vpop.f32.mrb[25].mxu1  ;;  %v2719_v48 = vadd.f32 %v9697_v44, %v2713_v35 }
 0xc58   :  { %v2715_v51 = vadd.f32 %v2703_v23, %v2616_v43  ;;  %v2725_v52 = vadd.f32 %v2718_v37, %v2717_v34  ;;  %v2838_v43 = vld [vmem:[%s14563_s14 + $0xb0] sm:$0xff]  ;;  %v2839_v40 = vld [vmem:[%s14563_s14 + $0xb8] sm:$0xff] }
 0xc59   :  { %v2720_v54 = vadd.f32 %v9698_v53, %v2714_v41  ;;  %v2716_v15 = vadd.f32 %v2707_v25, %v2691_v42  ;;  %v2726_v58 = vsel %vm160_vm3, %v2719_v48, 0.0  ;;  %v8777_v44 = vpack.c.bf16 %v2839_v40, %v2838_v43  ;;  %v2840_v53 = vld [vmem:[%s14563_s14 + $0xc0] sm:$0xff] }
 0xc5a   :  { %v2721_v61 = vadd.f32 %v9699_v60, %v2715_v51  ;;  %v2727_v31 = vadd.f32 %v2726_v58, %v2725_v52  ;;  %v2823_v51 = vld [vmem:[%s14563_s14 + $0x38] sm:$0xff]  ;;  %v2824_v58 = vld [vmem:[%s14563_s14 + $0x40] sm:$0xff]  ;;  %v2825_v60 = vld [vmem:[%s14563_s14 + $0x48] sm:$0xff] }
 0xc5b   :  { %v2722_v63 = vadd.f32 %v9700_v62, %v2716_v15  ;;  %8778 = vmatprep.subr.bf16.mxu0 %v8777_v44  ;;  %v2843_v62 = vld [vmem:[%s14563_s14 + $0xd8] sm:$0xff] }
 0xc5c   :  { %2728 = vadd.xlane.f32.xlu0 %v2727_v31  ;;  %v2730_v1 = vadd.f32 %v2721_v61, %v2720_v54  ;;  %v2842_v31 = vld [vmem:[%s14563_s14 + $0xd0] sm:$0xff] }
 0xc5d   :  { %v2731_v2 = vsel %vm160_vm3, %v2722_v63, 0.0 }
 0xc5e   :  { %v2732_v50 = vadd.f32 %v2731_v2, %v2730_v1  ;;  %v8785_v1 = vpack.c.bf16 %v2843_v62, %v2842_v31  ;;  %v2827_v2 = vld [vmem:[%s14563_s14 + $0x58] sm:$0xff] }
 0xc60   :  { %2733 = vadd.xlane.f32.xlu1 %v2732_v50  ;;  %v2848_v50 = vld [vmem:[%s14563_s14 + $0x100] sm:$0xff] }
 0xc61   :  { %v8797_v4 = vpack.c.bf16 %v2849_v3, %v2848_v50  ;;  %v3022_v3 = vld [vmem:[%s14565_s16] sm:$0xff] }
 0xc63   :  { %8798 = vmatprep.subr.bf16.mxu1 %v8797_v4 }
 0xc64   :  { %8800 = vmatpush3.bf16.msra.mxu1 %v8797_v4 }
 0xc65   :  { %8802 = vmatprep.subr.bf16.mxu1 %v8801_v12 }
 0xc68   :  { %8804 = vmatpush3.bf16.msra.mxu1 %v8801_v12 }
 0xce9   :  { %v2729_v11 = vpop.xlane.xlu0 %2728 }
 0xcea   :  { %v2736_v24 = vmul.f32 0.0033333334, %v2729_v11  ;;  %v2852_v11 = vld [vmem:[%s14563_s14 + $0x120] sm:$0xff] }
 0xcec   :  { %v11895_v20 = vsub.f32 %v2717_v34, %v2736_v24  ;;  %v11897_v16 = vsub.f32 %v2718_v37, %v2736_v24  ;;  %v11899_v23 = vsub.f32 %v2719_v48, %v2736_v24  ;;  %v2822_v48 = vld [vmem:[%s14563_s14 + $0x30] sm:$0xff]  ;;  %v2853_v24 = vld [vmem:[%s14563_s14 + $0x128] sm:$0xf] }
 0xced   :  { %v2734_v25 = vpop.xlane.xlu1 %2733  ;;  %v8779_v52 = vpack.c.bf16 %v2823_v51, %v2822_v48 }
 0xcee   :  { %v2737_v10 = vmul.f32 0.0033333334, %v2734_v25  ;;  %v2744_v26 = vmul.f32 %v11895_v20, %v11895_v20  ;;  %v2745_v28 = vmul.f32 %v11897_v16, %v11897_v16  ;;  %v2746_v13 = vmul.f32 %v11899_v23, %v11899_v23 }
 0xcef   :  { %8780 = vmatpush3.bf16.msra.mxu0 %v8779_v52  ;;  %v8805_v25 = vpack.c.bf16 %v2853_v24, %v2852_v11 }
 0xcf0   :  { %v11907_v29 = vsub.f32 %v2720_v54, %v2737_v10  ;;  %v11909_v30 = vsub.f32 %v2721_v61, %v2737_v10  ;;  %v11911_v33 = vsub.f32 %v2722_v63, %v2737_v10  ;;  %v2750_v45 = vadd.f32 %v2745_v28, %v2744_v26  ;;  %v2841_v54 = vld [vmem:[%s14563_s14 + $0xc8] sm:$0xff]  ;;  %v2826_v63 = vld [vmem:[%s14563_s14 + $0x50] sm:$0xff] }
 0xcf1   :  { %v2751_v34 = vsel %vm160_vm3, %v2746_v13, 0.0  ;;  %v8781_v15 = vpack.c.bf16 %v2841_v54, %v2840_v53  ;;  %v8783_v61 = vpack.c.bf16 %v2825_v60, %v2824_v58  ;;  %v8787_v57 = vpack.c.bf16 %v2827_v2, %v2826_v63  ;;  %8807 = vmatprep.subr.msk.bf16.mxu1 %vm10304_vm2, %v8805_v25 }
 0xcf2   :  { %v2752_v35 = vadd.f32 %v2751_v34, %v2750_v45  ;;  %v2747_v36 = vmul.f32 %v11907_v29, %v11907_v29  ;;  %v2748_v37 = vmul.f32 %v11909_v30, %v11909_v30  ;;  %v2749_v38 = vmul.f32 %v11911_v33, %v11911_v33  ;;  %8810 = vmatpush3.bf16.msk.msra.mxu1 %vm10304_vm2, %v8805_v25  ;;  %v3030_v25 = vld [vmem:[%s14565_s16 + $0x40] sm:$0xff] }
 0xcf3   :  { %8782 = vmatprep.subr.bf16.mxu0 %v8781_v15 }
 0xcf4   :  { %2753 = vadd.xlane.f32.xlu0 %v2752_v35  ;;  %v2755_v39 = vadd.f32 %v2748_v37, %v2747_v36  ;;  %v2756_v41 = vsel %vm160_vm3, %v2749_v38, 0.0  ;;  %8784 = vmatpush3.bf16.msra.mxu0 %v8783_v61  ;;  %v2723_v35 = vld [vmem:[%s14559_s10] sm:$0x7] }
 0xcf5   :  { %8786 = vmatprep.subr.bf16.mxu0 %v8785_v1  ;;  %v2724_v36 = vld [vmem:[%s14560_s11] sm:$0x7]  ;;  %v2776_v37 = vrot.slane %v2723_v35, %v10606_v49  ;;  %v2780_v38 = vrot.slane %v2723_v35, %v10600_v46 }
 0xcf6   :  { %v2757_v42 = vadd.f32 %v2756_v41, %v2755_v39  ;;  %v2784_v39 = vrot.slane %v2723_v35, %v11833_v22  ;;  %v2802_v43 = vrot.slane %v2724_v36, %v10600_v46  ;;  %v2806_v48 = vrot.slane %v2724_v36, %v11833_v22 }
 0xcf8   :  { %2758 = vadd.xlane.f32.xlu1 %v2757_v42  ;;  %8788 = vmatpush3.bf16.msra.mxu0 %v8787_v57  ;;  %v2798_v42 = vrot.slane %v2724_v36, %v10606_v49  ;;  %v3025_v57 = vld [vmem:[%s14565_s16 + $0x18] sm:$0xff] }
 0xcf9   :  { %8790 = vmatprep.subr.bf16.mxu0 %v8789_v6  ;;  %v8813_v4 = vpack.c.bf16 %v3025_v57, %v3022_v3  ;;  %v3028_v6 = vld [vmem:[%s14565_s16 + $0x30] sm:$0xff] }
 0xcfa   :  { %v8817_v8 = vpack.c.bf16 %v3031_v7, %v3028_v6  ;;  %v7254_v6 = vld [vmem:[%s14579_s23 + $0x4d0] sm:$0xff] }
 0xcfc   :  { %8792 = vmatpush3.bf16.msra.mxu0 %v8791_v0  ;;  %v3027_v0 = vld [vmem:[%s14565_s16 + $0x28] sm:$0xff] }
 0xcfd   :  { %8794 = vmatprep.subr.bf16.mxu0 %v8793_v18  ;;  %v8819_v12 = vpack.c.bf16 %v3027_v0, %v3024_v9  ;;  %v7244_v18 = vld [vmem:[%s14564_s15] ss:$0 sm:$0xff]  ;;  %v7335_v0 = vld [vmem:[%s14580_s26 + $0x4d0] sm:$0xff] }
 0xcfe   :  { %v7333_v9 = vld [vmem:[%s14580_s26 + $0x4c0] sm:$0xff] }
 0xd00   :  { %8796 = vmatpush3.bf16.msra.mxu0 %v8795_v59 }
 0xd81   :  { %v2754_v10 = vpop.xlane.xlu0 %2753 }
 0xd82   :  { %v2760_v26 = vmul.f32 0.0033333334, %v2754_v10  ;;  %v3033_v10 = vld [vmem:[%s14565_s16 + $0x58] sm:$0xff] }
 0xd84   :  { %v2762_v28 = vadd.f32 1e-05, %v2760_v26 }
 0xd85   :  { %v2759_v13 = vpop.xlane.xlu1 %2758 }
 0xd86   :  { %9657 = vrsqrt.f32 %v2762_v28  ;;  %v2761_v45 = vmul.f32 0.0033333334, %v2759_v13 }
 0xd88   :  { %v2763_v34 = vadd.f32 1e-05, %v2761_v45 }
 0xd8a   :  { %9659 = vrsqrt.f32 %v2763_v34  ;;  %v8823_v34 = vpack.c.bf16 %v3033_v10, %v3030_v25  ;;  %v7337_v25 = vld [vmem:[%s14580_s26 + $0x4e0] sm:$0xff] }
 0xd90   :  { %v9658_v41 = vpop.eup %9657 }
 0xd91   :  { %v2767_v40 = vmul.f32 %v9658_v41, %v11897_v16  ;;  %v2768_v44 = vmul.f32 %v9658_v41, %v11899_v23  ;;  %v2766_v51 = vmul.f32 %v9658_v41, %v11895_v20 }
 0xd93   :  { %v2789_v52 = vmul.f32 %v2780_v38, %v2767_v40  ;;  %v2790_v53 = vmul.f32 %v2784_v39, %v2768_v44  ;;  %v2788_v54 = vmul.f32 %v2776_v37, %v2766_v51 }
 0xd94   :  { %v9660_v15 = vpop.eup %9659 }
 0xd95   :  { %v12018_v58 = vadd.f32 %v2802_v43, %v2789_v52  ;;  %v2771_v60 = vmul.f32 %v9660_v15, %v11911_v33  ;;  %v12021_v61 = vadd.f32 %v2806_v48, %v2790_v53  ;;  %v12023_v31 = vadd.f32 %v2798_v42, %v2788_v54 }
 0xd96   :  { %v2770_v16 = vmul.f32 %v9660_v15, %v11909_v30  ;;  %v2769_v23 = vmul.f32 %v9660_v15, %v11907_v29  ;;  %v3023_v29 = vld [vmem:[%s14565_s16 + $0x8] sm:$0xff]  ;;  %v3026_v30 = vld [vmem:[%s14565_s16 + $0x20] sm:$0xff] }
 0xd97   :  { %2934 = vmatprep.mubr.f32.mxu0 %v12018_v58  ;;  %v2793_v62 = vmul.f32 %v2784_v39, %v2771_v60  ;;  %8109 = vmatprep.mubr.msk.f32.mxu1 %vm160_vm3, %v12021_v61  ;;  %v8811_v50 = vpack.c.bf16 %v3026_v30, %v3023_v29 }
 0xd98   :  { %2935 = vmatmul.mubr.f32.vlgmr.msra.gmra.mrb[26].mxu0 %v12023_v31  ;;  %v2792_v20 = vmul.f32 %v2780_v38, %v2770_v16  ;;  %v2791_v63 = vmul.f32 %v2776_v37, %v2769_v23  ;;  %v3034_v38 = vld [vmem:[%s14566_s17] sm:$0x7] }
 0xd99   :  { %v12031_v1 = vadd.f32 %v2806_v48, %v2793_v62  ;;  %8812 = vmatprep.subr.bf16.mxu1 %v8811_v50  ;;  %v3047_v53 = vrot.slane %v3034_v38, %v11833_v22 }
 0xd9a   :  { %v12033_v33 = vadd.f32 %v2802_v43, %v2792_v20  ;;  %v12035_v2 = vadd.f32 %v2798_v42, %v2791_v63  ;;  %v3039_v42 = vrot.slane %v3034_v38, %v10606_v49  ;;  %v3043_v43 = vrot.slane %v3034_v38, %v10600_v46 }
 0xd9b   :  { %8110 = vmatmul.mubr.msk.f32.vlgmr.msra.gmra.mrb[26].mxu1 %vm160_vm3, %v12031_v1 }
 0xd9c   :  { %2939 = vmatprep.mubr.f32.mxu0 %v12033_v33  ;;  %3122 = vmatprep.mubr.f32.mxu1 %v9726_v47 }
 0xd9d   :  { %2940 = vmatmul.mubr.f32.gmra.mrb[28].mxu0 %v12035_v2  ;;  %8814 = vmatpush1.bf16.msra.mxu1 %v8813_v4  ;;  %v7334_v4 = vld [vmem:[%s14580_s26 + $0x4c8] sm:$0xff] }
 0xd9e   :  { %8816 = vmatprep.subr.bf16.mxu1 %v8815_v27  ;;  %v7252_v27 = vld [vmem:[%s14579_s23 + $0x4c0] sm:$0xff]  ;;  %v8905_v7 = vpack.c.bf16 %v7336_v56, %v7334_v4  ;;  %v7270_v4 = vld [vmem:[%s14579_s23 + $0x550] sm:$0xff] }
 0xda0   :  { %8906 = vmatprep.subr.bf16.mxu0 %v8905_v7  ;;  %v7275_v7 = vld [vmem:[%s14579_s23 + $0x578] sm:$0xff] }
 0xda1   :  { %8818 = vmatpush1.bf16.msra.mxu1 %v8817_v8  ;;  %v8829_v8 = vpack.c.bf16 %v7254_v6, %v7252_v27  ;;  %v7351_v27 = vld [vmem:[%s14580_s26 + $0x550] sm:$0xff]  ;;  %v7273_v6 = vld [vmem:[%s14579_s23 + $0x568] sm:$0xff] }
 0xda2   :  { %8820 = vmatprep.subr.bf16.mxu1 %v8819_v12 }
 0xe6b   :  { %v7980_v14 = vpop.f32.mrb[26].mxu0 }
 0xe6c   :  { %v7981_v17 = vpop.f32.mrb[27].mxu0 }
 0xe6d   :  { %v7982_v19 = vadd.f32 %v7981_v17, %v7980_v14  ;;  %v8907_v14 = vpack.c.bf16 %v7335_v0, %v7333_v9  ;;  %v7259_v17 = vld [vmem:[%s14579_s23 + $0x4f8] sm:$0xff] }
 0xe6e   :  { %v8111_v21 = vpop.f32.mrb[26].mxu1  ;;  %v7356_v9 = vld [vmem:[%s14580_s26 + $0x578] sm:$0xff] }
 0xe6f   :  { %v2937_v59 = vadd.f32 %v7982_v19, %v7244_v18  ;;  %v3011_v11 = vpop.f32.mrb[27].mxu1  ;;  %v7340_v19 = vld [vmem:[%s14580_s26 + $0x4f8] sm:$0xff]  ;;  %8908 = vmatpush1.bf16.msra.mxu0 %v8907_v14  ;;  %v8847_v14 = vpack.c.bf16 %v7275_v7, %v7273_v6 }
 0xe70   :  { %v7983_v24 = vpop.f32.mrb[28].mxu0 }
 0xe71   :  { %v3012_v26 = vadd.f32 %v3011_v11, %v2937_v59  ;;  %v7984_v28 = vpop.f32.mrb[29].mxu0  ;;  %v7256_v11 = vld [vmem:[%s14579_s23 + $0x4e0] sm:$0xff] }
 0xe72   :  { %v7985_v13 = vadd.f32 %v7984_v28, %v7983_v24  ;;  %v7258_v24 = vld [vmem:[%s14579_s23 + $0x4f0] sm:$0xff]  ;;  %v7261_v28 = vld [vmem:[%s14579_s23 + $0x508] sm:$0xff] }
 0xe73   :  { %v3020_v45 = vmax.f32 %v3012_v26, 0.0  ;;  %v8833_v10 = vpack.c.bf16 %v7258_v24, %v7256_v11  ;;  %v7339_v26 = vld [vmem:[%s14580_s26 + $0x4f0] sm:$0xff]  ;;  %v7277_v11 = vld [vmem:[%s14579_s23 + $0x588] sm:$0xff]  ;;  %v7279_v24 = vld [vmem:[%s14579_s23 + $0x598] sm:$0xff] }
 0xe74   :  { %v2942_v35 = vadd.f32 %v7985_v13, %v7244_v18  ;;  %v7338_v18 = vld [vmem:[%s14580_s26 + $0x4e8] sm:$0xff]  ;;  %v7263_v13 = vld [vmem:[%s14579_s23 + $0x518] sm:$0xff] }
 0xe75   :  { %7248 = vmatmul.mubr.msk.f32.vlgmr.msra.gmra.mrb[28].mxu1 %vm3051_vm7, %v3020_v45  ;;  %v8909_v59 = vpack.c.bf16 %v7340_v19, %v7338_v18  ;;  %v7274_v18 = vld [vmem:[%s14579_s23 + $0x570] sm:$0xff]  ;;  %v7353_v19 = vld [vmem:[%s14580_s26 + $0x560] sm:$0xff] }
 0xe76   :  { %v3017_v36 = vadd.f32 %v8111_v21, %v2942_v35  ;;  %8822 = vmatpush3.bf16.msra.mxu1 %v8819_v12  ;;  %3128 = vmatprep.mubr.f32.mxu1 %v9726_v47  ;;  %v7257_v12 = vld [vmem:[%s14579_s23 + $0x4e8] sm:$0xff] }
 0xe77   :  { %8824 = vmatprep.subr.bf16.mxu1 %v8823_v34  ;;  %v8831_v21 = vpack.c.bf16 %v7259_v17, %v7257_v12  ;;  %8910 = vmatprep.subr.bf16.mxu0 %v8909_v59  ;;  %v7342_v35 = vld [vmem:[%s14580_s26 + $0x508] sm:$0xff]  ;;  %v7272_v17 = vld [vmem:[%s14579_s23 + $0x560] sm:$0xff]  ;;  %v7355_v59 = vld [vmem:[%s14580_s26 + $0x570] sm:$0xff] }
 0xe78   :  { %v3021_v37 = vmax.f32 %v3017_v36, 0.0  ;;  %v7344_v36 = vld [vmem:[%s14580_s26 + $0x518] sm:$0xff] }
 0xe79   :  { %v8913_v38 = vpack.c.bf16 %v7344_v36, %v7342_v35  ;;  %v7357_v35 = vld [vmem:[%s14580_s26 + $0x580] sm:$0xff] }
 0xe7a   :  { %7249 = vmatmul.mubr.msk.f32.gmra.mrb[30].mxu1 %vm3051_vm7, %v3021_v37 }
 0xe7b   :  { %8826 = vmatpush3.bf16.msra.mxu1 %v8823_v34  ;;  %8120 = vmatprep.mubr.msk.f32.mxu1 %vm3051_vm7, %v3020_v45  ;;  %v8911_v45 = vpack.c.bf16 %v7339_v26, %v7337_v25  ;;  %v8835_v34 = vpack.c.bf16 %v7263_v13, %v7261_v28  ;;  %v7358_v25 = vld [vmem:[%s14580_s26 + $0x588] sm:$0xff]  ;;  %v8849_v26 = vpack.c.bf16 %v7274_v18, %v7272_v17  ;;  %v7371_v17 = vld [vmem:[%s14580_s26 + $0x5f0] sm:$0xff] }
 0xe7c   :  { %v8927_v28 = vpack.c.bf16 %v7355_v59, %v7353_v19  ;;  %v8851_v13 = vpack.c.bf16 %v7279_v24, %v7277_v11  ;;  %v7293_v18 = vld [vmem:[%s14579_s23 + $0x608] sm:$0xff]  ;;  %v7295_v19 = vld [vmem:[%s14579_s23 + $0x618] sm:$0xff] }
 0xe7d   :  { %8912 = vmatpush1.bf16.msra.mxu0 %v8911_v45  ;;  %v7276_v45 = vld [vmem:[%s14579_s23 + $0x580] sm:$0xff]  ;;  %v7376_v59 = vld [vmem:[%s14580_s26 + $0x618] sm:$0xff] }
 0xe7e   :  { %8121 = vmatmul.mubr.msk.f32.vlgmr.msra.gmra.mrb[32].mxu1 %vm3051_vm7, %v3021_v37  ;;  %v7260_v37 = vld [vmem:[%s14579_s23 + $0x500] sm:$0xff]  ;;  %8914 = vmatprep.subr.bf16.mxu0 %v8913_v38  ;;  %v7281_v38 = vld [vmem:[%s14579_s23 + $0x5a8] sm:$0xff] }
 0xf48   :  { %v3124_v39 = vpop.f32.mrb[28].mxu1 }
 0xf49   :  { %v3126_v41 = vpop.f32.mrb[29].mxu1  ;;  %v3125_v44 = vadd.f32 %v3124_v39, %v3039_v42  ;;  %v7262_v39 = vld [vmem:[%s14579_s23 + $0x510] sm:$0xff] }
 0xf4a   :  { %v3127_v48 = vadd.f32 %v3126_v41, %v3043_v43  ;;  %v7341_v41 = vld [vmem:[%s14580_s26 + $0x500] sm:$0xff] }
 0xf4b   :  { %v12099_v23 = vadd.f32 %v3125_v44, %v12023_v31  ;;  %v7267_v44 = vld [vmem:[%s14579_s23 + $0x538] sm:$0xff] }
 0xf4c   :  { %v12102_v62 = vadd.f32 %v3127_v48, %v12018_v58  ;;  %v7346_v48 = vld [vmem:[%s14580_s26 + $0x528] sm:$0xff] }
 0xf4d   :  { %v3130_v40 = vpop.f32.mrb[30].mxu1 }
 0xf4e   :  { %v3131_v51 = vadd.f32 %v3130_v40, %v3039_v42  ;;  %v3132_v52 = vpop.f32.mrb[31].mxu1  ;;  %v3218_v31 = vadd.f32 %v12102_v62, %v12099_v23  ;;  %v7343_v42 = vld [vmem:[%s14580_s26 + $0x510] sm:$0xff]  ;;  %v7265_v40 = vld [vmem:[%s14579_s23 + $0x528] sm:$0xff] }
 0xf4f   :  { %v3133_v54 = vadd.f32 %v3132_v52, %v3043_v43  ;;  %v8837_v43 = vpack.c.bf16 %v7262_v39, %v7260_v37  ;;  %v8839_v52 = vpack.c.bf16 %v7267_v44, %v7265_v40  ;;  %v7359_v37 = vld [vmem:[%s14580_s26 + $0x590] sm:$0xff]  ;;  %v7283_v39 = vld [vmem:[%s14579_s23 + $0x5b8] sm:$0xff] }
 0xf50   :  { %v12093_v15 = vadd.f32 %v3131_v51, %v12035_v2  ;;  %v8915_v51 = vpack.c.bf16 %v7343_v42, %v7341_v41  ;;  %v7362_v41 = vld [vmem:[%s14580_s26 + $0x5a8] sm:$0xff]  ;;  %v7364_v42 = vld [vmem:[%s14580_s26 + $0x5b8] sm:$0xff]  ;;  %v8931_v40 = vpack.c.bf16 %v7359_v37, %v7357_v35  ;;  %v8855_v44 = vpack.c.bf16 %v7283_v39, %v7281_v38 }
 0xf51   :  { %v12096_v60 = vadd.f32 %v3133_v54, %v12033_v33  ;;  %v8122_v16 = vpop.f32.mrb[32].mxu1  ;;  %v7264_v54 = vld [vmem:[%s14579_s23 + $0x520] sm:$0xff] }
 0xf52   :  { %v3207_v20 = vadd.f32 %v8122_v16, %v3047_v53  ;;  %v3201_v63 = vpop.f32.mrb[33].mxu1  ;;  %v7266_v16 = vld [vmem:[%s14579_s23 + $0x530] sm:$0xff]  ;;  %8916 = vmatpush1.bf16.msra.mxu0 %v8915_v51 }
 0xf53   :  { %v3202_v29 = vadd.f32 %v3201_v63, %v3047_v53  ;;  %v3223_v33 = vadd.f32 %v12096_v60, %v12093_v15  ;;  %v7348_v53 = vld [vmem:[%s14580_s26 + $0x538] sm:$0xff]  ;;  %v7345_v63 = vld [vmem:[%s14580_s26 + $0x520] sm:$0xff]  ;;  %v7282_v51 = vld [vmem:[%s14579_s23 + $0x5b0] sm:$0xff] }
 0xf54   :  { %v12105_v30 = vadd.f32 %v3207_v20, %v12031_v1  ;;  %v7255_v1 = vld [vmem:[%s14579_s23 + $0x4d8] sm:$0xff]  ;;  %v8917_v20 = vpack.c.bf16 %v7348_v53, %v7346_v48  ;;  %v7280_v48 = vld [vmem:[%s14579_s23 + $0x5a0] sm:$0xff]  ;;  %v8933_v53 = vpack.c.bf16 %v7364_v42, %v7362_v41 }
 0xf55   :  { %v12108_v50 = vadd.f32 %v3202_v29, %v12021_v61  ;;  %v7253_v61 = vld [vmem:[%s14579_s23 + $0x4c8] sm:$0xff]  ;;  %v7347_v29 = vld [vmem:[%s14580_s26 + $0x530] sm:$0xff] }
 0xf56   :  { %v3224_v2 = vsel %vm160_vm3, %v12105_v30, 0.0  ;;  %v8827_v5 = vpack.c.bf16 %v7255_v1, %v7253_v61  ;;  %v7268_v1 = vld [vmem:[%s14579_s23 + $0x540] sm:$0xff]  ;;  %8918 = vmatprep.subr.bf16.mxu0 %v8917_v20  ;;  %v7287_v20 = vld [vmem:[%s14579_s23 + $0x5d8] sm:$0xff] }
 0xf57   :  { %v3225_v58 = vadd.f32 %v3224_v2, %v3223_v33  ;;  %v3219_v3 = vsel %vm160_vm3, %v12108_v50, 0.0  ;;  %v7269_v33 = vld [vmem:[%s14579_s23 + $0x548] sm:$0xff]  ;;  %v7271_v2 = vld [vmem:[%s14579_s23 + $0x558] sm:$0xff]  ;;  %v8845_v0 = vpack.c.bf16 %v7270_v4, %v7268_v1  ;;  %v7367_v1 = vld [vmem:[%s14580_s26 + $0x5d0] sm:$0xff] }
 0xf58   :  { %v3220_v57 = vadd.f32 %v3219_v3, %v3218_v31  ;;  %8828 = vmatprep.subr.bf16.mxu1 %v8827_v5  ;;  %v7350_v31 = vld [vmem:[%s14580_s26 + $0x548] sm:$0xff]  ;;  %v8841_v3 = vpack.c.bf16 %v7266_v16, %v7264_v54  ;;  %v8843_v61 = vpack.c.bf16 %v7271_v2, %v7269_v33  ;;  %v7349_v5 = vld [vmem:[%s14580_s26 + $0x540] sm:$0xff]  ;;  %v7363_v54 = vld [vmem:[%s14580_s26 + $0x5b0] sm:$0xff]  ;;  %v8857_v33 = vpack.c.bf16 %v7282_v51, %v7280_v48 }
 0xf59   :  { %3226 = vadd.xlane.f32.xlu1 %v3225_v58  ;;  %8830 = vmatpush1.bf16.msra.mxu1 %v8829_v8  ;;  %v7352_v58 = vld [vmem:[%s14580_s26 + $0x558] sm:$0xff]  ;;  %v7354_v8 = vld [vmem:[%s14580_s26 + $0x568] sm:$0xff]  ;;  %v8923_v12 = vpack.c.bf16 %v7351_v27, %v7349_v5 }
 0xf5a   :  { %3221 = vadd.xlane.f32.xlu0 %v3220_v57  ;;  %8832 = vmatprep.subr.bf16.mxu1 %v8831_v21  ;;  %v8919_v57 = vpack.c.bf16 %v7347_v29, %v7345_v63  ;;  %v8921_v56 = vpack.c.bf16 %v7352_v58, %v7350_v31  ;;  %v8925_v21 = vpack.c.bf16 %v7356_v9, %v7354_v8  ;;  %v7285_v16 = vld [vmem:[%s14579_s23 + $0x5c8] sm:$0xff]  ;;  %v7368_v29 = vld [vmem:[%s14580_s26 + $0x5d8] sm:$0xff]  ;;  %v7284_v58 = vld [vmem:[%s14579_s23 + $0x5c0] sm:$0xff] }
 0xf5b   :  { %v7366_v63 = vld [vmem:[%s14580_s26 + $0x5c8] sm:$0xff]  ;;  %v8859_v31 = vpack.c.bf16 %v7287_v20, %v7285_v16  ;;  %v7291_v5 = vld [vmem:[%s14579_s23 + $0x5f8] sm:$0xff]  ;;  %v7288_v9 = vld [vmem:[%s14579_s23 + $0x5e0] sm:$0xff] }
 0xf5c   :  { %8920 = vmatpush1.bf16.msra.mxu0 %v8919_v57  ;;  %v7365_v57 = vld [vmem:[%s14580_s26 + $0x5c0] sm:$0xff]  ;;  %v7289_v4 = vld [vmem:[%s14579_s23 + $0x5e8] sm:$0xff]  ;;  %v7372_v27 = vld [vmem:[%s14580_s26 + $0x5f8] sm:$0xff] }
 0xf5d   :  { %8834 = vmatpush1.bf16.msra.mxu1 %v8833_v10  ;;  %8922 = vmatprep.subr.bf16.mxu0 %v8921_v56  ;;  %v7360_v10 = vld [vmem:[%s14580_s26 + $0x598] sm:$0xff]  ;;  %v7370_v56 = vld [vmem:[%s14580_s26 + $0x5e8] sm:$0xff]  ;;  %v8939_v7 = vpack.c.bf16 %v7367_v1, %v7365_v57  ;;  %v8863_v8 = vpack.c.bf16 %v7291_v5, %v7289_v4  ;;  %v7377_v1 = vld [vmem:[%s14580_s26 + $0x620] sm:$0xff] }
 0xf5e   :  { %8836 = vmatprep.subr.bf16.mxu1 %v8835_v34  ;;  %v7278_v34 = vld [vmem:[%s14579_s23 + $0x590] sm:$0xff]  ;;  %v8929_v36 = vpack.c.bf16 %v7360_v10, %v7358_v25  ;;  %v8867_v25 = vpack.c.bf16 %v7295_v19, %v7293_v18  ;;  %v7292_v10 = vld [vmem:[%s14579_s23 + $0x600] sm:$0xff] }
 0xf5f   :  { %v7379_v4 = vld [vmem:[%s14580_s26 + $0x630] sm:$0xff] }
 0xf60   :  { %8924 = vmatpush1.bf16.msra.mxu0 %v8923_v12  ;;  %v7369_v12 = vld [vmem:[%s14580_s26 + $0x5e0] sm:$0xff]  ;;  %v8951_v5 = vpack.c.bf16 %v7379_v4, %v7377_v1  ;;  %v7383_v18 = vld [vmem:[%s14580_s26 + $0x650] sm:$0xff]  ;;  %v7319_v1 = vld [vmem:[%s14579_s23 + $0x6d8] sm:$0xff] }
 0xf61   :  { %8838 = vmatpush1.bf16.msra.mxu1 %v8837_v43  ;;  %8926 = vmatprep.subr.bf16.mxu0 %v8925_v21  ;;  %v8853_v43 = vpack.c.bf16 %v7278_v34, %v7276_v45  ;;  %v7374_v21 = vld [vmem:[%s14580_s26 + $0x608] sm:$0xff]  ;;  %v8943_v24 = vpack.c.bf16 %v7371_v17, %v7369_v12  ;;  %v7375_v45 = vld [vmem:[%s14580_s26 + $0x610] sm:$0xff]  ;;  %v7381_v17 = vld [vmem:[%s14580_s26 + $0x640] sm:$0xff] }
 0xf62   :  { %8840 = vmatprep.subr.bf16.mxu1 %v8839_v52  ;;  %v7361_v52 = vld [vmem:[%s14580_s26 + $0x5a0] sm:$0xff]  ;;  %v8955_v19 = vpack.c.bf16 %v7383_v18, %v7381_v17  ;;  %v7398_v4 = vld [vmem:[%s14580_s26 + $0x6c8] sm:$0xff] }
 0xf63   :  { %v8935_v2 = vpack.c.bf16 %v7363_v54, %v7361_v52  ;;  %v12552_v17 = vld [vmem:[%s14562_s13] sm:$0x7] }
 0xf64   :  { %8928 = vmatpush1.bf16.msra.mxu0 %v8927_v28  ;;  %v8945_v28 = vpack.c.bf16 %v7376_v59, %v7374_v21  ;;  %v7305_v21 = vld [vmem:[%s14579_s23 + $0x668] sm:$0xff]  ;;  %v7307_v59 = vld [vmem:[%s14579_s23 + $0x678] sm:$0xff] }
 0xf65   :  { %8842 = vmatpush1.bf16.msra.mxu1 %v8841_v3  ;;  %8930 = vmatprep.subr.bf16.mxu0 %v8929_v36  ;;  %v7286_v3 = vld [vmem:[%s14579_s23 + $0x5d0] sm:$0xff] }
 0xf66   :  { %8844 = vmatprep.subr.bf16.mxu1 %v8843_v61  ;;  %v8937_v61 = vpack.c.bf16 %v7368_v29, %v7366_v63  ;;  %v8861_v6 = vpack.c.bf16 %v7286_v3, %v7284_v58  ;;  %v7297_v63 = vld [vmem:[%s14579_s23 + $0x628] sm:$0xff]  ;;  %v7299_v29 = vld [vmem:[%s14579_s23 + $0x638] sm:$0xff]  ;;  %v7296_v58 = vld [vmem:[%s14579_s23 + $0x620] sm:$0xff] }
 0xf67   :  { %v7298_v3 = vld [vmem:[%s14579_s23 + $0x630] sm:$0xff] }
 0xf68   :  { %8932 = vmatpush1.bf16.msra.mxu0 %v8931_v40 }
 0xf69   :  { %8846 = vmatpush1.bf16.msra.mxu1 %v8845_v0  ;;  %8934 = vmatprep.subr.bf16.mxu0 %v8933_v53  ;;  %v7290_v0 = vld [vmem:[%s14579_s23 + $0x5f0] sm:$0xff] }
 0xf6a   :  { %8848 = vmatprep.subr.bf16.mxu1 %v8847_v14  ;;  %v8941_v14 = vpack.c.bf16 %v7372_v27, %v7370_v56  ;;  %v8865_v11 = vpack.c.bf16 %v7290_v0, %v7288_v9  ;;  %v7301_v56 = vld [vmem:[%s14579_s23 + $0x648] sm:$0xff]  ;;  %v7303_v27 = vld [vmem:[%s14579_s23 + $0x658] sm:$0xff]  ;;  %v7300_v9 = vld [vmem:[%s14579_s23 + $0x640] sm:$0xff] }
 0xf6b   :  { %v7302_v0 = vld [vmem:[%s14579_s23 + $0x650] sm:$0xff] }
 0xf6c   :  { %8936 = vmatpush1.bf16.msra.mxu0 %v8935_v2  ;;  %v8871_v2 = vpack.c.bf16 %v7299_v29, %v7297_v63  ;;  %v7396_v63 = vld [vmem:[%s14580_s26 + $0x6b8] sm:$0xff]  ;;  %v7312_v29 = vld [vmem:[%s14579_s23 + $0x6a0] sm:$0xff] }
 0xf6d   :  { %8850 = vmatpush1.bf16.msra.mxu1 %v8849_v26  ;;  %8938 = vmatprep.subr.bf16.mxu0 %v8937_v61  ;;  %v7294_v26 = vld [vmem:[%s14579_s23 + $0x610] sm:$0xff]  ;;  %v8873_v61 = vpack.c.bf16 %v7298_v3, %v7296_v58  ;;  %v7393_v58 = vld [vmem:[%s14580_s26 + $0x6a0] sm:$0xff] }
 0xf6e   :  { %8852 = vmatprep.subr.bf16.mxu1 %v8851_v13  ;;  %v7373_v13 = vld [vmem:[%s14580_s26 + $0x600] sm:$0xff]  ;;  %v8869_v34 = vpack.c.bf16 %v7294_v26, %v7292_v10  ;;  %v7306_v26 = vld [vmem:[%s14579_s23 + $0x670] sm:$0xff] }
 0xf6f   :  { %v8947_v35 = vpack.c.bf16 %v7375_v45, %v7373_v13  ;;  %v7304_v10 = vld [vmem:[%s14579_s23 + $0x660] sm:$0xff]  ;;  %v7395_v3 = vld [vmem:[%s14580_s26 + $0x6b0] sm:$0xff] }
 0xf70   :  { %8940 = vmatpush1.bf16.msra.mxu0 %v8939_v7  ;;  %v8875_v7 = vpack.c.bf16 %v7303_v27, %v7301_v56  ;;  %v8881_v13 = vpack.c.bf16 %v7306_v26, %v7304_v10  ;;  %v7385_v45 = vld [vmem:[%s14580_s26 + $0x660] sm:$0xff]  ;;  %v7400_v56 = vld [vmem:[%s14580_s26 + $0x6d8] sm:$0xff]  ;;  %v3294_v10 = vrot.slane %v12552_v17, %v10600_v46  ;;  %v3290_v26 = vrot.slane %v12552_v17, %v10606_v49 }
 0xf71   :  { %8854 = vmatpush1.bf16.msra.mxu1 %v8853_v43  ;;  %8942 = vmatprep.subr.bf16.mxu0 %v8941_v14  ;;  %v8877_v14 = vpack.c.bf16 %v7302_v0, %v7300_v9  ;;  %v8969_v27 = vpack.c.bf16 %v7400_v56, %v7398_v4  ;;  %v7405_v56 = vld [vmem:[%s14580_s26 + $0x700] sm:$0xff] }
 0xf72   :  { %8856 = vmatprep.subr.bf16.mxu1 %v8855_v44 }
 0xf74   :  { %8944 = vmatpush1.bf16.msra.mxu0 %v8943_v24  ;;  %v8879_v24 = vpack.c.bf16 %v7307_v59, %v7305_v21 }
 0xf75   :  { %8858 = vmatpush1.bf16.msra.mxu1 %v8857_v33  ;;  %8946 = vmatprep.subr.bf16.mxu0 %v8945_v28  ;;  %v7378_v33 = vld [vmem:[%s14580_s26 + $0x628] sm:$0xff] }
 0xf76   :  { %8860 = vmatprep.subr.bf16.mxu1 %v8859_v31  ;;  %v7380_v31 = vld [vmem:[%s14580_s26 + $0x638] sm:$0xff] }
 0xf77   :  { %v8949_v57 = vpack.c.bf16 %v7380_v31, %v7378_v33  ;;  %v7314_v33 = vld [vmem:[%s14579_s23 + $0x6b0] sm:$0xff] }
 0xf78   :  { %8948 = vmatpush1.bf16.msra.mxu0 %v8947_v35  ;;  %v8889_v31 = vpack.c.bf16 %v7314_v33, %v7312_v29  ;;  %v7408_v29 = vld [vmem:[%s14580_s26 + $0x718] sm:$0xf] }
 0xf79   :  { %8862 = vmatpush1.bf16.msra.mxu1 %v8861_v6  ;;  %8950 = vmatprep.subr.bf16.mxu0 %v8949_v57  ;;  %v7382_v6 = vld [vmem:[%s14580_s26 + $0x648] sm:$0xff]  ;;  %v8967_v57 = vpack.c.bf16 %v7395_v3, %v7393_v58 }
 0xf7a   :  { %8864 = vmatprep.subr.bf16.mxu1 %v8863_v8  ;;  %v7384_v8 = vld [vmem:[%s14580_s26 + $0x658] sm:$0xff] }
 0xf7b   :  { %v8953_v12 = vpack.c.bf16 %v7384_v8, %v7382_v6 }
 0xf7c   :  { %8952 = vmatpush1.bf16.msra.mxu0 %v8951_v5 }
 0xf7d   :  { %8866 = vmatpush1.bf16.msra.mxu1 %v8865_v11  ;;  %8954 = vmatprep.subr.bf16.mxu0 %v8953_v12  ;;  %v7386_v11 = vld [vmem:[%s14580_s26 + $0x668] sm:$0xff] }
 0xf7e   :  { %8868 = vmatprep.subr.bf16.mxu1 %v8867_v25  ;;  %v7388_v25 = vld [vmem:[%s14580_s26 + $0x678] sm:$0xff] }
 0xf7f   :  { %v8957_v28 = vpack.c.bf16 %v7388_v25, %v7386_v11 }
 0xf80   :  { %8956 = vmatpush1.bf16.msra.mxu0 %v8955_v19 }
 0xf81   :  { %8870 = vmatpush1.bf16.msra.mxu1 %v8869_v34  ;;  %v7387_v34 = vld [vmem:[%s14580_s26 + $0x670] sm:$0xff]  ;;  %8958 = vmatprep.subr.bf16.mxu0 %v8957_v28  ;;  %v7316_v28 = vld [vmem:[%s14579_s23 + $0x6c0] sm:$0xff] }
 0xf82   :  { %8872 = vmatprep.subr.bf16.mxu1 %v8871_v2  ;;  %v8959_v35 = vpack.c.bf16 %v7387_v34, %v7385_v45 }
 0xf84   :  { %8960 = vmatpush1.bf16.msra.mxu0 %v8959_v35  ;;  %v7321_v35 = vld [vmem:[%s14579_s23 + $0x6e8] sm:$0xff] }
 0xf85   :  { %8874 = vmatpush1.bf16.msra.mxu1 %v8873_v61  ;;  %v7317_v61 = vld [vmem:[%s14579_s23 + $0x6c8] sm:$0xff] }
 0xf86   :  { %8876 = vmatprep.subr.bf16.mxu1 %v8875_v7  ;;  %v8891_v5 = vpack.c.bf16 %v7319_v1, %v7317_v61 }
 0xf89   :  { %8878 = vmatpush1.bf16.msra.mxu1 %v8877_v14  ;;  %v3216_v14 = vld [vmem:[%s14561_s12] sm:$0x7] }
 0xf8a   :  { %8880 = vmatprep.subr.bf16.mxu1 %v8879_v24  ;;  %v3272_v19 = vrot.slane %v3216_v14, %v10600_v46  ;;  %v3268_v21 = vrot.slane %v3216_v14, %v10606_v49 }
 0xf8d   :  { %8882 = vmatpush1.bf16.msra.mxu1 %v8881_v13 }
 0xfe6   :  { %v3227_v36 = vpop.xlane.xlu1 %3226 }
 0xfe7   :  { %v3229_v37 = vmul.f32 0.0033333334, %v3227_v36  ;;  %v3222_v38 = vpop.xlane.xlu0 %3221  ;;  %v7309_v36 = vld [vmem:[%s14579_s23 + $0x688] sm:$0xff] }
 0xfe8   :  { %v3228_v39 = vmul.f32 0.0033333334, %v3222_v38  ;;  %v7390_v38 = vld [vmem:[%s14580_s26 + $0x688] sm:$0xff] }
 0xfe9   :  { %v12383_v41 = vsub.f32 %v12093_v15, %v3229_v37  ;;  %v12386_v42 = vsub.f32 %v12096_v60, %v3229_v37  ;;  %v12389_v43 = vsub.f32 %v12105_v30, %v3229_v37  ;;  %v7311_v37 = vld [vmem:[%s14579_s23 + $0x698] sm:$0xff] }
 0xfea   :  { %v12392_v40 = vsub.f32 %v12099_v23, %v3228_v39  ;;  %v12395_v44 = vsub.f32 %v12102_v62, %v3228_v39  ;;  %v12398_v48 = vsub.f32 %v12108_v50, %v3228_v39  ;;  %v8883_v39 = vpack.c.bf16 %v7311_v37, %v7309_v36  ;;  %v7402_v37 = vld [vmem:[%s14580_s26 + $0x6e8] sm:$0xff] }
 0xfeb   :  { %v3239_v51 = vmul.f32 %v12383_v41, %v12383_v41  ;;  %v3240_v15 = vmul.f32 %v12386_v42, %v12386_v42  ;;  %v3241_v60 = vmul.f32 %v12389_v43, %v12389_v43 }
 0xfec   :  { %v3236_v30 = vmul.f32 %v12392_v40, %v12392_v40  ;;  %v3237_v23 = vmul.f32 %v12395_v44, %v12395_v44  ;;  %v3238_v62 = vmul.f32 %v12398_v48, %v12398_v48  ;;  %8884 = vmatprep.subr.bf16.mxu1 %v8883_v39 }
 0xfed   :  { %v3247_v50 = vadd.f32 %v3240_v15, %v3239_v51  ;;  %v3248_v52 = vsel %vm160_vm3, %v3241_v60, 0.0  ;;  %v7392_v51 = vld [vmem:[%s14580_s26 + $0x698] sm:$0xff]  ;;  %v7308_v15 = vld [vmem:[%s14579_s23 + $0x680] sm:$0xff]  ;;  %v7310_v60 = vld [vmem:[%s14579_s23 + $0x690] sm:$0xff] }
 0xfee   :  { %v3242_v53 = vadd.f32 %v3237_v23, %v3236_v30  ;;  %v3243_v54 = vsel %vm160_vm3, %v3238_v62, 0.0  ;;  %v8961_v30 = vpack.c.bf16 %v7392_v51, %v7390_v38  ;;  %v8885_v23 = vpack.c.bf16 %v7310_v60, %v7308_v15  ;;  %v7389_v62 = vld [vmem:[%s14580_s26 + $0x680] sm:$0xff]  ;;  %v7404_v38 = vld [vmem:[%s14580_s26 + $0x6f8] sm:$0xff] }
 0xfef   :  { %v3249_v16 = vadd.f32 %v3248_v52, %v3247_v50  ;;  %v7391_v50 = vld [vmem:[%s14580_s26 + $0x690] sm:$0xff] }
 0xff0   :  { %v3244_v20 = vadd.f32 %v3243_v54, %v3242_v53  ;;  %v8963_v52 = vpack.c.bf16 %v7391_v50, %v7389_v62  ;;  %8962 = vmatprep.subr.bf16.mxu0 %v8961_v30  ;;  %8886 = vmatpush1.bf16.msra.mxu1 %v8885_v23  ;;  %v7313_v53 = vld [vmem:[%s14579_s23 + $0x6a8] sm:$0xff]  ;;  %v7315_v54 = vld [vmem:[%s14579_s23 + $0x6b8] sm:$0xff]  ;;  %v7320_v30 = vld [vmem:[%s14579_s23 + $0x6e0] sm:$0xff] }
 0xff1   :  { %3250 = vadd.xlane.f32.xlu1 %v3249_v16  ;;  %v7394_v16 = vld [vmem:[%s14580_s26 + $0x6a8] sm:$0xff]  ;;  %v7322_v23 = vld [vmem:[%s14579_s23 + $0x6f0] sm:$0xff]  ;;  %v7401_v62 = vld [vmem:[%s14580_s26 + $0x6e0] sm:$0xff] }
 0xff2   :  { %3245 = vadd.xlane.f32.xlu0 %v3244_v20  ;;  %8964 = vmatpush1.bf16.msra.mxu0 %v8963_v52  ;;  %v8887_v20 = vpack.c.bf16 %v7315_v54, %v7313_v53  ;;  %v8965_v2 = vpack.c.bf16 %v7396_v63, %v7394_v16  ;;  %v7403_v52 = vld [vmem:[%s14580_s26 + $0x6f0] sm:$0xff]  ;;  %v7325_v53 = vld [vmem:[%s14579_s23 + $0x708] sm:$0xff]  ;;  %v7327_v54 = vld [vmem:[%s14579_s23 + $0x718] sm:$0xf] }
 0xff3   :  { %v7406_v63 = vld [vmem:[%s14580_s26 + $0x708] sm:$0xff]  ;;  %v8975_v58 = vpack.c.bf16 %v7403_v52, %v7401_v62  ;;  %v8899_v3 = vpack.c.bf16 %v7327_v54, %v7325_v53  ;;  %v7430_v62 = vld [vmem:[%s14584_s21 + $0x540] sm:$0xff]  ;;  %v7437_v53 = vld [vmem:[%s14584_s21 + $0x578] sm:$0xff] }
 0xff4   :  { %8888 = vmatprep.subr.bf16.mxu1 %v8887_v20  ;;  %8966 = vmatprep.subr.bf16.mxu0 %v8965_v2  ;;  %v8973_v20 = vpack.c.bf16 %v7404_v38, %v7402_v37  ;;  %v3276_v2 = vrot.slane %v3216_v14, %v11833_v22  ;;  %v8977_v4 = vpack.c.bf16 %v7408_v29, %v7406_v63  ;;  %v7426_v37 = vld [vmem:[%s14584_s21 + $0x520] sm:$0xff]  ;;  %v7428_v38 = vld [vmem:[%s14584_s21 + $0x530] sm:$0xff]  ;;  %v7435_v52 = vld [vmem:[%s14584_s21 + $0x568] sm:$0xff] }
 0xff5   :  { %8890 = vmatpush1.bf16.msra.mxu1 %v8889_v31  ;;  %v8897_v31 = vpack.c.bf16 %v7322_v23, %v7320_v30  ;;  %v8997_v30 = vpack.c.bf16 %v7428_v38, %v7426_v37  ;;  %v7436_v63 = vld [vmem:[%s14584_s21 + $0x570] sm:$0xff]  ;;  %v7439_v29 = vld [vmem:[%s14584_s21 + $0x588] sm:$0xff] }
 0xff6   :  { %8968 = vmatpush1.bf16.msra.mxu0 %v8967_v57  ;;  %8892 = vmatprep.subr.bf16.mxu1 %v8891_v5  ;;  %v7324_v57 = vld [vmem:[%s14579_s23 + $0x700] sm:$0xff]  ;;  %v7326_v5 = vld [vmem:[%s14579_s23 + $0x710] sm:$0xf] }
 0xff7   :  { %8970 = vmatprep.subr.bf16.mxu0 %v8969_v27  ;;  %v7407_v27 = vld [vmem:[%s14580_s26 + $0x710] sm:$0xf] }
0x107e   :  { %v3251_v6 = vpop.xlane.xlu1 %3250 }
0x107f   :  { %v3253_v7 = vmul.f32 0.0033333334, %v3251_v6  ;;  %v3246_v8 = vpop.xlane.xlu0 %3245  ;;  %v7417_v6 = vld [vmem:[%s14584_s21 + $0x4d8] sm:$0xff] }
0x1080   :  { %v3252_v9 = vmul.f32 0.0033333334, %v3246_v8  ;;  %v8980_v8 = vpack.c.bf16 %v7407_v27, %v7405_v56  ;;  %v7442_v27 = vld [vmem:[%s14584_s21 + $0x5a0] sm:$0xff] }
0x1081   :  { %v3255_v0 = vadd.f32 1e-05, %v3253_v7  ;;  %v8902_v7 = vpack.c.bf16 %v7326_v5, %v7324_v57  ;;  %v7440_v57 = vld [vmem:[%s14584_s21 + $0x590] sm:$0xff] }
0x1082   :  { %v3254_v12 = vadd.f32 1e-05, %v3252_v9  ;;  %v3298_v9 = vrot.slane %v12552_v17, %v11833_v22  ;;  %v7421_v17 = vld [vmem:[%s14584_s21 + $0x4f8] sm:$0xff] }
0x1083   :  { %9661 = vrsqrt.f32 %v3255_v0 }
0x1084   :  { %9663 = vrsqrt.f32 %v3254_v12 }
0x108d   :  { %v12554_v18 = vpop.eup %9661 }
0x108e   :  { %v9664_v59 = vpop.eup %9663  ;;  %v3262_v11 = vmul.f32 %v12554_v18, %v12386_v42  ;;  %v3261_v13 = vmul.f32 %v12554_v18, %v12383_v41  ;;  %v7318_v42 = vld [vmem:[%s14579_s23 + $0x6d0] sm:$0xff]  ;;  %v7323_v41 = vld [vmem:[%s14579_s23 + $0x6f8] sm:$0xff]  ;;  %v3263_v0 = vmul.f32 %v12554_v18, %v12389_v43  ;;  %v7419_v43 = vld [vmem:[%s14584_s21 + $0x4e8] sm:$0xff] }
0x108f   :  { %v3258_v24 = vmul.f32 %v9664_v59, %v12392_v40  ;;  %v3259_v25 = vmul.f32 %v9664_v59, %v12395_v44  ;;  %v7397_v40 = vld [vmem:[%s14580_s26 + $0x6c0] sm:$0xff]  ;;  %v7399_v44 = vld [vmem:[%s14580_s26 + $0x6d0] sm:$0xff]  ;;  %v8893_v15 = vpack.c.bf16 %v7318_v42, %v7316_v28  ;;  %v8895_v16 = vpack.c.bf16 %v7323_v41, %v7321_v35  ;;  %v7425_v28 = vld [vmem:[%s14584_s21 + $0x518] sm:$0xff] }
0x1090   :  { %v3284_v36 = vmul.f32 %v3272_v19, %v3262_v11  ;;  %v8971_v60 = vpack.c.bf16 %v7399_v44, %v7397_v40  ;;  %v3283_v50 = vmul.f32 %v3268_v21, %v3261_v13  ;;  %v3260_v61 = vmul.f32 %v9664_v59, %v12398_v48  ;;  %v7415_v48 = vld [vmem:[%s14584_s21 + $0x4c8] sm:$0xff]  ;;  %v7422_v44 = vld [vmem:[%s14584_s21 + $0x500] sm:$0xff]  ;;  %v7429_v35 = vld [vmem:[%s14584_s21 + $0x538] sm:$0xff] }
0x1091   :  { %v3281_v45 = vmul.f32 %v3272_v19, %v3259_v25  ;;  %v3280_v34 = vmul.f32 %v3268_v21, %v3258_v24  ;;  %v8983_v14 = vpack.c.bf16 %v7417_v6, %v7415_v48  ;;  %v7414_v19 = vld [vmem:[%s14584_s21 + $0x4c0] sm:$0xff]  ;;  %v7416_v21 = vld [vmem:[%s14584_s21 + $0x4d0] sm:$0xff]  ;;  %v3285_v11 = vmul.f32 %v3276_v2, %v3263_v0  ;;  %v7447_v6 = vld [vmem:[%s14584_s21 + $0x5c8] sm:$0xff] }
0x1092   :  { %v12624_v33 = vadd.f32 %v3294_v10, %v3284_v36  ;;  %v12633_v1 = vadd.f32 %v3290_v26, %v3283_v50  ;;  %v3282_v12 = vmul.f32 %v3276_v2, %v3260_v61  ;;  %v8985_v18 = vpack.c.bf16 %v7416_v21, %v7414_v19  ;;  %v7418_v25 = vld [vmem:[%s14584_s21 + $0x4e0] sm:$0xff]  ;;  %v7432_v50 = vld [vmem:[%s14584_s21 + $0x550] sm:$0xff]  ;;  %v7441_v2 = vld [vmem:[%s14584_s21 + $0x598] sm:$0xff] }
0x1093   :  { %v12592_v39 = vadd.f32 %v3294_v10, %v3281_v45  ;;  %v12594_v51 = vadd.f32 %v3290_v26, %v3280_v34  ;;  %v8987_v24 = vpack.c.bf16 %v7421_v17, %v7419_v43  ;;  %v7420_v10 = vld [vmem:[%s14584_s21 + $0x4f0] sm:$0xff]  ;;  %v7423_v26 = vld [vmem:[%s14584_s21 + $0x508] sm:$0xff]  ;;  %v12698_v42 = vadd.f32 %v3298_v9, %v3285_v11  ;;  %v7446_v0 = vld [vmem:[%s14584_s21 + $0x5c0] sm:$0xff] }
0x1094   :  { %v12678_v59 = vadd.f32 %v3298_v9, %v3282_v12  ;;  %v8989_v13 = vpack.c.bf16 %v7420_v10, %v7418_v25  ;;  %v8991_v40 = vpack.c.bf16 %v7425_v28, %v7423_v26  ;;  %v7424_v45 = vld [vmem:[%s14584_s21 + $0x510] sm:$0xff]  ;;  %v7427_v34 = vld [vmem:[%s14584_s21 + $0x528] sm:$0xff]  ;;  %v9001_v54 = vpack.c.bf16 %v7432_v50, %v7430_v62  ;;  %v7453_v19 = vld [vmem:[%s14584_s21 + $0x5f8] sm:$0xff] }
0x1095   :  { %3474 = vmatprep.mubr.f32.mxu1 %v12592_v39  ;;  %3724 = vmatprep.mubr.f32.mxu0 %v12592_v39  ;;  %v8993_v36 = vpack.c.bf16 %v7424_v45, %v7422_v44  ;;  %v8995_v41 = vpack.c.bf16 %v7429_v35, %v7427_v34  ;;  %v7443_v61 = vld [vmem:[%s14584_s21 + $0x5a8] sm:$0xff]  ;;  %v7444_v48 = vld [vmem:[%s14584_s21 + $0x5b0] sm:$0xff]  ;;  %v7450_v17 = vld [vmem:[%s14584_s21 + $0x5e0] sm:$0xff] }
0x1096   :  { %3475 = vmatmul.mubr.f32.vlgmr.msra.gmra.mrb[34].mxu1 %v12594_v51  ;;  %3725 = vmatmul.mubr.f32.vlgmr.msra.gmra.mrb[30].mxu0 %v12594_v51  ;;  %v7448_v12 = vld [vmem:[%s14584_s21 + $0x5d0] sm:$0xff]  ;;  %v7455_v11 = vld [vmem:[%s14584_s21 + $0x608] sm:$0xff]  ;;  %v7454_v26 = vld [vmem:[%s14584_s21 + $0x600] sm:$0xff] }
0x1097   :  { %8894 = vmatpush1.bf16.msra.mxu1 %v8893_v15  ;;  %8972 = vmatpush1.bf16.msra.mxu0 %v8971_v60  ;;  %v7431_v15 = vld [vmem:[%s14584_s21 + $0x548] sm:$0xff]  ;;  %v7433_v60 = vld [vmem:[%s14584_s21 + $0x558] sm:$0xff]  ;;  %v9017_v21 = vpack.c.bf16 %v7448_v12, %v7446_v0  ;;  %v7456_v28 = vld [vmem:[%s14584_s21 + $0x610] sm:$0xff] }
0x1098   :  { %3480 = vmatprep.mubr.f32.mxu1 %v12624_v33  ;;  %3730 = vmatprep.mubr.f32.mxu0 %v12624_v33  ;;  %v8999_v23 = vpack.c.bf16 %v7433_v60, %v7431_v15  ;;  %v9025_v44 = vpack.c.bf16 %v7456_v28, %v7454_v26  ;;  %v7458_v34 = vld [vmem:[%s14584_s21 + $0x620] sm:$0xff]  ;;  %v7460_v35 = vld [vmem:[%s14584_s21 + $0x630] sm:$0xff] }
0x1099   :  { %8896 = vmatprep.subr.bf16.mxu1 %v8895_v16  ;;  %8974 = vmatprep.subr.bf16.mxu0 %v8973_v20  ;;  %v9003_v16 = vpack.c.bf16 %v7437_v53, %v7435_v52  ;;  %v7434_v20 = vld [vmem:[%s14584_s21 + $0x560] sm:$0xff]  ;;  %v9029_v37 = vpack.c.bf16 %v7460_v35, %v7458_v34  ;;  %v7464_v60 = vld [vmem:[%s14584_s21 + $0x650] sm:$0xff] }
0x109a   :  { %3481 = vmatmul.mubr.f32.gmra.mrb[36].mxu1 %v12633_v1  ;;  %3731 = vmatmul.mubr.f32.gmra.mrb[32].mxu0 %v12633_v1  ;;  %v7462_v15 = vld [vmem:[%s14584_s21 + $0x640] sm:$0xff]  ;;  %v7468_v53 = vld [vmem:[%s14584_s21 + $0x670] sm:$0xff] }
0x109b   :  { %8898 = vmatpush1.bf16.msra.mxu1 %v8897_v31  ;;  %8976 = vmatpush1.bf16.msra.mxu0 %v8975_v58  ;;  %v9005_v31 = vpack.c.bf16 %v7436_v63, %v7434_v20  ;;  %v9007_v58 = vpack.c.bf16 %v7441_v2, %v7439_v29  ;;  %v9033_v62 = vpack.c.bf16 %v7464_v60, %v7462_v15  ;;  %v7466_v52 = vld [vmem:[%s14584_s21 + $0x660] sm:$0xff]  ;;  %v7472_v2 = vld [vmem:[%s14584_s21 + $0x690] sm:$0xff] }
0x109c   :  { %8901 = vmatprep.subr.msk.bf16.mxu1 %vm10304_vm2, %v8899_v3  ;;  %8979 = vmatprep.subr.msk.bf16.mxu0 %vm10304_vm2, %v8977_v4  ;;  %v7438_v3 = vld [vmem:[%s14584_s21 + $0x580] sm:$0xff]  ;;  %v7445_v4 = vld [vmem:[%s14584_s21 + $0x5b8] sm:$0xff]  ;;  %v9037_v20 = vpack.c.bf16 %v7468_v53, %v7466_v52 }
0x109d   :  { %3551 = vmatprep.mubr.f32.mxu1 %v9726_v47  ;;  %3801 = vmatprep.mubr.f32.mxu0 %v9726_v47  ;;  %v9009_v5 = vpack.c.bf16 %v7440_v57, %v7438_v3  ;;  %v9011_v56 = vpack.c.bf16 %v7445_v4, %v7443_v61  ;;  %v7470_v29 = vld [vmem:[%s14584_s21 + $0x680] sm:$0xff]  ;;  %v7476_v4 = vld [vmem:[%s14584_s21 + $0x6b0] sm:$0xff] }
0x109e   :  { %v9041_v3 = vpack.c.bf16 %v7472_v2, %v7470_v29  ;;  %v7474_v61 = vld [vmem:[%s14584_s21 + $0x6a0] sm:$0xff] }
0x109f   :  { %8904 = vmatpush1.bf16.msk.msra.mxu1 %vm10304_vm2, %v8902_v7  ;;  %8982 = vmatpush1.bf16.msk.msra.mxu0 %vm10304_vm2, %v8980_v8  ;;  %v7449_v7 = vld [vmem:[%s14584_s21 + $0x5d8] sm:$0xff]  ;;  %v9013_v8 = vpack.c.bf16 %v7444_v48, %v7442_v27  ;;  %v9045_v27 = vpack.c.bf16 %v7476_v4, %v7474_v61 }
0x10a0   :  { %8984 = vmatprep.subr.bf16.mxu1 %v8983_v14  ;;  %v9015_v9 = vpack.c.bf16 %v7449_v7, %v7447_v6  ;;  %v7451_v14 = vld [vmem:[%s14584_s21 + $0x5e8] sm:$0xff]  ;;  %v7478_v6 = vld [vmem:[%s14584_s21 + $0x6c0] sm:$0xff]  ;;  %v7480_v7 = vld [vmem:[%s14584_s21 + $0x6d0] sm:$0xff] }
0x10a1   :  { %v9019_v43 = vpack.c.bf16 %v7453_v19, %v7451_v14  ;;  %v9049_v0 = vpack.c.bf16 %v7480_v7, %v7478_v6  ;;  %v7482_v14 = vld [vmem:[%s14584_s21 + $0x6e0] sm:$0xff]  ;;  %v7484_v19 = vld [vmem:[%s14584_s21 + $0x6f0] sm:$0xff] }
0x10a2   :  { %7331 = vmatmul.mubr.msk.f32.vlgmr.msra.gmra.mrb[34].mxu1 %vm160_vm3, %v12678_v59  ;;  %7412 = vmatmul.mubr.msk.f32.vlgmr.msra.gmra.mrb[30].mxu0 %vm160_vm3, %v12678_v59 }
0x10a3   :  { %8986 = vmatpush1.bf16.msra.mxu1 %v8985_v18  ;;  %3557 = vmatprep.mubr.f32.mxu1 %v9726_v47  ;;  %v7452_v18 = vld [vmem:[%s14584_s21 + $0x5f0] sm:$0xff] }
0x10a4   :  { %3807 = vmatprep.mubr.f32.mxu0 %v9726_v47  ;;  %8988 = vmatprep.subr.bf16.mxu1 %v8987_v24  ;;  %v7457_v24 = vld [vmem:[%s14584_s21 + $0x618] sm:$0xff]  ;;  %v9021_v25 = vpack.c.bf16 %v7452_v18, %v7450_v17  ;;  %v9053_v17 = vpack.c.bf16 %v7484_v19, %v7482_v14 }
0x10a5   :  { %v9023_v10 = vpack.c.bf16 %v7457_v24, %v7455_v11  ;;  %v7486_v11 = vld [vmem:[%s14584_s21 + $0x700] sm:$0xff]  ;;  %v7488_v24 = vld [vmem:[%s14584_s21 + $0x710] sm:$0xf] }
0x10a6   :  { %7332 = vmatmul.mubr.msk.f32.gmra.mrb[36].mxu1 %vm160_vm3, %v12698_v42  ;;  %7413 = vmatmul.mubr.msk.f32.gmra.mrb[32].mxu0 %vm160_vm3, %v12698_v42  ;;  %v9058_v26 = vpack.c.bf16 %v7488_v24, %v7486_v11 }
0x10a7   :  { %8990 = vmatpush1.bf16.msra.mxu1 %v8989_v13  ;;  %3974 = vmatprep.mubr.f32.mxu1 %v12592_v39  ;;  %v7459_v13 = vld [vmem:[%s14584_s21 + $0x628] sm:$0xff] }
0x10a8   :  { %8992 = vmatprep.subr.bf16.mxu1 %v8991_v40  ;;  %v7461_v40 = vld [vmem:[%s14584_s21 + $0x638] sm:$0xff] }
0x10a9   :  { %v9027_v45 = vpack.c.bf16 %v7461_v40, %v7459_v13  ;;  %v7639_v13 = vld [vmem:[%s14580_s26 + $0x720] sm:$0xff]  ;;  %v7641_v40 = vld [vmem:[%s14580_s26 + $0x730] sm:$0xff] }
0x10aa   :  { %v9141_v34 = vpack.c.bf16 %v7641_v40, %v7639_v13 }
0x10ab   :  { %8994 = vmatpush1.bf16.msra.mxu1 %v8993_v36  ;;  %v7463_v36 = vld [vmem:[%s14584_s21 + $0x648] sm:$0xff] }
0x10ac   :  { %8996 = vmatprep.subr.bf16.mxu1 %v8995_v41  ;;  %v7465_v41 = vld [vmem:[%s14584_s21 + $0x658] sm:$0xff] }
0x10ad   :  { %v9031_v38 = vpack.c.bf16 %v7465_v41, %v7463_v36  ;;  %v7643_v36 = vld [vmem:[%s14580_s26 + $0x740] sm:$0xff]  ;;  %v7645_v41 = vld [vmem:[%s14580_s26 + $0x750] sm:$0xff] }
0x10ae   :  { %v9145_v15 = vpack.c.bf16 %v7645_v41, %v7643_v36 }
0x10af   :  { %8998 = vmatpush1.bf16.msra.mxu1 %v8997_v30  ;;  %v7467_v30 = vld [vmem:[%s14584_s21 + $0x668] sm:$0xff] }
0x10b0   :  { %9000 = vmatprep.subr.bf16.mxu1 %v8999_v23  ;;  %v7469_v23 = vld [vmem:[%s14584_s21 + $0x678] sm:$0xff] }
0x10b1   :  { %v9035_v50 = vpack.c.bf16 %v7469_v23, %v7467_v30  ;;  %v7647_v30 = vld [vmem:[%s14580_s26 + $0x760] sm:$0xff]  ;;  %v7649_v23 = vld [vmem:[%s14580_s26 + $0x770] sm:$0xff] }
0x10b2   :  { %v9149_v52 = vpack.c.bf16 %v7649_v23, %v7647_v30 }
0x10b3   :  { %9002 = vmatpush1.bf16.msra.mxu1 %v9001_v54  ;;  %v7471_v54 = vld [vmem:[%s14584_s21 + $0x688] sm:$0xff] }
0x10b4   :  { %9004 = vmatprep.subr.bf16.mxu1 %v9003_v16  ;;  %v7473_v16 = vld [vmem:[%s14584_s21 + $0x698] sm:$0xff] }
0x10b5   :  { %v9039_v63 = vpack.c.bf16 %v7473_v16, %v7471_v54  ;;  %v7651_v54 = vld [vmem:[%s14580_s26 + $0x780] sm:$0xff]  ;;  %v7653_v16 = vld [vmem:[%s14580_s26 + $0x790] sm:$0xff] }
0x10b6   :  { %v9153_v29 = vpack.c.bf16 %v7653_v16, %v7651_v54 }
0x10b7   :  { %9006 = vmatpush1.bf16.msra.mxu1 %v9005_v31  ;;  %v7475_v31 = vld [vmem:[%s14584_s21 + $0x6a8] sm:$0xff] }
0x10b8   :  { %9008 = vmatprep.subr.bf16.mxu1 %v9007_v58  ;;  %v7477_v58 = vld [vmem:[%s14584_s21 + $0x6b8] sm:$0xff] }
0x10b9   :  { %v9043_v57 = vpack.c.bf16 %v7477_v58, %v7475_v31  ;;  %v7655_v31 = vld [vmem:[%s14580_s26 + $0x7a0] sm:$0xff]  ;;  %v7657_v58 = vld [vmem:[%s14580_s26 + $0x7b0] sm:$0xff] }
0x10ba   :  { %v9157_v61 = vpack.c.bf16 %v7657_v58, %v7655_v31 }
0x10bb   :  { %9010 = vmatpush1.bf16.msra.mxu1 %v9009_v5  ;;  %v7479_v5 = vld [vmem:[%s14584_s21 + $0x6c8] sm:$0xff] }
0x10bc   :  { %9012 = vmatprep.subr.bf16.mxu1 %v9011_v56  ;;  %v7481_v56 = vld [vmem:[%s14584_s21 + $0x6d8] sm:$0xff] }
0x10bd   :  { %v9047_v48 = vpack.c.bf16 %v7481_v56, %v7479_v5  ;;  %v7659_v5 = vld [vmem:[%s14580_s26 + $0x7c0] sm:$0xff]  ;;  %v7661_v56 = vld [vmem:[%s14580_s26 + $0x7d0] sm:$0xff] }
0x10be   :  { %v9161_v6 = vpack.c.bf16 %v7661_v56, %v7659_v5 }
0x10bf   :  { %9014 = vmatpush1.bf16.msra.mxu1 %v9013_v8  ;;  %v7483_v8 = vld [vmem:[%s14584_s21 + $0x6e8] sm:$0xff] }
0x10c0   :  { %9016 = vmatprep.subr.bf16.mxu1 %v9015_v9  ;;  %v7485_v9 = vld [vmem:[%s14584_s21 + $0x6f8] sm:$0xff] }
0x10c1   :  { %v9051_v12 = vpack.c.bf16 %v7485_v9, %v7483_v8  ;;  %v7663_v8 = vld [vmem:[%s14580_s26 + $0x7e0] sm:$0xff]  ;;  %v7665_v9 = vld [vmem:[%s14580_s26 + $0x7f0] sm:$0xff] }
0x10c2   :  { %v9165_v14 = vpack.c.bf16 %v7665_v9, %v7663_v8 }
0x10c3   :  { %9018 = vmatpush1.bf16.msra.mxu1 %v9017_v21  ;;  %v7487_v21 = vld [vmem:[%s14584_s21 + $0x708] sm:$0xff] }
0x10c4   :  { %9020 = vmatprep.subr.bf16.mxu1 %v9019_v43  ;;  %v7489_v43 = vld [vmem:[%s14584_s21 + $0x718] sm:$0xf] }
0x10c5   :  { %v9055_v18 = vpack.c.bf16 %v7489_v43, %v7487_v21  ;;  %v7667_v21 = vld [vmem:[%s14580_s26 + $0x800] sm:$0xff]  ;;  %v7669_v43 = vld [vmem:[%s14580_s26 + $0x810] sm:$0xff] }
0x10c6   :  { %v9169_v11 = vpack.c.bf16 %v7669_v43, %v7667_v21 }
0x10c7   :  { %9022 = vmatpush1.bf16.msra.mxu1 %v9021_v25  ;;  %v7640_v25 = vld [vmem:[%s14580_s26 + $0x728] sm:$0xff] }
0x10c8   :  { %9024 = vmatprep.subr.bf16.mxu1 %v9023_v10  ;;  %v7642_v10 = vld [vmem:[%s14580_s26 + $0x738] sm:$0xff] }
0x10c9   :  { %v9139_v28 = vpack.c.bf16 %v7642_v10, %v7640_v25  ;;  %v7671_v25 = vld [vmem:[%s14580_s26 + $0x820] sm:$0xff]  ;;  %v7673_v10 = vld [vmem:[%s14580_s26 + $0x830] sm:$0xff] }
0x10ca   :  { %v9173_v13 = vpack.c.bf16 %v7673_v10, %v7671_v25 }
0x10cb   :  { %9026 = vmatpush1.bf16.msra.mxu1 %v9025_v44  ;;  %v7644_v44 = vld [vmem:[%s14580_s26 + $0x748] sm:$0xff] }
0x10cc   :  { %9028 = vmatprep.subr.bf16.mxu1 %v9027_v45  ;;  %v7646_v45 = vld [vmem:[%s14580_s26 + $0x758] sm:$0xff] }
0x10cd   :  { %v9143_v35 = vpack.c.bf16 %v7646_v45, %v7644_v44  ;;  %v7675_v44 = vld [vmem:[%s14580_s26 + $0x840] sm:$0xff]  ;;  %v7677_v45 = vld [vmem:[%s14580_s26 + $0x850] sm:$0xff] }
0x10ce   :  { %v9177_v36 = vpack.c.bf16 %v7677_v45, %v7675_v44 }
0x10cf   :  { %9030 = vmatpush1.bf16.msra.mxu1 %v9029_v37  ;;  %v7648_v37 = vld [vmem:[%s14580_s26 + $0x768] sm:$0xff] }
0x10d0   :  { %9032 = vmatprep.subr.bf16.mxu1 %v9031_v38  ;;  %v7650_v38 = vld [vmem:[%s14580_s26 + $0x778] sm:$0xff] }
0x10d1   :  { %v9147_v60 = vpack.c.bf16 %v7650_v38, %v7648_v37  ;;  %v7679_v37 = vld [vmem:[%s14580_s26 + $0x860] sm:$0xff]  ;;  %v7681_v38 = vld [vmem:[%s14580_s26 + $0x870] sm:$0xff] }
0x10d2   :  { %v9181_v30 = vpack.c.bf16 %v7681_v38, %v7679_v37  ;;  %v7409_v37 = vld [vmem:[%s14555_s6 + $0x4] sm:$0x3] }
0x10d3   :  { %9034 = vmatpush1.bf16.msra.mxu1 %v9033_v62  ;;  %v7652_v62 = vld [vmem:[%s14580_s26 + $0x788] sm:$0xff] }
0x10d4   :  { %9036 = vmatprep.subr.bf16.mxu1 %v9035_v50  ;;  %v7654_v50 = vld [vmem:[%s14580_s26 + $0x798] sm:$0xff] }
0x10d5   :  { %v9151_v53 = vpack.c.bf16 %v7654_v50, %v7652_v62  ;;  %v7683_v62 = vld [vmem:[%s14580_s26 + $0x880] sm:$0xff]  ;;  %v7685_v50 = vld [vmem:[%s14580_s26 + $0x890] sm:$0xff] }
0x10d6   :  { %v9185_v54 = vpack.c.bf16 %v7685_v50, %v7683_v62 }
0x10d7   :  { %9038 = vmatpush1.bf16.msra.mxu1 %v9037_v20  ;;  %v7656_v20 = vld [vmem:[%s14580_s26 + $0x7a8] sm:$0xff] }
0x10d8   :  { %9040 = vmatprep.subr.bf16.mxu1 %v9039_v63  ;;  %v7658_v63 = vld [vmem:[%s14580_s26 + $0x7b8] sm:$0xff] }
0x10d9   :  { %v9155_v2 = vpack.c.bf16 %v7658_v63, %v7656_v20  ;;  %v7687_v20 = vld [vmem:[%s14580_s26 + $0x8a0] sm:$0xff]  ;;  %v7689_v63 = vld [vmem:[%s14580_s26 + $0x8b0] sm:$0xff] }
0x10da   :  { %v9189_v31 = vpack.c.bf16 %v7689_v63, %v7687_v20 }
0x10db   :  { %9042 = vmatpush1.bf16.msra.mxu1 %v9041_v3  ;;  %v7660_v3 = vld [vmem:[%s14580_s26 + $0x7c8] sm:$0xff] }
0x10dc   :  { %9044 = vmatprep.subr.bf16.mxu1 %v9043_v57  ;;  %v7662_v57 = vld [vmem:[%s14580_s26 + $0x7d8] sm:$0xff] }
0x10dd   :  { %v9159_v4 = vpack.c.bf16 %v7662_v57, %v7660_v3  ;;  %v7691_v3 = vld [vmem:[%s14580_s26 + $0x8c0] sm:$0xff]  ;;  %v7693_v57 = vld [vmem:[%s14580_s26 + $0x8d0] sm:$0xff] }
0x10de   :  { %v9193_v5 = vpack.c.bf16 %v7693_v57, %v7691_v3 }
0x10df   :  { %9046 = vmatpush1.bf16.msra.mxu1 %v9045_v27  ;;  %v7664_v27 = vld [vmem:[%s14580_s26 + $0x7e8] sm:$0xff] }
0x10e0   :  { %9048 = vmatprep.subr.bf16.mxu1 %v9047_v48  ;;  %v7666_v48 = vld [vmem:[%s14580_s26 + $0x7f8] sm:$0xff] }
0x10e1   :  { %v9163_v7 = vpack.c.bf16 %v7666_v48, %v7664_v27  ;;  %v7695_v27 = vld [vmem:[%s14580_s26 + $0x8e0] sm:$0xff]  ;;  %v7697_v48 = vld [vmem:[%s14580_s26 + $0x8f0] sm:$0xff] }
0x10e2   :  { %3975 = vmatmul.mubr.f32.vlgmr.msra.gmra.mrb[38].mxu1 %v12594_v51  ;;  %v9197_v8 = vpack.c.bf16 %v7697_v48, %v7695_v27 }
0x10e3   :  { %3980 = vmatprep.mubr.f32.mxu1 %v12624_v33  ;;  %9050 = vmatpush1.bf16.msra.mxu1 %v9049_v0  ;;  %v7668_v0 = vld [vmem:[%s14580_s26 + $0x808] sm:$0xff] }
0x10e4   :  { %9052 = vmatprep.subr.bf16.mxu1 %v9051_v12  ;;  %v7670_v12 = vld [vmem:[%s14580_s26 + $0x818] sm:$0xff] }
0x10e5   :  { %v9167_v19 = vpack.c.bf16 %v7670_v12, %v7668_v0  ;;  %v7699_v0 = vld [vmem:[%s14580_s26 + $0x900] sm:$0xff]  ;;  %v7701_v12 = vld [vmem:[%s14580_s26 + $0x910] sm:$0xff] }
0x10e6   :  { %3981 = vmatmul.mubr.f32.gmra.mrb[40].mxu1 %v12633_v1  ;;  %v9201_v21 = vpack.c.bf16 %v7701_v12, %v7699_v0 }
0x10e7   :  { %9054 = vmatpush1.bf16.msra.mxu1 %v9053_v17  ;;  %4051 = vmatprep.mubr.f32.mxu1 %v9726_v47  ;;  %v7672_v17 = vld [vmem:[%s14580_s26 + $0x828] sm:$0xff] }
0x10e8   :  { %9057 = vmatprep.subr.msk.bf16.mxu1 %vm10304_vm2, %v9055_v18  ;;  %v7674_v18 = vld [vmem:[%s14580_s26 + $0x838] sm:$0xff] }
0x10e9   :  { %v9171_v24 = vpack.c.bf16 %v7674_v18, %v7672_v17  ;;  %v7703_v17 = vld [vmem:[%s14580_s26 + $0x920] sm:$0xff]  ;;  %v7705_v18 = vld [vmem:[%s14580_s26 + $0x930] sm:$0xff] }
0x10ea   :  { %v9205_v25 = vpack.c.bf16 %v7705_v18, %v7703_v17 }
0x10eb   :  { %9060 = vmatpush1.bf16.msk.msra.mxu1 %vm10304_vm2, %v9058_v26  ;;  %v7676_v26 = vld [vmem:[%s14580_s26 + $0x848] sm:$0xff] }
0x10ec   :  { %9140 = vmatprep.subr.bf16.mxu1 %v9139_v28  ;;  %v7678_v28 = vld [vmem:[%s14580_s26 + $0x858] sm:$0xff] }
0x10ed   :  { %v9175_v40 = vpack.c.bf16 %v7678_v28, %v7676_v26  ;;  %v7707_v26 = vld [vmem:[%s14580_s26 + $0x940] sm:$0xff]  ;;  %v7709_v28 = vld [vmem:[%s14580_s26 + $0x950] sm:$0xff] }
0x10ee   :  { %7493 = vmatmul.mubr.msk.f32.vlgmr.msra.gmra.mrb[38].mxu1 %vm160_vm3, %v12678_v59  ;;  %v9209_v44 = vpack.c.bf16 %v7709_v28, %v7707_v26 }
0x10ef   :  { %9142 = vmatpush1.bf16.msra.mxu1 %v9141_v34  ;;  %4057 = vmatprep.mubr.f32.mxu1 %v9726_v47  ;;  %v7680_v34 = vld [vmem:[%s14580_s26 + $0x868] sm:$0xff] }
0x10f0   :  { %9144 = vmatprep.subr.bf16.mxu1 %v9143_v35  ;;  %v7682_v35 = vld [vmem:[%s14580_s26 + $0x878] sm:$0xff] }
0x10f1   :  { %v9179_v41 = vpack.c.bf16 %v7682_v35, %v7680_v34  ;;  %v7711_v34 = vld [vmem:[%s14580_s26 + $0x960] sm:$0xff]  ;;  %v7713_v35 = vld [vmem:[%s14580_s26 + $0x970] sm:$0xf] }
0x10f2   :  { %7494 = vmatmul.mubr.msk.f32.gmra.mrb[40].mxu1 %vm160_vm3, %v12698_v42 }
0x10f3   :  { %9146 = vmatpush1.bf16.msra.mxu1 %v9145_v15  ;;  %4866 = vmatprep.mubr.f32.mxu1 %v12592_v39  ;;  %v7684_v15 = vld [vmem:[%s14580_s26 + $0x888] sm:$0xff] }
0x10f4   :  { %9148 = vmatprep.subr.bf16.mxu1 %v9147_v60  ;;  %v7686_v60 = vld [vmem:[%s14580_s26 + $0x898] sm:$0xff] }
0x10f5   :  { %v9183_v23 = vpack.c.bf16 %v7686_v60, %v7684_v15  ;;  %v3651_v60 = vrot.slane %v7409_v37, %v10600_v46 }
0x10f7   :  { %9150 = vmatpush1.bf16.msra.mxu1 %v9149_v52  ;;  %v7688_v52 = vld [vmem:[%s14580_s26 + $0x8a8] sm:$0xff] }
0x10f8   :  { %9152 = vmatprep.subr.bf16.mxu1 %v9151_v53  ;;  %v7690_v53 = vld [vmem:[%s14580_s26 + $0x8b8] sm:$0xff] }
0x10f9   :  { %v9187_v16 = vpack.c.bf16 %v7690_v53, %v7688_v52 }
0x10fb   :  { %9154 = vmatpush1.bf16.msra.mxu1 %v9153_v29  ;;  %v7692_v29 = vld [vmem:[%s14580_s26 + $0x8c8] sm:$0xff] }
0x10fc   :  { %9156 = vmatprep.subr.bf16.mxu1 %v9155_v2  ;;  %v7694_v2 = vld [vmem:[%s14580_s26 + $0x8d8] sm:$0xff] }
0x10fd   :  { %v9191_v58 = vpack.c.bf16 %v7694_v2, %v7692_v29 }
0x10ff   :  { %9158 = vmatpush1.bf16.msra.mxu1 %v9157_v61  ;;  %v7696_v61 = vld [vmem:[%s14580_s26 + $0x8e8] sm:$0xff] }
0x1100   :  { %9160 = vmatprep.subr.bf16.mxu1 %v9159_v4  ;;  %v7698_v4 = vld [vmem:[%s14580_s26 + $0x8f8] sm:$0xff] }
0x1101   :  { %v9195_v56 = vpack.c.bf16 %v7698_v4, %v7696_v61 }
0x1103   :  { %9162 = vmatpush1.bf16.msra.mxu1 %v9161_v6  ;;  %v7700_v6 = vld [vmem:[%s14580_s26 + $0x908] sm:$0xff] }
0x1104   :  { %9164 = vmatprep.subr.bf16.mxu1 %v9163_v7  ;;  %v7702_v7 = vld [vmem:[%s14580_s26 + $0x918] sm:$0xff] }
0x1105   :  { %v9199_v9 = vpack.c.bf16 %v7702_v7, %v7700_v6 }
0x1107   :  { %9166 = vmatpush1.bf16.msra.mxu1 %v9165_v14  ;;  %v7704_v14 = vld [vmem:[%s14580_s26 + $0x928] sm:$0xff] }
0x1108   :  { %9168 = vmatprep.subr.bf16.mxu1 %v9167_v19  ;;  %v7706_v19 = vld [vmem:[%s14580_s26 + $0x938] sm:$0xff] }
0x1109   :  { %v9203_v43 = vpack.c.bf16 %v7706_v19, %v7704_v14 }
0x110b   :  { %9170 = vmatpush1.bf16.msra.mxu1 %v9169_v11  ;;  %v7708_v11 = vld [vmem:[%s14580_s26 + $0x948] sm:$0xff] }
0x110c   :  { %9172 = vmatprep.subr.bf16.mxu1 %v9171_v24  ;;  %v7710_v24 = vld [vmem:[%s14580_s26 + $0x958] sm:$0xff] }
0x110d   :  { %v9207_v10 = vpack.c.bf16 %v7710_v24, %v7708_v11 }
0x110f   :  { %9174 = vmatpush1.bf16.msra.mxu1 %v9173_v13  ;;  %v7712_v13 = vld [vmem:[%s14580_s26 + $0x968] sm:$0xff] }
0x1110   :  { %9176 = vmatprep.subr.bf16.mxu1 %v9175_v40  ;;  %v7714_v40 = vld [vmem:[%s14580_s26 + $0x978] sm:$0xf] }
0x1111   :  { %v9211_v45 = vpack.c.bf16 %v7714_v40, %v7712_v13 }
0x1113   :  { %9178 = vmatpush1.bf16.msra.mxu1 %v9177_v36  ;;  %v9214_v36 = vpack.c.bf16 %v7713_v35, %v7711_v34 }
0x1114   :  { %9180 = vmatprep.subr.bf16.mxu1 %v9179_v41  ;;  %v7328_v41 = vld [vmem:[%s14554_s5 + $0x4] sm:$0x3] }
0x1115   :  { %v3391_v38 = vrot.slane %v7328_v41, %v10606_v49  ;;  %v3395_v15 = vrot.slane %v7328_v41, %v10600_v46 }
0x1117   :  { %9182 = vmatpush1.bf16.msra.mxu1 %v9181_v30  ;;  %v3647_v30 = vrot.slane %v7409_v37, %v10606_v49 }
0x1118   :  { %9184 = vmatprep.subr.bf16.mxu1 %v9183_v23 }
0x111b   :  { %9186 = vmatpush1.bf16.msra.mxu1 %v9185_v54 }
0x111c   :  { %9188 = vmatprep.subr.bf16.mxu1 %v9187_v16 }
0x111f   :  { %9190 = vmatpush1.bf16.msra.mxu1 %v9189_v31 }
0x1120   :  { %9192 = vmatprep.subr.bf16.mxu1 %v9191_v58 }
0x1123   :  { %9194 = vmatpush1.bf16.msra.mxu1 %v9193_v5 }
0x1124   :  { %9196 = vmatprep.subr.bf16.mxu1 %v9195_v56  ;;  %v7490_v56 = vld [vmem:[%s14556_s7 + $0x4] sm:$0x3] }
0x1125   :  { %v3901_v27 = vrot.slane %v7490_v56, %v10600_v46  ;;  %v3897_v48 = vrot.slane %v7490_v56, %v10606_v49  ;;  %v7565_v56 = vld [vmem:[%s14579_s23 + $0x758] sm:$0xff] }
0x1127   :  { %9198 = vmatpush1.bf16.msra.mxu1 %v9197_v8 }
0x1128   :  { %9200 = vmatprep.subr.bf16.mxu1 %v9199_v9 }
0x112b   :  { %9202 = vmatpush1.bf16.msra.mxu1 %v9201_v21  ;;  %v7715_v21 = vld [vmem:[%s14555_s6 + $0x6] sm:$0x3] }
0x112c   :  { %9204 = vmatprep.subr.bf16.mxu1 %v9203_v43  ;;  %v4793_v43 = vrot.slane %v7715_v21, %v10600_v46  ;;  %v4789_v17 = vrot.slane %v7715_v21, %v10606_v49  ;;  %v7566_v21 = vld [vmem:[%s14579_s23 + $0x760] sm:$0xff] }
0x112e   :  { %4867 = vmatmul.mubr.f32.vlgmr.msra.gmra.mrb[42].mxu1 %v12594_v51 }
0x112f   :  { %4872 = vmatprep.mubr.f32.mxu1 %v12624_v33  ;;  %9206 = vmatpush1.bf16.msra.mxu1 %v9205_v25 }
0x1130   :  { %9208 = vmatprep.subr.bf16.mxu1 %v9207_v10 }
0x1132   :  { %4873 = vmatmul.mubr.f32.gmra.mrb[44].mxu1 %v12633_v1 }
0x1133   :  { %9210 = vmatpush1.bf16.msra.mxu1 %v9209_v44  ;;  %4943 = vmatprep.mubr.f32.mxu1 %v9726_v47 }
0x1134   :  { %9213 = vmatprep.subr.msk.bf16.mxu1 %vm10304_vm2, %v9211_v45 }
0x1137   :  { %9216 = vmatpush1.bf16.msk.msra.mxu1 %vm10304_vm2, %v9214_v36 }
0x113a   :  { %7718 = vmatmul.mubr.msk.f32.vlgmr.msra.gmra.mrb[42].mxu1 %vm160_vm3, %v12678_v59 }
0x113b   :  { %4949 = vmatprep.mubr.f32.mxu1 %v9726_v47 }
0x113e   :  { %7719 = vmatmul.mubr.msk.f32.gmra.mrb[44].mxu1 %vm160_vm3, %v12698_v42 }
0x1175   :  { %v3553_v23 = vpop.f32.mrb[34].mxu1  ;;  %v3803_v62 = vpop.f32.mrb[30].mxu0 }
0x1176   :  { %v3555_v50 = vpop.f32.mrb[35].mxu1  ;;  %v3805_v52 = vpop.f32.mrb[31].mxu0  ;;  %v9556_v53 = vadd.f32 %v3553_v23, %v3391_v38  ;;  %v9560_v20 = vadd.f32 %v3803_v62, %v3647_v30 }
0x1177   :  { %v9557_v54 = vadd.f32 %v3555_v50, %v3395_v15  ;;  %v9561_v16 = vadd.f32 %v3805_v52, %v3651_v60 }
0x1178   :  { %v4064_v61 = vmul.f32 0.08164966, %v9556_v53 }
0x1179   :  { %v4065_v63 = vmul.f32 0.08164966, %v9557_v54  ;;  %v3559_v29 = vpop.f32.mrb[36].mxu1  ;;  %v3809_v2 = vpop.f32.mrb[32].mxu0  ;;  %7495 = vmatprep.subr.msk.mxu0 %vm828_vm4, %v9561_v16 }
0x117a   :  { %v9558_v31 = vadd.f32 %v3559_v29, %v3391_v38  ;;  %v9562_v58 = vadd.f32 %v3809_v2, %v3647_v30  ;;  %v3561_v3 = vpop.f32.mrb[37].mxu1  ;;  %v3811_v57 = vpop.f32.mrb[33].mxu0  ;;  %4075 = vmatpush1.xpose.msra.mxu0 %v9560_v20 }
0x117b   :  { %v9559_v4 = vadd.f32 %v3561_v3, %v3395_v15  ;;  %v9563_v5 = vadd.f32 %v3811_v57, %v3651_v60  ;;  %7496 = vmatprep.mubr.msk.f32.mxu0 %vm828_vm4, %v4065_v63 }
0x117c   :  { %v4066_v23 = vmul.f32 0.08164966, %v9558_v31  ;;  %v7559_v31 = vld [vmem:[%s14579_s23 + $0x728] sm:$0xff] }
0x117d   :  { %4139 = vmatmul.mubr.f32.vlgmr.msra.gmra.mrb[34].mxu0 %v4064_v61  ;;  %v4067_v30 = vmul.f32 0.08164966, %v9559_v4  ;;  %v7558_v61 = vld [vmem:[%s14579_s23 + $0x720] sm:$0xff]  ;;  %v7560_v4 = vld [vmem:[%s14579_s23 + $0x730] sm:$0xff] }
0x117e   :  { %4222 = vmatprep.mubr.f32.mxu0 %v9726_v47 }
0x11c1   :  { %v4053_v6 = vpop.f32.mrb[38].mxu1 }
0x11c2   :  { %v4055_v7 = vpop.f32.mrb[39].mxu1  ;;  %v9564_v9 = vadd.f32 %v4053_v6, %v3897_v48 }
0x11c3   :  { %v9565_v8 = vadd.f32 %v4055_v7, %v3901_v27 }
0x11c5   :  { %v4059_v0 = vpop.f32.mrb[40].mxu1  ;;  %4158 = vmatprep.subr.mxu0 %v9565_v8  ;;  %v7562_v8 = vld [vmem:[%s14579_s23 + $0x740] sm:$0xff] }
0x11c6   :  { %v9566_v12 = vadd.f32 %v4059_v0, %v3897_v48  ;;  %v4061_v14 = vpop.f32.mrb[41].mxu1  ;;  %4159 = vmatpush1.msra.mxu0 %v9564_v9  ;;  %v9063_v48 = vpack.c.bf16 %v7560_v4, %v7558_v61  ;;  %v7564_v9 = vld [vmem:[%s14579_s23 + $0x750] sm:$0xff]  ;;  %v7567_v0 = vld [vmem:[%s14579_s23 + $0x768] sm:$0xff]  ;;  %v7590_v4 = vld [vmem:[%s14579_s23 + $0x820] sm:$0xff] }
0x11c7   :  { %v9567_v19 = vadd.f32 %v4061_v14, %v3901_v27  ;;  %7498 = vmatprep.subr.msk.mxu0 %vm828_vm4, %v9563_v5  ;;  %v7563_v5 = vld [vmem:[%s14579_s23 + $0x748] sm:$0xff]  ;;  %v9067_v14 = vpack.c.bf16 %v7564_v9, %v7562_v8  ;;  %v7596_v8 = vld [vmem:[%s14579_s23 + $0x850] sm:$0xff] }
0x11c8   :  { %v9065_v7 = vpack.c.bf16 %v7565_v56, %v7563_v5  ;;  %v7592_v5 = vld [vmem:[%s14579_s23 + $0x830] sm:$0xff]  ;;  %v7595_v56 = vld [vmem:[%s14579_s23 + $0x848] sm:$0xff] }
0x11c9   :  { %v7599_v9 = vld [vmem:[%s14579_s23 + $0x868] sm:$0xff] }
0x120d   :  { %v4945_v18 = vpop.f32.mrb[42].mxu1 }
0x120e   :  { %v4947_v11 = vpop.f32.mrb[43].mxu1  ;;  %v9572_v25 = vadd.f32 %v4945_v18, %v4789_v17  ;;  %v7573_v18 = vld [vmem:[%s14579_s23 + $0x798] sm:$0xff] }
0x120f   :  { %v9573_v24 = vadd.f32 %v4947_v11, %v4793_v43 }
0x1211   :  { %v4951_v10 = vpop.f32.mrb[44].mxu1  ;;  %7801 = vmatprep.subr.msk.mxu1 %vm828_vm4, %v9573_v24 }
0x1212   :  { %v13183_v26 = vadd.f32 %v4951_v10, %v4789_v17  ;;  %v4953_v28 = vpop.f32.mrb[45].mxu1  ;;  %5217 = vmatpush1.xpose.msra.mxu1 %v9572_v25  ;;  %v7571_v17 = vld [vmem:[%s14579_s23 + $0x788] sm:$0xff]  ;;  %v7570_v25 = vld [vmem:[%s14579_s23 + $0x780] sm:$0xff]  ;;  %v7572_v10 = vld [vmem:[%s14579_s23 + $0x790] sm:$0xff] }
0x1213   :  { %v13185_v13 = vadd.f32 %v4953_v28, %v4793_v43  ;;  %v7568_v43 = vld [vmem:[%s14579_s23 + $0x770] sm:$0xff]  ;;  %v9073_v24 = vpack.c.bf16 %v7573_v18, %v7571_v17  ;;  %v7575_v28 = vld [vmem:[%s14579_s23 + $0x7a8] sm:$0xff]  ;;  %v7605_v17 = vld [vmem:[%s14579_s23 + $0x898] sm:$0xff] }
0x1214   :  { %v9071_v11 = vpack.c.bf16 %v7568_v43, %v7566_v21  ;;  %v7600_v21 = vld [vmem:[%s14579_s23 + $0x870] sm:$0xff]  ;;  %v7603_v43 = vld [vmem:[%s14579_s23 + $0x888] sm:$0xff] }
0x1250   :  { %v4140_v40 = vpop.f32.mrb[34].mxu0 }
0x1251   :  { %v4142_v44 = vpop.f32.mrb[35].mxu0  ;;  %v4144_v45 = vsel %vm905_vm5, %v4140_v40, -inf }
0x1252   :  { %4145 = vmax.xlane.f32.xlu0 %v4144_v45  ;;  %v9075_v44 = vpack.c.bf16 %v7572_v10, %v7570_v25  ;;  %v7604_v25 = vld [vmem:[%s14579_s23 + $0x890] sm:$0xff]  ;;  %v7607_v10 = vld [vmem:[%s14579_s23 + $0x8a8] sm:$0xff] }
0x12df   :  { %v4146_v34 = vpop.xlane.xlu0 %4145 }
0x12e0   :  { %v4147_v35 = vsub.f32 %v4140_v40, %v4146_v34  ;;  %v7577_v40 = vld [vmem:[%s14579_s23 + $0x7b8] sm:$0xff]  ;;  %v7574_v34 = vld [vmem:[%s14579_s23 + $0x7a0] sm:$0xff] }
0x12e1   :  { %v9077_v45 = vpack.c.bf16 %v7577_v40, %v7575_v28  ;;  %v7609_v28 = vld [vmem:[%s14579_s23 + $0x8b8] sm:$0xff] }
0x12e2   :  { %v4148_v36 = vmul.f32 1.442695, %v4147_v35  ;;  %v7576_v35 = vld [vmem:[%s14579_s23 + $0x7b0] sm:$0xff] }
0x12e4   :  { %9665 = vpow2.f32 %v4148_v36  ;;  %v7579_v36 = vld [vmem:[%s14579_s23 + $0x7c8] sm:$0xff] }
0x12ee   :  { %v9666_v41 = vpop.eup %9665 }
0x12ef   :  { %v4150_v37 = vsel %vm905_vm5, %v9666_v41, 0.0 }
0x12f0   :  { %4151 = vadd.xlane.f32.xlu1 %v4150_v37  ;;  %v9079_v37 = vpack.c.bf16 %v7576_v35, %v7574_v34  ;;  %v7608_v34 = vld [vmem:[%s14579_s23 + $0x8b0] sm:$0xff]  ;;  %v7611_v35 = vld [vmem:[%s14579_s23 + $0x8c8] sm:$0xff] }
0x137d   :  { %v4152_v38 = vpop.xlane.xlu1 %4151 }
0x137e   :  { %9667 = vrcp.f32 %v4152_v38 }
0x1388   :  { %v9668_v15 = vpop.eup %9667 }
0x1389   :  { %v4154_v60 = vmul.f32 %v9668_v15, %v9666_v41  ;;  %v7581_v41 = vld [vmem:[%s14579_s23 + $0x7d8] sm:$0xff]  ;;  %v7578_v15 = vld [vmem:[%s14579_s23 + $0x7c0] sm:$0xff] }
0x138a   :  { %v9081_v38 = vpack.c.bf16 %v7581_v41, %v7579_v36  ;;  %v7613_v36 = vld [vmem:[%s14579_s23 + $0x8d8] sm:$0xff] }
0x138b   :  { %7497 = vmatmul.mubr.msk.f32.vlgmr.msra.gmra.mrb[36].mxu0 %vm905_vm5, %v4154_v60  ;;  %v7580_v60 = vld [vmem:[%s14579_s23 + $0x7d0] sm:$0xff] }
0x138c   :  { %4238 = vmatpush1.xpose.msra.mxu0 %v9562_v58  ;;  %7499 = vmatprep.mubr.msk.f32.mxu0 %vm828_vm4, %v4067_v30  ;;  %v7561_v58 = vld [vmem:[%s14579_s23 + $0x738] sm:$0xff]  ;;  %v7583_v30 = vld [vmem:[%s14579_s23 + $0x7e8] sm:$0xff] }
0x138d   :  { %4321 = vmatprep.subr.mxu0 %v9567_v19  ;;  %v9061_v3 = vpack.c.bf16 %v7561_v58, %v7559_v31  ;;  %v7588_v31 = vld [vmem:[%s14579_s23 + $0x810] sm:$0xff]  ;;  %v7591_v58 = vld [vmem:[%s14579_s23 + $0x828] sm:$0xff] }
0x138f   :  { %4302 = vmatmul.mubr.f32.vlgmr.msra.gmra.mrb[38].mxu0 %v4066_v23  ;;  %v7585_v23 = vld [vmem:[%s14579_s23 + $0x7f8] sm:$0xff] }
0x1390   :  { %4322 = vmatpush1.msra.mxu0 %v9566_v12  ;;  %4385 = vmatprep.mubr.f32.mxu0 %v9726_v47  ;;  %v7569_v12 = vld [vmem:[%s14579_s23 + $0x778] sm:$0xff] }
0x1391   :  { %9062 = vmatprep.subr.bf16.mxu0 %v9061_v3  ;;  %v9069_v19 = vpack.c.bf16 %v7569_v12, %v7567_v0  ;;  %v7593_v3 = vld [vmem:[%s14579_s23 + $0x838] sm:$0xff] }
0x1392   :  { %v9093_v61 = vpack.c.bf16 %v7593_v3, %v7591_v58  ;;  %v7601_v0 = vld [vmem:[%s14579_s23 + $0x878] sm:$0xff] }
0x1393   :  { %v7625_v58 = vld [vmem:[%s14579_s23 + $0x938] sm:$0xff] }
0x145e   :  { %v13192_v62 = vpop.f32.mrb[36].mxu0 }
0x145f   :  { %v4226_v50 = vpop.f32.mrb[37].mxu0 }
0x1460   :  { %4230 = vst.msk [vmem:[#allocation2 + $0x8] sm:$0xff] %vm828_vm4, %v4226_v50  ;;  %v9083_v50 = vpack.c.bf16 %v7580_v60, %v7578_v15  ;;  %v7612_v15 = vld [vmem:[%s14579_s23 + $0x8d0] sm:$0xff]  ;;  %v7615_v60 = vld [vmem:[%s14579_s23 + $0x8e8] sm:$0xff] }
0x1462   :  { %v4303_v52 = vpop.f32.mrb[38].mxu0 }
0x1463   :  { %v4305_v53 = vpop.f32.mrb[39].mxu0  ;;  %v4307_v54 = vsel %vm905_vm5, %v4303_v52, -inf }
0x1464   :  { %4308 = vmax.xlane.f32.xlu0 %v4307_v54  ;;  %v7582_v53 = vld [vmem:[%s14579_s23 + $0x7e0] sm:$0xff]  ;;  %v7584_v54 = vld [vmem:[%s14579_s23 + $0x7f0] sm:$0xff] }
0x14f1   :  { %v4309_v16 = vpop.xlane.xlu0 %4308 }
0x14f2   :  { %v4310_v20 = vsub.f32 %v4303_v52, %v4309_v16  ;;  %v9085_v52 = vpack.c.bf16 %v7585_v23, %v7583_v30  ;;  %v7587_v16 = vld [vmem:[%s14579_s23 + $0x808] sm:$0xff]  ;;  %v7617_v30 = vld [vmem:[%s14579_s23 + $0x8f8] sm:$0xff] }
0x14f4   :  { %v4311_v63 = vmul.f32 1.442695, %v4310_v20  ;;  %v7589_v20 = vld [vmem:[%s14579_s23 + $0x818] sm:$0xff] }
0x14f6   :  { %9669 = vpow2.f32 %v4311_v63  ;;  %v9087_v63 = vpack.c.bf16 %v7584_v54, %v7582_v53  ;;  %v7616_v53 = vld [vmem:[%s14579_s23 + $0x8f0] sm:$0xff]  ;;  %v7619_v54 = vld [vmem:[%s14579_s23 + $0x908] sm:$0xff] }
0x1500   :  { %v9670_v29 = vpop.eup %9669 }
0x1501   :  { %v4313_v2 = vsel %vm905_vm5, %v9670_v29, 0.0 }
0x1502   :  { %4314 = vadd.xlane.f32.xlu1 %v4313_v2  ;;  %v7586_v2 = vld [vmem:[%s14579_s23 + $0x800] sm:$0xff] }
0x158f   :  { %v4315_v57 = vpop.xlane.xlu1 %4314 }
0x1590   :  { %9671 = vrcp.f32 %v4315_v57  ;;  %v9091_v57 = vpack.c.bf16 %v7588_v31, %v7586_v2  ;;  %v7620_v2 = vld [vmem:[%s14579_s23 + $0x910] sm:$0xff]  ;;  %v7623_v31 = vld [vmem:[%s14579_s23 + $0x928] sm:$0xff] }
0x159a   :  { %v9672_v27 = vpop.eup %9671 }
0x159b   :  { %v4317_v6 = vmul.f32 %v9672_v27, %v9670_v29  ;;  %v9089_v29 = vpack.c.bf16 %v7589_v20, %v7587_v16  ;;  %v7597_v27 = vld [vmem:[%s14579_s23 + $0x858] sm:$0xff] }
0x159c   :  { %v7621_v16 = vld [vmem:[%s14579_s23 + $0x918] sm:$0xff] }
0x159d   :  { %7500 = vmatmul.mubr.msk.f32.vlgmr.msra.gmra.mrb[40].mxu0 %vm905_vm5, %v4317_v6  ;;  %v9097_v6 = vpack.c.bf16 %v7597_v27, %v7595_v56  ;;  %v7629_v56 = vld [vmem:[%s14579_s23 + $0x958] sm:$0xff] }
0x159e   :  { %9064 = vmatpush1.bf16.msra.mxu0 %v9063_v48  ;;  %4616 = vmatprep.mubr.f32.mxu0 %v12592_v39  ;;  %v9095_v48 = vpack.c.bf16 %v7592_v5, %v7590_v4  ;;  %v7624_v4 = vld [vmem:[%s14579_s23 + $0x930] sm:$0xff]  ;;  %v7627_v5 = vld [vmem:[%s14579_s23 + $0x948] sm:$0xff] }
0x159f   :  { %9066 = vmatprep.subr.bf16.mxu0 %v9065_v7  ;;  %v7594_v7 = vld [vmem:[%s14579_s23 + $0x840] sm:$0xff] }
0x15a0   :  { %v9099_v12 = vpack.c.bf16 %v7596_v8, %v7594_v7  ;;  %v7628_v7 = vld [vmem:[%s14579_s23 + $0x950] sm:$0xff]  ;;  %v7631_v8 = vld [vmem:[%s14579_s23 + $0x968] sm:$0xff] }
0x15a2   :  { %9068 = vmatpush1.bf16.msra.mxu0 %v9067_v14  ;;  %v9101_v14 = vpack.c.bf16 %v7601_v0, %v7599_v9  ;;  %v7633_v9 = vld [vmem:[%s14579_s23 + $0x978] sm:$0xf] }
0x15a3   :  { %9070 = vmatprep.subr.bf16.mxu0 %v9069_v19  ;;  %v7598_v19 = vld [vmem:[%s14579_s23 + $0x860] sm:$0xff] }
0x15a4   :  { %v9103_v18 = vpack.c.bf16 %v7600_v21, %v7598_v19  ;;  %v7632_v19 = vld [vmem:[%s14579_s23 + $0x970] sm:$0xf]  ;;  %v7721_v21 = vld [vmem:[%s14584_s21 + $0x728] sm:$0xff] }
0x15a6   :  { %9072 = vmatpush1.bf16.msra.mxu0 %v9071_v11  ;;  %v9105_v11 = vpack.c.bf16 %v7605_v17, %v7603_v43  ;;  %v7723_v43 = vld [vmem:[%s14584_s21 + $0x738] sm:$0xff] }
0x15a7   :  { %9074 = vmatprep.subr.bf16.mxu0 %v9073_v24  ;;  %v7602_v24 = vld [vmem:[%s14579_s23 + $0x880] sm:$0xff] }
0x15a8   :  { %v9107_v40 = vpack.c.bf16 %v7604_v25, %v7602_v24  ;;  %v7722_v24 = vld [vmem:[%s14584_s21 + $0x730] sm:$0xff]  ;;  %v7725_v25 = vld [vmem:[%s14584_s21 + $0x748] sm:$0xff] }
0x15aa   :  { %9076 = vmatpush1.bf16.msra.mxu0 %v9075_v44  ;;  %v9109_v44 = vpack.c.bf16 %v7609_v28, %v7607_v10  ;;  %v7727_v10 = vld [vmem:[%s14584_s21 + $0x758] sm:$0xff] }
0x15ab   :  { %9078 = vmatprep.subr.bf16.mxu0 %v9077_v45  ;;  %v7606_v45 = vld [vmem:[%s14579_s23 + $0x8a0] sm:$0xff] }
0x15ac   :  { %v9111_v41 = vpack.c.bf16 %v7608_v34, %v7606_v45  ;;  %v7726_v45 = vld [vmem:[%s14584_s21 + $0x750] sm:$0xff]  ;;  %v7729_v34 = vld [vmem:[%s14584_s21 + $0x768] sm:$0xff] }
0x15ae   :  { %9080 = vmatpush1.bf16.msra.mxu0 %v9079_v37  ;;  %v9113_v37 = vpack.c.bf16 %v7613_v36, %v7611_v35  ;;  %v7731_v35 = vld [vmem:[%s14584_s21 + $0x778] sm:$0xff] }
0x15af   :  { %9082 = vmatprep.subr.bf16.mxu0 %v9081_v38  ;;  %v7610_v38 = vld [vmem:[%s14579_s23 + $0x8c0] sm:$0xff] }
0x15b0   :  { %v9115_v23 = vpack.c.bf16 %v7612_v15, %v7610_v38  ;;  %v7730_v38 = vld [vmem:[%s14584_s21 + $0x770] sm:$0xff]  ;;  %v7733_v15 = vld [vmem:[%s14584_s21 + $0x788] sm:$0xff] }
0x15b2   :  { %9084 = vmatpush1.bf16.msra.mxu0 %v9083_v50  ;;  %v9117_v50 = vpack.c.bf16 %v7617_v30, %v7615_v60  ;;  %v7735_v60 = vld [vmem:[%s14584_s21 + $0x798] sm:$0xff] }
0x15b3   :  { %9086 = vmatprep.subr.bf16.mxu0 %v9085_v52  ;;  %v7614_v52 = vld [vmem:[%s14579_s23 + $0x8e0] sm:$0xff] }
0x15b4   :  { %v9119_v20 = vpack.c.bf16 %v7616_v53, %v7614_v52  ;;  %v7734_v52 = vld [vmem:[%s14584_s21 + $0x790] sm:$0xff]  ;;  %v7737_v53 = vld [vmem:[%s14584_s21 + $0x7a8] sm:$0xff] }
0x15b6   :  { %9088 = vmatpush1.bf16.msra.mxu0 %v9087_v63  ;;  %v9121_v63 = vpack.c.bf16 %v7621_v16, %v7619_v54  ;;  %v7739_v54 = vld [vmem:[%s14584_s21 + $0x7b8] sm:$0xff] }
0x15b7   :  { %9090 = vmatprep.subr.bf16.mxu0 %v9089_v29  ;;  %v7618_v29 = vld [vmem:[%s14579_s23 + $0x900] sm:$0xff] }
0x15b8   :  { %v9123_v3 = vpack.c.bf16 %v7620_v2, %v7618_v29  ;;  %v7738_v29 = vld [vmem:[%s14584_s21 + $0x7b0] sm:$0xff]  ;;  %v7741_v2 = vld [vmem:[%s14584_s21 + $0x7c8] sm:$0xff] }
0x15ba   :  { %9092 = vmatpush1.bf16.msra.mxu0 %v9091_v57  ;;  %v9125_v57 = vpack.c.bf16 %v7625_v58, %v7623_v31  ;;  %v7743_v31 = vld [vmem:[%s14584_s21 + $0x7d8] sm:$0xff] }
0x15bb   :  { %9094 = vmatprep.subr.bf16.mxu0 %v9093_v61  ;;  %v7622_v61 = vld [vmem:[%s14579_s23 + $0x920] sm:$0xff] }
0x15bc   :  { %v9127_v27 = vpack.c.bf16 %v7624_v4, %v7622_v61  ;;  %v7742_v61 = vld [vmem:[%s14584_s21 + $0x7d0] sm:$0xff]  ;;  %v7745_v4 = vld [vmem:[%s14584_s21 + $0x7e8] sm:$0xff] }
0x15be   :  { %9096 = vmatpush1.bf16.msra.mxu0 %v9095_v48  ;;  %v9129_v48 = vpack.c.bf16 %v7629_v56, %v7627_v5  ;;  %v7747_v5 = vld [vmem:[%s14584_s21 + $0x7f8] sm:$0xff] }
0x15bf   :  { %9098 = vmatprep.subr.bf16.mxu0 %v9097_v6  ;;  %v7626_v6 = vld [vmem:[%s14579_s23 + $0x940] sm:$0xff] }
0x15c0   :  { %v9131_v0 = vpack.c.bf16 %v7628_v7, %v7626_v6  ;;  %v7746_v6 = vld [vmem:[%s14584_s21 + $0x7f0] sm:$0xff]  ;;  %v7749_v7 = vld [vmem:[%s14584_s21 + $0x808] sm:$0xff] }
0x15c2   :  { %9100 = vmatpush1.bf16.msra.mxu0 %v9099_v12  ;;  %v9133_v12 = vpack.c.bf16 %v7633_v9, %v7631_v8  ;;  %v7751_v8 = vld [vmem:[%s14584_s21 + $0x818] sm:$0xff] }
0x15c3   :  { %9102 = vmatprep.subr.bf16.mxu0 %v9101_v14  ;;  %v7630_v14 = vld [vmem:[%s14579_s23 + $0x960] sm:$0xff] }
0x15c4   :  { %v9136_v17 = vpack.c.bf16 %v7632_v19, %v7630_v14  ;;  %v7750_v14 = vld [vmem:[%s14584_s21 + $0x810] sm:$0xff]  ;;  %v7753_v19 = vld [vmem:[%s14584_s21 + $0x828] sm:$0xff] }
0x15c6   :  { %9104 = vmatpush1.bf16.msra.mxu0 %v9103_v18  ;;  %v9217_v18 = vpack.c.bf16 %v7723_v43, %v7721_v21  ;;  %v7755_v21 = vld [vmem:[%s14584_s21 + $0x838] sm:$0xff] }
0x15c7   :  { %9106 = vmatprep.subr.bf16.mxu0 %v9105_v11  ;;  %v7720_v11 = vld [vmem:[%s14584_s21 + $0x720] sm:$0xff] }
0x15c8   :  { %v9219_v28 = vpack.c.bf16 %v7722_v24, %v7720_v11  ;;  %v7754_v11 = vld [vmem:[%s14584_s21 + $0x830] sm:$0xff]  ;;  %v7757_v24 = vld [vmem:[%s14584_s21 + $0x848] sm:$0xff] }
0x15ca   :  { %9108 = vmatpush1.bf16.msra.mxu0 %v9107_v40  ;;  %v9221_v40 = vpack.c.bf16 %v7727_v10, %v7725_v25  ;;  %v7759_v25 = vld [vmem:[%s14584_s21 + $0x858] sm:$0xff] }
0x15cb   :  { %9110 = vmatprep.subr.bf16.mxu0 %v9109_v44  ;;  %v7724_v44 = vld [vmem:[%s14584_s21 + $0x740] sm:$0xff] }
0x15cc   :  { %v9223_v36 = vpack.c.bf16 %v7726_v45, %v7724_v44  ;;  %v7758_v44 = vld [vmem:[%s14584_s21 + $0x850] sm:$0xff]  ;;  %v7761_v45 = vld [vmem:[%s14584_s21 + $0x868] sm:$0xff] }
0x15ce   :  { %9112 = vmatpush1.bf16.msra.mxu0 %v9111_v41  ;;  %v9225_v41 = vpack.c.bf16 %v7731_v35, %v7729_v34  ;;  %v7763_v34 = vld [vmem:[%s14584_s21 + $0x878] sm:$0xff] }
0x15cf   :  { %9114 = vmatprep.subr.bf16.mxu0 %v9113_v37  ;;  %v7728_v37 = vld [vmem:[%s14584_s21 + $0x760] sm:$0xff] }
0x15d0   :  { %v9227_v30 = vpack.c.bf16 %v7730_v38, %v7728_v37  ;;  %v7762_v37 = vld [vmem:[%s14584_s21 + $0x870] sm:$0xff]  ;;  %v7765_v38 = vld [vmem:[%s14584_s21 + $0x888] sm:$0xff] }
0x15d2   :  { %9116 = vmatpush1.bf16.msra.mxu0 %v9115_v23  ;;  %v9229_v23 = vpack.c.bf16 %v7735_v60, %v7733_v15  ;;  %v7767_v15 = vld [vmem:[%s14584_s21 + $0x898] sm:$0xff] }
0x15d3   :  { %9118 = vmatprep.subr.bf16.mxu0 %v9117_v50  ;;  %v7732_v50 = vld [vmem:[%s14584_s21 + $0x780] sm:$0xff] }
0x15d4   :  { %v9231_v16 = vpack.c.bf16 %v7734_v52, %v7732_v50  ;;  %v7766_v50 = vld [vmem:[%s14584_s21 + $0x890] sm:$0xff]  ;;  %v7769_v52 = vld [vmem:[%s14584_s21 + $0x8a8] sm:$0xff] }
0x15d6   :  { %9120 = vmatpush1.bf16.msra.mxu0 %v9119_v20  ;;  %v9233_v20 = vpack.c.bf16 %v7739_v54, %v7737_v53  ;;  %v7771_v53 = vld [vmem:[%s14584_s21 + $0x8b8] sm:$0xff] }
0x15d7   :  { %9122 = vmatprep.subr.bf16.mxu0 %v9121_v63  ;;  %v7736_v63 = vld [vmem:[%s14584_s21 + $0x7a0] sm:$0xff] }
0x15d8   :  { %v9235_v58 = vpack.c.bf16 %v7738_v29, %v7736_v63  ;;  %v7770_v63 = vld [vmem:[%s14584_s21 + $0x8b0] sm:$0xff]  ;;  %v7773_v29 = vld [vmem:[%s14584_s21 + $0x8c8] sm:$0xff] }
0x15da   :  { %9124 = vmatpush1.bf16.msra.mxu0 %v9123_v3  ;;  %v9237_v3 = vpack.c.bf16 %v7743_v31, %v7741_v2  ;;  %v7775_v2 = vld [vmem:[%s14584_s21 + $0x8d8] sm:$0xff] }
0x15db   :  { %9126 = vmatprep.subr.bf16.mxu0 %v9125_v57  ;;  %v7740_v57 = vld [vmem:[%s14584_s21 + $0x7c0] sm:$0xff] }
0x15dc   :  { %v9239_v56 = vpack.c.bf16 %v7742_v61, %v7740_v57  ;;  %v7774_v57 = vld [vmem:[%s14584_s21 + $0x8d0] sm:$0xff]  ;;  %v7777_v61 = vld [vmem:[%s14584_s21 + $0x8e8] sm:$0xff] }
0x15dd   :  { %4617 = vmatmul.mubr.f32.vlgmr.msra.gmra.mrb[42].mxu0 %v12594_v51 }
0x15de   :  { %4622 = vmatprep.mubr.f32.mxu0 %v12624_v33  ;;  %9128 = vmatpush1.bf16.msra.mxu0 %v9127_v27  ;;  %v9241_v27 = vpack.c.bf16 %v7747_v5, %v7745_v4  ;;  %v7779_v4 = vld [vmem:[%s14584_s21 + $0x8f8] sm:$0xff] }
0x15df   :  { %9130 = vmatprep.subr.bf16.mxu0 %v9129_v48  ;;  %v7744_v48 = vld [vmem:[%s14584_s21 + $0x7e0] sm:$0xff] }
0x15e0   :  { %v9243_v9 = vpack.c.bf16 %v7746_v6, %v7744_v48  ;;  %v7778_v48 = vld [vmem:[%s14584_s21 + $0x8f0] sm:$0xff]  ;;  %v7781_v6 = vld [vmem:[%s14584_s21 + $0x908] sm:$0xff] }
0x15e1   :  { %4623 = vmatmul.mubr.f32.gmra.mrb[44].mxu0 %v12633_v1 }
0x15e2   :  { %9132 = vmatpush1.bf16.msra.mxu0 %v9131_v0  ;;  %4693 = vmatprep.mubr.f32.mxu0 %v9726_v47  ;;  %v9245_v0 = vpack.c.bf16 %v7751_v8, %v7749_v7  ;;  %v7783_v7 = vld [vmem:[%s14584_s21 + $0x918] sm:$0xff] }
0x15e3   :  { %9135 = vmatprep.subr.msk.bf16.mxu0 %vm10304_vm2, %v9133_v12  ;;  %v7748_v12 = vld [vmem:[%s14584_s21 + $0x800] sm:$0xff] }
0x15e4   :  { %v9247_v43 = vpack.c.bf16 %v7750_v14, %v7748_v12  ;;  %v7782_v12 = vld [vmem:[%s14584_s21 + $0x910] sm:$0xff]  ;;  %v7785_v14 = vld [vmem:[%s14584_s21 + $0x928] sm:$0xff] }
0x15e6   :  { %9138 = vmatpush1.bf16.msk.msra.mxu0 %vm10304_vm2, %v9136_v17  ;;  %v9249_v17 = vpack.c.bf16 %v7755_v21, %v7753_v19  ;;  %v7787_v19 = vld [vmem:[%s14584_s21 + $0x938] sm:$0xff] }
0x15e7   :  { %9218 = vmatprep.subr.bf16.mxu0 %v9217_v18  ;;  %v7752_v18 = vld [vmem:[%s14584_s21 + $0x820] sm:$0xff] }
0x15e8   :  { %v9251_v10 = vpack.c.bf16 %v7754_v11, %v7752_v18  ;;  %v7786_v18 = vld [vmem:[%s14584_s21 + $0x930] sm:$0xff]  ;;  %v7789_v11 = vld [vmem:[%s14584_s21 + $0x948] sm:$0xff] }
0x15e9   :  { %7637 = vmatmul.mubr.msk.f32.vlgmr.msra.gmra.mrb[42].mxu0 %vm160_vm3, %v12678_v59 }
0x15ea   :  { %9220 = vmatpush1.bf16.msra.mxu0 %v9219_v28  ;;  %4699 = vmatprep.mubr.f32.mxu0 %v9726_v47  ;;  %v9253_v28 = vpack.c.bf16 %v7759_v25, %v7757_v24  ;;  %v7791_v24 = vld [vmem:[%s14584_s21 + $0x958] sm:$0xff] }
0x15eb   :  { %9222 = vmatprep.subr.bf16.mxu0 %v9221_v40  ;;  %v7756_v40 = vld [vmem:[%s14584_s21 + $0x840] sm:$0xff] }
0x15ec   :  { %v9255_v35 = vpack.c.bf16 %v7758_v44, %v7756_v40  ;;  %v7790_v40 = vld [vmem:[%s14584_s21 + $0x950] sm:$0xff]  ;;  %v7793_v44 = vld [vmem:[%s14584_s21 + $0x968] sm:$0xff] }
0x15ed   :  { %7638 = vmatmul.mubr.msk.f32.gmra.mrb[44].mxu0 %vm160_vm3, %v12698_v42 }
0x15ee   :  { %9224 = vmatpush1.bf16.msra.mxu0 %v9223_v36  ;;  %5116 = vmatprep.mubr.f32.mxu0 %v12592_v39  ;;  %v9257_v36 = vpack.c.bf16 %v7763_v34, %v7761_v45  ;;  %v7795_v45 = vld [vmem:[%s14584_s21 + $0x978] sm:$0xf] }
0x15ef   :  { %9226 = vmatprep.subr.bf16.mxu0 %v9225_v41  ;;  %v7760_v41 = vld [vmem:[%s14584_s21 + $0x860] sm:$0xff] }
0x15f0   :  { %v9259_v60 = vpack.c.bf16 %v7762_v37, %v7760_v41  ;;  %v7794_v41 = vld [vmem:[%s14584_s21 + $0x970] sm:$0xf] }
0x15f2   :  { %9228 = vmatpush1.bf16.msra.mxu0 %v9227_v30  ;;  %v9261_v30 = vpack.c.bf16 %v7767_v15, %v7765_v38 }
0x15f3   :  { %9230 = vmatprep.subr.bf16.mxu0 %v9229_v23  ;;  %v7764_v23 = vld [vmem:[%s14584_s21 + $0x880] sm:$0xff] }
0x15f4   :  { %v9263_v54 = vpack.c.bf16 %v7766_v50, %v7764_v23 }
0x15f6   :  { %9232 = vmatpush1.bf16.msra.mxu0 %v9231_v16  ;;  %v9265_v16 = vpack.c.bf16 %v7771_v53, %v7769_v52 }
0x15f7   :  { %9234 = vmatprep.subr.bf16.mxu0 %v9233_v20  ;;  %v7768_v20 = vld [vmem:[%s14584_s21 + $0x8a0] sm:$0xff] }
0x15f8   :  { %v9267_v31 = vpack.c.bf16 %v7770_v63, %v7768_v20 }
0x15fa   :  { %9236 = vmatpush1.bf16.msra.mxu0 %v9235_v58  ;;  %v9269_v58 = vpack.c.bf16 %v7775_v2, %v7773_v29 }
0x15fb   :  { %9238 = vmatprep.subr.bf16.mxu0 %v9237_v3  ;;  %v7772_v3 = vld [vmem:[%s14584_s21 + $0x8c0] sm:$0xff] }
0x15fc   :  { %v9271_v5 = vpack.c.bf16 %v7774_v57, %v7772_v3 }
0x15fe   :  { %9240 = vmatpush1.bf16.msra.mxu0 %v9239_v56  ;;  %v9273_v56 = vpack.c.bf16 %v7779_v4, %v7777_v61 }
0x15ff   :  { %9242 = vmatprep.subr.bf16.mxu0 %v9241_v27  ;;  %v7776_v27 = vld [vmem:[%s14584_s21 + $0x8e0] sm:$0xff] }
0x1600   :  { %v9275_v8 = vpack.c.bf16 %v7778_v48, %v7776_v27 }
0x1602   :  { %9244 = vmatpush1.bf16.msra.mxu0 %v9243_v9  ;;  %v9277_v9 = vpack.c.bf16 %v7783_v7, %v7781_v6 }
0x1603   :  { %9246 = vmatprep.subr.bf16.mxu0 %v9245_v0  ;;  %v7780_v0 = vld [vmem:[%s14584_s21 + $0x900] sm:$0xff] }
0x1604   :  { %v9279_v21 = vpack.c.bf16 %v7782_v12, %v7780_v0 }
0x1606   :  { %9248 = vmatpush1.bf16.msra.mxu0 %v9247_v43  ;;  %v9281_v43 = vpack.c.bf16 %v7787_v19, %v7785_v14 }
0x1607   :  { %9250 = vmatprep.subr.bf16.mxu0 %v9249_v17  ;;  %v7784_v17 = vld [vmem:[%s14584_s21 + $0x920] sm:$0xff] }
0x1608   :  { %v9283_v25 = vpack.c.bf16 %v7786_v18, %v7784_v17  ;;  %v7809_v17 = vld [vmem:[%s14557_s8 + $0x568] sm:$0xff]  ;;  %v7815_v18 = vld [vmem:[%s14557_s8 + $0x598] sm:$0xff] }
0x160a   :  { %9252 = vmatpush1.bf16.msra.mxu0 %v9251_v10  ;;  %v9285_v10 = vpack.c.bf16 %v7791_v24, %v7789_v11  ;;  %v7818_v24 = vld [vmem:[%s14557_s8 + $0x5b0] sm:$0xff] }
0x160b   :  { %9254 = vmatprep.subr.bf16.mxu0 %v9253_v28  ;;  %v7788_v28 = vld [vmem:[%s14584_s21 + $0x940] sm:$0xff] }
0x160c   :  { %v9287_v34 = vpack.c.bf16 %v7790_v40, %v7788_v28  ;;  %v7824_v28 = vld [vmem:[%s14557_s8 + $0x5e0] sm:$0xff] }
0x160e   :  { %9256 = vmatpush1.bf16.msra.mxu0 %v9255_v35  ;;  %v9289_v35 = vpack.c.bf16 %v7795_v45, %v7793_v44  ;;  %v7827_v44 = vld [vmem:[%s14557_s8 + $0x5f8] sm:$0xff]  ;;  %v7830_v45 = vld [vmem:[%s14557_s8 + $0x610] sm:$0xff] }
0x160f   :  { %9258 = vmatprep.subr.bf16.mxu0 %v9257_v36  ;;  %v7792_v36 = vld [vmem:[%s14584_s21 + $0x960] sm:$0xff] }
0x1610   :  { %v9292_v37 = vpack.c.bf16 %v7794_v41, %v7792_v36  ;;  %v7836_v36 = vld [vmem:[%s14557_s8 + $0x640] sm:$0xff] }
0x1612   :  { %9260 = vmatpush1.bf16.msra.mxu0 %v9259_v60  ;;  %v7634_v60 = vld [vmem:[%s14554_s5 + $0x6] sm:$0x3] }
0x1613   :  { %9262 = vmatprep.subr.bf16.mxu0 %v9261_v30  ;;  %v4539_v30 = vrot.slane %v7634_v60, %v10606_v49  ;;  %v4543_v23 = vrot.slane %v7634_v60, %v10600_v46 }
0x1616   :  { %9264 = vmatpush1.bf16.msra.mxu0 %v9263_v54 }
0x1617   :  { %9266 = vmatprep.subr.bf16.mxu0 %v9265_v16 }
0x161a   :  { %9268 = vmatpush1.bf16.msra.mxu0 %v9267_v31 }
0x161b   :  { %9270 = vmatprep.subr.bf16.mxu0 %v9269_v58  ;;  %v7796_v58 = vld [vmem:[%s14556_s7 + $0x6] sm:$0x3] }
0x161c   :  { %v5043_v3 = vrot.slane %v7796_v58, %v10600_v46  ;;  %v5039_v57 = vrot.slane %v7796_v58, %v10606_v49 }
0x161e   :  { %9272 = vmatpush1.bf16.msra.mxu0 %v9271_v5 }
0x161f   :  { %9274 = vmatprep.subr.bf16.mxu0 %v9273_v56 }
0x1622   :  { %9276 = vmatpush1.bf16.msra.mxu0 %v9275_v8 }
0x1623   :  { %9278 = vmatprep.subr.bf16.mxu0 %v9277_v9 }
0x1626   :  { %9280 = vmatpush1.bf16.msra.mxu0 %v9279_v21 }
0x1627   :  { %9282 = vmatprep.subr.bf16.mxu0 %v9281_v43 }
0x1629   :  { %5117 = vmatmul.mubr.f32.vlgmr.msra.gmra.mrb[46].mxu0 %v12594_v51 }
0x162a   :  { %5122 = vmatprep.mubr.f32.mxu0 %v12624_v33  ;;  %9284 = vmatpush1.bf16.msra.mxu0 %v9283_v25  ;;  %v9335_v25 = vpack.c.bf16 %v7818_v24, %v7815_v18  ;;  %v7512_v24 = vld [vmem:[%s14557_s8 + $0x3e8] sm:$0xff] }
0x162b   :  { %9286 = vmatprep.subr.bf16.mxu0 %v9285_v10  ;;  %v7821_v10 = vld [vmem:[%s14557_s8 + $0x5c8] sm:$0xff] }
0x162c   :  { %v9338_v40 = vpack.c.bf16 %v7824_v28, %v7821_v10  ;;  %v7515_v10 = vld [vmem:[%s14557_s8 + $0x400] sm:$0xff]  ;;  %v7518_v28 = vld [vmem:[%s14557_s8 + $0x418] sm:$0xff] }
0x162d   :  { %5123 = vmatmul.mubr.f32.gmra.mrb[48].mxu0 %v12633_v1 }
0x162e   :  { %9288 = vmatpush1.bf16.msra.mxu0 %v9287_v34  ;;  %5193 = vmatprep.mubr.f32.mxu0 %v9726_v47  ;;  %v9341_v34 = vpack.c.bf16 %v7830_v45, %v7827_v44  ;;  %v7521_v44 = vld [vmem:[%s14557_s8 + $0x430] sm:$0xff]  ;;  %v7524_v45 = vld [vmem:[%s14557_s8 + $0x448] sm:$0xff] }
0x162f   :  { %9291 = vmatprep.subr.msk.bf16.mxu0 %vm10304_vm2, %v9289_v35  ;;  %v7833_v35 = vld [vmem:[%s14557_s8 + $0x628] sm:$0xff] }
0x1630   :  { %v9344_v41 = vpack.c.bf16 %v7836_v36, %v7833_v35  ;;  %v7527_v35 = vld [vmem:[%s14557_s8 + $0x460] sm:$0xff]  ;;  %v7530_v36 = vld [vmem:[%s14557_s8 + $0x478] sm:$0xff] }
0x1632   :  { %9294 = vmatpush1.bf16.msk.msra.mxu0 %vm10304_vm2, %v9292_v37  ;;  %v7839_v37 = vld [vmem:[%s14557_s8 + $0x658] sm:$0xff] }
0x1633   :  { %9331 = vmatprep.subr.bf16.mxu0 %v9727_v55 }
0x1635   :  { %7799 = vmatmul.mubr.msk.f32.vlgmr.msra.gmra.mrb[46].mxu0 %vm160_vm3, %v12678_v59 }
0x1636   :  { %5199 = vmatprep.mubr.f32.mxu0 %v9726_v47 }
0x1639   :  { %7800 = vmatmul.mubr.msk.f32.gmra.mrb[48].mxu0 %vm160_vm3, %v12698_v42 }
0x1670   :  { %v13683_v38 = vpop.f32.mrb[40].mxu0 }
0x1671   :  { %v4389_v15 = vpop.f32.mrb[41].mxu0 }
0x1672   :  { %4393 = vst.msk [vmem:[#allocation2 + $0x18] sm:$0xff] %vm828_vm4, %v4389_v15  ;;  %v7842_v15 = vld [vmem:[%s14557_s8 + $0x670] sm:$0xff] }
0x1673   :  { %v9347_v60 = vpack.c.bf16 %v7842_v15, %v7839_v37  ;;  %v7533_v37 = vld [vmem:[%s14557_s8 + $0x490] sm:$0xff]  ;;  %v7536_v15 = vld [vmem:[%s14557_s8 + $0x4a8] sm:$0xff] }
0x16bc   :  { %v4695_v50 = vpop.f32.mrb[42].mxu0 }
0x16bd   :  { %v9568_v52 = vadd.f32 %v4695_v50, %v4539_v30  ;;  %v4697_v53 = vpop.f32.mrb[43].mxu0 }
0x16be   :  { %v9569_v54 = vadd.f32 %v4697_v53, %v4543_v23 }
0x16bf   :  { %v5206_v63 = vmul.f32 0.08164966, %v9568_v52 }
0x16c0   :  { %v5207_v16 = vmul.f32 0.08164966, %v9569_v54  ;;  %v4701_v20 = vpop.f32.mrb[44].mxu0 }
0x16c1   :  { %v13691_v29 = vadd.f32 %v4701_v20, %v4539_v30  ;;  %v4703_v2 = vpop.f32.mrb[45].mxu0  ;;  %v7845_v30 = vld [vmem:[%s14557_s8 + $0x688] sm:$0xff] }
0x16c2   :  { %v13693_v31 = vadd.f32 %v4703_v2, %v4543_v23  ;;  %7802 = vmatprep.mubr.msk.f32.mxu1 %vm828_vm4, %v5207_v16  ;;  %v7848_v23 = vld [vmem:[%s14557_s8 + $0x6a0] sm:$0xff]  ;;  %v7854_v2 = vld [vmem:[%s14557_s8 + $0x6d0] sm:$0xff] }
0x16c3   :  { %5281 = vmatmul.mubr.f32.vlgmr.msra.gmra.mrb[46].mxu1 %v5206_v63  ;;  %v9350_v50 = vpack.c.bf16 %v7848_v23, %v7845_v30  ;;  %v5208_v20 = vmul.f32 0.08164966, %v13691_v29  ;;  %v7851_v63 = vld [vmem:[%s14557_s8 + $0x6b8] sm:$0xff]  ;;  %v7860_v29 = vld [vmem:[%s14557_s8 + $0x700] sm:$0xff] }
0x16c4   :  { %5364 = vmatprep.mubr.f32.mxu1 %v9726_v47  ;;  %v5209_v16 = vmul.f32 0.08164966, %v13693_v31  ;;  %v9353_v31 = vpack.c.bf16 %v7854_v2, %v7851_v63  ;;  %v7807_v23 = vld [vmem:[%s14557_s8 + $0x558] sm:$0xff]  ;;  %v7813_v2 = vld [vmem:[%s14557_s8 + $0x588] sm:$0xff] }
0x1708   :  { %v5195_v61 = vpop.f32.mrb[46].mxu0 }
0x1709   :  { %v5197_v4 = vpop.f32.mrb[47].mxu0  ;;  %v9576_v56 = vadd.f32 %v5195_v61, %v5039_v57  ;;  %v13783_v61 = vld [vmem:[#allocation2 + $0x8] sm:$0xff] }
0x170a   :  { %v9577_v5 = vadd.f32 %v5197_v4, %v5043_v3 }
0x170c   :  { %v5201_v27 = vpop.f32.mrb[48].mxu0  ;;  %5300 = vmatprep.subr.mxu1 %v9577_v5 }
0x170d   :  { %v9578_v48 = vadd.f32 %v5201_v27, %v5039_v57  ;;  %v5203_v6 = vpop.f32.mrb[49].mxu0  ;;  %5301 = vmatpush1.msra.mxu1 %v9576_v56 }
0x170e   :  { %v9579_v7 = vadd.f32 %v5203_v6, %v5043_v3  ;;  %7804 = vmatprep.subr.msk.mxu1 %vm828_vm4, %v13185_v13  ;;  %v7812_v13 = vld [vmem:[%s14557_s8 + $0x580] sm:$0xff]  ;;  %v7863_v3 = vld [vmem:[%s14557_s8 + $0x718] sm:$0x3f] }
0x170f   :  { %v9332_v11 = vpack.c.bf16 %v7812_v13, %v7809_v17  ;;  %v7503_v17 = vld [vmem:[%s14557_s8 + $0x3a0] sm:$0xff]  ;;  %v7506_v13 = vld [vmem:[%s14557_s8 + $0x3b8] sm:$0xff] }
0x1710   :  { %v9395_v18 = vpack.c.bf16 %v7506_v13, %v7503_v17  ;;  %v7838_v17 = vld [vmem:[%s14557_s8 + $0x650] sm:$0xff]  ;;  %v7841_v13 = vld [vmem:[%s14557_s8 + $0x668] sm:$0xff] }
0x1711   :  { %9333 = vmatpush1.bf16.msra.mxu0 %v9332_v11  ;;  %v7509_v11 = vld [vmem:[%s14557_s8 + $0x3d0] sm:$0xff] }
0x1712   :  { %9334 = vmatprep.subr.bf16.mxu0 %v9727_v55 }
0x1715   :  { %9336 = vmatpush1.bf16.msra.mxu0 %v9335_v25  ;;  %v9398_v25 = vpack.c.bf16 %v7512_v24, %v7509_v11  ;;  %v9315_v11 = vpack.c.bf16 %v7841_v13, %v7838_v17  ;;  %v7837_v24 = vld [vmem:[%s14557_s8 + $0x648] sm:$0xff]  ;;  %v7519_v17 = vld [vmem:[%s14557_s8 + $0x420] sm:$0xff]  ;;  %v7522_v13 = vld [vmem:[%s14557_s8 + $0x438] sm:$0xff] }
0x1716   :  { %9337 = vmatprep.subr.bf16.mxu0 %v9727_v55 }
0x1719   :  { %9339 = vmatpush1.bf16.msra.mxu0 %v9338_v40  ;;  %v9401_v40 = vpack.c.bf16 %v7518_v28, %v7515_v10  ;;  %v7844_v10 = vld [vmem:[%s14557_s8 + $0x680] sm:$0xff]  ;;  %v7847_v28 = vld [vmem:[%s14557_s8 + $0x698] sm:$0xff] }
0x171a   :  { %9340 = vmatprep.subr.bf16.mxu0 %v9727_v55 }
0x171d   :  { %9342 = vmatpush1.bf16.msra.mxu0 %v9341_v34  ;;  %v9404_v34 = vpack.c.bf16 %v7524_v45, %v7521_v44  ;;  %v9319_v44 = vpack.c.bf16 %v7847_v28, %v7844_v10  ;;  %v7843_v45 = vld [vmem:[%s14557_s8 + $0x678] sm:$0xff]  ;;  %v7525_v10 = vld [vmem:[%s14557_s8 + $0x450] sm:$0xff]  ;;  %v7528_v28 = vld [vmem:[%s14557_s8 + $0x468] sm:$0xff] }
0x171e   :  { %9343 = vmatprep.subr.bf16.mxu0 %v9727_v55 }
0x1721   :  { %9345 = vmatpush1.bf16.msra.mxu0 %v9344_v41  ;;  %v9407_v41 = vpack.c.bf16 %v7530_v36, %v7527_v35  ;;  %v7850_v35 = vld [vmem:[%s14557_s8 + $0x6b0] sm:$0xff]  ;;  %v7853_v36 = vld [vmem:[%s14557_s8 + $0x6c8] sm:$0xff] }
0x1722   :  { %9346 = vmatprep.subr.bf16.mxu0 %v9727_v55 }
0x1725   :  { %9348 = vmatpush1.bf16.msra.mxu0 %v9347_v60  ;;  %v9410_v60 = vpack.c.bf16 %v7536_v15, %v7533_v37  ;;  %v9323_v37 = vpack.c.bf16 %v7853_v36, %v7850_v35  ;;  %v7849_v15 = vld [vmem:[%s14557_s8 + $0x6a8] sm:$0xff]  ;;  %v7531_v35 = vld [vmem:[%s14557_s8 + $0x480] sm:$0xff]  ;;  %v7534_v36 = vld [vmem:[%s14557_s8 + $0x498] sm:$0xff] }
0x1726   :  { %9349 = vmatprep.subr.bf16.mxu0 %v9727_v55 }
0x1729   :  { %9351 = vmatpush1.bf16.msra.mxu0 %v9350_v50  ;;  %v7810_v50 = vld [vmem:[%s14557_s8 + $0x570] sm:$0xff] }
0x172a   :  { %9352 = vmatprep.subr.bf16.mxu0 %v9727_v55 }
0x172d   :  { %9354 = vmatpush1.bf16.msra.mxu0 %v9353_v31  ;;  %v7816_v31 = vld [vmem:[%s14557_s8 + $0x5a0] sm:$0xff] }
0x172e   :  { %9355 = vmatprep.subr.bf16.mxu0 %v9727_v55 }
0x1796   :  { %v5282_v8 = vpop.f32.mrb[46].mxu1 }
0x1797   :  { %v5284_v9 = vpop.f32.mrb[47].mxu1  ;;  %v5286_v0 = vsel %vm905_vm5, %v5282_v8, -inf }
0x1798   :  { %5287 = vmax.xlane.f32.xlu0 %v5286_v0 }
0x1825   :  { %v5288_v12 = vpop.xlane.xlu0 %5287 }
0x1826   :  { %v5289_v14 = vsub.f32 %v5282_v8, %v5288_v12  ;;  %v7808_v12 = vld [vmem:[%s14557_s8 + $0x560] sm:$0xff] }
0x1828   :  { %v5290_v19 = vmul.f32 1.442695, %v5289_v14  ;;  %v7811_v14 = vld [vmem:[%s14557_s8 + $0x578] sm:$0xff] }
0x182a   :  { %9673 = vpow2.f32 %v5290_v19  ;;  %v9295_v19 = vpack.c.bf16 %v7811_v14, %v7808_v12 }
0x1834   :  { %v9674_v21 = vpop.eup %9673 }
0x1835   :  { %v5292_v43 = vsel %vm905_vm5, %v9674_v21, 0.0 }
0x1836   :  { %5293 = vadd.xlane.f32.xlu1 %v5292_v43 }
0x18c3   :  { %v5294_v52 = vpop.xlane.xlu1 %5293 }
0x18c4   :  { %9675 = vrcp.f32 %v5294_v52  ;;  %v7814_v52 = vld [vmem:[%s14557_s8 + $0x590] sm:$0xff] }
0x18ce   :  { %v9676_v53 = vpop.eup %9675 }
0x18cf   :  { %v5296_v54 = vmul.f32 %v9676_v53, %v9674_v21  ;;  %v7817_v53 = vld [vmem:[%s14557_s8 + $0x5a8] sm:$0xff] }
0x18d0   :  { %v9299_v63 = vpack.c.bf16 %v7817_v53, %v7814_v52  ;;  %v7855_v53 = vld [vmem:[%s14557_s8 + $0x6d8] sm:$0xff] }
0x18d1   :  { %7803 = vmatmul.mubr.msk.f32.vlgmr.msra.gmra.mrb[48].mxu1 %vm905_vm5, %v5296_v54 }
0x18d2   :  { %5380 = vmatpush1.xpose.msra.mxu1 %v13183_v26  ;;  %7805 = vmatprep.mubr.msk.f32.mxu1 %vm828_vm4, %v5209_v16  ;;  %v7857_v26 = vld [vmem:[%s14557_s8 + $0x6e8] sm:$0xff]  ;;  %v9297_v16 = vpack.c.bf16 %v7810_v50, %v7807_v23  ;;  %v7859_v23 = vld [vmem:[%s14557_s8 + $0x6f8] sm:$0xff] }
0x18d3   :  { %5463 = vmatprep.subr.mxu1 %v9579_v7  ;;  %v9356_v58 = vpack.c.bf16 %v7860_v29, %v7857_v26  ;;  %v7820_v26 = vld [vmem:[%s14557_s8 + $0x5c0] sm:$0xff]  ;;  %v7823_v29 = vld [vmem:[%s14557_s8 + $0x5d8] sm:$0xff] }
0x18d5   :  { %5444 = vmatmul.mubr.f32.vlgmr.msra.gmra.mrb[50].mxu1 %v5208_v20  ;;  %9357 = vmatpush1.bf16.msra.mxu0 %v9356_v58  ;;  %v9301_v58 = vpack.c.bf16 %v7816_v31, %v7813_v2  ;;  %v7505_v2 = vld [vmem:[%s14557_s8 + $0x3b0] sm:$0xff] }
0x18d6   :  { %5464 = vmatpush1.msra.mxu1 %v9578_v48  ;;  %5527 = vmatprep.mubr.f32.mxu1 %v9726_v47  ;;  %v7501_v31 = vld [vmem:[%s14557_s8 + $0x390] sm:$0xff] }
0x18d7   :  { %5726 = vmatprep.subr.mxu0 %v9726_v47  ;;  %9296 = vmatprep.subr.bf16.mxu1 %v9295_v19  ;;  %v7831_v19 = vld [vmem:[%s14557_s8 + $0x618] sm:$0xff] }
0x18d9   :  { %7868 = vmatpush1.msk.msra.mxu0 %vm2365_vm6, %v7863_v3  ;;  %v9303_v3 = vpack.c.bf16 %v7823_v29, %v7820_v26  ;;  %v7504_v26 = vld [vmem:[%s14557_s8 + $0x3a8] sm:$0xff] }
0x18da   :  { %9394 = vmatprep.subr.bf16.mxu0 %v9727_v55  ;;  %v7508_v29 = vld [vmem:[%s14557_s8 + $0x3c8] sm:$0xff] }
0x19a4   :  { %v13780_v57 = vpop.f32.mrb[48].mxu1 }
0x19a5   :  { %5371 = vst [vmem:[#allocation2] sm:$0xff] %v13780_v57  ;;  %v5368_v4 = vpop.f32.mrb[49].mxu1 }
0x19a6   :  { %5372 = vst.msk [vmem:[#allocation2 + $0x8] sm:$0xff] %vm828_vm4, %v5368_v4  ;;  %v7819_v4 = vld [vmem:[%s14557_s8 + $0x5b8] sm:$0xff] }
0x19a8   :  { %v5445_v5 = vpop.f32.mrb[50].mxu1 }
0x19a9   :  { %v5447_v56 = vpop.f32.mrb[51].mxu1  ;;  %v5449_v27 = vsel %vm905_vm5, %v5445_v5, -inf }
0x19aa   :  { %5450 = vmax.xlane.f32.xlu0 %v5449_v27  ;;  %v7826_v56 = vld [vmem:[%s14557_s8 + $0x5f0] sm:$0xff]  ;;  %v7829_v27 = vld [vmem:[%s14557_s8 + $0x608] sm:$0xff] }
0x19ad   :  { %v5537_v48 = vld [vmem:[#allocation2 + $0x8] sm:$0xff] }
0x19ae   :  { %7869 = vmatprep.mubr.msk.f32.mxu0 %vm828_vm4, %v5537_v48 }
0x19af   :  { %5755 = vmatmul.mubr.f32.vlgmr.msra.gmra.mrb[50].mxu0 %v13780_v57 }
0x19b0   :  { %9396 = vmatpush1.bf16.msra.mxu0 %v9395_v18 }
0x19b1   :  { %9397 = vmatprep.subr.bf16.mxu0 %v9727_v55 }
0x19b4   :  { %9399 = vmatpush1.bf16.msra.mxu0 %v9398_v25  ;;  %v7840_v25 = vld [vmem:[%s14557_s8 + $0x660] sm:$0xff] }
0x19b5   :  { %9400 = vmatprep.subr.bf16.mxu0 %v9727_v55 }
0x19b8   :  { %9402 = vmatpush1.bf16.msra.mxu0 %v9401_v40  ;;  %v9317_v40 = vpack.c.bf16 %v7840_v25, %v7837_v24  ;;  %v9372_v24 = vpack.c.bf16 %v7522_v13, %v7519_v17  ;;  %v7878_v13 = vld [vmem:[%s14558_s9 + $0x3] sm:$0x7] }
0x19b9   :  { %9403 = vmatprep.subr.bf16.mxu0 %v9727_v55 }
0x19bc   :  { %9405 = vmatpush1.bf16.msra.mxu0 %v9404_v34  ;;  %v7846_v34 = vld [vmem:[%s14557_s8 + $0x690] sm:$0xff] }
0x19bd   :  { %9406 = vmatprep.subr.bf16.mxu0 %v9727_v55 }
0x19c0   :  { %9408 = vmatpush1.bf16.msra.mxu0 %v9407_v41  ;;  %v9321_v41 = vpack.c.bf16 %v7846_v34, %v7843_v45  ;;  %v9376_v45 = vpack.c.bf16 %v7528_v28, %v7525_v10 }
0x19c1   :  { %9409 = vmatprep.subr.bf16.mxu0 %v9727_v55 }
0x19c4   :  { %9411 = vmatpush1.bf16.msra.mxu0 %v9410_v60  ;;  %v7852_v60 = vld [vmem:[%s14557_s8 + $0x6c0] sm:$0xff] }
0x19c5   :  { %9412 = vmatprep.subr.bf16.mxu0 %v9727_v55  ;;  %v9325_v50 = vpack.c.bf16 %v7852_v60, %v7849_v15  ;;  %v7541_v15 = vld [vmem:[%s14557_s8 + $0x4d0] sm:$0xff] }
0x1a37   :  { %v5451_v6 = vpop.xlane.xlu0 %5450 }
0x1a38   :  { %v5452_v7 = vsub.f32 %v5445_v5, %v5451_v6  ;;  %v7822_v5 = vld [vmem:[%s14557_s8 + $0x5d0] sm:$0xff]  ;;  %v9307_v6 = vpack.c.bf16 %v7829_v27, %v7826_v56  ;;  %v7507_v27 = vld [vmem:[%s14557_s8 + $0x3c0] sm:$0xff] }
0x1a3a   :  { %v5453_v8 = vmul.f32 1.442695, %v5452_v7  ;;  %v7825_v7 = vld [vmem:[%s14557_s8 + $0x5e8] sm:$0xff] }
0x1a3c   :  { %9677 = vpow2.f32 %v5453_v8  ;;  %v7828_v8 = vld [vmem:[%s14557_s8 + $0x600] sm:$0xff] }
0x1a3d   :  { %v9309_v12 = vpack.c.bf16 %v7828_v8, %v7825_v7  ;;  %v7517_v7 = vld [vmem:[%s14557_s8 + $0x410] sm:$0xff] }
0x1a46   :  { %v9678_v9 = vpop.eup %9677 }
0x1a47   :  { %v5455_v0 = vsel %vm905_vm5, %v9678_v9, 0.0 }
0x1a48   :  { %5456 = vadd.xlane.f32.xlu1 %v5455_v0  ;;  %v7835_v0 = vld [vmem:[%s14557_s8 + $0x638] sm:$0xff] }
0x1a82   :  { %v13796_v21 = vpop.f32.mrb[50].mxu0 }
0x1a83   :  { %v5758_v43 = vpop.f32.mrb[51].mxu0 }
0x1a84   :  { %v7834_v43 = vld [vmem:[%s14557_s8 + $0x630] sm:$0xff] }
0x1a85   :  { %v9313_v18 = vpack.c.bf16 %v7834_v43, %v7831_v19 }
0x1ad5   :  { %v5457_v30 = vpop.xlane.xlu1 %5456 }
0x1ad6   :  { %9679 = vrcp.f32 %v5457_v30  ;;  %v7856_v30 = vld [vmem:[%s14557_s8 + $0x6e0] sm:$0xff] }
0x1ad7   :  { %v9327_v52 = vpack.c.bf16 %v7859_v23, %v7856_v30  ;;  %v7537_v30 = vld [vmem:[%s14557_s8 + $0x4b0] sm:$0xff]  ;;  %v7540_v23 = vld [vmem:[%s14557_s8 + $0x4c8] sm:$0xff] }
0x1ae0   :  { %v9680_v54 = vpop.eup %9679 }
0x1ae1   :  { %v5459_v20 = vmul.f32 %v9680_v54, %v9678_v9  ;;  %v7832_v9 = vld [vmem:[%s14557_s8 + $0x620] sm:$0xff]  ;;  %v7858_v54 = vld [vmem:[%s14557_s8 + $0x6f0] sm:$0xff] }
0x1ae2   :  { %v9311_v14 = vpack.c.bf16 %v7835_v0, %v7832_v9  ;;  %v7513_v0 = vld [vmem:[%s14557_s8 + $0x3f0] sm:$0xff] }
0x1ae3   :  { %7806 = vmatmul.mubr.msk.f32.vlgmr.msra.gmra.mrb[52].mxu1 %vm905_vm5, %v5459_v20  ;;  %v7862_v20 = vld [vmem:[%s14557_s8 + $0x710] sm:$0x3f] }
0x1ae4   :  { %9298 = vmatpush1.bf16.msra.mxu1 %v9297_v16  ;;  %7866 = vmatprep.mubr.msk.f32.mxu1 %vm828_vm4, %v5537_v48  ;;  %v9305_v48 = vpack.c.bf16 %v7822_v5, %v7819_v4  ;;  %v9329_v16 = vpack.c.bf16 %v7858_v54, %v7855_v53  ;;  %v9360_v5 = vpack.c.bf16 %v7504_v26, %v7501_v31  ;;  %v7542_v53 = vld [vmem:[%s14557_s8 + $0x4d8] sm:$0xff]  ;;  %v7545_v26 = vld [vmem:[%s14557_s8 + $0x4f0] sm:$0xff] }
0x1ae5   :  { %9300 = vmatprep.subr.bf16.mxu1 %v9299_v63  ;;  %v7502_v63 = vld [vmem:[%s14557_s8 + $0x398] sm:$0xff] }
0x1ae6   :  { %v9358_v4 = vpack.c.bf16 %v7505_v2, %v7502_v63  ;;  %v7543_v63 = vld [vmem:[%s14557_s8 + $0x4e0] sm:$0xff]  ;;  %v7546_v31 = vld [vmem:[%s14557_s8 + $0x4f8] sm:$0xff] }
0x1ae8   :  { %9302 = vmatpush1.bf16.msra.mxu1 %v9301_v58  ;;  %v7511_v58 = vld [vmem:[%s14557_s8 + $0x3e0] sm:$0xff] }
0x1ae9   :  { %9304 = vmatprep.subr.bf16.mxu1 %v9303_v3  ;;  %v7861_v3 = vld [vmem:[%s14557_s8 + $0x708] sm:$0x3f]  ;;  %v9362_v56 = vpack.c.bf16 %v7511_v58, %v7508_v29  ;;  %v9388_v58 = vpack.c.bf16 %v7546_v31, %v7543_v63 }
0x1aea   :  { %v7548_v29 = vld [vmem:[%s14557_s8 + $0x508] sm:$0xff] }
0x1aec   :  { %9306 = vmatpush1.bf16.msra.mxu1 %v9305_v48  ;;  %v7510_v48 = vld [vmem:[%s14557_s8 + $0x3d8] sm:$0xff] }
0x1aed   :  { %9308 = vmatprep.subr.bf16.mxu1 %v9307_v6  ;;  %v7514_v6 = vld [vmem:[%s14557_s8 + $0x3f8] sm:$0xff]  ;;  %v9364_v8 = vpack.c.bf16 %v7510_v48, %v7507_v27  ;;  %v7549_v27 = vld [vmem:[%s14557_s8 + $0x510] sm:$0xff]  ;;  %v7552_v48 = vld [vmem:[%s14557_s8 + $0x528] sm:$0xff] }
0x1aee   :  { %v9366_v9 = vpack.c.bf16 %v7517_v7, %v7514_v6  ;;  %v7551_v6 = vld [vmem:[%s14557_s8 + $0x520] sm:$0xff]  ;;  %v9392_v7 = vpack.c.bf16 %v7552_v48, %v7549_v27  ;;  %v7901_v27 = vld [vmem:[%s14563_s14 + $0x1d0] sm:$0xff]  ;;  %v7902_v48 = vld [vmem:[%s14563_s14 + $0x1d8] sm:$0xff] }
0x1af0   :  { %9310 = vmatpush1.bf16.msra.mxu1 %v9309_v12  ;;  %v7516_v12 = vld [vmem:[%s14557_s8 + $0x408] sm:$0xff] }
0x1af1   :  { %9312 = vmatprep.subr.bf16.mxu1 %v9311_v14  ;;  %v7520_v14 = vld [vmem:[%s14557_s8 + $0x428] sm:$0xff]  ;;  %v9368_v19 = vpack.c.bf16 %v7516_v12, %v7513_v0  ;;  %v7555_v12 = vld [vmem:[%s14557_s8 + $0x540] sm:$0x3f] }
0x1af2   :  { %v7556_v0 = vld [vmem:[%s14557_s8 + $0x548] sm:$0x3f] }
0x1af4   :  { %9314 = vmatpush1.bf16.msra.mxu1 %v9313_v18  ;;  %v7526_v18 = vld [vmem:[%s14557_s8 + $0x458] sm:$0xff] }
0x1af5   :  { %9316 = vmatprep.subr.bf16.mxu1 %v9315_v11  ;;  %v7529_v11 = vld [vmem:[%s14557_s8 + $0x470] sm:$0xff] }
0x1af6   :  { %v9374_v25 = vpack.c.bf16 %v7529_v11, %v7526_v18 }
0x1af8   :  { %9318 = vmatpush1.bf16.msra.mxu1 %v9317_v40  ;;  %v7532_v40 = vld [vmem:[%s14557_s8 + $0x488] sm:$0xff] }
0x1af9   :  { %9320 = vmatprep.subr.bf16.mxu1 %v9319_v44  ;;  %v7535_v44 = vld [vmem:[%s14557_s8 + $0x4a0] sm:$0xff] }
0x1afa   :  { %v9378_v34 = vpack.c.bf16 %v7535_v44, %v7532_v40 }
0x1afc   :  { %9322 = vmatpush1.bf16.msra.mxu1 %v9321_v41  ;;  %v9380_v41 = vpack.c.bf16 %v7534_v36, %v7531_v35 }
0x1afd   :  { %9324 = vmatprep.subr.bf16.mxu1 %v9323_v37  ;;  %v7538_v37 = vld [vmem:[%s14557_s8 + $0x4b8] sm:$0xff] }
0x1afe   :  { %v9382_v60 = vpack.c.bf16 %v7541_v15, %v7538_v37 }
0x1b00   :  { %9326 = vmatpush1.bf16.msra.mxu1 %v9325_v50  ;;  %v7539_v50 = vld [vmem:[%s14557_s8 + $0x4c0] sm:$0xff] }
0x1b01   :  { %9328 = vmatprep.subr.bf16.mxu1 %v9327_v52  ;;  %v9384_v52 = vpack.c.bf16 %v7540_v23, %v7537_v30  ;;  %v9413_v54 = vpack.c.bf16 %v7542_v53, %v7539_v50 }
0x1b03   :  { %9414 = vmatpush1.bf16.msra.mxu0 %v9413_v54 }
0x1b04   :  { %9330 = vmatpush1.bf16.msra.mxu1 %v9329_v16  ;;  %v7544_v16 = vld [vmem:[%s14557_s8 + $0x4e8] sm:$0xff]  ;;  %9415 = vmatprep.subr.bf16.mxu0 %v9727_v55 }
0x1b05   :  { %7864 = vmatprep.subr.msk.mxu1 %vm2365_vm6, %v7862_v20  ;;  %v7547_v20 = vld [vmem:[%s14557_s8 + $0x500] sm:$0xff] }
0x1b06   :  { %v9386_v2 = vpack.c.bf16 %v7547_v20, %v7544_v16 }
0x1b08   :  { %7865 = vmatpush1.msk.msra.mxu1 %vm2365_vm6, %v7861_v3  ;;  %v9416_v3 = vpack.c.bf16 %v7548_v29, %v7545_v26  ;;  %v7899_v29 = vld [vmem:[%s14563_s14 + $0x1c0] sm:$0xff] }
0x1b09   :  { %5678 = vmatmul.mubr.f32.vlgmr.msra.gmra.mrb[54].mxu1 %v13780_v57  ;;  %9359 = vmatprep.subr.bf16.mxu1 %v9358_v4  ;;  %v7523_v57 = vld [vmem:[%s14557_s8 + $0x440] sm:$0xff]  ;;  %v7550_v4 = vld [vmem:[%s14557_s8 + $0x518] sm:$0xff] }
0x1b0a   :  { %9361 = vmatpush1.bf16.msra.mxu1 %v9360_v5  ;;  %v9370_v43 = vpack.c.bf16 %v7523_v57, %v7520_v14  ;;  %v7553_v5 = vld [vmem:[%s14557_s8 + $0x530] sm:$0xff]  ;;  %9417 = vmatpush1.bf16.msra.mxu0 %v9416_v3 }
0x1b0b   :  { %9363 = vmatprep.subr.bf16.mxu1 %v9362_v56  ;;  %v9390_v56 = vpack.c.bf16 %v7553_v5, %v7550_v4  ;;  %9418 = vmatprep.subr.bf16.mxu0 %v9727_v55  ;;  %v7557_v14 = vld [vmem:[%s14557_s8 + $0x550] sm:$0x3f]  ;;  %v7883_v5 = vld [vmem:[%s14563_s14 + $0x140] sm:$0xff] }
0x1b0e   :  { %9365 = vmatpush1.bf16.msra.mxu1 %v9364_v8  ;;  %v7554_v8 = vld [vmem:[%s14557_s8 + $0x538] sm:$0xff] }
0x1b0f   :  { %9367 = vmatprep.subr.bf16.mxu1 %v9366_v9  ;;  %v9419_v9 = vpack.c.bf16 %v7554_v8, %v7551_v6  ;;  %v7885_v8 = vld [vmem:[%s14563_s14 + $0x150] sm:$0xff] }
0x1b11   :  { %9420 = vmatpush1.bf16.msra.mxu0 %v9419_v9  ;;  %v7886_v9 = vld [vmem:[%s14563_s14 + $0x158] sm:$0xff] }
0x1b12   :  { %9369 = vmatpush1.bf16.msra.mxu1 %v9368_v19  ;;  %5893 = vmatprep.subr.mxu0 %v9726_v47  ;;  %v4397_v19 = vld [vmem:[#allocation2 + $0x18] sm:$0xff] }
0x1b13   :  { %9371 = vmatprep.subr.bf16.mxu1 %v9370_v43 }
0x1b15   :  { %7875 = vmatpush1.msk.msra.mxu0 %vm2365_vm6, %v7557_v14 }
0x1b16   :  { %9373 = vmatpush1.bf16.msra.mxu1 %v9372_v24  ;;  %v5942_v24 = vrot.slane %v7878_v13, %v10600_v46 }
0x1b17   :  { %9375 = vmatprep.subr.bf16.mxu1 %v9374_v25 }
0x1b1a   :  { %9377 = vmatpush1.bf16.msra.mxu1 %v9376_v45 }
0x1b1b   :  { %9379 = vmatprep.subr.bf16.mxu1 %v9378_v34 }
0x1b1e   :  { %9381 = vmatpush1.bf16.msra.mxu1 %v9380_v41 }
0x1b1f   :  { %9383 = vmatprep.subr.bf16.mxu1 %v9382_v60 }
0x1b22   :  { %9385 = vmatpush1.bf16.msra.mxu1 %v9384_v52 }
0x1b23   :  { %9387 = vmatprep.subr.bf16.mxu1 %v9386_v2 }
0x1b26   :  { %9389 = vmatpush1.bf16.msra.mxu1 %v9388_v58  ;;  %v7900_v58 = vld [vmem:[%s14563_s14 + $0x1c8] sm:$0xff] }
0x1b27   :  { %9391 = vmatprep.subr.bf16.mxu1 %v9390_v56  ;;  %v9425_v4 = vpack.c.bf16 %v7900_v58, %v7899_v29  ;;  %v7884_v56 = vld [vmem:[%s14563_s14 + $0x148] sm:$0xff]  ;;  %v7893_v29 = vld [vmem:[%s14563_s14 + $0x190] sm:$0xff] }
0x1b28   :  { %v9427_v6 = vpack.c.bf16 %v7884_v56, %v7883_v5  ;;  %v7916_v5 = vld [vmem:[%s14563_s14 + $0x248] sm:$0xff] }
0x1b2a   :  { %9393 = vmatpush1.bf16.msra.mxu1 %v9392_v7  ;;  %v9429_v7 = vpack.c.bf16 %v7902_v48, %v7901_v27  ;;  %v7911_v48 = vld [vmem:[%s14563_s14 + $0x220] sm:$0xff] }
0x1b2b   :  { %7871 = vmatprep.subr.msk.mxu1 %vm2365_vm6, %v7556_v0  ;;  %v9431_v0 = vpack.c.bf16 %v7886_v9, %v7885_v8  ;;  %v7895_v8 = vld [vmem:[%s14563_s14 + $0x1a0] sm:$0xff]  ;;  %v7896_v9 = vld [vmem:[%s14563_s14 + $0x1a8] sm:$0xff] }
0x1b2e   :  { %7872 = vmatpush1.msk.msra.mxu1 %vm2365_vm6, %v7555_v12 }
0x1bb6   :  { %v5529_v57 = vpop.f32.mrb[52].mxu1 }
0x1bb7   :  { %v5531_v43 = vpop.f32.mrb[53].mxu1 }
0x1bb8   :  { %5535 = vst.msk [vmem:[#allocation2 + $0x18] sm:$0xff] %vm828_vm4, %v5531_v43 }
0x1bbf   :  { %v5539_v17 = vld [vmem:[#allocation2 + $0x18] sm:$0xff] }
0x1bc0   :  { %7867 = vmatprep.mubr.msk.f32.mxu1 %vm828_vm4, %v5539_v17  ;;  %7870 = vmatprep.mubr.msk.f32.mxu0 %vm828_vm4, %v5539_v17 }
0x1bc1   :  { %5684 = vmatmul.mubr.f32.gmra.mrb[56].mxu1 %v5529_v57  ;;  %5760 = vmatmul.mubr.f32.gmra.mrb[52].mxu0 %v5529_v57 }
0x1bc2   :  { %7873 = vmatprep.mubr.msk.f32.mxu1 %vm828_vm4, %v13783_v61  ;;  %7876 = vmatprep.mubr.msk.f32.mxu0 %vm828_vm4, %v13783_v61  ;;  %v5938_v61 = vrot.slane %v7878_v13, %v10606_v49 }
0x1bc5   :  { %5845 = vmatmul.mubr.f32.vlgmr.msra.gmra.mrb[54].mxu1 %v13192_v62  ;;  %5922 = vmatmul.mubr.f32.vlgmr.msra.gmra.mrb[54].mxu0 %v13192_v62  ;;  %v5946_v62 = vrot.slane %v7878_v13, %v11833_v22 }
0x1bc6   :  { %7874 = vmatprep.mubr.msk.f32.mxu1 %vm828_vm4, %v4397_v19  ;;  %7877 = vmatprep.mubr.msk.f32.mxu0 %vm828_vm4, %v4397_v19 }
0x1bc9   :  { %5851 = vmatmul.mubr.f32.gmra.mrb[56].mxu1 %v13683_v38  ;;  %5927 = vmatmul.mubr.f32.gmra.mrb[56].mxu0 %v13683_v38 }
0x1c94   :  { %v5761_v18 = vpop.f32.mrb[52].mxu0 }
0x1c95   :  { %v5763_v11 = vpop.f32.mrb[53].mxu0 }
0x1c98   :  { %v5846_v25 = vpop.f32.mrb[54].mxu1  ;;  %v5923_v10 = vpop.f32.mrb[54].mxu0 }
0x1c99   :  { %v5950_v28 = vadd.f32 %v5938_v61, %v5846_v25  ;;  %v5924_v40 = vadd.f32 %v5923_v10, %v13796_v21  ;;  %v5848_v44 = vpop.f32.mrb[55].mxu1  ;;  %v5925_v45 = vpop.f32.mrb[55].mxu0 }
0x1c9a   :  { %v5951_v38 = vadd.f32 %v5942_v24, %v5848_v44 }
0x1c9b   :  { %v5956_v34 = vadd.f32 %v5950_v28, %v12594_v51  ;;  %v5952_v35 = vadd.f32 %v5946_v62, %v5924_v40 }
0x1c9c   :  { %v5957_v36 = vadd.f32 %v5951_v38, %v12592_v39  ;;  %v5852_v41 = vpop.f32.mrb[56].mxu1  ;;  %v5928_v37 = vpop.f32.mrb[56].mxu0 }
0x1c9d   :  { %v5953_v15 = vadd.f32 %v5938_v61, %v5852_v41  ;;  %v5929_v60 = vadd.f32 %v5928_v37, %v5761_v18  ;;  %v5854_v30 = vpop.f32.mrb[57].mxu1  ;;  %v5930_v23 = vpop.f32.mrb[57].mxu0  ;;  %v5958_v50 = vadd.f32 %v5952_v35, %v12678_v59  ;;  %v7897_v59 = vld [vmem:[%s14563_s14 + $0x1b0] sm:$0xff]  ;;  %v7903_v41 = vld [vmem:[%s14563_s14 + $0x1e0] sm:$0xff]  ;;  %v7904_v37 = vld [vmem:[%s14563_s14 + $0x1e8] sm:$0xff] }
0x1c9e   :  { %v5954_v52 = vadd.f32 %v5942_v24, %v5854_v30  ;;  %v5966_v53 = vadd.f32 %v5957_v36, %v5956_v34  ;;  %v7888_v30 = vld [vmem:[%s14563_s14 + $0x168] sm:$0xff] }
0x1c9f   :  { %v5959_v21 = vadd.f32 %v5953_v15, %v12633_v1  ;;  %v5955_v54 = vadd.f32 %v5946_v62, %v5929_v60  ;;  %v5967_v16 = vsel %vm160_vm3, %v5958_v50, 0.0  ;;  %v7898_v1 = vld [vmem:[%s14563_s14 + $0x1b8] sm:$0xff]  ;;  %v9433_v15 = vpack.c.bf16 %v7904_v37, %v7903_v41  ;;  %v7887_v60 = vld [vmem:[%s14563_s14 + $0x160] sm:$0xff] }
0x1ca0   :  { %v5960_v51 = vadd.f32 %v5954_v52, %v12624_v33  ;;  %v5968_v20 = vadd.f32 %v5967_v16, %v5966_v53  ;;  %v7881_v33 = vld [vmem:[%s14563_s14 + $0x130] sm:$0xff]  ;;  %v9421_v26 = vpack.c.bf16 %v7898_v1, %v7897_v59  ;;  %v9435_v23 = vpack.c.bf16 %v7888_v30, %v7887_v60  ;;  %v7906_v52 = vld [vmem:[%s14563_s14 + $0x1f8] sm:$0xff] }
0x1ca1   :  { %v5961_v39 = vadd.f32 %v5955_v54, %v12698_v42  ;;  %v7882_v42 = vld [vmem:[%s14563_s14 + $0x138] sm:$0xff] }
0x1ca2   :  { %5969 = vadd.xlane.f32.xlu0 %v5968_v20  ;;  %v5971_v63 = vadd.f32 %v5960_v51, %v5959_v21  ;;  %v9423_v3 = vpack.c.bf16 %v7882_v42, %v7881_v33  ;;  %9422 = vmatprep.subr.bf16.mxu1 %v9421_v26  ;;  %v7890_v54 = vld [vmem:[%s14563_s14 + $0x178] sm:$0xff]  ;;  %v7908_v20 = vld [vmem:[%s14563_s14 + $0x208] sm:$0xff]  ;;  %v7909_v26 = vld [vmem:[%s14563_s14 + $0x210] sm:$0xff] }
0x1ca3   :  { %v5972_v2 = vsel %vm160_vm3, %v5961_v39, 0.0  ;;  %v7914_v59 = vld [vmem:[%s14563_s14 + $0x238] sm:$0xff] }
0x1ca4   :  { %v5973_v31 = vadd.f32 %v5972_v2, %v5971_v63  ;;  %9424 = vmatpush3.bf16.msra.mxu1 %v9423_v3  ;;  %v7892_v2 = vld [vmem:[%s14563_s14 + $0x188] sm:$0xff]  ;;  %v7910_v42 = vld [vmem:[%s14563_s14 + $0x218] sm:$0xff] }
0x1ca5   :  { %9426 = vmatprep.subr.bf16.mxu1 %v9425_v4  ;;  %v9445_v58 = vpack.c.bf16 %v7910_v42, %v7909_v26  ;;  %v7894_v3 = vld [vmem:[%s14563_s14 + $0x198] sm:$0xff]  ;;  %v7915_v4 = vld [vmem:[%s14563_s14 + $0x240] sm:$0xff]  ;;  %v7934_v42 = vld [vmem:[%s14565_s16 + $0xb0] sm:$0xff] }
0x1ca6   :  { %5974 = vadd.xlane.f32.xlu1 %v5973_v31  ;;  %v7913_v31 = vld [vmem:[%s14563_s14 + $0x230] sm:$0xff]  ;;  %v9447_v56 = vpack.c.bf16 %v7894_v3, %v7893_v29  ;;  %v9457_v27 = vpack.c.bf16 %v7916_v5, %v7915_v4  ;;  %v7931_v26 = vld [vmem:[%s14565_s16 + $0x98] sm:$0xff]  ;;  %v7933_v3 = vld [vmem:[%s14565_s16 + $0xa8] sm:$0xff] }
0x1ca7   :  { %v9453_v33 = vpack.c.bf16 %v7914_v59, %v7913_v31  ;;  %v7924_v59 = vld [vmem:[%s14565_s16 + $0x60] sm:$0xff]  ;;  %v9471_v29 = vpack.c.bf16 %v7934_v42, %v7931_v26  ;;  %v7926_v5 = vld [vmem:[%s14565_s16 + $0x70] sm:$0xff] }
0x1ca8   :  { %9428 = vmatpush3.bf16.msra.mxu1 %v9427_v6  ;;  %v7912_v6 = vld [vmem:[%s14563_s14 + $0x228] sm:$0xff] }
0x1ca9   :  { %9430 = vmatprep.subr.bf16.mxu1 %v9429_v7  ;;  %9454 = vmatprep.subr.bf16.mxu0 %v9453_v33  ;;  %v9449_v7 = vpack.c.bf16 %v7912_v6, %v7911_v48 }
0x1caa   :  { %9456 = vmatpush3.bf16.msra.mxu0 %v9453_v33 }
0x1cab   :  { %9458 = vmatprep.subr.bf16.mxu0 %v9457_v27 }
0x1cac   :  { %9432 = vmatpush3.bf16.msra.mxu1 %v9431_v0  ;;  %v9451_v0 = vpack.c.bf16 %v7896_v9, %v7895_v8 }
0x1cad   :  { %9434 = vmatprep.subr.bf16.mxu1 %v9433_v15 }
0x1cae   :  { %9460 = vmatpush3.bf16.msra.mxu0 %v9457_v27 }
0x1cb0   :  { %9436 = vmatpush3.bf16.msra.mxu1 %v9435_v23 }
0x1d2f   :  { %v5970_v12 = vpop.xlane.xlu0 %5969 }
0x1d30   :  { %v5976_v14 = vmul.f32 0.0033333334, %v5970_v12  ;;  %v7917_v12 = vld [vmem:[%s14563_s14 + $0x250] sm:$0xff] }
0x1d32   :  { %v14158_v57 = vsub.f32 %v5956_v34, %v5976_v14  ;;  %v14160_v19 = vsub.f32 %v5957_v36, %v5976_v14  ;;  %v14162_v43 = vsub.f32 %v5958_v50, %v5976_v14  ;;  %v7905_v50 = vld [vmem:[%s14563_s14 + $0x1f0] sm:$0xff]  ;;  %v7918_v14 = vld [vmem:[%s14563_s14 + $0x258] sm:$0xf] }
0x1d33   :  { %v5975_v17 = vpop.xlane.xlu1 %5974  ;;  %v9437_v53 = vpack.c.bf16 %v7906_v52, %v7905_v50 }
0x1d34   :  { %v5977_v13 = vmul.f32 0.0033333334, %v5975_v17  ;;  %v5984_v18 = vmul.f32 %v14158_v57, %v14158_v57  ;;  %v5985_v11 = vmul.f32 %v14160_v19, %v14160_v19  ;;  %v5986_v61 = vmul.f32 %v14162_v43, %v14162_v43 }
0x1d35   :  { %9438 = vmatprep.subr.bf16.mxu1 %v9437_v53  ;;  %v9461_v17 = vpack.c.bf16 %v7918_v14, %v7917_v12 }
0x1d36   :  { %v14170_v24 = vsub.f32 %v5959_v21, %v5977_v13  ;;  %v14172_v62 = vsub.f32 %v5960_v51, %v5977_v13  ;;  %v14174_v25 = vsub.f32 %v5961_v39, %v5977_v13  ;;  %v5990_v10 = vadd.f32 %v5985_v11, %v5984_v18  ;;  %v7889_v21 = vld [vmem:[%s14563_s14 + $0x170] sm:$0xff]  ;;  %v7907_v51 = vld [vmem:[%s14563_s14 + $0x200] sm:$0xff] }
0x1d37   :  { %v5991_v28 = vsel %vm160_vm3, %v5986_v61, 0.0  ;;  %v9439_v16 = vpack.c.bf16 %v7890_v54, %v7889_v21  ;;  %v7891_v39 = vld [vmem:[%s14563_s14 + $0x180] sm:$0xff]  ;;  %v9441_v63 = vpack.c.bf16 %v7908_v20, %v7907_v51  ;;  %9463 = vmatprep.subr.msk.bf16.mxu0 %vm10304_vm2, %v9461_v17 }
0x1d38   :  { %v5992_v40 = vadd.f32 %v5991_v28, %v5990_v10  ;;  %v5987_v44 = vmul.f32 %v14170_v24, %v14170_v24  ;;  %v5988_v45 = vmul.f32 %v14172_v62, %v14172_v62  ;;  %v5989_v38 = vmul.f32 %v14174_v25, %v14174_v25  ;;  %9466 = vmatpush3.bf16.msk.msra.mxu0 %vm10304_vm2, %v9461_v17  ;;  %v7932_v17 = vld [vmem:[%s14565_s16 + $0xa0] sm:$0xff] }
0x1d39   :  { %9440 = vmatpush3.bf16.msra.mxu1 %v9439_v16  ;;  %v9443_v1 = vpack.c.bf16 %v7892_v2, %v7891_v39 }
0x1d3a   :  { %5993 = vadd.xlane.f32.xlu0 %v5992_v40  ;;  %v5995_v34 = vadd.f32 %v5988_v45, %v5987_v44  ;;  %v5996_v35 = vsel %vm160_vm3, %v5989_v38, 0.0  ;;  %9442 = vmatprep.subr.bf16.mxu1 %v9441_v63  ;;  %v7879_v40 = vld [vmem:[%s14559_s10 + $0x3] sm:$0x7] }
0x1d3b   :  { %v7880_v44 = vld [vmem:[%s14560_s11 + $0x3] sm:$0x7]  ;;  %v6016_v45 = vrot.slane %v7879_v40, %v10606_v49  ;;  %v6020_v38 = vrot.slane %v7879_v40, %v10600_v46 }
0x1d3c   :  { %v5997_v36 = vadd.f32 %v5996_v35, %v5995_v34  ;;  %v6024_v34 = vrot.slane %v7879_v40, %v11833_v22  ;;  %v6042_v41 = vrot.slane %v7880_v44, %v10600_v46  ;;  %v6046_v60 = vrot.slane %v7880_v44, %v11833_v22 }
0x1d3d   :  { %9444 = vmatpush3.bf16.msra.mxu1 %v9443_v1  ;;  %v7927_v1 = vld [vmem:[%s14565_s16 + $0x78] sm:$0xff] }
0x1d3e   :  { %5998 = vadd.xlane.f32.xlu1 %v5997_v36  ;;  %9446 = vmatprep.subr.bf16.mxu1 %v9445_v58  ;;  %v6038_v36 = vrot.slane %v7880_v44, %v10606_v49  ;;  %v9469_v33 = vpack.c.bf16 %v7927_v1, %v7924_v59  ;;  %v7930_v58 = vld [vmem:[%s14565_s16 + $0x90] sm:$0xff] }
0x1d3f   :  { %v9473_v4 = vpack.c.bf16 %v7933_v3, %v7930_v58 }
0x1d41   :  { %9448 = vmatpush3.bf16.msra.mxu1 %v9447_v56  ;;  %v7929_v56 = vld [vmem:[%s14565_s16 + $0x88] sm:$0xff] }
0x1d42   :  { %9450 = vmatprep.subr.bf16.mxu1 %v9449_v7  ;;  %v9475_v27 = vpack.c.bf16 %v7929_v56, %v7926_v5  ;;  %v7920_v7 = vld [vmem:[%s14564_s15 + $0x1] ss:$0 sm:$0xff] }
0x1d45   :  { %9452 = vmatpush3.bf16.msra.mxu1 %v9451_v0 }
0x1dc7   :  { %v5994_v13 = vpop.xlane.xlu0 %5993 }
0x1dc8   :  { %v6000_v18 = vmul.f32 0.0033333334, %v5994_v13  ;;  %v7935_v13 = vld [vmem:[%s14565_s16 + $0xb8] sm:$0xff] }
0x1dca   :  { %v6002_v11 = vadd.f32 1e-05, %v6000_v18 }
0x1dcb   :  { %v5999_v61 = vpop.xlane.xlu1 %5998 }
0x1dcc   :  { %9681 = vrsqrt.f32 %v6002_v11  ;;  %v6001_v10 = vmul.f32 0.0033333334, %v5999_v61 }
0x1dce   :  { %v6003_v28 = vadd.f32 1e-05, %v6001_v10 }
0x1dd0   :  { %9683 = vrsqrt.f32 %v6003_v28  ;;  %v9479_v28 = vpack.c.bf16 %v7935_v13, %v7932_v17 }
0x1dd6   :  { %v9682_v35 = vpop.eup %9681 }
0x1dd7   :  { %v6007_v37 = vmul.f32 %v9682_v35, %v14160_v19  ;;  %v6008_v15 = vmul.f32 %v9682_v35, %v14162_v43  ;;  %v6006_v30 = vmul.f32 %v9682_v35, %v14158_v57 }
0x1dd9   :  { %v6029_v23 = vmul.f32 %v6020_v38, %v6007_v37  ;;  %v6030_v50 = vmul.f32 %v6024_v34, %v6008_v15  ;;  %v6028_v52 = vmul.f32 %v6016_v45, %v6006_v30 }
0x1dda   :  { %v9684_v53 = vpop.eup %9683 }
0x1ddb   :  { %v14281_v21 = vadd.f32 %v6042_v41, %v6029_v23  ;;  %v6011_v54 = vmul.f32 %v9684_v53, %v14174_v25  ;;  %v14284_v16 = vadd.f32 %v6046_v60, %v6030_v50  ;;  %v14286_v51 = vadd.f32 %v6038_v36, %v6028_v52 }
0x1ddc   :  { %v6010_v19 = vmul.f32 %v9684_v53, %v14172_v62  ;;  %v6009_v43 = vmul.f32 %v9684_v53, %v14170_v24  ;;  %v7925_v24 = vld [vmem:[%s14565_s16 + $0x68] sm:$0xff]  ;;  %v7928_v62 = vld [vmem:[%s14565_s16 + $0x80] sm:$0xff] }
0x1ddd   :  { %6176 = vmatprep.mubr.f32.mxu1 %v14281_v21  ;;  %v6033_v20 = vmul.f32 %v6024_v34, %v6011_v54  ;;  %8135 = vmatprep.mubr.msk.f32.mxu0 %vm160_vm3, %v14284_v16  ;;  %v9467_v31 = vpack.c.bf16 %v7928_v62, %v7925_v24 }
0x1dde   :  { %6177 = vmatmul.mubr.f32.vlgmr.msra.gmra.mrb[58].mxu1 %v14286_v51  ;;  %v6032_v57 = vmul.f32 %v6020_v38, %v6010_v19  ;;  %v6031_v39 = vmul.f32 %v6016_v45, %v6009_v43  ;;  %v7936_v38 = vld [vmem:[%s14566_s17 + $0x3] sm:$0x7] }
0x1ddf   :  { %v14294_v63 = vadd.f32 %v6046_v60, %v6033_v20  ;;  %9468 = vmatprep.subr.bf16.mxu0 %v9467_v31  ;;  %v6291_v50 = vrot.slane %v7936_v38, %v11833_v22 }
0x1de0   :  { %v14296_v25 = vadd.f32 %v6042_v41, %v6032_v57  ;;  %v14298_v2 = vadd.f32 %v6038_v36, %v6031_v39  ;;  %v6283_v36 = vrot.slane %v7936_v38, %v10606_v49  ;;  %v6287_v41 = vrot.slane %v7936_v38, %v10600_v46 }
0x1de1   :  { %8136 = vmatmul.mubr.msk.f32.vlgmr.msra.gmra.mrb[58].mxu0 %vm160_vm3, %v14294_v63 }
0x1de2   :  { %6181 = vmatprep.mubr.f32.mxu1 %v14296_v25  ;;  %6365 = vmatprep.mubr.f32.mxu0 %v9726_v47 }
0x1de3   :  { %6182 = vmatmul.mubr.f32.gmra.mrb[60].mxu1 %v14298_v2  ;;  %9470 = vmatpush1.bf16.msra.mxu0 %v9469_v33 }
0x1de4   :  { %9472 = vmatprep.subr.bf16.mxu0 %v9471_v29 }
0x1de7   :  { %9474 = vmatpush1.bf16.msra.mxu0 %v9473_v4 }
0x1de8   :  { %9476 = vmatprep.subr.bf16.mxu0 %v9475_v27 }
0x1eb1   :  { %v8032_v48 = vpop.f32.mrb[58].mxu1 }
0x1eb2   :  { %v8033_v6 = vpop.f32.mrb[59].mxu1 }
0x1eb3   :  { %v8034_v8 = vadd.f32 %v8033_v6, %v8032_v48 }
0x1eb4   :  { %v8137_v9 = vpop.f32.mrb[58].mxu0 }
0x1eb5   :  { %v6179_v0 = vadd.f32 %v8034_v8, %v7920_v7  ;;  %v6253_v12 = vpop.f32.mrb[59].mxu0 }
0x1eb6   :  { %v8035_v14 = vpop.f32.mrb[60].mxu1 }
0x1eb7   :  { %v6254_v18 = vadd.f32 %v6253_v12, %v6179_v0  ;;  %v8036_v11 = vpop.f32.mrb[61].mxu1 }
0x1eb8   :  { %v8037_v61 = vadd.f32 %v8036_v11, %v8035_v14  ;;  %v6716_v11 = vld [vmem:[%s14567_s18 + $0x88] sm:$0xff] }
0x1eb9   :  { %v6262_v10 = vmax.f32 %v6254_v18, 0.0  ;;  %v6715_v18 = vld [vmem:[%s14567_s18 + $0x80] sm:$0xff] }
0x1eba   :  { %v6184_v40 = vadd.f32 %v8037_v61, %v7920_v7  ;;  %v6699_v61 = vld [vmem:[%s14567_s18] sm:$0xff] }
0x1ebb   :  { %7937 = vmatmul.mubr.msk.f32.vlgmr.msra.gmra.mrb[60].mxu0 %vm3051_vm7, %v6262_v10 }
0x1ebc   :  { %v6259_v44 = vadd.f32 %v8137_v9, %v6184_v40  ;;  %9478 = vmatpush3.bf16.msra.mxu0 %v9475_v27  ;;  %6371 = vmatprep.mubr.f32.mxu0 %v9726_v47  ;;  %v6717_v40 = vld [vmem:[%s14567_s18 + $0x90] sm:$0xff] }
0x1ebd   :  { %9480 = vmatprep.subr.bf16.mxu0 %v9479_v28 }
0x1ebe   :  { %v6263_v45 = vmax.f32 %v6259_v44, 0.0  ;;  %v6718_v44 = vld [vmem:[%s14567_s18 + $0x98] sm:$0xff] }
0x1ebf   :  { %v9494_v38 = vpack.c.bf16 %v6718_v44, %v6717_v40 }
0x1ec0   :  { %7938 = vmatmul.mubr.msk.f32.gmra.mrb[62].mxu0 %vm3051_vm7, %v6263_v45 }
0x1ec1   :  { %9482 = vmatpush3.bf16.msra.mxu0 %v9479_v28  ;;  %8146 = vmatprep.mubr.msk.f32.mxu0 %vm3051_vm7, %v6262_v10  ;;  %v9490_v10 = vpack.c.bf16 %v6716_v11, %v6715_v18  ;;  %v6700_v28 = vld [vmem:[%s14567_s18 + $0x8] sm:$0xff]  ;;  %v7942_v18 = vld [vmem:[%s14562_s13 + $0x3] sm:$0x7] }
0x1ec3   :  { %9491 = vmatprep.subr.bf16.mxu1 %v9490_v10 }
0x1ec4   :  { %8147 = vmatmul.mubr.msk.f32.vlgmr.msra.gmra.mrb[64].mxu0 %vm3051_vm7, %v6263_v45  ;;  %v9492_v45 = vpack.c.bf16 %v6700_v28, %v6699_v61  ;;  %v6539_v28 = vrot.slane %v7942_v18, %v10600_v46 }
0x1ec5   :  { %6622 = vmatprep.mubr.f32.mxu0 %v9726_v47 }
0x1ec6   :  { %9493 = vmatpush3.bf16.msra.mxu1 %v9492_v45 }
0x1ec7   :  { %9495 = vmatprep.subr.bf16.mxu1 %v9494_v38 }
0x1f8e   :  { %v6367_v34 = vpop.f32.mrb[60].mxu0 }
0x1f8f   :  { %v6369_v35 = vpop.f32.mrb[61].mxu0  ;;  %v6368_v15 = vadd.f32 %v6367_v34, %v6283_v36  ;;  %v6701_v34 = vld [vmem:[%s14567_s18 + $0x10] sm:$0xff] }
0x1f90   :  { %v6370_v60 = vadd.f32 %v6369_v35, %v6287_v41  ;;  %v6702_v35 = vld [vmem:[%s14567_s18 + $0x18] sm:$0xff] }
0x1f91   :  { %v6453_v43 = vadd.f32 %v6368_v15, %v14286_v51 }
0x1f92   :  { %v6454_v20 = vadd.f32 %v6370_v60, %v14281_v21  ;;  %v6703_v60 = vld [vmem:[%s14567_s18 + $0x20] sm:$0xff] }
0x1f93   :  { %v6373_v37 = vpop.f32.mrb[62].mxu0 }
0x1f94   :  { %v6374_v30 = vadd.f32 %v6373_v37, %v6283_v36  ;;  %v6375_v23 = vpop.f32.mrb[63].mxu0  ;;  %v6463_v33 = vadd.f32 %v6454_v20, %v6453_v43  ;;  %v6719_v36 = vld [vmem:[%s14567_s18 + $0xa0] sm:$0xff]  ;;  %v9496_v37 = vpack.c.bf16 %v6702_v35, %v6701_v34  ;;  %v6535_v34 = vrot.slane %v7942_v18, %v10606_v49 }
0x1f95   :  { %v6376_v52 = vadd.f32 %v6375_v23, %v6287_v41  ;;  %v6720_v41 = vld [vmem:[%s14567_s18 + $0xa8] sm:$0xff]  ;;  %v6721_v23 = vld [vmem:[%s14567_s18 + $0xb0] sm:$0xff] }
0x1f96   :  { %v6456_v53 = vadd.f32 %v6374_v30, %v14298_v2  ;;  %v9498_v15 = vpack.c.bf16 %v6720_v41, %v6719_v36  ;;  %v6704_v30 = vld [vmem:[%s14567_s18 + $0x28] sm:$0xff]  ;;  %9497 = vmatpush3.bf16.msra.mxu1 %v9496_v37 }
0x1f97   :  { %v6457_v54 = vadd.f32 %v6376_v52, %v14296_v25  ;;  %v8148_v19 = vpop.f32.mrb[64].mxu0  ;;  %v9500_v52 = vpack.c.bf16 %v6704_v30, %v6703_v60 }
0x1f98   :  { %v6450_v57 = vadd.f32 %v8148_v19, %v6291_v50  ;;  %v6444_v39 = vpop.f32.mrb[65].mxu0  ;;  %9499 = vmatprep.subr.bf16.mxu1 %v9498_v15  ;;  %v6706_v19 = vld [vmem:[%s14567_s18 + $0x38] sm:$0xff] }
0x1f99   :  { %v6445_v24 = vadd.f32 %v6444_v39, %v6291_v50  ;;  %v6468_v59 = vadd.f32 %v6457_v54, %v6456_v53  ;;  %v6722_v50 = vld [vmem:[%s14567_s18 + $0xb8] sm:$0xff] }
0x1f9a   :  { %v6458_v62 = vadd.f32 %v6450_v57, %v14294_v63  ;;  %9501 = vmatpush3.bf16.msra.mxu1 %v9500_v52 }
0x1f9b   :  { %v6455_v31 = vadd.f32 %v6445_v24, %v14284_v16  ;;  %v6707_v24 = vld [vmem:[%s14567_s18 + $0x40] sm:$0xff] }
0x1f9c   :  { %v6469_v1 = vsel %vm160_vm3, %v6458_v62, 0.0 }
0x1f9d   :  { %v6470_v26 = vadd.f32 %v6469_v1, %v6468_v59  ;;  %v6464_v2 = vsel %vm160_vm3, %v6455_v31, 0.0  ;;  %v6726_v59 = vld [vmem:[%s14567_s18 + $0xd8] sm:$0xff] }
0x1f9e   :  { %v6465_v25 = vadd.f32 %v6464_v2, %v6463_v33  ;;  %v6710_v2 = vld [vmem:[%s14567_s18 + $0x58] sm:$0xff] }
0x1f9f   :  { %6471 = vadd.xlane.f32.xlu1 %v6470_v26  ;;  %v6709_v26 = vld [vmem:[%s14567_s18 + $0x50] sm:$0xff] }
0x1fa0   :  { %6466 = vadd.xlane.f32.xlu0 %v6465_v25  ;;  %v6727_v25 = vld [vmem:[%s14567_s18 + $0xe0] sm:$0xff] }
0x202c   :  { %v6472_v51 = vpop.xlane.xlu1 %6471 }
0x202d   :  { %v6474_v42 = vmul.f32 0.0033333334, %v6472_v51  ;;  %v6467_v21 = vpop.xlane.xlu0 %6466  ;;  %v6728_v51 = vld [vmem:[%s14567_s18 + $0xe8] sm:$0xff] }
0x202e   :  { %v6473_v29 = vmul.f32 0.0033333334, %v6467_v21  ;;  %v9514_v21 = vpack.c.bf16 %v6728_v51, %v6727_v25 }
0x202f   :  { %v14364_v58 = vsub.f32 %v6456_v53, %v6474_v42  ;;  %v14366_v3 = vsub.f32 %v6457_v54, %v6474_v42  ;;  %v14368_v63 = vsub.f32 %v6458_v62, %v6474_v42  ;;  %v9502_v53 = vpack.c.bf16 %v6722_v50, %v6721_v23  ;;  %v6705_v54 = vld [vmem:[%s14567_s18 + $0x30] sm:$0xff]  ;;  %v6708_v62 = vld [vmem:[%s14567_s18 + $0x48] sm:$0xff] }
0x2030   :  { %v14370_v16 = vsub.f32 %v6453_v43, %v6473_v29  ;;  %v14372_v4 = vsub.f32 %v6454_v20, %v6473_v29  ;;  %v14374_v5 = vsub.f32 %v6455_v31, %v6473_v29  ;;  %v6723_v43 = vld [vmem:[%s14567_s18 + $0xc0] sm:$0xff]  ;;  %v6724_v20 = vld [vmem:[%s14567_s18 + $0xc8] sm:$0xff]  ;;  %v9504_v57 = vpack.c.bf16 %v6706_v19, %v6705_v54  ;;  %v6725_v31 = vld [vmem:[%s14567_s18 + $0xd0] sm:$0xff] }
0x2031   :  { %v6484_v56 = vmul.f32 %v14364_v58, %v14364_v58  ;;  %v6485_v27 = vmul.f32 %v14366_v3, %v14366_v3  ;;  %v6486_v48 = vmul.f32 %v14368_v63, %v14368_v63  ;;  %9503 = vmatprep.subr.bf16.mxu1 %v9502_v53  ;;  %v9506_v39 = vpack.c.bf16 %v6724_v20, %v6723_v43  ;;  %v6711_v29 = vld [vmem:[%s14567_s18 + $0x60] sm:$0xff] }
0x2032   :  { %v6481_v6 = vmul.f32 %v14370_v16, %v14370_v16  ;;  %v6482_v7 = vmul.f32 %v14372_v4, %v14372_v4  ;;  %v6483_v8 = vmul.f32 %v14374_v5, %v14374_v5  ;;  %9505 = vmatpush3.bf16.msra.mxu1 %v9504_v57  ;;  %v9508_v1 = vpack.c.bf16 %v6708_v62, %v6707_v24  ;;  %v6713_v57 = vld [vmem:[%s14567_s18 + $0x70] sm:$0xff] }
0x2033   :  { %v6492_v9 = vadd.f32 %v6485_v27, %v6484_v56  ;;  %v6493_v0 = vsel %vm160_vm3, %v6486_v48, 0.0  ;;  %9507 = vmatprep.subr.bf16.mxu1 %v9506_v39  ;;  %v9510_v33 = vpack.c.bf16 %v6726_v59, %v6725_v31  ;;  %v9512_v42 = vpack.c.bf16 %v6710_v2, %v6709_v26  ;;  %v6712_v56 = vld [vmem:[%s14567_s18 + $0x68] sm:$0xff]  ;;  %v6729_v27 = vld [vmem:[%s14567_s18 + $0xf0] sm:$0xff]  ;;  %v6730_v48 = vld [vmem:[%s14567_s18 + $0xf8] sm:$0xff] }
0x2034   :  { %v6487_v12 = vadd.f32 %v6482_v7, %v6481_v6  ;;  %v6488_v14 = vsel %vm160_vm3, %v6483_v8, 0.0  ;;  %v9516_v6 = vpack.c.bf16 %v6712_v56, %v6711_v29  ;;  %v9518_v7 = vpack.c.bf16 %v6730_v48, %v6729_v27  ;;  %v6714_v39 = vld [vmem:[%s14567_s18 + $0x78] sm:$0xff]  ;;  %v6733_v24 = vld [vmem:[%s14567_s18 + $0x110] sm:$0xff]  ;;  %v6735_v59 = vld [vmem:[%s14567_s18 + $0x120] sm:$0xff] }
0x2035   :  { %v6494_v17 = vadd.f32 %v6493_v0, %v6492_v9  ;;  %v6543_v23 = vrot.slane %v7942_v18, %v11833_v22  ;;  %v9520_v62 = vpack.c.bf16 %v6714_v39, %v6713_v57  ;;  %v6734_v31 = vld [vmem:[%s14567_s18 + $0x118] sm:$0xff]  ;;  %v7945_v29 = vld [vmem:[%s14568_s19] ss:$0 sm:$0xff] }
0x2036   :  { %v6489_v13 = vadd.f32 %v6488_v14, %v6487_v12  ;;  %9509 = vmatpush3.bf16.msra.mxu1 %v9508_v1  ;;  %v6736_v1 = vld [vmem:[%s14567_s18 + $0x128] sm:$0xf] }
0x2037   :  { %6495 = vadd.xlane.f32.xlu1 %v6494_v17  ;;  %9511 = vmatprep.subr.bf16.mxu1 %v9510_v33  ;;  %v9529_v33 = vpack.c.bf16 %v6736_v1, %v6735_v59 }
0x2038   :  { %6490 = vadd.xlane.f32.xlu0 %v6489_v13  ;;  %v7941_v13 = vld [vmem:[%s14561_s12 + $0x3] sm:$0x7] }
0x2039   :  { %v6517_v11 = vrot.slane %v7941_v13, %v10600_v46  ;;  %v6513_v61 = vrot.slane %v7941_v13, %v10606_v49  ;;  %v6521_v40 = vrot.slane %v7941_v13, %v11833_v22  ;;  %v6731_v22 = vld [vmem:[%s14567_s18 + $0x100] sm:$0xff] }
0x203a   :  { %9513 = vmatpush3.bf16.msra.mxu1 %v9512_v42 }
0x203b   :  { %9515 = vmatprep.subr.bf16.mxu1 %v9514_v21 }
0x203e   :  { %9517 = vmatpush3.bf16.msra.mxu1 %v9516_v6 }
0x203f   :  { %9519 = vmatprep.subr.bf16.mxu1 %v9518_v7 }
0x2042   :  { %9521 = vmatpush3.bf16.msra.mxu1 %v9520_v62 }
0x20c4   :  { %v6496_v8 = vpop.xlane.xlu1 %6495 }
0x20c5   :  { %v6498_v9 = vmul.f32 0.0033333334, %v6496_v8  ;;  %v6491_v0 = vpop.xlane.xlu0 %6490 }
0x20c6   :  { %v6497_v12 = vmul.f32 0.0033333334, %v6491_v0 }
0x20c7   :  { %v6500_v14 = vadd.f32 1e-05, %v6498_v9 }
0x20c8   :  { %v6499_v17 = vadd.f32 1e-05, %v6497_v12 }
0x20c9   :  { %9685 = vrsqrt.f32 %v6500_v14 }
0x20ca   :  { %9687 = vrsqrt.f32 %v6499_v17 }
0x20d3   :  { %v9686_v10 = vpop.eup %9685 }
0x20d4   :  { %v9688_v44 = vpop.eup %9687  ;;  %v6507_v45 = vmul.f32 %v9686_v10, %v14366_v3  ;;  %v6506_v38 = vmul.f32 %v9686_v10, %v14364_v58  ;;  %v6508_v35 = vmul.f32 %v9686_v10, %v14368_v63 }
0x20d5   :  { %v6504_v36 = vmul.f32 %v9688_v44, %v14372_v4  ;;  %v6503_v41 = vmul.f32 %v9688_v44, %v14370_v16  ;;  %v6505_v37 = vmul.f32 %v9688_v44, %v14374_v5  ;;  %v6553_v16 = vld [vmem:[%s14585_s28] sm:$0x3]  ;;  %v6732_v5 = vld [vmem:[%s14567_s18 + $0x108] sm:$0xff]  ;;  %s9729_s18 = smov [#allocation3]  }
0x20d6   :  { %v6529_v15 = vmul.f32 %v6517_v11, %v6507_v45  ;;  %v6528_v60 = vmul.f32 %v6513_v61, %v6506_v38  ;;  %v6530_v58 = vmul.f32 %v6521_v40, %v6508_v35  ;;  %v9523_v20 = vpack.c.bf16 %v6732_v5, %v6731_v22  ;;  %s6898_s5 = sshll.u32 %s9729_s18, 4  ;;  %s6899_s5 = int_to_ptr.vmem [resolvable:$true] %s6898_s5 }
0x20d7   :  { %v6526_v46 = vmul.f32 %v6517_v11, %v6504_v36  ;;  %v6525_v30 = vmul.f32 %v6513_v61, %v6503_v41  ;;  %v6527_v52 = vmul.f32 %v6521_v40, %v6505_v37  ;;  %s9701_s24 = scalar_lea.vmem %s6899_s5, 32  ;;  %p9706_p1 = scmp.lt.s32.totalorder %s6899_s5, %s6899_s5 }
0x20d8   :  { %v6551_v50 = vadd.f32 %v6539_v28, %v6529_v15  ;;  %v6550_v3 = vadd.f32 %v6535_v34, %v6528_v60  ;;  %v6552_v4 = vadd.f32 %v6543_v23, %v6530_v58  ;;  %p9702_p0 = scmp.ne.s32.totalorder %s6899_s5, %s9701_s24  ;;  %p9707_p2 = scmp.lt.s32.totalorder %s9701_s24, %s9701_s24 }
0x20d9   :  { %v6548_v53 = vadd.f32 %v6539_v28, %v6526_v46  ;;  %v6547_v49 = vadd.f32 %v6535_v34, %v6525_v30  ;;  %v6549_v19 = vadd.f32 %v6543_v23, %v6527_v52 }
0x20da   :  { %p9708_p3 = por %p9707_p2, %p9706_p1 }
0x20db   :  { %v9483_v54 = vpack.c.bf16 %v6551_v50, %v6548_v53  ;;  %v9485_v63 = vpack.c.bf16 %v6550_v3, %v6547_v49  ;;  %v9488_v43 = vpack.c.bf16 %v6552_v4, %v6549_v19 }
0x20dc   :  { %p9709_p4 = pnand %p9708_p3, %p9702_p0 }
0x20dd   :  { %9484 = vmatprep.subr.bf16.mxu0 %v9483_v54 }
0x20de   :  { %9486 = vmatpush1.bf16.msra.mxu0 %v9485_v63 }
0x20df   :  { %9487 = vmatprep.subr.bf16.mxu0 %v9727_v55 }
0x20e1   :  { %7943 = vmatmul.mubr.msk.f32.vlgmr.msra.gmra.mrb[66].mxu0 %vm6554_vm8, %v6553_v16 }
0x20e2   :  { %9489 = vmatpush3.bf16.msra.mxu0 %v9488_v43  ;;  %8153 = vmatprep.mubr.msk.f32.mxu0 %vm9728_vm9, %v9726_v47 }
0x20e3   :  { %9522 = vmatprep.subr.bf16.mxu0 %v9727_v55 }
0x20e5   :  { %8154 = vmatmul.mubr.msk.f32.vlgmr.msra.gmra.mrb[68].mxu0 %vm6554_vm8, %v6553_v16 }
0x20e6   :  { %9524 = vmatpush3.bf16.msra.mxu0 %v9523_v20  ;;  %8168 = vmatprep.mubr.msk.f32.mxu0 %vm9728_vm9, %v9726_v47  ;;  %v9526_v47 = vpack.c.bf16 %v6734_v31, %v6733_v24 }
0x20e7   :  { %9525 = vmatprep.subr.bf16.mxu0 %v9727_v55 }
0x20ea   :  { %9527 = vmatpush3.bf16.msra.mxu0 %v9526_v47 }
0x20eb   :  { %9528 = vmatprep.subr.bf16.mxu0 %v9727_v55 }
0x20ee   :  { %9531 = vmatpush3.bf16.msk.msra.mxu0 %vm10304_vm2, %v9529_v33 }
0x21b4   :  { %v6624_v26 = vpop.f32.mrb[66].mxu0 }
0x21b5   :  { %v6626_v2 = vpop.f32.mrb[67].mxu0 }
0x21b6   :  { %6814 = vmatprep.mubr.f32.mxu1 %v6626_v2 }
0x21b7   :  { %6815 = vmatmul.mubr.f32.vlgmr.msra.gmra.mrb[62].mxu1 %v6624_v26 }
0x21b8   :  { %v6695_v25 = vpop.f32.mrb[68].mxu0 }
0x21b9   :  { %8169 = vmatmul.mubr.msk.f32.vlgmr.msra.gmra.mrb[70].mxu0 %vm160_vm3, %v6695_v25  ;;  %v8155_v51 = vpop.f32.mrb[69].mxu0 }
0x228a   :  { %v8087_v42 = vpop.f32.mrb[62].mxu1 }
0x228b   :  { %v8088_v21 = vpop.f32.mrb[63].mxu1 }
0x228c   :  { %v8089_v56 = vadd.f32 %v8088_v21, %v8087_v42  ;;  %v6886_v55 = vpop.f32.mrb[70].mxu0 }
0x228d   :  { %v8170_v27 = vpop.f32.mrb[71].mxu0 }
0x228e   :  { %v6817_v32 = vadd.f32 %v8089_v56, %v7945_v29 }
0x2290   :  { %v6887_v48 = vadd.f32 %v6886_v55, %v6817_v32 }
0x2292   :  { %6891 = vst.msk [vmem:[#allocation3] sm:$0x3] %vm6890_vm10, %v6887_v48 }
0x2293   :  { %9712 = shalt.err (!%p9709_p4)
}
0x2294   :  { %s9713_s19 = scalar_lea.hbm %s14569_s20, 32 }
0x2295   :  { %p9714_p5 = scmp.ne.s32.totalorder %s14569_s20, %s9713_s19  ;;  %p9717_p6 = scmp.lt.u32.totalorder %s9713_s19, %s14569_s20 }
0x2297   :  { %p9719_p7 = pnand %p9717_p6, %p9714_p5 }
0x2299   :  { %9722 = shalt.err (!%p9719_p7)
}
0x229a   :  { %6901 = dma.vmem_to_hbm [thread:$0]  %s6899_s5, 32, %s14569_s20, [#allocation4]  }
0x229b   :  { %9723 = dma.done.wait [#allocation4], 32  }
0x229c   :  { %9724 = vsyncadd [#allocation4], 4294967264 }
0x229d   :  { %6905 = vsyncpa [#allocation4], 1 }

</bundles_post_ra>
